<compile_context>
chip_gen: v7x
topology: tpu7x:2x2x1
jax: 0.10.0
libtpu: 0.0.40
codegen_flags: <defaults>
</compile_context>

<pallas_src>
import functools

import jax
import jax.numpy as jnp
from jax.experimental import pallas as pl
from jax.experimental.pallas import tpu as pltpu


# ----------------------------------------------------------------------------
# Weight preprocessing (plain JAX, traced once under jit).
# ----------------------------------------------------------------------------
def _temporal_toeplitz(w, T):
    """w: (KH, KW, KT, Cin, Cout) -> (KH*KW, T*Cin, T*Cout).

    out[tap, t_in*Cin + ci, t_out*Cout + co] =
        w[tap//KW, tap%KW, t_in - t_out + pad, ci, co]  if 0 <= t_in-t_out+pad < KT
        0                                               otherwise
    so that (x packed as (t, ci)) @ out[tap] performs a 'same'-zero-padded
    temporal convolution producing outputs packed as (t, co).
    """
    KH, KW, KT, Cin, Cout = w.shape
    pad = (KT - 1) // 2
    t_in = jnp.arange(T)[:, None]
    t_out = jnp.arange(T)[None, :]
    dt = t_in - t_out + pad                                   # (T, T)
    valid = ((dt >= 0) & (dt < KT)).astype(w.dtype)
    dt = jnp.clip(dt, 0, KT - 1)
    wk = w.reshape(KH * KW, KT, Cin, Cout)
    big = jnp.take(wk, dt, axis=1)                            # (taps, T, T, Cin, Cout)
    big = big * valid[None, :, :, None, None]
    big = jnp.transpose(big, (0, 1, 3, 2, 4))                 # (taps, T_in, Cin, T_out, Cout)
    return big.reshape(KH * KW, T * Cin, T * Cout)


def _pick_block_batch(B):
    """Largest BB <= 8 dividing B, preferring an even grid length (megacore)."""
    for bb in (8, 4, 2, 1):
        if B % bb == 0 and (B // bb) % 2 == 0:
            return bb
    for bb in (8, 4, 2, 1):
        if B % bb == 0:
            return bb
    return 1


# ----------------------------------------------------------------------------
# Fully fused kernel: BB batch elements per grid step, everything in VMEM.
# ----------------------------------------------------------------------------
def _fused_kernel(x_ref, w1_ref, b1_ref, w2_ref, b2_ref, wt_ref, bt_ref,
                  wc_ref, bc_ref, o_ref, p1pad_ref, *, BB, H, W, T, C1, C2):
    H1, W1 = H // 2, W // 2            # after pool1
    H2, W2 = H1 // 2, W1 // 2          # after pool2
    TC1, TC2 = T * C1, T * C2
    f32, bf16 = jnp.float32, jnp.bfloat16

    # ---- conv1: pre-im2col'd in the wrapper -> one big matmul ---------------
    # LHS (BB*H*W, K1) bf16, RHS (K1, TC1) bf16, f32 accumulation.
    K1 = x_ref.shape[-1]
    lhs1 = x_ref[...].reshape(BB * H * W, K1)
    acc1 = jnp.dot(lhs1, w1_ref[...], preferred_element_type=f32)
    acc1 = jnp.maximum(acc1 + b1_ref[...], 0.0)                 # bias + ReLU (f32)

    # ---- MaxPool3d(1,2,2): 2x2 max over (H, W); (t, c) lanes untouched ------
    a = acc1.reshape(BB * H * W1, 2, TC1)
    a = jnp.maximum(a[:, 0, :], a[:, 1, :])                     # pool W
    a = a.reshape(BB * H1, 2, W1, TC1)
    p1 = jnp.maximum(a[:, 0], a[:, 1])                          # pool H
    p1 = p1.reshape(BB, H1, W1, TC1)                            # (BB,H1,W1,TC1) f32

    # ---- zero-padded staging buffer for conv2 (persistent VMEM scratch) -----
    # Re-zeroed every step: an init-once-at-step-0 pattern would be unsafe
    # because the "parallel" grid may be split across TensorCores, each with
    # its own scratch copy.  The zero store is cheap and replaces the old
    # per-step concatenate-based padding.
    p1pad_ref[...] = jnp.zeros_like(p1pad_ref)
    p1pad_ref[:, 1:1 + H1, 1:1 + W1, :] = p1

    # ---- conv2: fold the 9 spatial taps into K -> one long-K matmul ---------
    taps = [p1pad_ref[:, dh:dh + H1, dw:dw + W1, :].astype(bf16)
            for dh in range(3) for dw in range(3)]
    lhs2 = jnp.concatenate(taps, axis=-1).reshape(BB * H1 * W1, 9 * TC1)
    acc2 = jnp.dot(lhs2, w2_ref[...], preferred_element_type=f32)
    acc2 = jnp.maximum(acc2 + b2_ref[...], 0.0)                 # bias + ReLU (f32)

    # ---- MaxPool3d(1,2,2) ----------------------------------------------------
    a2 = acc2.reshape(BB * H1 * W2, 2, TC2)
    a2 = jnp.maximum(a2[:, 0, :], a2[:, 1, :])                  # pool W
    a2 = a2.reshape(BB * H2, 2, W2, TC2)
    p2 = jnp.maximum(a2[:, 0], a2[:, 1])                        # (BB*H2, W2, TC2)

    # ---- head: the spatial mean commutes with the (linear, 1x1-spatial)
    #      temporal conv and the 1x1 classifier, so reduce over (H2,W2) first.
    m = jnp.mean(p2.reshape(BB, H2 * W2, TC2), axis=1)          # (BB, TC2) f32
    xt = jnp.dot(m, wt_ref[...], preferred_element_type=f32) + bt_ref[...]
    logits = jnp.dot(xt, wc_ref[...], preferred_element_type=f32) + bc_ref[...]
    probs = 1.0 / (1.0 + jnp.exp(-logits))                      # sigmoid, (BB, T)
    o_ref[...] = probs.reshape(1, BB, T).astype(o_ref.dtype)


# ----------------------------------------------------------------------------
# Wrapper: layout transform, im2col, Toeplitz weight folding, one pallas_call.
# ----------------------------------------------------------------------------
def threed_cnn_forward(x_ncdhw, params, *, block_batch=None):
    """x_ncdhw: [B, Cin, T, H, W]  ->  [B, T]  (same semantics as threeDCNN)."""
    B, Cin, T, H, W = x_ncdhw.shape
    C1 = params["b1"].shape[0]
    C2 = params["b2"].shape[0]
    assert H % 4 == 0 and W % 4 == 0, "two MaxPool3d(1,2,2) stages need H,W % 4 == 0"
    f32, bf16 = jnp.float32, jnp.bfloat16
    TCin, TC1, TC2 = T * Cin, T * C1, T * C2
    H1, W1 = H // 2, W // 2

    BB = block_batch if block_batch is not None else _pick_block_batch(B)
    assert B % BB == 0

    # ---- conv1 im2col done once in the wrapper (plain JAX, under jit) -------
    x = jnp.transpose(x_ncdhw, (0, 3, 4, 2, 1)).reshape(B, H, W, TCin).astype(f32)
    xp = jnp.pad(x, ((0, 0), (1, 1), (1, 1), (0, 0)))
    cols = [xp[:, dh:dh + H, dw:dw + W, :] for dh in range(3) for dw in range(3)]
    x_i2c = jnp.concatenate(cols, axis=-1).reshape(B, H * W, 9 * TCin)
    K1 = 9 * TCin
    K1p = max(128, -(-K1 // 128) * 128)        # lane-align the contraction dim
    x_i2c = jnp.pad(x_i2c, ((0, 0), (0, 0), (0, K1p - K1))).astype(bf16)

    # ---- fold temporal (KT=3, 'same') axis into block-Toeplitz weights ------
    w1t = _temporal_toeplitz(params["w1"].astype(f32), T)        # (9, TCin, TC1)
    w1k = jnp.pad(w1t.reshape(K1, TC1), ((0, K1p - K1), (0, 0))).astype(bf16)
    w2t = _temporal_toeplitz(params["w2"].astype(f32), T)        # (9, TC1, TC2)
    w2k = w2t.reshape(9 * TC1, TC2).astype(bf16)
    wtt = _temporal_toeplitz(params["wt"].astype(f32), T)[0]     # (TC2, TC2) f32
    b1p = jnp.tile(params["b1"].astype(f32), T).reshape(1, TC1)
    b2p = jnp.tile(params["b2"].astype(f32), T).reshape(1, TC2)
    btp = jnp.tile(params["bt"].astype(f32), T).reshape(1, TC2)
    wc = params["wc"].reshape(-1).astype(f32)                    # (C2,)
    wcb = (jnp.eye(T, dtype=f32)[:, None, :] * wc[None, :, None]).reshape(TC2, T)
    bcb = jnp.tile(params["bc"].astype(f32).reshape(1, 1), (1, T))

    w_pad_cols = -(-(W1 + 2) // 8) * 8         # sublane-align the padded width

    kernel = functools.partial(_fused_kernel, BB=BB, H=H, W=W, T=T, C1=C1, C2=C2)
    out = pl.pallas_call(
        kernel,
        out_shape=jax.ShapeDtypeStruct((B // BB, BB, T), jnp.float32),
        grid=(B // BB,),
        in_specs=[
            pl.BlockSpec((BB, H * W, K1p), lambda i: (i, 0, 0)),     # im2col'd input
            pl.BlockSpec((K1p, TC1), lambda i: (0, 0)),              # conv1 weight
            pl.BlockSpec((1, TC1), lambda i: (0, 0)),                # conv1 bias
            pl.BlockSpec((9 * TC1, TC2), lambda i: (0, 0)),          # conv2 weight (taps in K)
            pl.BlockSpec((1, TC2), lambda i: (0, 0)),                # conv2 bias
            pl.BlockSpec((TC2, TC2), lambda i: (0, 0)),              # temporal weight
            pl.BlockSpec((1, TC2), lambda i: (0, 0)),                # temporal bias
            pl.BlockSpec((TC2, T), lambda i: (0, 0)),                # classifier weight
            pl.BlockSpec((1, T), lambda i: (0, 0)),                  # classifier bias
        ],
        out_specs=pl.BlockSpec((1, BB, T), lambda i: (i, 0, 0)),
        scratch_shapes=[pltpu.VMEM((BB, H1 + 2, w_pad_cols, TC1), jnp.float32)],
        compiler_params=pltpu.CompilerParams(
            # batch blocks are independent -> use both TensorCores on v7x
            dimension_semantics=("parallel",),
            vmem_limit_bytes=32 * 1024 * 1024,
        ),
    )(x_i2c, w1k, b1p, w2k, b2p, wtt, btp, wcb, bcb)
    return out.reshape(B, T)                                     # [B, T]


# ----------------------------------------------------------------------------
# Pure-JAX reference (for correctness checking only).
# ----------------------------------------------------------------------------
def _conv3d_ref(x, w, b, padding):
    wr = jnp.transpose(w, (4, 3, 2, 0, 1))                       # (Cout, Cin, KT, KH, KW)
    y = jax.lax.conv_general_dilated(
        x, wr, window_strides=(1, 1, 1),
        padding=[(p, p) for p in padding],
        dimension_numbers=("NCDHW", "OIDHW", "NCDHW"),
        precision=jax.lax.Precision.HIGHEST)
    return y + b.reshape(1, -1, 1, 1, 1)


def _maxpool_hw_ref(x):
    B, C, T, H, W = x.shape
    return jnp.max(x.reshape(B, C, T, H // 2, 2, W // 2, 2), axis=(4, 6))


def threed_cnn_reference(x, params):
    y = jax.nn.relu(_conv3d_ref(x, params["w1"], params["b1"], (1, 1, 1)))
    y = _maxpool_hw_ref(y)
    y = jax.nn.relu(_conv3d_ref(y, params["w2"], params["b2"], (1, 1, 1)))
    y = _maxpool_hw_ref(y)
    y = _conv3d_ref(y, params["wt"], params["bt"], (1, 0, 0))
    m = jnp.mean(y, axis=(3, 4))                                 # (B, C2, T)
    logits = jnp.einsum("bct,c->bt", m, params["wc"].reshape(-1),
                        precision=jax.lax.Precision.HIGHEST)
    logits = logits + params["bc"].reshape(1, 1)
    return jax.nn.sigmoid(logits)


# ----------------------------------------------------------------------------
# Synthetic parameters (PyTorch-like uniform fan-in init), (KH,KW,KT,Cin,Cout).
# ----------------------------------------------------------------------------
def init_params(key):
    ks = jax.random.split(key, 8)

    def u(k, shape, fan_in):
        bound = 1.0 / jnp.sqrt(float(fan_in))
        return jax.random.uniform(k, shape, jnp.float32, -bound, bound)

    return {
        "w1": u(ks[0], (3, 3, 3, 1, 16), 1 * 27),
        "b1": u(ks[1], (16,), 1 * 27),
        "w2": u(ks[2], (3, 3, 3, 16, 32), 16 * 27),
        "b2": u(ks[3], (32,), 16 * 27),
        "wt": u(ks[4], (1, 1, 3, 32, 32), 32 * 3),
        "bt": u(ks[5], (32,), 32 * 3),
        "wc": u(ks[6], (1, 32), 32),
        "bc": u(ks[7], (1,), 32),
    }


if __name__ == "__main__":
    key = jax.random.PRNGKey(0)
    pkey, xkey = jax.random.split(key)
    params = init_params(pkey)

    # T*C1 = 128, T*C2 = 256 (lane dense); B=8 -> BB=4, grid=2 (both TCs on v7x)
    B, C, T, H, W = 8, 1, 8, 16, 16
    x = jax.random.normal(xkey, (B, C, T, H, W), jnp.float32)

    fwd = jax.jit(lambda inp: threed_cnn_forward(inp, params))
    y = jax.block_until_ready(fwd(x))

    assert y.shape == (B, T), y.shape
    assert bool(jnp.all(jnp.isfinite(y)))
    assert bool(jnp.all((y >= 0.0) & (y <= 1.0)))      # sigmoid output range

    y_ref = jax.jit(lambda inp: threed_cnn_reference(inp, params))(x)
    err = float(jnp.max(jnp.abs(y - y_ref)))
    assert err < 2e-2, err                             # bf16 MXU operands, f32 accum

    print("KERNEL_OK")
</pallas_src>

<mosaic_0001>
module attributes {stable_mosaic.version = 11 : i64} {
  func.func @_fused_kernel(%arg0: i32, %arg1: memref<4x256x128xbf16, #tpu.memory_space<vmem>>, %arg2: memref<128x128xbf16, #tpu.memory_space<vmem>>, %arg3: memref<1x128xf32, #tpu.memory_space<vmem>>, %arg4: memref<1152x256xbf16, #tpu.memory_space<vmem>>, %arg5: memref<1x256xf32, #tpu.memory_space<vmem>>, %arg6: memref<256x256xf32, #tpu.memory_space<vmem>>, %arg7: memref<1x256xf32, #tpu.memory_space<vmem>>, %arg8: memref<256x8xf32, #tpu.memory_space<vmem>>, %arg9: memref<1x8xf32, #tpu.memory_space<vmem>>, %arg10: memref<1x4x8xf32, #tpu.memory_space<vmem>>, %arg11: memref<4x10x16x128xf32, #tpu.memory_space<vmem>>) attributes {dimension_semantics = [#tpu.dimension_semantics<parallel>], iteration_bounds = array<i64: 2>, scalar_prefetch = 0 : i64, scratch_operands = 1 : i64, tpu.core_type = #tpu.core_type<tc>, window_params = [{transform_indices = @transform_0, window_bounds = array<i64: 4, 256, 128>}, {pipeline_mode = #tpu.pipeline_mode<synchronous>, transform_indices = @transform_1, window_bounds = array<i64: 128, 128>}, {pipeline_mode = #tpu.pipeline_mode<synchronous>, transform_indices = @transform_2, window_bounds = array<i64: 1, 128>}, {pipeline_mode = #tpu.pipeline_mode<synchronous>, transform_indices = @transform_3, window_bounds = array<i64: 1152, 256>}, {pipeline_mode = #tpu.pipeline_mode<synchronous>, transform_indices = @transform_4, window_bounds = array<i64: 1, 256>}, {pipeline_mode = #tpu.pipeline_mode<synchronous>, transform_indices = @transform_5, window_bounds = array<i64: 256, 256>}, {pipeline_mode = #tpu.pipeline_mode<synchronous>, transform_indices = @transform_6, window_bounds = array<i64: 1, 256>}, {pipeline_mode = #tpu.pipeline_mode<synchronous>, transform_indices = @transform_7, window_bounds = array<i64: 256, 8>}, {pipeline_mode = #tpu.pipeline_mode<synchronous>, transform_indices = @transform_8, window_bounds = array<i64: 1, 8>}, {transform_indices = @transform_9, window_bounds = array<i64: 1, 4, 8>}]} {
    %c0 = arith.constant 0 : index
    %c0_0 = arith.constant 0 : index
    %c0_1 = arith.constant 0 : index
    %0 = vector.load %arg1[%c0, %c0_0, %c0_1] : memref<4x256x128xbf16, #tpu.memory_space<vmem>>, vector<4x256x128xbf16>
    %1 = vector.shape_cast %0 : vector<4x256x128xbf16> to vector<1024x128xbf16>
    %c0_2 = arith.constant 0 : index
    %c0_3 = arith.constant 0 : index
    %2 = vector.load %arg2[%c0_2, %c0_3] : memref<128x128xbf16, #tpu.memory_space<vmem>>, vector<128x128xbf16>
    %cst = arith.constant dense<0.000000e+00> : vector<1024x128xf32>
    %3 = tpu.matmul %1, %2, %cst {dimension_numbers = #tpu.dot_dimension_numbers<[1], [0], [0], [1], [0, 0, 1, 1], [], []>} : vector<1024x128xbf16>, vector<128x128xbf16>, vector<1024x128xf32> -> vector<1024x128xf32>
    %c0_4 = arith.constant 0 : index
    %c0_5 = arith.constant 0 : index
    %4 = vector.load %arg3[%c0_4, %c0_5] : memref<1x128xf32, #tpu.memory_space<vmem>>, vector<1x128xf32>
    %5 = vector.broadcast %4 : vector<1x128xf32> to vector<1024x128xf32>
    %6 = arith.addf %3, %5 : vector<1024x128xf32>
    %cst_6 = arith.constant 0.000000e+00 : f32
    %7 = vector.broadcast %cst_6 : f32 to vector<1024x128xf32>
    %8 = arith.maximumf %6, %7 : vector<1024x128xf32>
    %9 = vector.shape_cast %8 : vector<1024x128xf32> to vector<512x2x128xf32>
    %10 = vector.extract_strided_slice %9 {offsets = [0, 0, 0], sizes = [512, 1, 128], strides = [1, 1, 1]} : vector<512x2x128xf32> to vector<512x1x128xf32>
    %11 = vector.shape_cast %10 : vector<512x1x128xf32> to vector<512x128xf32>
    %12 = vector.extract_strided_slice %9 {offsets = [0, 1, 0], sizes = [512, 1, 128], strides = [1, 1, 1]} : vector<512x2x128xf32> to vector<512x1x128xf32>
    %13 = vector.shape_cast %12 : vector<512x1x128xf32> to vector<512x128xf32>
    %14 = arith.maximumf %11, %13 : vector<512x128xf32>
    %15 = vector.shape_cast %14 : vector<512x128xf32> to vector<32x2x8x128xf32>
    %16 = vector.extract_strided_slice %15 {offsets = [0, 0, 0, 0], sizes = [32, 1, 8, 128], strides = [1, 1, 1, 1]} : vector<32x2x8x128xf32> to vector<32x1x8x128xf32>
    %17 = vector.shape_cast %16 : vector<32x1x8x128xf32> to vector<32x8x128xf32>
    %18 = vector.extract_strided_slice %15 {offsets = [0, 1, 0, 0], sizes = [32, 1, 8, 128], strides = [1, 1, 1, 1]} : vector<32x2x8x128xf32> to vector<32x1x8x128xf32>
    %19 = vector.shape_cast %18 : vector<32x1x8x128xf32> to vector<32x8x128xf32>
    %20 = arith.maximumf %17, %19 : vector<32x8x128xf32>
    %21 = vector.shape_cast %20 : vector<32x8x128xf32> to vector<4x8x8x128xf32>
    %cst_7 = arith.constant 0.000000e+00 : f32
    %22 = vector.broadcast %cst_7 : f32 to vector<4x10x16x128xf32>
    %c0_8 = arith.constant 0 : index
    %c0_9 = arith.constant 0 : index
    %c0_10 = arith.constant 0 : index
    %c0_11 = arith.constant 0 : index
    %23 = vector.load %arg11[%c0_8, %c0_9, %c0_10, %c0_11] : memref<4x10x16x128xf32, #tpu.memory_space<vmem>>, vector<4x10x16x128xf32>
    tpu.vector_store %arg11[%c0_8, %c0_9, %c0_10, %c0_11], %22 {strides = array<i32>} : memref<4x10x16x128xf32, #tpu.memory_space<vmem>>, vector<4x10x16x128xf32>,
    %c0_12 = arith.constant 0 : index
    %c1 = arith.constant 1 : index
    %c1_13 = arith.constant 1 : index
    %c0_14 = arith.constant 0 : index
    %24 = vector.load %arg11[%c0_12, %c1, %c1_13, %c0_14] : memref<4x10x16x128xf32, #tpu.memory_space<vmem>>, vector<4x8x8x128xf32>
    tpu.vector_store %arg11[%c0_12, %c1, %c1_13, %c0_14], %21 {strides = array<i32>} : memref<4x10x16x128xf32, #tpu.memory_space<vmem>>, vector<4x8x8x128xf32>,
    %c0_15 = arith.constant 0 : index
    %c0_16 = arith.constant 0 : index
    %c0_17 = arith.constant 0 : index
    %c0_18 = arith.constant 0 : index
    %25 = vector.load %arg11[%c0_15, %c0_16, %c0_17, %c0_18] : memref<4x10x16x128xf32, #tpu.memory_space<vmem>>, vector<4x8x8x128xf32>
    %26 = arith.truncf %25 : vector<4x8x8x128xf32> to vector<4x8x8x128xbf16>
    %c0_19 = arith.constant 0 : index
    %c0_20 = arith.constant 0 : index
    %c1_21 = arith.constant 1 : index
    %c0_22 = arith.constant 0 : index
    %27 = vector.load %arg11[%c0_19, %c0_20, %c1_21, %c0_22] : memref<4x10x16x128xf32, #tpu.memory_space<vmem>>, vector<4x8x8x128xf32>
    %28 = arith.truncf %27 : vector<4x8x8x128xf32> to vector<4x8x8x128xbf16>
    %c0_23 = arith.constant 0 : index
    %c0_24 = arith.constant 0 : index
    %c2 = arith.constant 2 : index
    %c0_25 = arith.constant 0 : index
    %29 = vector.load %arg11[%c0_23, %c0_24, %c2, %c0_25] : memref<4x10x16x128xf32, #tpu.memory_space<vmem>>, vector<4x8x8x128xf32>
    %30 = arith.truncf %29 : vector<4x8x8x128xf32> to vector<4x8x8x128xbf16>
    %c0_26 = arith.constant 0 : index
    %c1_27 = arith.constant 1 : index
    %c0_28 = arith.constant 0 : index
    %c0_29 = arith.constant 0 : index
    %31 = vector.load %arg11[%c0_26, %c1_27, %c0_28, %c0_29] : memref<4x10x16x128xf32, #tpu.memory_space<vmem>>, vector<4x8x8x128xf32>
    %32 = arith.truncf %31 : vector<4x8x8x128xf32> to vector<4x8x8x128xbf16>
    %c0_30 = arith.constant 0 : index
    %c1_31 = arith.constant 1 : index
    %c1_32 = arith.constant 1 : index
    %c0_33 = arith.constant 0 : index
    %33 = vector.load %arg11[%c0_30, %c1_31, %c1_32, %c0_33] : memref<4x10x16x128xf32, #tpu.memory_space<vmem>>, vector<4x8x8x128xf32>
    %34 = arith.truncf %33 : vector<4x8x8x128xf32> to vector<4x8x8x128xbf16>
    %c0_34 = arith.constant 0 : index
    %c1_35 = arith.constant 1 : index
    %c2_36 = arith.constant 2 : index
    %c0_37 = arith.constant 0 : index
    %35 = vector.load %arg11[%c0_34, %c1_35, %c2_36, %c0_37] : memref<4x10x16x128xf32, #tpu.memory_space<vmem>>, vector<4x8x8x128xf32>
    %36 = arith.truncf %35 : vector<4x8x8x128xf32> to vector<4x8x8x128xbf16>
    %c0_38 = arith.constant 0 : index
    %c2_39 = arith.constant 2 : index
    %c0_40 = arith.constant 0 : index
    %c0_41 = arith.constant 0 : index
    %37 = vector.load %arg11[%c0_38, %c2_39, %c0_40, %c0_41] : memref<4x10x16x128xf32, #tpu.memory_space<vmem>>, vector<4x8x8x128xf32>
    %38 = arith.truncf %37 : vector<4x8x8x128xf32> to vector<4x8x8x128xbf16>
    %c0_42 = arith.constant 0 : index
    %c2_43 = arith.constant 2 : index
    %c1_44 = arith.constant 1 : index
    %c0_45 = arith.constant 0 : index
    %39 = vector.load %arg11[%c0_42, %c2_43, %c1_44, %c0_45] : memref<4x10x16x128xf32, #tpu.memory_space<vmem>>, vector<4x8x8x128xf32>
    %40 = arith.truncf %39 : vector<4x8x8x128xf32> to vector<4x8x8x128xbf16>
    %c0_46 = arith.constant 0 : index
    %c2_47 = arith.constant 2 : index
    %c2_48 = arith.constant 2 : index
    %c0_49 = arith.constant 0 : index
    %41 = vector.load %arg11[%c0_46, %c2_47, %c2_48, %c0_49] : memref<4x10x16x128xf32, #tpu.memory_space<vmem>>, vector<4x8x8x128xf32>
    %42 = arith.truncf %41 : vector<4x8x8x128xf32> to vector<4x8x8x128xbf16>
    %43 = tpu.concatenate %26, %28, %30, %32, %34, %36, %38, %40, %42 in 3 : vector<4x8x8x128xbf16>, vector<4x8x8x128xbf16>, vector<4x8x8x128xbf16>, vector<4x8x8x128xbf16>, vector<4x8x8x128xbf16>, vector<4x8x8x128xbf16>, vector<4x8x8x128xbf16>, vector<4x8x8x128xbf16>, vector<4x8x8x128xbf16> -> vector<4x8x8x1152xbf16>
    %44 = vector.shape_cast %43 : vector<4x8x8x1152xbf16> to vector<256x1152xbf16>
    %c0_50 = arith.constant 0 : index
    %c0_51 = arith.constant 0 : index
    %45 = vector.load %arg4[%c0_50, %c0_51] : memref<1152x256xbf16, #tpu.memory_space<vmem>>, vector<1152x256xbf16>
    %cst_52 = arith.constant dense<0.000000e+00> : vector<256x256xf32>
    %46 = tpu.matmul %44, %45, %cst_52 {dimension_numbers = #tpu.dot_dimension_numbers<[1], [0], [0], [1], [0, 0, 1, 1], [], []>} : vector<256x1152xbf16>, vector<1152x256xbf16>, vector<256x256xf32> -> vector<256x256xf32>
    %c0_53 = arith.constant 0 : index
    %c0_54 = arith.constant 0 : index
    %47 = vector.load %arg5[%c0_53, %c0_54] : memref<1x256xf32, #tpu.memory_space<vmem>>, vector<1x256xf32>
    %48 = vector.broadcast %47 : vector<1x256xf32> to vector<256x256xf32>
    %49 = arith.addf %46, %48 : vector<256x256xf32>
    %cst_55 = arith.constant 0.000000e+00 : f32
    %50 = vector.broadcast %cst_55 : f32 to vector<256x256xf32>
    %51 = arith.maximumf %49, %50 : vector<256x256xf32>
    %52 = vector.shape_cast %51 : vector<256x256xf32> to vector<128x2x256xf32>
    %53 = vector.extract_strided_slice %52 {offsets = [0, 0, 0], sizes = [128, 1, 256], strides = [1, 1, 1]} : vector<128x2x256xf32> to vector<128x1x256xf32>
    %54 = vector.shape_cast %53 : vector<128x1x256xf32> to vector<128x256xf32>
    %55 = vector.extract_strided_slice %52 {offsets = [0, 1, 0], sizes = [128, 1, 256], strides = [1, 1, 1]} : vector<128x2x256xf32> to vector<128x1x256xf32>
    %56 = vector.shape_cast %55 : vector<128x1x256xf32> to vector<128x256xf32>
    %57 = arith.maximumf %54, %56 : vector<128x256xf32>
    %58 = vector.shape_cast %57 : vector<128x256xf32> to vector<16x2x4x256xf32>
    %59 = vector.extract_strided_slice %58 {offsets = [0, 0, 0, 0], sizes = [16, 1, 4, 256], strides = [1, 1, 1, 1]} : vector<16x2x4x256xf32> to vector<16x1x4x256xf32>
    %60 = vector.shape_cast %59 : vector<16x1x4x256xf32> to vector<16x4x256xf32>
    %61 = vector.extract_strided_slice %58 {offsets = [0, 1, 0, 0], sizes = [16, 1, 4, 256], strides = [1, 1, 1, 1]} : vector<16x2x4x256xf32> to vector<16x1x4x256xf32>
    %62 = vector.shape_cast %61 : vector<16x1x4x256xf32> to vector<16x4x256xf32>
    %63 = arith.maximumf %60, %62 : vector<16x4x256xf32>
    %64 = vector.shape_cast %63 : vector<16x4x256xf32> to vector<4x16x256xf32>
    %cst_56 = arith.constant dense<0.000000e+00> : vector<4x256xf32>
    %65 = vector.multi_reduction <add>, %64, %cst_56 [1] : vector<4x16x256xf32> to vector<4x256xf32>
    %cst_57 = arith.constant 1.600000e+01 : f32
    %66 = vector.broadcast %cst_57 : f32 to vector<4x256xf32>
    %67 = arith.divf %65, %66 : vector<4x256xf32>
    %c0_58 = arith.constant 0 : index
    %c0_59 = arith.constant 0 : index
    %68 = vector.load %arg6[%c0_58, %c0_59] : memref<256x256xf32, #tpu.memory_space<vmem>>, vector<256x256xf32>
    %cst_60 = arith.constant dense<0.000000e+00> : vector<4x256xf32>
    %69 = tpu.matmul %67, %68, %cst_60 {dimension_numbers = #tpu.dot_dimension_numbers<[1], [0], [0], [1], [0, 0, 1, 1], [], []>} : vector<4x256xf32>, vector<256x256xf32>, vector<4x256xf32> -> vector<4x256xf32>
    %c0_61 = arith.constant 0 : index
    %c0_62 = arith.constant 0 : index
    %70 = vector.load %arg7[%c0_61, %c0_62] : memref<1x256xf32, #tpu.memory_space<vmem>>, vector<1x256xf32>
    %71 = vector.broadcast %70 : vector<1x256xf32> to vector<4x256xf32>
    %72 = arith.addf %69, %71 : vector<4x256xf32>
    %c0_63 = arith.constant 0 : index
    %c0_64 = arith.constant 0 : index
    %73 = vector.load %arg8[%c0_63, %c0_64] : memref<256x8xf32, #tpu.memory_space<vmem>>, vector<256x8xf32>
    %cst_65 = arith.constant dense<0.000000e+00> : vector<4x8xf32>
    %74 = tpu.matmul %72, %73, %cst_65 {dimension_numbers = #tpu.dot_dimension_numbers<[1], [0], [0], [1], [0, 0, 1, 1], [], []>} : vector<4x256xf32>, vector<256x8xf32>, vector<4x8xf32> -> vector<4x8xf32>
    %c0_66 = arith.constant 0 : index
    %c0_67 = arith.constant 0 : index
    %75 = vector.load %arg9[%c0_66, %c0_67] : memref<1x8xf32, #tpu.memory_space<vmem>>, vector<1x8xf32>
    %76 = vector.broadcast %75 : vector<1x8xf32> to vector<4x8xf32>
    %77 = arith.addf %74, %76 : vector<4x8xf32>
    %cst_68 = arith.constant 0.000000e+00 : f32
    %78 = vector.broadcast %cst_68 : f32 to vector<4x8xf32>
    %79 = arith.subf %78, %77 : vector<4x8xf32>
    %80 = math.exp %79 : vector<4x8xf32>
    %cst_69 = arith.constant 1.000000e+00 : f32
    %81 = vector.broadcast %cst_69 : f32 to vector<4x8xf32>
    %82 = arith.addf %81, %80 : vector<4x8xf32>
    %cst_70 = arith.constant 1.000000e+00 : f32
    %83 = vector.broadcast %cst_70 : f32 to vector<4x8xf32>
    %84 = arith.divf %83, %82 : vector<4x8xf32>
    %85 = vector.shape_cast %84 : vector<4x8xf32> to vector<1x4x8xf32>
    %c0_71 = arith.constant 0 : index
    %c0_72 = arith.constant 0 : index
    %c0_73 = arith.constant 0 : index
    %86 = vector.load %arg10[%c0_71, %c0_72, %c0_73] : memref<1x4x8xf32, #tpu.memory_space<vmem>>, vector<1x4x8xf32>
    tpu.vector_store %arg10[%c0_71, %c0_72, %c0_73], %85 {strides = array<i32>} : memref<1x4x8xf32, #tpu.memory_space<vmem>>, vector<1x4x8xf32>,
    return
  }
  func.func @transform_0(%arg0: i32) -> (i32, i32, i32) {
    %c0_i32 = arith.constant 0 : i32
    %c0_i32_0 = arith.constant 0 : i32
    %c0_i32_1 = arith.constant 0 : i32
    return %arg0, %c0_i32, %c0_i32_0 : i32, i32, i32
  }
  func.func @transform_1(%arg0: i32) -> (i32, i32) {
    %c0_i32 = arith.constant 0 : i32
    %c0_i32_0 = arith.constant 0 : i32
    %c0_i32_1 = arith.constant 0 : i32
    return %c0_i32, %c0_i32_0 : i32, i32
  }
  func.func @transform_2(%arg0: i32) -> (i32, i32) {
    %c0_i32 = arith.constant 0 : i32
    %c0_i32_0 = arith.constant 0 : i32
    %c0_i32_1 = arith.constant 0 : i32
    return %c0_i32, %c0_i32_0 : i32, i32
  }
  func.func @transform_3(%arg0: i32) -> (i32, i32) {
    %c0_i32 = arith.constant 0 : i32
    %c0_i32_0 = arith.constant 0 : i32
    %c0_i32_1 = arith.constant 0 : i32
    return %c0_i32, %c0_i32_0 : i32, i32
  }
  func.func @transform_4(%arg0: i32) -> (i32, i32) {
    %c0_i32 = arith.constant 0 : i32
    %c0_i32_0 = arith.constant 0 : i32
    %c0_i32_1 = arith.constant 0 : i32
    return %c0_i32, %c0_i32_0 : i32, i32
  }
  func.func @transform_5(%arg0: i32) -> (i32, i32) {
    %c0_i32 = arith.constant 0 : i32
    %c0_i32_0 = arith.constant 0 : i32
    %c0_i32_1 = arith.constant 0 : i32
    return %c0_i32, %c0_i32_0 : i32, i32
  }
  func.func @transform_6(%arg0: i32) -> (i32, i32) {
    %c0_i32 = arith.constant 0 : i32
    %c0_i32_0 = arith.constant 0 : i32
    %c0_i32_1 = arith.constant 0 : i32
    return %c0_i32, %c0_i32_0 : i32, i32
  }
  func.func @transform_7(%arg0: i32) -> (i32, i32) {
    %c0_i32 = arith.constant 0 : i32
    %c0_i32_0 = arith.constant 0 : i32
    %c0_i32_1 = arith.constant 0 : i32
    return %c0_i32, %c0_i32_0 : i32, i32
  }
  func.func @transform_8(%arg0: i32) -> (i32, i32) {
    %c0_i32 = arith.constant 0 : i32
    %c0_i32_0 = arith.constant 0 : i32
    %c0_i32_1 = arith.constant 0 : i32
    return %c0_i32, %c0_i32_0 : i32, i32
  }
  func.func @transform_9(%arg0: i32) -> (i32, i32, i32) {
    %c0_i32 = arith.constant 0 : i32
    %c0_i32_0 = arith.constant 0 : i32
    %c0_i32_1 = arith.constant 0 : i32
    return %arg0, %c0_i32, %c0_i32_0 : i32, i32, i32
  }
}

</mosaic_0001>

<bundles_post_ra>
// kernel: tile.19
= control target key start
LH: loop header
LB: loop body
LE: loop exit
PB: predicated region body
PF: predicated region fallthrough
CT: control target
= control target key end

     0   :  { %s7_s6 = smov 3  ;;  %s14_s9 = smov 3  ;;  %vm4_vm0 = vcmask 261120   ;;  %vm11_vm1 = vcmask 1048320   ;;  %vm18_vm2 = vcmask 785920   ;;  %vm25_vm3 = vcmask 523520   ;;  %s76_s0 = inlined_call_operand.vmem [shape: f32[8,32], index: 0, kind: input, shape index: {}]   ;;  %s77_s1 = inlined_call_operand.vmem [shape: f32[1,256], index: 1, kind: output, shape index: {}]  }
   0x1   :  { %v38_v0 = vld [vmem:[%s76_s0 + $0x3] ss:$4 sm:%s7_s6]   ;;  %s45_s10 = smov 96   ;;  %s21_s11 = smov 3  ;;  %v39_v1 = vld [vmem:[%s76_s0 + $0x2] ss:$4 sm:%s14_s9]  }
   0x2   :  { %9 = vrot.lane.b32.xlu0 %v38_v0, %s45_s10  ;;  %v40_v2 = vld [vmem:[%s76_s0 + $0x1] ss:$4 sm:%s21_s11]   ;;  %s2_s16 = smov 3  ;;  %s46_s17 = smov 32  }
   0x3   :  { %23 = vrot.lane.b32.xlu1 %v40_v2, %s46_s17  ;;  %v3_v3 = vld [vmem:[%s76_s0] ss:$4 sm:%s2_s16]   ;;  %s47_s0 = smov 64  }
   0x4   :  { %5 = vst.msk [vmem:[#allocation0] ss:$8 sm:$0x3] %vm4_vm0, %v3_v3  }
   0x6   :  { %16 = vrot.lane.b32.xlu0 %v39_v1, %s47_s0 }
  0x74   :  { %v10_v4 = vpop.permute.xlu0 %9  }
  0x75   :  { %12 = vst.msk [vmem:[#allocation0] ss:$8 sm:$0x3] %vm11_vm1, %v10_v4   ;;  %v24_v5 = vpop.permute.xlu1 %23  }
  0x78   :  { %v17_v6 = vpop.permute.xlu0 %16  }
  0x79   :  { %19 = vst.msk [vmem:[#allocation0] ss:$8 sm:$0x3] %vm18_vm2, %v17_v6  }
  0x7a   :  { %26 = vst.msk [vmem:[#allocation0] ss:$8 sm:$0x3] %vm25_vm3, %v24_v5  }
  0x81   :  { %v30_v7 = vld [vmem:[#allocation0] sm:$0x1]  ;;  %v34_v8 = vld [vmem:[#allocation0 + $0x8] sm:$0x1] }
  0x82   :  { %32 = vst [vmem:[%s77_s1] sm:$0x1] %v30_v7  ;;  %41 = vst [vmem:[%s77_s1 + $0x1] sm:$0x1] %v34_v8 }

// kernel: tile.14
= control target key start
LH: loop header
LB: loop body
LE: loop exit
PB: predicated region body
PF: predicated region fallthrough
CT: control target
= control target key end

     0   :  { %s22_s0 = inlined_call_operand.vmem [shape: f32[16], index: 0, kind: input, shape index: {}]   ;;  %s23_s1 = inlined_call_operand.vmem [shape: f32[8,16], index: 1, kind: output, shape index: {}]  }
   0x1   :  { %v4_v0 = vld [vmem:[%s22_s0] ss:$0 sm:$0xff] }
   0x2   :  { %5 = vst [vmem:[%s23_s1] sm:$0xff] %v4_v0 }

// kernel: tile.15
= control target key start
LH: loop header
LB: loop body
LE: loop exit
PB: predicated region body
PF: predicated region fallthrough
CT: control target
= control target key end

     0   :  { %s67_s10 = smov 112   ;;  %s68_s11 = smov 80   ;;  %vm3_vm0 = vcmask 130048   ;;  %vm9_vm1 = vcmask 1048448   ;;  %vm15_vm2 = vcmask 917248   ;;  %vm21_vm3 = vcmask 786048   ;;  %s111_s0 = inlined_call_operand.vmem [shape: f32[8,16], index: 0, kind: input, shape index: {}]   ;;  %s112_s1 = inlined_call_operand.vmem [shape: f32[1,128], index: 1, kind: output, shape index: {}]  }
   0x1   :  { %v53_v0 = vld [vmem:[%s111_s0 + $0x7] sm:$0x1]   ;;  %v55_v1 = vld [vmem:[%s111_s0 + $0x5] sm:$0x1]   ;;  %v54_v2 = vld [vmem:[%s111_s0 + $0x6] sm:$0x1]  }
   0x2   :  { %7 = vrot.lane.b32.xlu0 %v53_v0, %s67_s10  ;;  %19 = vrot.lane.b32.xlu1 %v55_v1, %s68_s11  ;;  %v56_v3 = vld [vmem:[%s111_s0 + $0x4] sm:$0x1]   ;;  %v2_v4 = vld [vmem:[%s111_s0] sm:$0x1]   ;;  %s69_s18 = smov 96   ;;  %s70_s19 = smov 64  }
   0x3   :  { %4 = vst.msk [vmem:[#allocation0] sm:$0x1] %vm3_vm0, %v2_v4   ;;  %v57_v5 = vld [vmem:[%s111_s0 + $0x3] sm:$0x1]   ;;  %v58_v6 = vld [vmem:[%s111_s0 + $0x2] sm:$0x1]  }
   0x4   :  { %s71_s24 = smov 48   ;;  %s72_s25 = smov 32   ;;  %v59_v7 = vld [vmem:[%s111_s0 + $0x1] sm:$0x1]   ;;  %vm27_vm4 = vcmask 654848   ;;  %vm33_vm5 = vcmask 523648  }
   0x5   :  { %s73_s0 = smov 16   ;;  %vm39_vm6 = vcmask 392448   ;;  %vm45_vm7 = vcmask 261248  }
   0x6   :  { %13 = vrot.lane.b32.xlu0 %v54_v2, %s69_s18  ;;  %25 = vrot.lane.b32.xlu1 %v56_v3, %s70_s19 }
   0xa   :  { %31 = vrot.lane.b32.xlu0 %v57_v5, %s71_s24  ;;  %37 = vrot.lane.b32.xlu1 %v58_v6, %s72_s25 }
   0xe   :  { %43 = vrot.lane.b32.xlu0 %v59_v7, %s73_s0 }
  0x74   :  { %v8_v8 = vpop.permute.xlu0 %7   ;;  %v20_v9 = vpop.permute.xlu1 %19  }
  0x75   :  { %10 = vst.msk [vmem:[#allocation0] sm:$0x1] %vm9_vm1, %v8_v8  }
  0x78   :  { %v14_v10 = vpop.permute.xlu0 %13   ;;  %v26_v11 = vpop.permute.xlu1 %25  }
  0x79   :  { %16 = vst.msk [vmem:[#allocation0] sm:$0x1] %vm15_vm2, %v14_v10  }
  0x7a   :  { %22 = vst.msk [vmem:[#allocation0] sm:$0x1] %vm21_vm3, %v20_v9  }
  0x7b   :  { %28 = vst.msk [vmem:[#allocation0] sm:$0x1] %vm27_vm4, %v26_v11  }
  0x7c   :  { %v32_v12 = vpop.permute.xlu0 %31   ;;  %v38_v13 = vpop.permute.xlu1 %37  }
  0x7d   :  { %34 = vst.msk [vmem:[#allocation0] sm:$0x1] %vm33_vm5, %v32_v12  }
  0x7e   :  { %40 = vst.msk [vmem:[#allocation0] sm:$0x1] %vm39_vm6, %v38_v13  }
  0x80   :  { %v44_v14 = vpop.permute.xlu0 %43  }
  0x81   :  { %46 = vst.msk [vmem:[#allocation0] sm:$0x1] %vm45_vm7, %v44_v14  }
  0x88   :  { %v50_v15 = vld [vmem:[#allocation0] sm:$0x1] }
  0x89   :  { %52 = vst [vmem:[%s112_s1] sm:$0x1] %v50_v15 }

// kernel: _lambda_.1
= control target key start
LH: loop header
LB: loop body
LE: loop exit
PB: predicated region body
PF: predicated region fallthrough
CT: control target
= control target key end

     0   :  { %14 = vsyncpa [#allocation4], 0  ;;  %s20446_s0 = inlined_call_operand.vmem [shape: bf16[8,256,128], index: 0, kind: input, shape index: {}]   ;;  %s20447_s1 = inlined_call_operand.vmem [shape: bf16[128,128], index: 1, kind: input, shape index: {}]   ;;  %s20448_s2 = inlined_call_operand.vmem [shape: f32[1,128], index: 2, kind: input, shape index: {}]   ;;  %s20449_s3 = inlined_call_operand.vmem [shape: bf16[1152,256], index: 3, kind: input, shape index: {}]   ;;  %s20450_s4 = inlined_call_operand.vmem [shape: f32[1,256], index: 4, kind: input, shape index: {}]   ;;  %s20451_s5 = inlined_call_operand.vmem [shape: f32[256,256], index: 5, kind: input, shape index: {}]   ;;  %s20452_s6 = inlined_call_operand.vmem [shape: f32[1,256], index: 6, kind: input, shape index: {}]   ;;  %s20453_s7 = inlined_call_operand.vmem [shape: f32[256,8], index: 7, kind: input, shape index: {}]   ;;  %s20454_s8 = inlined_call_operand.vmem [shape: f32[1,8], index: 8, kind: input, shape index: {}]   ;;  %s20455_s9 = inlined_call_operand.hbm [shape: f32[2,4,8], index: 9, kind: output, shape index: {}]  }
   0x1   :  { %16 = vsyncpa [#allocation4 + $0x1], 0  ;;  %s16507_s30 = smov 0   ;;  %s16509_s10 = smov 0  }
   0x2   :  { %s16511_s11 = smov 0   ;;  %s16513_s12 = smov 0  }
   0x3 LB: > { %s16528_s13 = sadd.s32 4294967295, %s16451_s12   ;;  %s14187_s14 = sadd.s32 4294967294, %s16451_s12   ;;  %s16451_s12 = sphi %s16513_s12, %s20638_s12   ;;  %s16447_s11 = sphi %s16511_s11, %s20637_s11   ;;  %s16443_s10 = sphi %s16509_s10, %s20636_s10   ;;  %s16439_s30 = sphi %s16507_s30, %s20635_s30  }
   0x4   : > { %s16532_s15 = sadd.s32 1, %s16451_s12   ;;  %s223_s16 = sadd.s32 1, %s16447_s11 }
   0x5   : > { %s220_s17 = ssub.s32 %s16451_s12, %s16532_s15  ;;  %p233_p0 = scmp.ne.s32.totalorder %s16447_s11, %s16443_s10 }
   0x6   : > { %p221_p1 = scmp.eq.s32.totalorder %s220_s17, 0  ;;  %p234_p2 = scmp.eq.s32.totalorder %s16528_s13, 1 }
   0x7   : > { %p239_p3 = scmp.ne.s32.totalorder %s16443_s10, %s16439_s30  ;;  %p240_p4 = scmp.eq.s32.totalorder %s14187_s14, 1 }
   0x8   : > { %s16543_s18 = scalar_select %p221_p1, %s16447_s11, %s223_s16  }
   0x9   : > { %p16545_p5 = por %p234_p2, %p233_p0  ;;  %p16549_p6 = por %p240_p4, %p239_p3 }
   0xa   : > { %p14190_p7 = scmp.ge.s32.totalorder %s16451_s12, 1  ;;  %p292_p8 = scmp.lt.s32.totalorder %s16451_s12, 3 }
   0xc   : > { %p293_p9 = pnand %p14190_p7, %p292_p8 }
   0xe   : > { %296 = sbr.rel (%p293_p9) target bundleno = 2172 (0x87c), region = 56 }
  0x15   : > { %v16087_v0 = vld [vmem:[%s20447_s1] sm:$0xff]   ;;  %s14192_s23 = sshll.u32 %s16528_s13, 2  ;;  %v16088_v1 = vld [vmem:[%s20447_s1 + $0x8] sm:$0xff]   ;;  %v16089_v2 = vld [vmem:[%s20447_s1 + $0x10] sm:$0xff]   ;;  %v16453_v55 = vmov 0.0   ;;  %vm8073_vm0 = vcmask 1041409  }
  0x16   : > { %p330_p10 = scmp.lt.s32.totalorder %s14192_s23, 7  ;;  %15453 = vmatprep.subr.bf16.mxu0 %v16087_v0  ;;  %v16090_v3 = vld [vmem:[%s20447_s1 + $0x18] sm:$0xff]   ;;  %v16091_v5 = vld [vmem:[%s20447_s1 + $0x20] sm:$0xff]   ;;  %v16092_v6 = vld [vmem:[%s20447_s1 + $0x28] sm:$0xff]   ;;  %6715 = vst [vmem:[#allocation2 + $0x10] sm:$0xff] %v16453_v55  ;;  %vm8075_vm1 = vcmask 1042434  }
  0x17   : > { %15454 = vmatpush3.bf16.msra.mxu0 %v16087_v0  ;;  %v16093_v7 = vld [vmem:[%s20447_s1 + $0x30] sm:$0xff]   ;;  %v16094_v8 = vld [vmem:[%s20447_s1 + $0x38] sm:$0xff]   ;;  %v16147_v27 = vld [vmem:[%s20449_s3 + $0x4] ss:$8 sps:$4 sm:$0xff]   ;;  %6716 = vst [vmem:[#allocation2 + $0x18] sm:$0xff] %v16453_v55  ;;  %vm8077_vm2 = vcmask 1043459  }
  0x18   : > { %s20640_s23 = smov (!%p330_p10, %s14192_s23), 7  ;;  %15455 = vmatprep.subr.bf16.mxu0 %v16088_v1  ;;  %v16145_v28 = vld [vmem:[%s20449_s3] ss:$8 sps:$4 sm:$0xff]   ;;  %v16150_v29 = vld [vmem:[%s20449_s3 + $0x14] ss:$8 sps:$4 sm:$0xff]   ;;  %6713 = vst [vmem:[#allocation2] sm:$0xff] %v16453_v55 }
  0x19   : > { %s15201_s28 = sshll.u32 %s20640_s23, 7  ;;  %v16148_v30 = vld [vmem:[%s20449_s3 + $0x10] ss:$8 sps:$4 sm:$0xff]   ;;  %v16155_v33 = vld [vmem:[%s20449_s3 + $0x24] ss:$8 sps:$4 sm:$0xff]   ;;  %6714 = vst [vmem:[#allocation2 + $0x8] sm:$0xff] %v16453_v55 }
  0x1a   : > { %s16568_s16 = scalar_lea.vmem %s20446_s0, %s15201_s28  ;;  %v16153_v34 = vld [vmem:[%s20449_s3 + $0x20] ss:$8 sps:$4 sm:$0xff]   ;;  %v16158_v35 = vld [vmem:[%s20449_s3 + $0x34] ss:$8 sps:$4 sm:$0xff]   ;;  %v16156_v36 = vld [vmem:[%s20449_s3 + $0x30] ss:$8 sps:$4 sm:$0xff]  }
  0x1b   : > { %15456 = vmatpush3.bf16.msra.mxu0 %v16088_v1  ;;  %v16095_v4 = vld [vmem:[%s16568_s16] sm:$0xff]   ;;  %v16096_v9 = vld [vmem:[%s16568_s16 + $0x8] sm:$0xff]   ;;  %v16097_v10 = vld [vmem:[%s16568_s16 + $0x10] sm:$0xff]   ;;  %6717 = vst [vmem:[#allocation2 + $0x20] sm:$0xff] %v16453_v55  ;;  %vm8079_vm3 = vcmask 1044484   ;;  %vm8081_vm4 = vcmask 1045509  }
  0x1c   : > { %15457 = vmatprep.subr.bf16.mxu0 %v16089_v2  ;;  %15469 = vmatprep.mubr.bf16.mxu0 %v16095_v4  ;;  %v16098_v11 = vld [vmem:[%s16568_s16 + $0x18] sm:$0xff]   ;;  %v16099_v12 = vld [vmem:[%s16568_s16 + $0x20] sm:$0xff]   ;;  %v16100_v13 = vld [vmem:[%s16568_s16 + $0x28] sm:$0xff]   ;;  %6718 = vst [vmem:[#allocation2 + $0x28] sm:$0xff] %v16453_v55  ;;  %vm8083_vm5 = vcmask 1046534   ;;  %vm8085_vm6 = vcmask 1047559  }
  0x1d   : > { %v16101_v14 = vld [vmem:[%s16568_s16 + $0x30] sm:$0xff]   ;;  %v16102_v15 = vld [vmem:[%s16568_s16 + $0x38] sm:$0xff]   ;;  %v16103_v16 = vld [vmem:[%s16568_s16 + $0x40] sm:$0xff]   ;;  %6719 = vst [vmem:[#allocation2 + $0x30] sm:$0xff] %v16453_v55  ;;  %s15198_s17 = sshll.u32 %s16528_s13, 6  ;;  %vm14112_vm7 = vcmask 60416  }
  0x1e   : > { %v16104_v17 = vld [vmem:[%s16568_s16 + $0x48] sm:$0xff]   ;;  %v16105_v18 = vld [vmem:[%s16568_s16 + $0x50] sm:$0xff]   ;;  %v16106_v19 = vld [vmem:[%s16568_s16 + $0x58] sm:$0xff]   ;;  %6720 = vst [vmem:[#allocation2 + $0x38] sm:$0xff] %v16453_v55  ;;  %s20404_s25 = scalar_lea.hbm %s20455_s9, %s15198_s17  ;;  %s16456_s13 = smov [#allocation3]  }
  0x1f   : > { %15458 = vmatpush3.bf16.msra.mxu0 %v16089_v2  ;;  %v16107_v20 = vld [vmem:[%s16568_s16 + $0x60] sm:$0xff]   ;;  %v16108_v21 = vld [vmem:[%s16568_s16 + $0x68] sm:$0xff]   ;;  %v16109_v22 = vld [vmem:[%s16568_s16 + $0x70] sm:$0xff]   ;;  %6721 = vst [vmem:[#allocation2 + $0x40] sm:$0xff] %v16453_v55  ;;  %s16393_s28 = sshll.u32 %s16456_s13, 4  ;;  %s16394_s28 = int_to_ptr.vmem [resolvable:$false] %s16393_s28 }
  0x20   : > { %15459 = vmatprep.subr.bf16.mxu0 %v16090_v3  ;;  %v16110_v23 = vld [vmem:[%s16568_s16 + $0x78] sm:$0xff]   ;;  %v16111_v24 = vld [vmem:[%s16568_s16 + $0x80] sm:$0xff]   ;;  %v16112_v25 = vld [vmem:[%s16568_s16 + $0x88] sm:$0xff]   ;;  %6722 = vst [vmem:[#allocation2 + $0x48] sm:$0xff] %v16453_v55  ;;  %s16395_s29 = scalar_lea.vmem %s16394_s28, 128 }
  0x21   : > { %v16113_v26 = vld [vmem:[%s16568_s16 + $0x90] sm:$0xff]   ;;  %v16114_v31 = vld [vmem:[%s16568_s16 + $0x98] sm:$0xff]   ;;  %v16115_v32 = vld [vmem:[%s16568_s16 + $0xa0] sm:$0xff]   ;;  %6723 = vst [vmem:[#allocation2 + $0x50] sm:$0xff] %v16453_v55 }
  0x22   : > { %v16116_v37 = vld [vmem:[%s16568_s16 + $0xa8] sm:$0xff]   ;;  %v16117_v38 = vld [vmem:[%s16568_s16 + $0xb0] sm:$0xff]   ;;  %v16118_v41 = vld [vmem:[%s16568_s16 + $0xb8] sm:$0xff]   ;;  %6724 = vst [vmem:[#allocation2 + $0x58] sm:$0xff] %v16453_v55 }
  0x23   : > { %15460 = vmatpush3.bf16.msra.mxu0 %v16090_v3  ;;  %v16163_v39 = vld [vmem:[%s20449_s3 + $0x44] ss:$8 sps:$4 sm:$0xff]   ;;  %v16161_v40 = vld [vmem:[%s20449_s3 + $0x40] ss:$8 sps:$4 sm:$0xff]   ;;  %v16166_v42 = vld [vmem:[%s20449_s3 + $0x54] ss:$8 sps:$4 sm:$0xff]  }
  0x24   : > { %15461 = vmatprep.subr.bf16.mxu0 %v16091_v5  ;;  %v16119_v43 = vld [vmem:[%s16568_s16 + $0xc0] sm:$0xff]   ;;  %v16164_v44 = vld [vmem:[%s20449_s3 + $0x50] ss:$8 sps:$4 sm:$0xff]   ;;  %v16120_v45 = vld [vmem:[%s16568_s16 + $0xc8] sm:$0xff]   ;;  %6725 = vst [vmem:[#allocation2 + $0x60] sm:$0xff] %v16453_v55 }
  0x25   : > { %v16121_v46 = vld [vmem:[%s16568_s16 + $0xd0] sm:$0xff]   ;;  %v16171_v47 = vld [vmem:[%s20449_s3 + $0x64] ss:$8 sps:$4 sm:$0xff]   ;;  %v16169_v48 = vld [vmem:[%s20449_s3 + $0x60] ss:$8 sps:$4 sm:$0xff]   ;;  %6726 = vst [vmem:[#allocation2 + $0x68] sm:$0xff] %v16453_v55 }
  0x26   : > { %v16122_v49 = vld [vmem:[%s16568_s16 + $0xd8] sm:$0xff]   ;;  %v16123_v50 = vld [vmem:[%s16568_s16 + $0xe0] sm:$0xff]   ;;  %v16663_v53 = vld [vmem:[%s16568_s16 + $0xe8] sm:$0xff]   ;;  %6727 = vst [vmem:[#allocation2 + $0x70] sm:$0xff] %v16453_v55 }
  0x27   : > { %15462 = vmatpush3.bf16.msra.mxu0 %v16091_v5  ;;  %v16174_v51 = vld [vmem:[%s20449_s3 + $0x74] ss:$8 sps:$4 sm:$0xff]   ;;  %v16172_v52 = vld [vmem:[%s20449_s3 + $0x70] ss:$8 sps:$4 sm:$0xff]   ;;  %6728 = vst [vmem:[#allocation2 + $0x78] sm:$0xff] %v16453_v55  ;;  %6729 = vst [vmem:[#allocation2 + $0x80] sm:$0xff] %v16453_v55 }
  0x28   : > { %15463 = vmatprep.subr.bf16.mxu0 %v16092_v6  ;;  %v16666_v54 = vld [vmem:[%s16568_s16 + $0xf0] sm:$0xff]   ;;  %6730 = vst [vmem:[#allocation2 + $0x88] sm:$0xff] %v16453_v55  ;;  %6731 = vst [vmem:[#allocation2 + $0x90] sm:$0xff] %v16453_v55  ;;  %v16126_v56 = vld [vmem:[%s16568_s16 + $0xf8] sm:$0xff]  }
  0x29   : > { %6732 = vst [vmem:[#allocation2 + $0x98] sm:$0xff] %v16453_v55  ;;  %6733 = vst [vmem:[#allocation2 + $0xa0] sm:$0xff] %v16453_v55  ;;  %v16179_v57 = vld [vmem:[%s20449_s3 + $0x84] ss:$8 sps:$4 sm:$0xff]   ;;  %v16177_v59 = vld [vmem:[%s20449_s3 + $0x80] ss:$8 sps:$4 sm:$0xff]  }
  0x2a   : > { %6734 = vst [vmem:[#allocation2 + $0xa8] sm:$0xff] %v16453_v55  ;;  %6735 = vst [vmem:[#allocation2 + $0xb0] sm:$0xff] %v16453_v55  ;;  %v16127_v58 = vld [vmem:[%s16568_s16 + $0x100] sm:$0xff]   ;;  %v16128_v60 = vld [vmem:[%s16568_s16 + $0x108] sm:$0xff]  }
  0x2b   : > { %15464 = vmatpush3.bf16.msra.mxu0 %v16092_v6  ;;  %6736 = vst [vmem:[#allocation2 + $0xb8] sm:$0xff] %v16453_v55  ;;  %6737 = vst [vmem:[#allocation2 + $0xc0] sm:$0xff] %v16453_v55  ;;  %v16129_v61 = vld [vmem:[%s16568_s16 + $0x110] sm:$0xff]   ;;  %v16130_v0 = vld [vmem:[%s16568_s16 + $0x118] sm:$0xff]  }
  0x2c   : > { %15465 = vmatprep.subr.bf16.mxu0 %v16093_v7  ;;  %6738 = vst [vmem:[#allocation2 + $0xc8] sm:$0xff] %v16453_v55  ;;  %6739 = vst [vmem:[#allocation2 + $0xd0] sm:$0xff] %v16453_v55  ;;  %v16182_v62 = vld [vmem:[%s20449_s3 + $0x94] ss:$8 sps:$4 sm:$0xff]   ;;  %v16180_v63 = vld [vmem:[%s20449_s3 + $0x90] ss:$8 sps:$4 sm:$0xff]  }
  0x2d   : > { %6740 = vst [vmem:[#allocation2 + $0xd8] sm:$0xff] %v16453_v55  ;;  %6741 = vst [vmem:[#allocation2 + $0xe0] sm:$0xff] %v16453_v55  ;;  %v16131_v1 = vld [vmem:[%s16568_s16 + $0x120] sm:$0xff]   ;;  %v16132_v4 = vld [vmem:[%s16568_s16 + $0x128] sm:$0xff]  }
  0x2e   : > { %6742 = vst [vmem:[#allocation2 + $0xe8] sm:$0xff] %v16453_v55  ;;  %6743 = vst [vmem:[#allocation2 + $0xf0] sm:$0xff] %v16453_v55  ;;  %v16187_v2 = vld [vmem:[%s20449_s3 + $0xa4] ss:$8 sps:$4 sm:$0xff]   ;;  %v16185_v3 = vld [vmem:[%s20449_s3 + $0xa0] ss:$8 sps:$4 sm:$0xff]  }
  0x2f   : > { %15466 = vmatpush3.bf16.msra.mxu0 %v16093_v7  ;;  %6744 = vst [vmem:[#allocation2 + $0xf8] sm:$0xff] %v16453_v55  ;;  %6745 = vst [vmem:[#allocation2 + $0x100] sm:$0xff] %v16453_v55  ;;  %v16133_v5 = vld [vmem:[%s16568_s16 + $0x130] sm:$0xff]  }
  0x30   : > { %15467 = vmatprep.subr.bf16.mxu0 %v16094_v8  ;;  %6746 = vst [vmem:[#allocation2 + $0x108] sm:$0xff] %v16453_v55  ;;  %6747 = vst [vmem:[#allocation2 + $0x110] sm:$0xff] %v16453_v55  ;;  %v16190_v6 = vld [vmem:[%s20449_s3 + $0xb4] ss:$8 sps:$4 sm:$0xff]   ;;  %v16188_v7 = vld [vmem:[%s20449_s3 + $0xb0] ss:$8 sps:$4 sm:$0xff]  }
  0x31   : > { %6748 = vst [vmem:[#allocation2 + $0x118] sm:$0xff] %v16453_v55  ;;  %6749 = vst [vmem:[#allocation2 + $0x120] sm:$0xff] %v16453_v55 }
  0x32   : > { %6750 = vst [vmem:[#allocation2 + $0x128] sm:$0xff] %v16453_v55  ;;  %6751 = vst [vmem:[#allocation2 + $0x130] sm:$0xff] %v16453_v55 }
  0x33   : > { %15468 = vmatpush3.bf16.msra.mxu0 %v16094_v8  ;;  %6752 = vst [vmem:[#allocation2 + $0x138] sm:$0xff] %v16453_v55  ;;  %6753 = vst [vmem:[#allocation2 + $0x140] sm:$0xff] %v16453_v55  ;;  %v16134_v8 = vld [vmem:[%s16568_s16 + $0x138] sm:$0xff]  }
  0x34   : > { %10686 = vmatprep.subr.bf16.mxu0 %v16147_v27  ;;  %6754 = vst [vmem:[#allocation2 + $0x148] sm:$0xff] %v16453_v55  ;;  %6755 = vst [vmem:[#allocation2 + $0x150] sm:$0xff] %v16453_v55  ;;  %v16204_v27 = vld [vmem:[%s20449_s3 + $0xf0] ss:$8 sps:$4 sm:$0xff]  }
  0x35   : > { %6756 = vst [vmem:[#allocation2 + $0x158] sm:$0xff] %v16453_v55  ;;  %6757 = vst [vmem:[#allocation2 + $0x160] sm:$0xff] %v16453_v55 }
  0x36   : > { %15470 = vmatmul.mubr.bf16.vlgmr.msra.gmra.mrb[0].mxu0 %v16096_v9  ;;  %6758 = vst [vmem:[#allocation2 + $0x168] sm:$0xff] %v16453_v55  ;;  %6759 = vst [vmem:[#allocation2 + $0x170] sm:$0xff] %v16453_v55  ;;  %v16135_v9 = vld [vmem:[%s16568_s16 + $0x140] sm:$0xff]  }
  0x37   : > { %15473 = vmatprep.mubr.bf16.mxu0 %v16097_v10  ;;  %10687 = vmatpush1.bf16.msra.mxu0 %v16145_v28  ;;  %6760 = vst [vmem:[#allocation2 + $0x178] sm:$0xff] %v16453_v55  ;;  %6761 = vst [vmem:[#allocation2 + $0x180] sm:$0xff] %v16453_v55  ;;  %v16136_v10 = vld [vmem:[%s16568_s16 + $0x148] sm:$0xff]   ;;  %v16152_v28 = vld [vmem:[%s16568_s16 + $0x198] sm:$0xff]  }
  0x38   : > { %10688 = vmatprep.subr.bf16.mxu0 %v16150_v29  ;;  %6762 = vst [vmem:[#allocation2 + $0x188] sm:$0xff] %v16453_v55  ;;  %6763 = vst [vmem:[#allocation2 + $0x190] sm:$0xff] %v16453_v55  ;;  %v16159_v29 = vld [vmem:[%s16568_s16 + $0x1a0] sm:$0xff]  }
  0x39   : > { %6764 = vst [vmem:[#allocation2 + $0x198] sm:$0xff] %v16453_v55  ;;  %6765 = vst [vmem:[#allocation2 + $0x1a0] sm:$0xff] %v16453_v55 }
  0x3a   : > { %6766 = vst [vmem:[#allocation2 + $0x1a8] sm:$0xff] %v16453_v55  ;;  %6767 = vst [vmem:[#allocation2 + $0x1b0] sm:$0xff] %v16453_v55 }
  0x3b   : > { %10689 = vmatpush1.bf16.msra.mxu0 %v16148_v30  ;;  %6768 = vst [vmem:[#allocation2 + $0x1b8] sm:$0xff] %v16453_v55  ;;  %6769 = vst [vmem:[#allocation2 + $0x1c0] sm:$0xff] %v16453_v55  ;;  %v16160_v30 = vld [vmem:[%s16568_s16 + $0x1a8] sm:$0xff]  }
  0x3c   : > { %10690 = vmatprep.subr.bf16.mxu0 %v16155_v33  ;;  %6770 = vst [vmem:[#allocation2 + $0x1c8] sm:$0xff] %v16453_v55  ;;  %6771 = vst [vmem:[#allocation2 + $0x1d0] sm:$0xff] %v16453_v55  ;;  %v1725_v33 = vlaneseq }
  0x3d   : > { %6772 = vst [vmem:[#allocation2 + $0x1d8] sm:$0xff] %v16453_v55  ;;  %6773 = vst [vmem:[#allocation2 + $0x1e0] sm:$0xff] %v16453_v55 }
  0x3e   : > { %15474 = vmatmul.mubr.bf16.gmra.mrb[4].mxu0 %v16098_v11  ;;  %6774 = vst [vmem:[#allocation2 + $0x1e8] sm:$0xff] %v16453_v55  ;;  %6775 = vst [vmem:[#allocation2 + $0x1f0] sm:$0xff] %v16453_v55  ;;  %v16137_v11 = vld [vmem:[%s16568_s16 + $0x150] sm:$0xff]  }
  0x3f   : > { %15477 = vmatprep.mubr.bf16.mxu0 %v16099_v12  ;;  %10691 = vmatpush1.bf16.msra.mxu0 %v16153_v34  ;;  %6776 = vst [vmem:[#allocation2 + $0x1f8] sm:$0xff] %v16453_v55  ;;  %6777 = vst [vmem:[#allocation2 + $0x200] sm:$0xff] %v16453_v55  ;;  %v16195_v12 = vld [vmem:[%s20449_s3 + $0xc4] ss:$8 sps:$4 sm:$0xff]   ;;  %v16167_v34 = vld [vmem:[%s16568_s16 + $0x1b0] sm:$0xff]  }
  0x40   : > { %10692 = vmatprep.subr.bf16.mxu0 %v16158_v35  ;;  %6778 = vst [vmem:[#allocation2 + $0x208] sm:$0xff] %v16453_v55  ;;  %6779 = vst [vmem:[#allocation2 + $0x210] sm:$0xff] %v16453_v55 }
  0x41   : > { %6780 = vst [vmem:[#allocation2 + $0x218] sm:$0xff] %v16453_v55  ;;  %6781 = vst [vmem:[#allocation2 + $0x220] sm:$0xff] %v16453_v55 }
  0x42   : > { %6782 = vst [vmem:[#allocation2 + $0x228] sm:$0xff] %v16453_v55  ;;  %6783 = vst [vmem:[#allocation2 + $0x230] sm:$0xff] %v16453_v55 }
  0x43   : > { %10693 = vmatpush1.bf16.msra.mxu0 %v16156_v36  ;;  %6784 = vst [vmem:[#allocation2 + $0x238] sm:$0xff] %v16453_v55  ;;  %6785 = vst [vmem:[#allocation2 + $0x240] sm:$0xff] %v16453_v55  ;;  %v16822_v36 = vshrl.u32 %v1725_v33, 7 }
  0x44   : > { %10694 = vmatprep.subr.bf16.mxu0 %v16163_v39  ;;  %6786 = vst [vmem:[#allocation2 + $0x248] sm:$0xff] %v16453_v55  ;;  %6787 = vst [vmem:[#allocation2 + $0x250] sm:$0xff] %v16453_v55 }
  0x45   : > { %6788 = vst [vmem:[#allocation2 + $0x258] sm:$0xff] %v16453_v55  ;;  %6789 = vst [vmem:[#allocation2 + $0x260] sm:$0xff] %v16453_v55 }
  0x46   : > { %15478 = vmatmul.mubr.bf16.gmra.mrb[8].mxu0 %v16100_v13  ;;  %6790 = vst [vmem:[#allocation2 + $0x268] sm:$0xff] %v16453_v55  ;;  %6791 = vst [vmem:[#allocation2 + $0x270] sm:$0xff] %v16453_v55  ;;  %v16193_v13 = vld [vmem:[%s20449_s3 + $0xc0] ss:$8 sps:$4 sm:$0xff]  }
  0x47   : > { %15481 = vmatprep.mubr.bf16.mxu0 %v16101_v14  ;;  %10695 = vmatpush1.bf16.msra.mxu0 %v16161_v40  ;;  %6792 = vst [vmem:[#allocation2 + $0x278] sm:$0xff] %v16453_v55  ;;  %v16138_v14 = vld [vmem:[%s16568_s16 + $0x158] sm:$0xff]   ;;  %20466 = vst [vmem:[#allocation6_spill] sm:$0xff] %v16822_v36 }
  0x48   : > { %10696 = vmatprep.subr.bf16.mxu0 %v16166_v42  ;;  %v16168_v42 = vld [vmem:[%s16568_s16 + $0x1b8] sm:$0xff]  }
  0x4b   : > { %10697 = vmatpush1.bf16.msra.mxu0 %v16164_v44 }
  0x4c   : > { %10698 = vmatprep.subr.bf16.mxu0 %v16171_v47 }
  0x4e   : > { %15482 = vmatmul.mubr.bf16.gmra.mrb[12].mxu0 %v16102_v15  ;;  %v16139_v15 = vld [vmem:[%s16568_s16 + $0x160] sm:$0xff]  }
  0x4f   : > { %15485 = vmatprep.mubr.bf16.mxu0 %v16103_v16  ;;  %10699 = vmatpush1.bf16.msra.mxu0 %v16169_v48  ;;  %v16198_v16 = vld [vmem:[%s20449_s3 + $0xd4] ss:$8 sps:$4 sm:$0xff]  }
  0x50   : > { %10700 = vmatprep.subr.bf16.mxu0 %v16174_v51 }
  0x53   : > { %10701 = vmatpush1.bf16.msra.mxu0 %v16172_v52 }
  0x54   : > { %10702 = vmatprep.subr.bf16.mxu0 %v16179_v57 }
  0x56   : > { %15486 = vmatmul.mubr.bf16.gmra.mrb[16].mxu0 %v16104_v17  ;;  %v16196_v17 = vld [vmem:[%s20449_s3 + $0xd0] ss:$8 sps:$4 sm:$0xff]  }
  0x57   : > { %15489 = vmatprep.mubr.bf16.mxu0 %v16105_v18  ;;  %10703 = vmatpush1.bf16.msra.mxu0 %v16177_v59  ;;  %v16140_v18 = vld [vmem:[%s16568_s16 + $0x168] sm:$0xff]  }
  0x58   : > { %10704 = vmatprep.subr.bf16.mxu0 %v16182_v62 }
  0x5b   : > { %10705 = vmatpush1.bf16.msra.mxu0 %v16180_v63 }
  0x5c   : > { %10706 = vmatprep.subr.bf16.mxu0 %v16187_v2 }
  0x5e   : > { %15490 = vmatmul.mubr.bf16.gmra.mrb[20].mxu0 %v16106_v19  ;;  %v16141_v19 = vld [vmem:[%s16568_s16 + $0x170] sm:$0xff]  }
  0x5f   : > { %15493 = vmatprep.mubr.bf16.mxu0 %v16107_v20  ;;  %10707 = vmatpush1.bf16.msra.mxu0 %v16185_v3  ;;  %v16203_v20 = vld [vmem:[%s20449_s3 + $0xe4] ss:$8 sps:$4 sm:$0xff]  }
  0x60   : > { %10708 = vmatprep.subr.bf16.mxu0 %v16190_v6 }
  0x63   : > { %10709 = vmatpush1.bf16.msra.mxu0 %v16188_v7 }
  0x64   : > { %10710 = vmatprep.subr.bf16.mxu0 %v16195_v12 }
  0x66   : > { %15494 = vmatmul.mubr.bf16.gmra.mrb[24].mxu0 %v16108_v21  ;;  %v16201_v21 = vld [vmem:[%s20449_s3 + $0xe0] ss:$8 sps:$4 sm:$0xff]  }
  0x67   : > { %15497 = vmatprep.mubr.bf16.mxu0 %v16109_v22  ;;  %10711 = vmatpush1.bf16.msra.mxu0 %v16193_v13  ;;  %v16142_v22 = vld [vmem:[%s16568_s16 + $0x178] sm:$0xff]  }
  0x68   : > { %10712 = vmatprep.subr.bf16.mxu0 %v16198_v16 }
  0x6b   : > { %10713 = vmatpush1.bf16.msra.mxu0 %v16196_v17 }
  0x6c   : > { %10714 = vmatprep.subr.bf16.mxu0 %v16203_v20 }
  0x6e   : > { %15498 = vmatmul.mubr.bf16.gmra.mrb[28].mxu0 %v16110_v23  ;;  %v16143_v23 = vld [vmem:[%s16568_s16 + $0x180] sm:$0xff]  }
  0x6f   : > { %15501 = vmatprep.mubr.bf16.mxu0 %v16111_v24  ;;  %10715 = vmatpush1.bf16.msra.mxu0 %v16201_v21  ;;  %v16144_v24 = vld [vmem:[%s16568_s16 + $0x188] sm:$0xff]  }
  0x76   : > { %15502 = vmatmul.mubr.bf16.gmra.mrb[32].mxu0 %v16112_v25  ;;  %v16151_v25 = vld [vmem:[%s16568_s16 + $0x190] sm:$0xff]  }
  0x77   : > { %15505 = vmatprep.mubr.bf16.mxu0 %v16113_v26  ;;  %v16206_v26 = vld [vmem:[%s20449_s3 + $0xf4] ss:$8 sps:$4 sm:$0xff]  }
  0x78   : > { %10716 = vmatprep.subr.bf16.mxu0 %v16206_v26 }
  0x79   : > { %10717 = vmatpush1.bf16.msra.mxu0 %v16204_v27 }
  0x7e   : > { %15506 = vmatmul.mubr.bf16.gmra.mrb[36].mxu0 %v16114_v31  ;;  %v16454_v31 = vmov 1983009808  }
  0x7f   : > { %15509 = vmatprep.mubr.bf16.mxu0 %v16115_v32  ;;  %v1723_v32 = vunpack.c.l.s4 %v16454_v31 }
  0x81   : > { %v1724_v35 = vunpack.c.0.s8 %v1723_v32 }
  0x83   : > { %v16831_v40 = vsub.s32 %v1724_v35, %v16822_v36 }
  0x85   : > { %20467 = vst [vmem:[#allocation7_spill] sm:$0xff] %v16831_v40 }
  0x86   : > { %15510 = vmatmul.mubr.bf16.gmra.mrb[40].mxu0 %v16116_v37  ;;  %v16827_v37 = vld [vmem:[%s20448_s2] ss:$0 sm:$0xff] }
  0x87   : > { %15513 = vmatprep.mubr.bf16.mxu0 %v16117_v38 }
  0x8e   : > { %15514 = vmatmul.mubr.bf16.gmra.mrb[44].mxu0 %v16118_v41 }
  0x8f   : > { %15517 = vmatprep.mubr.bf16.mxu0 %v16119_v43 }
  0x96   : > { %15518 = vmatmul.mubr.bf16.gmra.mrb[48].mxu0 %v16120_v45  ;;  %v16175_v45 = vld [vmem:[%s16568_s16 + $0x1c0] sm:$0xff]  }
  0x97   : > { %15521 = vmatprep.mubr.bf16.mxu0 %v16121_v46 }
  0x9e   : > { %15522 = vmatmul.mubr.bf16.gmra.mrb[52].mxu0 %v16122_v49 }
  0x9f   : > { %15525 = vmatprep.mubr.bf16.mxu0 %v16123_v50 }
  0xa6   : > { %15526 = vmatmul.mubr.bf16.gmra.mrb[56].mxu0 %v16663_v53 }
  0xa7   : > { %15529 = vmatprep.mubr.bf16.mxu0 %v16666_v54 }
  0xae   : > { %15530 = vmatmul.mubr.bf16.gmra.mrb[60].mxu0 %v16126_v56  ;;  %v16841_v56 = vsub.s32 0, %v16822_v36 }
  0xaf   : > { %15533 = vmatprep.mubr.bf16.mxu0 %v16127_v58 }
  0xb6   : > { %15534 = vmatmul.mubr.bf16.gmra.mrb[64].mxu0 %v16128_v60 }
  0xb7   : > { %15537 = vmatprep.mubr.bf16.mxu0 %v16129_v61 }
  0xbe   : > { %15538 = vmatmul.mubr.bf16.gmra.mrb[68].mxu0 %v16130_v0 }
  0xbf   : > { %15541 = vmatprep.mubr.bf16.mxu0 %v16131_v1 }
  0xc6   : > { %15542 = vmatmul.mubr.bf16.gmra.mrb[72].mxu0 %v16132_v4 }
  0xc7   : > { %15545 = vmatprep.mubr.bf16.mxu0 %v16133_v5 }
  0xce   : > { %15546 = vmatmul.mubr.bf16.gmra.mrb[76].mxu0 %v16134_v8  ;;  %v16176_v8 = vld [vmem:[%s16568_s16 + $0x1c8] sm:$0xff]  }
  0xcf   : > { %15549 = vmatprep.mubr.bf16.mxu0 %v16135_v9 }
  0xd6   : > { %15550 = vmatmul.mubr.bf16.gmra.mrb[80].mxu0 %v16136_v10 }
  0xd7   : > { %15553 = vmatprep.mubr.bf16.mxu0 %v16137_v11 }
  0xde   : > { %15554 = vmatmul.mubr.bf16.gmra.mrb[84].mxu0 %v16138_v14  ;;  %v16183_v14 = vld [vmem:[%s16568_s16 + $0x1d0] sm:$0xff]  }
  0xdf   : > { %15557 = vmatprep.mubr.bf16.mxu0 %v16139_v15 }
  0xe6   : > { %15558 = vmatmul.mubr.bf16.gmra.mrb[88].mxu0 %v16140_v18 }
  0xe7   : > { %15561 = vmatprep.mubr.bf16.mxu0 %v16141_v19 }
  0xee   : > { %15562 = vmatmul.mubr.bf16.gmra.mrb[92].mxu0 %v16142_v22 }
  0xef   : > { %15565 = vmatprep.mubr.bf16.mxu0 %v16143_v23 }
  0xf6   : > { %15566 = vmatmul.mubr.bf16.gmra.mrb[96].mxu0 %v16144_v24 }
  0xf7   : > { %15569 = vmatprep.mubr.bf16.mxu0 %v16151_v25 }
  0xfe   : > { %15570 = vmatmul.mubr.bf16.gmra.mrb[100].mxu0 %v16152_v28 }
  0xff   : > { %15573 = vmatprep.mubr.bf16.mxu0 %v16159_v29 }
 0x106   : > { %15574 = vmatmul.mubr.bf16.gmra.mrb[104].mxu0 %v16160_v30 }
 0x107   : > { %15577 = vmatprep.mubr.bf16.mxu0 %v16167_v34 }
 0x109   : > { %v15471_v38 = vpop.f32.mrb[0].mxu0 }
 0x10a   : > { %v963_v39 = vadd.f32 %v15471_v38, %v16827_v37  ;;  %v954_v41 = vpop.f32.mrb[1].mxu0 }
 0x10b   : > { %v955_v43 = vadd.f32 %v16827_v37, %v954_v41  ;;  %v15472_v44 = vpop.f32.mrb[2].mxu0 }
 0x10c   : > { %v1467_v46 = vmax.f32 %v963_v39, 0.0  ;;  %v966_v47 = vadd.f32 %v15472_v44, %v16827_v37  ;;  %v957_v48 = vpop.f32.mrb[3].mxu0 }
 0x10d   : > { %v1465_v49 = vmax.f32 %v955_v43, 0.0  ;;  %v958_v50 = vadd.f32 %v16827_v37, %v957_v48 }
 0x10e   : > { %v1755_v51 = vcombine.high %v1467_v46, %v1467_v46  ;;  %v1762_v52 = vrot.slane %v1467_v46, %v16831_v40  ;;  %v1468_v53 = vmax.f32 %v966_v47, 0.0  ;;  %15578 = vmatmul.mubr.bf16.gmra.mrb[108].mxu0 %v16168_v42 }
 0x10f   : > { %v1721_v54 = vcombine.high %v1465_v49, %v1465_v49  ;;  %v1728_v55 = vrot.slane %v1465_v49, %v16831_v40  ;;  %v16843_v57 = vmax.f32 %v958_v50, 0.0  ;;  %15581 = vmatprep.mubr.bf16.mxu0 %v16175_v45  ;;  %v16184_v49 = vld [vmem:[%s16568_s16 + $0x1d8] sm:$0xff]  }
 0x110   : > { %v1769_v58 = vrot.slane %v1755_v51, %v16831_v40  ;;  %v1770_v59 = vcombine.high %v1762_v52, %v1762_v52  ;;  %v14276_v60 = vrot.slane %v1762_v52, 9  ;;  %v1772_v61 = vcombine.high %v1468_v53, %v1468_v53 }
 0x111   : > { %v1735_v62 = vrot.slane %v1721_v54, %v16831_v40  ;;  %v1736_v63 = vcombine.high %v1728_v55, %v1728_v55  ;;  %v14268_v0 = vrot.slane %v1728_v55, 9  ;;  %v1779_v1 = vrot.slane %v1468_v53, %v16831_v40  ;;  %v15475_v2 = vpop.f32.mrb[4].mxu0 }
 0x112   : > { %v1771_v3 = vcombine.high %v1769_v58, %v1769_v58  ;;  %v14277_v4 = vrot.slane %v1770_v59, 9  ;;  %v14278_v5 = vrot.slane %v1769_v58, 9  ;;  %v5953_v6 = vmax.f32 %v1762_v52, %v14276_v60  ;;  %v970_v7 = vpop.f32.mrb[5].mxu0 }
 0x113   : > { %v1737_v9 = vcombine.high %v1735_v62, %v1735_v62  ;;  %v14269_v10 = vrot.slane %v1736_v63, 9  ;;  %v14270_v11 = vrot.slane %v1735_v62, 9  ;;  %v5945_v12 = vmax.f32 %v1728_v55, %v14268_v0  ;;  %v15476_v13 = vpop.f32.mrb[6].mxu0  ;;  %v16191_v55 = vld [vmem:[%s16568_s16 + $0x1e0] sm:$0xff]  }
 0x114   : > { %v14279_v15 = vrot.slane %v1771_v3, 9  ;;  %v5954_v16 = vmax.f32 %v1770_v59, %v14277_v4  ;;  %v5955_v17 = vmax.f32 %v1769_v58, %v14278_v5  ;;  %v1786_v18 = vrot.slane %v1772_v61, %v16831_v40  ;;  %v16851_v19 = vpop.f32.mrb[7].mxu0 }
 0x115   : > { %v14271_v20 = vrot.slane %v1737_v9, 9  ;;  %v5946_v21 = vmax.f32 %v1736_v63, %v14269_v10  ;;  %v5947_v22 = vmax.f32 %v1735_v62, %v14270_v11  ;;  %v6457_v23 = vmax.f32 %v5945_v12, %v5953_v6 }
 0x116   : > { %v5956_v24 = vmax.f32 %v1771_v3, %v14279_v15  ;;  %v1787_v25 = vcombine.high %v1779_v1, %v1779_v1  ;;  %v1788_v26 = vcombine.high %v1786_v18, %v1786_v18  ;;  %v14280_v27 = vrot.slane %v1779_v1, 9  ;;  %15582 = vmatmul.mubr.bf16.gmra.mrb[112].mxu0 %v16176_v8 }
 0x117   : > { %v5948_v28 = vmax.f32 %v1737_v9, %v14271_v20  ;;  %v6458_v29 = vmax.f32 %v5946_v21, %v5954_v16  ;;  %v6459_v30 = vmax.f32 %v5947_v22, %v5955_v17  ;;  %v7052_v31 = vrot.slane %v6457_v23, %v16841_v56  ;;  %15585 = vmatprep.mubr.bf16.mxu0 %v16183_v14 }
 0x118   : > { %v14281_v32 = vrot.slane %v1787_v25, 9  ;;  %v14282_v33 = vrot.slane %v1786_v18, 9  ;;  %v14283_v34 = vrot.slane %v1788_v26, 9  ;;  %v5957_v35 = vmax.f32 %v1779_v1, %v14280_v27 }
 0x119   : > { %v6460_v38 = vmax.f32 %v5948_v28, %v5956_v24  ;;  %v7056_v39 = vrot.slane %v6458_v29, %v16841_v56  ;;  %v7060_v41 = vrot.slane %v6459_v30, %v16841_v56  ;;  %v1738_v42 = vcombine.high %v16843_v57, %v16843_v57  ;;  %v16858_v43 = vpop.f32.mrb[8].mxu0 }
 0x11a   : > { %v5958_v44 = vmax.f32 %v1787_v25, %v14281_v32  ;;  %v5959_v45 = vmax.f32 %v1786_v18, %v14282_v33  ;;  %v5960_v46 = vmax.f32 %v1788_v26, %v14283_v34  ;;  %v1745_v47 = vrot.slane %v16843_v57, %v16831_v40  ;;  %v16862_v48 = vpop.f32.mrb[9].mxu0  ;;  %v16192_v25 = vld [vmem:[%s16568_s16 + $0x1e8] sm:$0xff]  }
 0x11b   : > { %v7064_v50 = vrot.slane %v6460_v38, %v16841_v56  ;;  %v8074_v51 = vsel %vm8073_vm0, %v7056_v39, %v7052_v31  ;;  %v1752_v52 = vrot.slane %v1738_v42, %v16831_v40  ;;  %v979_v53 = vadd.f32 %v15475_v2, %v16827_v37  ;;  %v16869_v54 = vpop.f32.mrb[10].mxu0  ;;  %v16199_v31 = vld [vmem:[%s16568_s16 + $0x1f0] sm:$0xff]  }
 0x11c   : > { %v8076_v58 = vsel %vm8075_vm1, %v7060_v41, %v8074_v51  ;;  %v1753_v59 = vcombine.high %v1745_v47, %v1745_v47  ;;  %v14272_v60 = vrot.slane %v1745_v47, 9  ;;  %v971_v57 = vadd.f32 %v16827_v37, %v970_v7  ;;  %v16874_v61 = vpop.f32.mrb[11].mxu0 }
 0x11d   : > { %v1754_v62 = vcombine.high %v1752_v52, %v1752_v52  ;;  %v14274_v63 = vrot.slane %v1752_v52, 9  ;;  %v8078_v0 = vsel %vm8077_vm2, %v7064_v50, %v8076_v58  ;;  %v1471_v1 = vmax.f32 %v979_v53, 0.0 }
 0x11e   : > { %v14273_v3 = vrot.slane %v1753_v59, 9  ;;  %v5949_v2 = vmax.f32 %v1745_v47, %v14272_v60  ;;  %v1469_v4 = vmax.f32 %v971_v57, 0.0  ;;  %v982_v5 = vadd.f32 %v15476_v13, %v16827_v37  ;;  %15586 = vmatmul.mubr.bf16.gmra.mrb[116].mxu0 %v16184_v49 }
 0x11f   : > { %v14275_v6 = vrot.slane %v1754_v62, 9  ;;  %v5951_v8 = vmax.f32 %v1752_v52, %v14274_v63  ;;  %v1823_v9 = vcombine.high %v1471_v1, %v1471_v1  ;;  %v1830_v10 = vrot.slane %v1471_v1, %v16831_v40  ;;  %15589 = vmatprep.mubr.bf16.mxu0 %v16191_v55 }
 0x120   : > { %v5950_v7 = vmax.f32 %v1753_v59, %v14273_v3  ;;  %v6461_v11 = vmax.f32 %v5949_v2, %v5957_v35  ;;  %v1789_v12 = vcombine.high %v1469_v4, %v1469_v4  ;;  %v1796_v14 = vrot.slane %v1469_v4, %v16831_v40 }
 0x121   : > { %v5952_v15 = vmax.f32 %v1754_v62, %v14275_v6  ;;  %v6463_v16 = vmax.f32 %v5951_v8, %v5959_v45  ;;  %v1837_v17 = vrot.slane %v1823_v9, %v16831_v40  ;;  %v1838_v18 = vcombine.high %v1830_v10, %v1830_v10  ;;  %v16881_v13 = vpop.f32.mrb[12].mxu0  ;;  %v16200_v9 = vld [vmem:[%s16568_s16 + $0x1f8] sm:$0xff]   ;;  %s326_s16 = sand.u32 1, %s16443_s10  }
 0x122   : > { %v6462_v20 = vmax.f32 %v5950_v7, %v5958_v44  ;;  %v7068_v21 = vrot.slane %v6461_v11, %v16841_v56  ;;  %v14292_v22 = vrot.slane %v1830_v10, 9  ;;  %v1803_v23 = vrot.slane %v1789_v12, %v16831_v40  ;;  %v16885_v24 = vpop.f32.mrb[13].mxu0  ;;  %s14191_s14 = sshll.u32 %s326_s16, 2  ;;  %s14115_s26 = scalar_lea.sflag [#allocation4], %s326_s16 }
 0x123   : > { %v6464_v26 = vmax.f32 %v5952_v15, %v5960_v46  ;;  %v7076_v27 = vrot.slane %v6463_v16, %v16841_v56  ;;  %v1839_v28 = vcombine.high %v1837_v17, %v1837_v17  ;;  %v14293_v29 = vrot.slane %v1838_v18, 9  ;;  %v16889_v30 = vpop.f32.mrb[14].mxu0  ;;  %s328_s21 = scalar_lea.vmem [#allocation3], %s14191_s14 }
 0x124   : > { %v7072_v32 = vrot.slane %v6462_v20, %v16841_v56  ;;  %v8080_v33 = vsel %vm8079_vm3, %v7068_v21, %v8078_v0  ;;  %v14294_v34 = vrot.slane %v1837_v17, 9  ;;  %v5969_v35 = vmax.f32 %v1830_v10, %v14292_v22  ;;  %v16894_v38 = vpop.f32.mrb[15].mxu0  ;;  %s14128_s22 = sshll.u32 %s328_s21, 4  ;;  %s20406_s22 = int_to_ptr.vmem [resolvable:$true] %s14128_s22 }
 0x125   : > { %v7080_v39 = vrot.slane %v6464_v26, %v16841_v56  ;;  %v14295_v41 = vrot.slane %v1839_v28, 9  ;;  %v5970_v42 = vmax.f32 %v1838_v18, %v14293_v29  ;;  %v1804_v44 = vcombine.high %v1796_v14, %v1796_v14  ;;  %s16389_s27 = scalar_lea.vmem %s20406_s22, 64  ;;  %p16396_p0 = scmp.lt.s32.totalorder %s20406_s22, %s16394_s28 }
 0x126   : > { %v8082_v45 = vsel %vm8081_vm4, %v7072_v32, %v8080_v33  ;;  %v5971_v46 = vmax.f32 %v1837_v17, %v14294_v34  ;;  %v1805_v47 = vcombine.high %v1803_v23, %v1803_v23  ;;  %v14284_v49 = vrot.slane %v1796_v14, 9  ;;  %15590 = vmatmul.mubr.bf16.gmra.mrb[120].mxu0 %v16192_v25  ;;  %p16390_p11 = scmp.ne.s32.totalorder %s20406_s22, %s16389_s27  ;;  %p16397_p1 = scmp.lt.s32.totalorder %s16395_s29, %s16389_s27 }
 0x127   : > { %v8084_v50 = vsel %vm8083_vm5, %v7076_v27, %v8082_v45  ;;  %v5972_v51 = vmax.f32 %v1839_v28, %v14295_v41  ;;  %v14285_v52 = vrot.slane %v1804_v44, 9  ;;  %v14286_v53 = vrot.slane %v1803_v23, 9  ;;  %15593 = vmatprep.mubr.bf16.mxu0 %v16199_v31 }
 0x128   : > { %v8086_v55 = vsel %vm8085_vm6, %v7080_v39, %v8084_v50  ;;  %v14287_v58 = vrot.slane %v1805_v47, 9  ;;  %v5961_v59 = vmax.f32 %v1796_v14, %v14284_v49  ;;  %v1472_v60 = vmax.f32 %v982_v5, 0.0  ;;  %p16391_p12 = pnand %p16390_p11, %p16545_p5  ;;  %p16398_p2 = por %p16397_p1, %p16396_p0 }
 0x129   : > { %8337 = vst [vmem:[#allocation2 + $0x11] sm:$0xff] %v8086_v55  ;;  %v5962_v57 = vmax.f32 %v1804_v44, %v14285_v52  ;;  %v5963_v62 = vmax.f32 %v1803_v23, %v14286_v53  ;;  %v974_v63 = vadd.f32 %v16827_v37, %v16851_v19  ;;  %v995_v0 = vadd.f32 %v16858_v43, %v16827_v37  ;;  %v16904_v1 = vpop.f32.mrb[16].mxu0 }
 0x12a   : > { %v5964_v3 = vmax.f32 %v1805_v47, %v14287_v58  ;;  %v6465_v2 = vmax.f32 %v5961_v59, %v5969_v35  ;;  %v1840_v4 = vcombine.high %v1472_v60, %v1472_v60  ;;  %v1847_v6 = vrot.slane %v1472_v60, %v16831_v40  ;;  %v16907_v8 = vpop.f32.mrb[17].mxu0  ;;  %p16392_p13 = pneg %p16391_p12 }
 0x12b   : > { %v6466_v5 = vmax.f32 %v5962_v57, %v5970_v42  ;;  %v6467_v10 = vmax.f32 %v5963_v62, %v5971_v46  ;;  %v1470_v7 = vmax.f32 %v974_v63, 0.0  ;;  %v1475_v11 = vmax.f32 %v995_v0, 0.0  ;;  %v16910_v12 = vpop.f32.mrb[18].mxu0 }
 0x12c   : > { %v6468_v19 = vmax.f32 %v5964_v3, %v5972_v51  ;;  %v7084_v14 = vrot.slane %v6465_v2, %v16841_v56  ;;  %v1854_v43 = vrot.slane %v1840_v4, %v16831_v40  ;;  %v1855_v15 = vcombine.high %v1847_v6, %v1847_v6  ;;  %v16914_v16 = vpop.f32.mrb[19].mxu0  ;;  %p16399_p3 = pnand %p16398_p2, %p16392_p13 }
 0x12d   : > { %v7088_v17 = vrot.slane %v6466_v5, %v16841_v56  ;;  %v7092_v18 = vrot.slane %v6467_v10, %v16841_v56  ;;  %v14296_v20 = vrot.slane %v1847_v6, 9  ;;  %v1806_v21 = vcombine.high %v1470_v7, %v1470_v7 }
 0x12e   : > { %v7096_v22 = vrot.slane %v6468_v19, %v16841_v56  ;;  %v1856_v23 = vcombine.high %v1854_v43, %v1854_v43  ;;  %v14297_v25 = vrot.slane %v1855_v15, 9  ;;  %v14298_v26 = vrot.slane %v1854_v43, 9  ;;  %15594 = vmatmul.mubr.bf16.gmra.mrb[124].mxu0 %v16200_v9 }
 0x12f   : > { %v8087_v27 = vsel %vm8073_vm0, %v7088_v17, %v7084_v14  ;;  %v5973_v28 = vmax.f32 %v1847_v6, %v14296_v20  ;;  %v1813_v29 = vrot.slane %v1470_v7, %v16831_v40  ;;  %v1820_v31 = vrot.slane %v1806_v21, %v16831_v40 }
 0x130   : > { %v8088_v32 = vsel %vm8075_vm1, %v7092_v18, %v8087_v27  ;;  %v14299_v33 = vrot.slane %v1856_v23, 9  ;;  %v5974_v34 = vmax.f32 %v1855_v15, %v14297_v25  ;;  %v5975_v35 = vmax.f32 %v1854_v43, %v14298_v26 }
 0x131   : > { %v1821_v39 = vcombine.high %v1813_v29, %v1813_v29  ;;  %v1822_v41 = vcombine.high %v1820_v31, %v1820_v31  ;;  %v14288_v42 = vrot.slane %v1813_v29, 9  ;;  %v14290_v44 = vrot.slane %v1820_v31, 9  ;;  %v16923_v45 = vpop.f32.mrb[20].mxu0 }
 0x132   : > { %v5976_v46 = vmax.f32 %v1856_v23, %v14299_v33  ;;  %v8089_v47 = vsel %vm8077_vm2, %v7096_v22, %v8088_v32  ;;  %v1891_v49 = vcombine.high %v1475_v11, %v1475_v11  ;;  %v1898_v50 = vrot.slane %v1475_v11, %v16831_v40  ;;  %v16927_v51 = vpop.f32.mrb[21].mxu0 }
 0x133   : > { %v14289_v52 = vrot.slane %v1821_v39, 9  ;;  %v14291_v53 = vrot.slane %v1822_v41, 9  ;;  %v5965_v55 = vmax.f32 %v1813_v29, %v14288_v42  ;;  %v5967_v58 = vmax.f32 %v1820_v31, %v14290_v44  ;;  %v16929_v59 = vpop.f32.mrb[22].mxu0 }
 0x134   : > { %v1905_v60 = vrot.slane %v1891_v49, %v16831_v40  ;;  %v1906_v57 = vcombine.high %v1898_v50, %v1898_v50  ;;  %v14308_v62 = vrot.slane %v1898_v50, 9  ;;  %v987_v63 = vadd.f32 %v16827_v37, %v16862_v48  ;;  %v16934_v0 = vpop.f32.mrb[23].mxu0 }
 0x135   : > { %v5966_v3 = vmax.f32 %v1821_v39, %v14289_v52  ;;  %v5968_v2 = vmax.f32 %v1822_v41, %v14291_v53  ;;  %v6469_v4 = vmax.f32 %v5965_v55, %v5973_v28  ;;  %v6471_v6 = vmax.f32 %v5967_v58, %v5975_v35 }
 0x136   : > { %v1907_v9 = vcombine.high %v1905_v60, %v1905_v60  ;;  %v14309_v5 = vrot.slane %v1906_v57, 9  ;;  %v14310_v10 = vrot.slane %v1905_v60, 9  ;;  %v5985_v7 = vmax.f32 %v1898_v50, %v14308_v62 }
 0x137   : > { %v6470_v11 = vmax.f32 %v5966_v3, %v5974_v34  ;;  %v6472_v19 = vmax.f32 %v5968_v2, %v5976_v46  ;;  %v7100_v14 = vrot.slane %v6469_v4, %v16841_v56  ;;  %v7108_v43 = vrot.slane %v6471_v6, %v16841_v56 }
 0x138   : > { %v14311_v15 = vrot.slane %v1907_v9, 9  ;;  %v5986_v17 = vmax.f32 %v1906_v57, %v14309_v5  ;;  %v5987_v18 = vmax.f32 %v1905_v60, %v14310_v10  ;;  %v1473_v48 = vmax.f32 %v987_v63, 0.0 }
 0x139   : > { %v7104_v20 = vrot.slane %v6470_v11, %v16841_v56  ;;  %v7112_v21 = vrot.slane %v6472_v19, %v16841_v56  ;;  %v8090_v22 = vsel %vm8079_vm3, %v7100_v14, %v8089_v47  ;;  %v998_v23 = vadd.f32 %v16869_v54, %v16827_v37  ;;  %v16943_v25 = vpop.f32.mrb[24].mxu0 }
 0x13a   : > { %v5988_v26 = vmax.f32 %v1907_v9, %v14311_v15  ;;  %v1857_v27 = vcombine.high %v1473_v48, %v1473_v48  ;;  %v1864_v28 = vrot.slane %v1473_v48, %v16831_v40  ;;  %v990_v29 = vadd.f32 %v16827_v37, %v16874_v61  ;;  %v16948_v31 = vpop.f32.mrb[25].mxu0 }
 0x13b   : > { %v8091_v32 = vsel %vm8081_vm4, %v7104_v20, %v8090_v22  ;;  %v1476_v33 = vmax.f32 %v998_v23, 0.0  ;;  %v1011_v34 = vadd.f32 %v16881_v13, %v16827_v37  ;;  %v16955_v54 = vadd.f32 %v16827_v37, %v16885_v24  ;;  %v16957_v35 = vpop.f32.mrb[26].mxu0 }
 0x13c   : > { %v8092_v39 = vsel %vm8083_vm5, %v7108_v43, %v8091_v32  ;;  %v1871_v41 = vrot.slane %v1857_v27, %v16831_v40  ;;  %v1872_v42 = vcombine.high %v1864_v28, %v1864_v28  ;;  %v14300_v61 = vrot.slane %v1864_v28, 9  ;;  %v16961_v44 = vpop.f32.mrb[27].mxu0 }
 0x13d   : > { %v8093_v46 = vsel %vm8085_vm6, %v7112_v21, %v8092_v39  ;;  %v1908_v47 = vcombine.high %v1476_v33, %v1476_v33  ;;  %v1915_v49 = vrot.slane %v1476_v33, %v16831_v40  ;;  %v1474_v13 = vmax.f32 %v990_v29, 0.0 }
 0x13e   : > { %8338 = vst [vmem:[#allocation2 + $0x21] sm:$0xff] %v8093_v46  ;;  %v1873_v50 = vcombine.high %v1871_v41, %v1871_v41  ;;  %v14301_v24 = vrot.slane %v1872_v42, 9  ;;  %v14302_v52 = vrot.slane %v1871_v41, 9  ;;  %v5977_v53 = vmax.f32 %v1864_v28, %v14300_v61 }
 0x13f   : > { %v1922_v55 = vrot.slane %v1908_v47, %v16831_v40  ;;  %v1923_v58 = vcombine.high %v1915_v49, %v1915_v49  ;;  %v14312_v60 = vrot.slane %v1915_v49, 9  ;;  %v1874_v57 = vcombine.high %v1474_v13, %v1474_v13 }
 0x140   : > { %v14303_v62 = vrot.slane %v1873_v50, 9  ;;  %v5978_v63 = vmax.f32 %v1872_v42, %v14301_v24  ;;  %v5979_v3 = vmax.f32 %v1871_v41, %v14302_v52  ;;  %v6473_v2 = vmax.f32 %v5977_v53, %v5985_v7 }
 0x141   : > { %v1924_v4 = vcombine.high %v1922_v55, %v1922_v55  ;;  %v14313_v6 = vrot.slane %v1923_v58, 9  ;;  %v14314_v9 = vrot.slane %v1922_v55, 9  ;;  %v5989_v5 = vmax.f32 %v1915_v49, %v14312_v60  ;;  %v16966_v10 = vpop.f32.mrb[28].mxu0 }
 0x142   : > { %v5980_v11 = vmax.f32 %v1873_v50, %v14303_v62  ;;  %v6474_v19 = vmax.f32 %v5978_v63, %v5986_v17  ;;  %v6475_v14 = vmax.f32 %v5979_v3, %v5987_v18  ;;  %v7116_v43 = vrot.slane %v6473_v2, %v16841_v56  ;;  %v16969_v15 = vpop.f32.mrb[29].mxu0 }
 0x143   : > { %v14315_v48 = vrot.slane %v1924_v4, 9  ;;  %v5990_v20 = vmax.f32 %v1923_v58, %v14313_v6  ;;  %v5991_v21 = vmax.f32 %v1922_v55, %v14314_v9  ;;  %v1881_v22 = vrot.slane %v1474_v13, %v16831_v40  ;;  %v16972_v23 = vpop.f32.mrb[30].mxu0 }
 0x144   : > { %v6476_v7 = vmax.f32 %v5980_v11, %v5988_v26  ;;  %v7120_v27 = vrot.slane %v6474_v19, %v16841_v56  ;;  %v7124_v28 = vrot.slane %v6475_v14, %v16841_v56  ;;  %v1888_v29 = vrot.slane %v1874_v57, %v16831_v40  ;;  %v16977_v17 = vpop.f32.mrb[31].mxu0 }
 0x145   : > { %v5992_v18 = vmax.f32 %v1924_v4, %v14315_v48  ;;  %v1889_v32 = vcombine.high %v1881_v22, %v1881_v22  ;;  %v14304_v33 = vrot.slane %v1881_v22, 9  ;;  %v1479_v39 = vmax.f32 %v1011_v34, 0.0 }
 0x146   : > { %v7128_v41 = vrot.slane %v6476_v7, %v16841_v56  ;;  %v8094_v42 = vsel %vm8073_vm0, %v7120_v27, %v7116_v43  ;;  %v1890_v61 = vcombine.high %v1888_v29, %v1888_v29  ;;  %v14306_v46 = vrot.slane %v1888_v29, 9 }
 0x147   : > { %v8095_v26 = vsel %vm8075_vm1, %v7124_v28, %v8094_v42  ;;  %v14305_v47 = vrot.slane %v1889_v32, 9  ;;  %v5981_v49 = vmax.f32 %v1881_v22, %v14304_v33  ;;  %v1959_v13 = vcombine.high %v1479_v39, %v1479_v39 }
 0x148   : > { %v14307_v50 = vrot.slane %v1890_v61, 9  ;;  %v5983_v24 = vmax.f32 %v1888_v29, %v14306_v46  ;;  %v8096_v52 = vsel %vm8077_vm2, %v7128_v41, %v8095_v26  ;;  %v1966_v53 = vrot.slane %v1479_v39, %v16831_v40 }
 0x149   : > { %v5982_v55 = vmax.f32 %v1889_v32, %v14305_v47  ;;  %v6477_v58 = vmax.f32 %v5981_v49, %v5989_v5  ;;  %v1973_v34 = vrot.slane %v1959_v13, %v16831_v40  ;;  %v1477_v60 = vmax.f32 %v16955_v54, 0.0  ;;  %v16986_v57 = vpop.f32.mrb[32].mxu0 }
 0x14a   : > { %v5984_v62 = vmax.f32 %v1890_v61, %v14307_v50  ;;  %v6479_v63 = vmax.f32 %v5983_v24, %v5991_v21  ;;  %v1974_v3 = vcombine.high %v1966_v53, %v1966_v53  ;;  %v14324_v2 = vrot.slane %v1966_v53, 9  ;;  %v16988_v4 = vpop.f32.mrb[33].mxu0 }
 0x14b   : > { %v6478_v6 = vmax.f32 %v5982_v55, %v5990_v20  ;;  %v7132_v9 = vrot.slane %v6477_v58, %v16841_v56  ;;  %v1975_v11 = vcombine.high %v1973_v34, %v1973_v34  ;;  %v14326_v19 = vrot.slane %v1973_v34, 9  ;;  %v16991_v14 = vpop.f32.mrb[34].mxu0 }
 0x14c   : > { %v6480_v5 = vmax.f32 %v5984_v62, %v5992_v18  ;;  %v7140_v43 = vrot.slane %v6479_v63, %v16841_v56  ;;  %v14325_v48 = vrot.slane %v1974_v3, 9  ;;  %v6001_v54 = vmax.f32 %v1966_v53, %v14324_v2  ;;  %v16994_v22 = vpop.f32.mrb[35].mxu0 }
 0x14d   : > { %v7136_v21 = vrot.slane %v6478_v6, %v16841_v56  ;;  %v8097_v7 = vsel %vm8079_vm3, %v7132_v9, %v8096_v52  ;;  %v14327_v27 = vrot.slane %v1975_v11, 9  ;;  %v6003_v28 = vmax.f32 %v1973_v34, %v14326_v19 }
 0x14e   : > { %v7144_v20 = vrot.slane %v6480_v5, %v16841_v56  ;;  %v6002_v29 = vmax.f32 %v1974_v3, %v14325_v48  ;;  %v1925_v32 = vcombine.high %v1477_v60, %v1477_v60  ;;  %v1932_v33 = vrot.slane %v1477_v60, %v16831_v40 }
 0x14f   : > { %v8098_v18 = vsel %vm8081_vm4, %v7136_v21, %v8097_v7  ;;  %v6004_v39 = vmax.f32 %v1975_v11, %v14327_v27  ;;  %v1014_v41 = vadd.f32 %v16889_v30, %v16827_v37  ;;  %v1006_v42 = vadd.f32 %v16827_v37, %v16894_v38 }
 0x150   : > { %v8099_v61 = vsel %vm8083_vm5, %v7140_v43, %v8098_v18  ;;  %v1939_v46 = vrot.slane %v1925_v32, %v16831_v40  ;;  %v1940_v26 = vcombine.high %v1932_v33, %v1932_v33  ;;  %v14316_v47 = vrot.slane %v1932_v33, 9 }
 0x151   : > { %v17008_v49 = vsel %vm8085_vm6, %v7144_v20, %v8099_v61  ;;  %v1480_v13 = vmax.f32 %v1014_v41, 0.0  ;;  %v1478_v50 = vmax.f32 %v1006_v42, 0.0  ;;  %v1027_v24 = vadd.f32 %v16904_v1, %v16827_v37  ;;  %v17012_v52 = vpop.f32.mrb[36].mxu0 }
 0x152   : > { %8339 = vst [vmem:[#allocation2 + $0x31] sm:$0xff] %v17008_v49  ;;  %v1941_v30 = vcombine.high %v1939_v46, %v1939_v46  ;;  %v14317_v38 = vrot.slane %v1940_v26, 9  ;;  %v14318_v53 = vrot.slane %v1939_v46, 9  ;;  %v5993_v55 = vmax.f32 %v1932_v33, %v14316_v47  ;;  %v17015_v58 = vpop.f32.mrb[37].mxu0 }
 0x153   : > { %v1976_v34 = vcombine.high %v1480_v13, %v1480_v13  ;;  %v1983_v60 = vrot.slane %v1480_v13, %v16831_v40  ;;  %v1942_v62 = vcombine.high %v1478_v50, %v1478_v50  ;;  %v1949_v63 = vrot.slane %v1478_v50, %v16831_v40  ;;  %v17019_v3 = vpop.f32.mrb[38].mxu0 }
 0x154   : > { %v14319_v2 = vrot.slane %v1941_v30, 9  ;;  %v5994_v1 = vmax.f32 %v1940_v26, %v14317_v38  ;;  %v5995_v6 = vmax.f32 %v1939_v46, %v14318_v53  ;;  %v6481_v9 = vmax.f32 %v5993_v55, %v6001_v54  ;;  %v17021_v11 = vpop.f32.mrb[39].mxu0 }
 0x155   : > { %v1990_v19 = vrot.slane %v1976_v34, %v16831_v40  ;;  %v1991_v5 = vcombine.high %v1983_v60, %v1983_v60  ;;  %v14328_v43 = vrot.slane %v1983_v60, 9  ;;  %v1956_v48 = vrot.slane %v1942_v62, %v16831_v40 }
 0x156   : > { %v5996_v21 = vmax.f32 %v1941_v30, %v14319_v2  ;;  %v6482_v7 = vmax.f32 %v5994_v1, %v6002_v29  ;;  %v6483_v27 = vmax.f32 %v5995_v6, %v6003_v28  ;;  %v7148_v20 = vrot.slane %v6481_v9, %v16841_v56 }
 0x157   : > { %v1992_v32 = vcombine.high %v1990_v19, %v1990_v19  ;;  %v14329_v33 = vrot.slane %v1991_v5, 9  ;;  %v14330_v18 = vrot.slane %v1990_v19, 9  ;;  %v6005_v41 = vmax.f32 %v1983_v60, %v14328_v43 }
 0x158   : > { %v6484_v42 = vmax.f32 %v5996_v21, %v6004_v39  ;;  %v7152_v54 = vrot.slane %v6482_v7, %v16841_v56  ;;  %v7156_v61 = vrot.slane %v6483_v27, %v16841_v56  ;;  %v1957_v46 = vcombine.high %v1949_v63, %v1949_v63 }
 0x159   : > { %v14331_v26 = vrot.slane %v1992_v32, 9  ;;  %v6006_v47 = vmax.f32 %v1991_v5, %v14329_v33  ;;  %v6007_v13 = vmax.f32 %v1990_v19, %v14330_v18  ;;  %v1958_v50 = vcombine.high %v1956_v48, %v1956_v48  ;;  %v17028_v38 = vpop.f32.mrb[40].mxu0 }
 0x15a   : > { %v7160_v28 = vrot.slane %v6484_v42, %v16841_v56  ;;  %v8101_v29 = vsel %vm8073_vm0, %v7152_v54, %v7148_v20  ;;  %v14320_v30 = vrot.slane %v1949_v63, 9  ;;  %v14321_v53 = vrot.slane %v1957_v46, 9  ;;  %v17032_v55 = vpop.f32.mrb[41].mxu0 }
 0x15b   : > { %v8102_v39 = vsel %vm8075_vm1, %v7156_v61, %v8101_v29  ;;  %v6008_v34 = vmax.f32 %v1992_v32, %v14331_v26  ;;  %v14322_v60 = vrot.slane %v1956_v48, 9  ;;  %v14323_v62 = vrot.slane %v1958_v50, 9  ;;  %v17036_v19 = vpop.f32.mrb[42].mxu0 }
 0x15c   : > { %v5997_v2 = vmax.f32 %v1949_v63, %v14320_v30  ;;  %v5998_v1 = vmax.f32 %v1957_v46, %v14321_v53  ;;  %v8103_v6 = vsel %vm8077_vm2, %v7160_v28, %v8102_v39  ;;  %v1483_v9 = vmax.f32 %v1027_v24, 0.0 }
 0x15d   : > { %v5999_v5 = vmax.f32 %v1956_v48, %v14322_v60  ;;  %v6000_v43 = vmax.f32 %v1958_v50, %v14323_v62  ;;  %v1019_v21 = vadd.f32 %v16827_v37, %v16907_v8  ;;  %v1030_v7 = vadd.f32 %v16910_v12, %v16827_v37 }
 0x15e   : > { %v6485_v27 = vmax.f32 %v5997_v2, %v6005_v41  ;;  %v6486_v20 = vmax.f32 %v5998_v1, %v6006_v47  ;;  %v2027_v32 = vcombine.high %v1483_v9, %v1483_v9  ;;  %v2034_v33 = vrot.slane %v1483_v9, %v16831_v40  ;;  %v17053_v1 = vpop.f32.mrb[43].mxu0 }
 0x15f   : > { %v6487_v63 = vmax.f32 %v5999_v5, %v6007_v13  ;;  %v6488_v18 = vmax.f32 %v6000_v43, %v6008_v34  ;;  %v1481_v42 = vmax.f32 %v1019_v21, 0.0  ;;  %v1484_v54 = vmax.f32 %v1030_v7, 0.0 }
 0x160   : > { %v7164_v24 = vrot.slane %v6485_v27, %v16841_v56  ;;  %v7168_v48 = vrot.slane %v6486_v20, %v16841_v56  ;;  %v2041_v61 = vrot.slane %v2027_v32, %v16831_v40  ;;  %v2042_v46 = vcombine.high %v2034_v33, %v2034_v33 }
 0x161   : > { %v7172_v8 = vrot.slane %v6487_v63, %v16841_v56  ;;  %v7176_v12 = vrot.slane %v6488_v18, %v16841_v56  ;;  %v14340_v41 = vrot.slane %v2034_v33, 9  ;;  %v1993_v26 = vcombine.high %v1481_v42, %v1481_v42 }
 0x162   : > { %v8104_v47 = vsel %vm8079_vm3, %v7164_v24, %v8103_v6  ;;  %v2043_v50 = vcombine.high %v2041_v61, %v2041_v61  ;;  %v14341_v13 = vrot.slane %v2042_v46, 9  ;;  %v14342_v28 = vrot.slane %v2041_v61, 9 }
 0x163   : > { %v8105_v29 = vsel %vm8081_vm4, %v7168_v48, %v8104_v47  ;;  %v6017_v30 = vmax.f32 %v2034_v33, %v14340_v41  ;;  %v2000_v53 = vrot.slane %v1481_v42, %v16831_v40  ;;  %v2007_v39 = vrot.slane %v1993_v26, %v16831_v40 }
 0x164   : > { %v8106_v34 = vsel %vm8083_vm5, %v7172_v8, %v8105_v29  ;;  %v14343_v60 = vrot.slane %v2043_v50, 9  ;;  %v6018_v62 = vmax.f32 %v2042_v46, %v14341_v13  ;;  %v6019_v2 = vmax.f32 %v2041_v61, %v14342_v28 }
 0x165   : > { %v17056_v9 = vsel %vm8085_vm6, %v7176_v12, %v8106_v34  ;;  %v2008_v6 = vcombine.high %v2000_v53, %v2000_v53  ;;  %v2009_v5 = vcombine.high %v2007_v39, %v2007_v39  ;;  %v14332_v43 = vrot.slane %v2000_v53, 9  ;;  %v8433_v34 = vld [vmem:[#allocation2 + $0x1] sm:$0xff] }
 0x166   : > { %8340 = vst [vmem:[#allocation2 + $0x41] sm:$0xff] %v17056_v9  ;;  %v6020_v21 = vmax.f32 %v2043_v50, %v14343_v60  ;;  %v14334_v7 = vrot.slane %v2007_v39, 9  ;;  %v2044_v27 = vcombine.high %v1484_v54, %v1484_v54  ;;  %v2051_v20 = vrot.slane %v1484_v54, %v16831_v40 }
 0x167   : > { %v14333_v32 = vrot.slane %v2008_v6, 9  ;;  %v14335_v33 = vrot.slane %v2009_v5, 9  ;;  %v6009_v63 = vmax.f32 %v2000_v53, %v14332_v43  ;;  %v1022_v18 = vadd.f32 %v16827_v37, %v16914_v16  ;;  %v8434_v16 = vld [vmem:[#allocation2 + $0x11] sm:$0xff] }
 0x168   : > { %v6011_v42 = vmax.f32 %v2007_v39, %v14334_v7  ;;  %v2058_v24 = vrot.slane %v2044_v27, %v16831_v40  ;;  %v2059_v48 = vcombine.high %v2051_v20, %v2051_v20  ;;  %v14344_v61 = vrot.slane %v2051_v20, 9 }
 0x169   : > { %v6010_v46 = vmax.f32 %v2008_v6, %v14333_v32  ;;  %v6012_v8 = vmax.f32 %v2009_v5, %v14335_v33  ;;  %v6489_v12 = vmax.f32 %v6009_v63, %v6017_v30  ;;  %v1482_v41 = vmax.f32 %v1022_v18, 0.0 }
 0x16a   : > { %v6491_v26 = vmax.f32 %v6011_v42, %v6019_v2  ;;  %v2060_v47 = vcombine.high %v2058_v24, %v2058_v24  ;;  %v14345_v50 = vrot.slane %v2059_v48, 9  ;;  %v14346_v13 = vrot.slane %v2058_v24, 9 }
 0x16b   : > { %v6490_v54 = vmax.f32 %v6010_v46, %v6018_v62  ;;  %v6492_v28 = vmax.f32 %v6012_v8, %v6020_v21  ;;  %v7180_v29 = vrot.slane %v6489_v12, %v16841_v56  ;;  %v6021_v53 = vmax.f32 %v2051_v20, %v14344_v61 }
 0x16c   : > { %v7188_v39 = vrot.slane %v6491_v26, %v16841_v56  ;;  %v14347_v60 = vrot.slane %v2060_v47, 9  ;;  %v6022_v43 = vmax.f32 %v2059_v48, %v14345_v50  ;;  %v6023_v7 = vmax.f32 %v2058_v24, %v14346_v13 }
 0x16d   : > { %v7184_v6 = vrot.slane %v6490_v54, %v16841_v56  ;;  %v7192_v30 = vrot.slane %v6492_v28, %v16841_v56  ;;  %v2010_v2 = vcombine.high %v1482_v41, %v1482_v41  ;;  %v2017_v5 = vrot.slane %v1482_v41, %v16831_v40 }
 0x16e   : > { %v6024_v27 = vmax.f32 %v2060_v47, %v14347_v60  ;;  %v15203_v62 = vpack.c.bf16 %v8434_v16, %v8433_v34  ;;  %v1043_v21 = vadd.f32 %v16923_v45, %v16827_v37  ;;  %v1035_v20 = vadd.f32 %v16827_v37, %v16927_v51 }
 0x16f   : > { %v8108_v32 = vsel %vm8073_vm0, %v7184_v6, %v7180_v29  ;;  %v2024_v33 = vrot.slane %v2010_v2, %v16831_v40  ;;  %v2025_v63 = vcombine.high %v2017_v5, %v2017_v5  ;;  %v14336_v18 = vrot.slane %v2017_v5, 9 }
 0x170   : > { %v8109_v42 = vsel %vm8075_vm1, %v7188_v39, %v8108_v32  ;;  %10718 = vmatprep.mubr.bf16.mxu0 %v15203_v62  ;;  %v1487_v24 = vmax.f32 %v1043_v21, 0.0  ;;  %v1485_v48 = vmax.f32 %v1035_v20, 0.0  ;;  %v1046_v61 = vadd.f32 %v16929_v59, %v16827_v37 }
 0x171   : > { %v2026_v46 = vcombine.high %v2024_v33, %v2024_v33  ;;  %v14337_v8 = vrot.slane %v2025_v63, 9  ;;  %v14338_v45 = vrot.slane %v2024_v33, 9  ;;  %v6013_v12 = vmax.f32 %v2017_v5, %v14336_v18 }
 0x172   : > { %v8110_v51 = vsel %vm8077_vm2, %v7192_v30, %v8109_v42  ;;  %v2095_v41 = vcombine.high %v1487_v24, %v1487_v24  ;;  %v2102_v26 = vrot.slane %v1487_v24, %v16831_v40  ;;  %v2061_v47 = vcombine.high %v1485_v48, %v1485_v48  ;;  %v17082_v30 = vpop.f32.mrb[44].mxu0 }
 0x173   : > { %v14339_v50 = vrot.slane %v2026_v46, 9  ;;  %v6014_v13 = vmax.f32 %v2025_v63, %v14337_v8  ;;  %v6015_v54 = vmax.f32 %v2024_v33, %v14338_v45  ;;  %v6493_v28 = vmax.f32 %v6013_v12, %v6021_v53  ;;  %v17084_v20 = vpop.f32.mrb[45].mxu0  ;;  %v8370_v12 = vld [vmem:[#allocation2 + $0x10] sm:$0xff] }
 0x174   : > { %v2109_v29 = vrot.slane %v2095_v41, %v16831_v40  ;;  %v2110_v34 = vcombine.high %v2102_v26, %v2102_v26  ;;  %v14356_v16 = vrot.slane %v2102_v26, 9  ;;  %v2068_v37 = vrot.slane %v1485_v48, %v16831_v40  ;;  %v17089_v18 = vpop.f32.mrb[46].mxu0 }
 0x175   : > { %v6016_v59 = vmax.f32 %v2026_v46, %v14339_v50  ;;  %v6494_v39 = vmax.f32 %v6014_v13, %v6022_v43  ;;  %v6495_v60 = vmax.f32 %v6015_v54, %v6023_v7  ;;  %v7196_v6 = vrot.slane %v6493_v28, %v16841_v56  ;;  %v17092_v48 = vpop.f32.mrb[47].mxu0 }
 0x176   : > { %v2111_v2 = vcombine.high %v2109_v29, %v2109_v29  ;;  %v14357_v5 = vrot.slane %v2110_v34, 9  ;;  %v14358_v62 = vrot.slane %v2109_v29, 9  ;;  %v6033_v21 = vmax.f32 %v2102_v26, %v14356_v16  ;;  %v17104_v16 = vld [vmem:[%s20448_s2] ss:$0 sm:$0xff] }
 0x177   : > { %v6496_v53 = vmax.f32 %v6016_v59, %v6024_v27  ;;  %v7200_v32 = vrot.slane %v6494_v39, %v16841_v56  ;;  %v7204_v33 = vrot.slane %v6495_v60, %v16841_v56  ;;  %v8111_v63 = vsel %vm8079_vm3, %v7196_v6, %v8110_v51  ;;  %v16380_v39 = vld [vmem:[#allocation2] sm:$0xff] }
 0x178   : > { %v14359_v43 = vrot.slane %v2111_v2, 9  ;;  %v6034_v7 = vmax.f32 %v2110_v34, %v14357_v5  ;;  %v6035_v42 = vmax.f32 %v2109_v29, %v14358_v62  ;;  %v2075_v24 = vrot.slane %v2061_v47, %v16831_v40 }
 0x179   : > { %v7208_v46 = vrot.slane %v6496_v53, %v16841_v56  ;;  %v8112_v8 = vsel %vm8081_vm4, %v7200_v32, %v8111_v63  ;;  %v2076_v27 = vcombine.high %v2068_v37, %v2068_v37  ;;  %v14348_v45 = vrot.slane %v2068_v37, 9 }
 0x17a   : > { %v8113_v41 = vsel %vm8083_vm5, %v7204_v33, %v8112_v8  ;;  %v6036_v26 = vmax.f32 %v2111_v2, %v14359_v43  ;;  %v2077_v51 = vcombine.high %v2075_v24, %v2075_v24  ;;  %v14350_v50 = vrot.slane %v2075_v24, 9 }
 0x17b   : > { %v17098_v13 = vsel %vm8085_vm6, %v7208_v46, %v8113_v41  ;;  %v14349_v54 = vrot.slane %v2076_v27, 9  ;;  %v6025_v28 = vmax.f32 %v2068_v37, %v14348_v45  ;;  %v1488_v47 = vmax.f32 %v1046_v61, 0.0 }
 0x17c   : > { %8341 = vst [vmem:[#allocation2 + $0x51] sm:$0xff] %v17098_v13  ;;  %v14351_v29 = vrot.slane %v2077_v51, 9  ;;  %v6027_v34 = vmax.f32 %v2075_v24, %v14350_v50  ;;  %v1038_v59 = vadd.f32 %v17104_v16, %v16934_v0  ;;  %v15202_v60 = vpack.c.bf16 %v8370_v12, %v16380_v39 }
 0x17d   : > { %v6026_v6 = vmax.f32 %v2076_v27, %v14349_v54  ;;  %v6497_v2 = vmax.f32 %v6025_v28, %v6033_v21  ;;  %v2112_v5 = vcombine.high %v1488_v47, %v1488_v47  ;;  %v2119_v37 = vrot.slane %v1488_v47, %v16831_v40  ;;  %v17114_v27 = vpop.f32.mrb[48].mxu0 }
 0x17e   : > { %v6028_v61 = vmax.f32 %v2077_v51, %v14351_v29  ;;  %v6499_v62 = vmax.f32 %v6027_v34, %v6035_v42  ;;  %v1486_v53 = vmax.f32 %v1038_v59, 0.0  ;;  %10719 = vmatmul.mubr.bf16.vlgmr.msra.gmra.mrb[128].mxu0 %v15202_v60  ;;  %v1059_v32 = vadd.f32 %v17104_v16, %v16943_v25  ;;  %v17122_v60 = vpop.f32.mrb[49].mxu0 }
 0x17f   : > { %v6498_v33 = vmax.f32 %v6026_v6, %v6034_v7  ;;  %v7212_v63 = vrot.slane %v6497_v2, %v16841_v56  ;;  %v2126_v43 = vrot.slane %v2112_v5, %v16831_v40  ;;  %v2127_v0 = vcombine.high %v2119_v37, %v2119_v37 }
 0x180   : > { %v6500_v24 = vmax.f32 %v6028_v61, %v6036_v26  ;;  %v7220_v46 = vrot.slane %v6499_v62, %v16841_v56  ;;  %v14360_v21 = vrot.slane %v2119_v37, 9  ;;  %v2078_v8 = vcombine.high %v1486_v53, %v1486_v53 }
 0x181   : > { %v7216_v42 = vrot.slane %v6498_v33, %v16841_v56  ;;  %v2128_v45 = vcombine.high %v2126_v43, %v2126_v43  ;;  %v14361_v12 = vrot.slane %v2127_v0, 9  ;;  %v14362_v41 = vrot.slane %v2126_v43, 9 }
 0x182   : > { %v7224_v25 = vrot.slane %v6500_v24, %v16841_v56  ;;  %v6037_v7 = vmax.f32 %v2119_v37, %v14360_v21  ;;  %v2085_v51 = vrot.slane %v1486_v53, %v16831_v40  ;;  %v2092_v50 = vrot.slane %v2078_v8, %v16831_v40 }
 0x183   : > { %v8115_v26 = vsel %vm8073_vm0, %v7216_v42, %v7212_v63  ;;  %v14363_v54 = vrot.slane %v2128_v45, 9  ;;  %v6038_v28 = vmax.f32 %v2127_v0, %v14361_v12  ;;  %v6039_v47 = vmax.f32 %v2126_v43, %v14362_v41 }
 0x184   : > { %v8116_v29 = vsel %vm8075_vm1, %v7220_v46, %v8115_v26  ;;  %v2093_v34 = vcombine.high %v2085_v51, %v2085_v51  ;;  %v2094_v59 = vcombine.high %v2092_v50, %v2092_v50  ;;  %v14352_v39 = vrot.slane %v2085_v51, 9 }
 0x185   : > { %v6040_v6 = vmax.f32 %v2128_v45, %v14363_v54  ;;  %v14354_v2 = vrot.slane %v2092_v50, 9  ;;  %v8117_v5 = vsel %vm8077_vm2, %v7224_v25, %v8116_v29  ;;  %v1491_v37 = vmax.f32 %v1059_v32, 0.0  ;;  %v17130_v45 = vpop.f32.mrb[50].mxu0 }
 0x186   : > { %v14353_v61 = vrot.slane %v2093_v34, 9  ;;  %v14355_v62 = vrot.slane %v2094_v59, 9  ;;  %v6029_v53 = vmax.f32 %v2085_v51, %v14352_v39  ;;  %v1051_v33 = vadd.f32 %v17104_v16, %v16948_v31 }
 0x187   : > { %v6031_v63 = vmax.f32 %v2092_v50, %v14354_v2  ;;  %v2163_v43 = vcombine.high %v1491_v37, %v1491_v37  ;;  %v2170_v0 = vrot.slane %v1491_v37, %v16831_v40  ;;  %v1062_v24 = vadd.f32 %v17104_v16, %v16957_v35  ;;  %v17138_v2 = vpop.f32.mrb[51].mxu0 }
 0x188   : > { %v6030_v46 = vmax.f32 %v2093_v34, %v14353_v61  ;;  %v6032_v21 = vmax.f32 %v2094_v59, %v14355_v62  ;;  %v6501_v8 = vmax.f32 %v6029_v53, %v6037_v7  ;;  %v1489_v42 = vmax.f32 %v1051_v33, 0.0 }
 0x189   : > { %v6503_v32 = vmax.f32 %v6031_v63, %v6039_v47  ;;  %v2177_v12 = vrot.slane %v2163_v43, %v16831_v40  ;;  %v2178_v41 = vcombine.high %v2170_v0, %v2170_v0  ;;  %v14372_v25 = vrot.slane %v2170_v0, 9 }
 0x18a   : > { %v6502_v51 = vmax.f32 %v6030_v46, %v6038_v28  ;;  %v6504_v31 = vmax.f32 %v6032_v21, %v6040_v6  ;;  %v7228_v50 = vrot.slane %v6501_v8, %v16841_v56  ;;  %v2129_v26 = vcombine.high %v1489_v42, %v1489_v42  ;;  %v8435_v21 = vld [vmem:[#allocation2 + $0x21] sm:$0xff] }
 0x18b   : > { %v7236_v54 = vrot.slane %v6503_v32, %v16841_v56  ;;  %v2179_v29 = vcombine.high %v2177_v12, %v2177_v12  ;;  %v14373_v35 = vrot.slane %v2178_v41, 9  ;;  %v14374_v34 = vrot.slane %v2177_v12, 9 }
 0x18c   : > { %v7232_v7 = vrot.slane %v6502_v51, %v16841_v56  ;;  %v7240_v59 = vrot.slane %v6504_v31, %v16841_v56  ;;  %v8118_v47 = vsel %vm8079_vm3, %v7228_v50, %v8117_v5  ;;  %v6049_v39 = vmax.f32 %v2170_v0, %v14372_v25 }
 0x18d   : > { %v14375_v37 = vrot.slane %v2179_v29, 9  ;;  %v6050_v28 = vmax.f32 %v2178_v41, %v14373_v35  ;;  %v6051_v6 = vmax.f32 %v2177_v12, %v14374_v34  ;;  %v2136_v61 = vrot.slane %v1489_v42, %v16831_v40 }
 0x18e   : > { %v8119_v62 = vsel %vm8081_vm4, %v7232_v7, %v8118_v47  ;;  %v2143_v53 = vrot.slane %v2129_v26, %v16831_v40  ;;  %v1492_v33 = vmax.f32 %v1062_v24, 0.0  ;;  %v1054_v63 = vadd.f32 %v17104_v16, %v16961_v44 }
 0x18f   : > { %v8120_v43 = vsel %vm8083_vm5, %v7236_v54, %v8119_v62  ;;  %v6052_v46 = vmax.f32 %v2179_v29, %v14375_v37  ;;  %v2144_v5 = vcombine.high %v2136_v61, %v2136_v61  ;;  %v14364_v0 = vrot.slane %v2136_v61, 9 }
 0x190   : > { %v17147_v8 = vsel %vm8085_vm6, %v7240_v59, %v8120_v43  ;;  %v2145_v32 = vcombine.high %v2143_v53, %v2143_v53  ;;  %v14366_v12 = vrot.slane %v2143_v53, 9  ;;  %v2180_v42 = vcombine.high %v1492_v33, %v1492_v33  ;;  %v8372_v43 = vld [vmem:[#allocation2 + $0x30] sm:$0xff] }
 0x191   : > { %8342 = vst [vmem:[#allocation2 + $0x61] sm:$0xff] %v17147_v8  ;;  %v14365_v41 = vrot.slane %v2144_v5, 9  ;;  %v6041_v25 = vmax.f32 %v2136_v61, %v14364_v0  ;;  %v2187_v24 = vrot.slane %v1492_v33, %v16831_v40  ;;  %v1490_v51 = vmax.f32 %v1054_v63, 0.0 }
 0x192   : > { %v14367_v44 = vrot.slane %v2145_v32, 9  ;;  %v6043_v31 = vmax.f32 %v2143_v53, %v14366_v12  ;;  %v2194_v50 = vrot.slane %v2180_v42, %v16831_v40  ;;  %v15212_v26 = vpack.c.bf16 %v17008_v49, %v8435_v21 }
 0x193   : > { %v6042_v54 = vmax.f32 %v2144_v5, %v14365_v41  ;;  %v6505_v29 = vmax.f32 %v6041_v25, %v6049_v39  ;;  %v2195_v35 = vcombine.high %v2187_v24, %v2187_v24  ;;  %v14376_v34 = vrot.slane %v2187_v24, 9 }
 0x194   : > { %v6044_v7 = vmax.f32 %v2145_v32, %v14367_v44  ;;  %v6507_v59 = vmax.f32 %v6043_v31, %v6051_v6  ;;  %v2196_v47 = vcombine.high %v2194_v50, %v2194_v50  ;;  %v14378_v37 = vrot.slane %v2194_v50, 9  ;;  %10728 = vmatprep.mubr.bf16.mxu0 %v15212_v26  ;;  %v8371_v32 = vld [vmem:[#allocation2 + $0x20] sm:$0xff] }
 0x195   : > { %v6506_v62 = vmax.f32 %v6042_v54, %v6050_v28  ;;  %v7244_v61 = vrot.slane %v6505_v29, %v16841_v56  ;;  %v14377_v33 = vrot.slane %v2195_v35, 9  ;;  %v6053_v63 = vmax.f32 %v2187_v24, %v14376_v34 }
 0x196   : > { %v6508_v53 = vmax.f32 %v6044_v7, %v6052_v46  ;;  %v7252_v0 = vrot.slane %v6507_v59, %v16841_v56  ;;  %v14379_v12 = vrot.slane %v2196_v47, 9  ;;  %v6055_v49 = vmax.f32 %v2194_v50, %v14378_v37 }
 0x197   : > { %v7248_v39 = vrot.slane %v6506_v62, %v16841_v56  ;;  %v6054_v5 = vmax.f32 %v2195_v35, %v14377_v33  ;;  %v2146_v21 = vcombine.high %v1490_v51, %v1490_v51  ;;  %v2153_v6 = vrot.slane %v1490_v51, %v16831_v40 }
 0x198   : > { %v7256_v42 = vrot.slane %v6508_v53, %v16841_v56  ;;  %v6056_v28 = vmax.f32 %v2196_v47, %v14379_v12  ;;  %v15211_v41 = vpack.c.bf16 %v8372_v43, %v8371_v32  ;;  %v1075_v25 = vadd.f32 %v17104_v16, %v16966_v10 }
 0x199   : > { %v8122_v46 = vsel %vm8073_vm0, %v7248_v39, %v7244_v61  ;;  %v2160_v24 = vrot.slane %v2146_v21, %v16831_v40  ;;  %v2161_v44 = vcombine.high %v2153_v6, %v2153_v6  ;;  %v14368_v31 = vrot.slane %v2153_v6, 9 }
 0x19a   : > { %v8123_v50 = vsel %vm8075_vm1, %v7252_v0, %v8122_v46  ;;  %10729 = vmatmul.mubr.bf16.gmra.mrb[132].mxu0 %v15211_v41  ;;  %v1495_v26 = vmax.f32 %v1075_v25, 0.0  ;;  %v1067_v51 = vadd.f32 %v17104_v16, %v16969_v15  ;;  %v1078_v54 = vadd.f32 %v17104_v16, %v16972_v23 }
 0x19b   : > { %v2162_v29 = vcombine.high %v2160_v24, %v2160_v24  ;;  %v14369_v35 = vrot.slane %v2161_v44, 9  ;;  %v14370_v34 = vrot.slane %v2160_v24, 9  ;;  %v6045_v10 = vmax.f32 %v2153_v6, %v14368_v31 }
 0x19c   : > { %v8124_v7 = vsel %vm8077_vm2, %v7256_v42, %v8123_v50  ;;  %v2231_v59 = vcombine.high %v1495_v26, %v1495_v26  ;;  %v2238_v47 = vrot.slane %v1495_v26, %v16831_v40  ;;  %v1493_v37 = vmax.f32 %v1067_v51, 0.0 }
 0x19d   : > { %v14371_v62 = vrot.slane %v2162_v29, 9  ;;  %v6046_v61 = vmax.f32 %v2161_v44, %v14369_v35  ;;  %v6047_v33 = vmax.f32 %v2160_v24, %v14370_v34  ;;  %v6509_v43 = vmax.f32 %v6045_v10, %v6053_v63  ;;  %v17178_v34 = vpop.f32.mrb[52].mxu0 }
 0x19e   : > { %v2245_v53 = vrot.slane %v2231_v59, %v16831_v40  ;;  %v2246_v15 = vcombine.high %v2238_v47, %v2238_v47  ;;  %v14388_v0 = vrot.slane %v2238_v47, 9  ;;  %v2197_v12 = vcombine.high %v1493_v37, %v1493_v37 }
 0x19f   : > { %v6048_v23 = vmax.f32 %v2162_v29, %v14371_v62  ;;  %v6510_v39 = vmax.f32 %v6046_v61, %v6054_v5  ;;  %v6511_v21 = vmax.f32 %v6047_v33, %v6055_v49  ;;  %v7260_v6 = vrot.slane %v6509_v43, %v16841_v56  ;;  %v17184_v33 = vpop.f32.mrb[53].mxu0 }
 0x1a0   : > { %v2247_v32 = vcombine.high %v2245_v53, %v2245_v53  ;;  %v14389_v42 = vrot.slane %v2246_v15, 9  ;;  %v14390_v41 = vrot.slane %v2245_v53, 9  ;;  %v6065_v25 = vmax.f32 %v2238_v47, %v14388_v0 }
 0x1a1   : > { %v6512_v46 = vmax.f32 %v6048_v23, %v6056_v28  ;;  %v7264_v31 = vrot.slane %v6510_v39, %v16841_v56  ;;  %v7268_v24 = vrot.slane %v6511_v21, %v16841_v56  ;;  %v8125_v63 = vsel %vm8079_vm3, %v7260_v6, %v8124_v7 }
 0x1a2   : > { %v14391_v44 = vrot.slane %v2247_v32, 9  ;;  %v6066_v50 = vmax.f32 %v2246_v15, %v14389_v42  ;;  %v6067_v26 = vmax.f32 %v2245_v53, %v14390_v41  ;;  %v2204_v51 = vrot.slane %v1493_v37, %v16831_v40  ;;  %v17193_v41 = vpop.f32.mrb[54].mxu0 }
 0x1a3   : > { %v7272_v49 = vrot.slane %v6512_v46, %v16841_v56  ;;  %v8126_v5 = vsel %vm8081_vm4, %v7264_v31, %v8125_v63  ;;  %v2211_v29 = vrot.slane %v2197_v12, %v16831_v40  ;;  %v1496_v35 = vmax.f32 %v1078_v54, 0.0  ;;  %v16207_v46 = vld [vmem:[%s20449_s3 + $0x104] ss:$8 sps:$4 sm:$0xff]  }
 0x1a4   : > { %v8127_v28 = vsel %vm8083_vm5, %v7268_v24, %v8126_v5  ;;  %v6068_v10 = vmax.f32 %v2247_v32, %v14391_v44  ;;  %v2212_v59 = vcombine.high %v2204_v51, %v2204_v51  ;;  %v14380_v47 = vrot.slane %v2204_v51, 9  ;;  %v17198_v44 = vpop.f32.mrb[55].mxu0  ;;  %15693 = vmatprep.subr.bf16.mxu1 %v16207_v46  ;;  %10879 = vmatprep.subr.bf16.mxu0 %v16207_v46 }
 0x1a5   : > { %v17182_v7 = vsel %vm8085_vm6, %v7272_v49, %v8127_v28  ;;  %v2213_v62 = vcombine.high %v2211_v29, %v2211_v29  ;;  %v14382_v61 = vrot.slane %v2211_v29, 9  ;;  %v2248_v37 = vcombine.high %v1496_v35, %v1496_v35 }
 0x1a6   : > { %8343 = vst [vmem:[#allocation2 + $0x71] sm:$0xff] %v17182_v7  ;;  %v14381_v43 = vrot.slane %v2212_v59, 9  ;;  %v6057_v53 = vmax.f32 %v2204_v51, %v14380_v47  ;;  %v2255_v54 = vrot.slane %v1496_v35, %v16831_v40  ;;  %v1070_v15 = vadd.f32 %v17104_v16, %v16977_v17 }
 0x1a7   : > { %v14383_v0 = vrot.slane %v2213_v62, 9  ;;  %v6059_v12 = vmax.f32 %v2211_v29, %v14382_v61  ;;  %v2262_v23 = vrot.slane %v2248_v37, %v16831_v40  ;;  %v1091_v39 = vadd.f32 %v17104_v16, %v16986_v57  ;;  %v16209_v57 = vld [vmem:[%s20449_s3 + $0x100] ss:$8 sps:$4 sm:$0xff]  }
 0x1a8   : > { %v6058_v21 = vmax.f32 %v2212_v59, %v14381_v43  ;;  %v6513_v6 = vmax.f32 %v6057_v53, %v6065_v25  ;;  %v2263_v32 = vcombine.high %v2255_v54, %v2255_v54  ;;  %v14392_v42 = vrot.slane %v2255_v54, 9  ;;  %15709 = vmatpush1.bf16.msra.mxu1 %v16209_v57  ;;  %10880 = vmatpush1.bf16.msra.mxu0 %v16209_v57 }
 0x1a9   : > { %v6060_v31 = vmax.f32 %v2213_v62, %v14383_v0  ;;  %v6515_v24 = vmax.f32 %v6059_v12, %v6067_v26  ;;  %v2264_v17 = vcombine.high %v2262_v23, %v2262_v23  ;;  %v14394_v63 = vrot.slane %v2262_v23, 9 }
 0x1aa   : > { %v6514_v51 = vmax.f32 %v6058_v21, %v6066_v50  ;;  %v7276_v25 = vrot.slane %v6513_v6, %v16841_v56  ;;  %v14393_v49 = vrot.slane %v2263_v32, 9  ;;  %v6069_v5 = vmax.f32 %v2255_v54, %v14392_v42  ;;  %v16210_v50 = vld [vmem:[%s20449_s3 + $0x114] ss:$8 sps:$4 sm:$0xff]  }
 0x1ab   : > { %v6516_v29 = vmax.f32 %v6060_v31, %v6068_v10  ;;  %v7284_v35 = vrot.slane %v6515_v24, %v16841_v56  ;;  %v14395_v28 = vrot.slane %v2264_v17, 9  ;;  %v17205_v26 = vmax.f32 %v2262_v23, %v14394_v63  ;;  %v17218_v23 = vpop.f32.mrb[56].mxu0  ;;  %15694 = vmatprep.subr.bf16.mxu1 %v16210_v50  ;;  %10881 = vmatprep.subr.bf16.mxu0 %v16210_v50 }
 0x1ac   : > { %v7280_v59 = vrot.slane %v6514_v51, %v16841_v56  ;;  %v6070_v47 = vmax.f32 %v2263_v32, %v14393_v49  ;;  %v1494_v62 = vmax.f32 %v1070_v15, 0.0  ;;  %v1499_v61 = vmax.f32 %v1091_v39, 0.0  ;;  %20468 = vst [vmem:[#allocation8_spill] sm:$0xff] %v17218_v23  ;;  %v17222_v42 = vpop.f32.mrb[57].mxu0 }
 0x1ad   : > { %v7288_v37 = vrot.slane %v6516_v29, %v16841_v56  ;;  %v6072_v43 = vmax.f32 %v2264_v17, %v14395_v28  ;;  %v1083_v10 = vadd.f32 %v17104_v16, %v16988_v4  ;;  %v1094_v53 = vadd.f32 %v17104_v16, %v16991_v14  ;;  %20469 = vst [vmem:[#allocation9_spill] sm:$0xff] %v17222_v42  ;;  %v16212_v4 = vld [vmem:[%s20449_s3 + $0x110] ss:$8 sps:$4 sm:$0xff]   ;;  %v17230_v28 = vpop.f32.mrb[58].mxu0 }
 0x1ae   : > { %v8129_v54 = vsel %vm8073_vm0, %v7280_v59, %v7276_v25  ;;  %v2214_v0 = vcombine.high %v1494_v62, %v1494_v62  ;;  %v2221_v12 = vrot.slane %v1494_v62, %v16831_v40  ;;  %v2299_v15 = vcombine.high %v1499_v61, %v1499_v61  ;;  %15710 = vmatpush1.bf16.msra.mxu1 %v16212_v4 }
 0x1af   : > { %v8130_v39 = vsel %vm8075_vm1, %v7284_v35, %v8129_v54  ;;  %v2306_v21 = vrot.slane %v1499_v61, %v16831_v40  ;;  %v1497_v6 = vmax.f32 %v1083_v10, 0.0  ;;  %v1500_v32 = vmax.f32 %v1094_v53, 0.0  ;;  %10882 = vmatpush1.bf16.msra.mxu0 %v16212_v4  ;;  %20470 = vst [vmem:[#allocation10_spill] sm:$0xff] %v17230_v28 }
 0x1b0   : > { %v2228_v14 = vrot.slane %v2214_v0, %v16831_v40  ;;  %v2229_v46 = vcombine.high %v2221_v12, %v2221_v12  ;;  %v14384_v31 = vrot.slane %v2221_v12, 9  ;;  %v8131_v24 = vsel %vm8077_vm2, %v7288_v37, %v8130_v39 }
 0x1b1   : > { %v2313_v17 = vrot.slane %v2299_v15, %v16831_v40  ;;  %v2314_v63 = vcombine.high %v2306_v21, %v2306_v21  ;;  %v14404_v57 = vrot.slane %v2306_v21, 9  ;;  %v2265_v51 = vcombine.high %v1497_v6, %v1497_v6 }
 0x1b2   : > { %v2230_v25 = vcombine.high %v2228_v14, %v2228_v14  ;;  %v14385_v49 = vrot.slane %v2229_v46, 9  ;;  %v14386_v29 = vrot.slane %v2228_v14, 9  ;;  %v6061_v35 = vmax.f32 %v2221_v12, %v14384_v31  ;;  %v17235_v31 = vpop.f32.mrb[59].mxu0 }
 0x1b3   : > { %v2315_v59 = vcombine.high %v2313_v17, %v2313_v17  ;;  %v14405_v62 = vrot.slane %v2314_v63, 9  ;;  %v14406_v61 = vrot.slane %v2313_v17, 9  ;;  %v6081_v50 = vmax.f32 %v2306_v21, %v14404_v57 }
 0x1b4   : > { %v14387_v10 = vrot.slane %v2230_v25, 9  ;;  %v6062_v53 = vmax.f32 %v2229_v46, %v14385_v49  ;;  %v6063_v37 = vmax.f32 %v2228_v14, %v14386_v29  ;;  %v6517_v54 = vmax.f32 %v6061_v35, %v6069_v5 }
 0x1b5   : > { %v14407_v0 = vrot.slane %v2315_v59, 9  ;;  %v6082_v15 = vmax.f32 %v2314_v63, %v14405_v62  ;;  %v6083_v39 = vmax.f32 %v2313_v17, %v14406_v61  ;;  %v2272_v36 = vrot.slane %v1497_v6, %v16831_v40 }
 0x1b6   : > { %v6064_v4 = vmax.f32 %v2230_v25, %v14387_v10  ;;  %v6518_v42 = vmax.f32 %v6062_v53, %v6070_v47  ;;  %v6519_v23 = vmax.f32 %v6063_v37, %v17205_v26  ;;  %v7292_v12 = vrot.slane %v6517_v54, %v16841_v56 }
 0x1b7   : > { %v6084_v28 = vmax.f32 %v2315_v59, %v14407_v0  ;;  %v2279_v21 = vrot.slane %v2265_v51, %v16831_v40  ;;  %v2280_v57 = vcombine.high %v2272_v36, %v2272_v36  ;;  %v14396_v46 = vrot.slane %v2272_v36, 9 }
 0x1b8   : > { %v6520_v14 = vmax.f32 %v6064_v4, %v6072_v43  ;;  %v7296_v5 = vrot.slane %v6518_v42, %v16841_v56  ;;  %v7300_v17 = vrot.slane %v6519_v23, %v16841_v56  ;;  %v8132_v6 = vsel %vm8079_vm3, %v7292_v12, %v8131_v24 }
 0x1b9   : > { %v2281_v63 = vcombine.high %v2279_v21, %v2279_v21  ;;  %v14397_v47 = vrot.slane %v2280_v57, 9  ;;  %v14398_v25 = vrot.slane %v2279_v21, 9  ;;  %v6073_v26 = vmax.f32 %v2272_v36, %v14396_v46  ;;  %v8374_v46 = vld [vmem:[#allocation2 + $0x50] sm:$0xff] }
 0x1ba   : > { %v7304_v49 = vrot.slane %v6520_v14, %v16841_v56  ;;  %v8133_v29 = vsel %vm8081_vm4, %v7296_v5, %v8132_v6  ;;  %v2316_v35 = vcombine.high %v1500_v32, %v1500_v32  ;;  %v2323_v51 = vrot.slane %v1500_v32, %v16831_v40 }
 0x1bb   : > { %v8134_v59 = vsel %vm8083_vm5, %v7300_v17, %v8133_v29  ;;  %v14399_v43 = vrot.slane %v2281_v63, 9  ;;  %v6074_v62 = vmax.f32 %v2280_v57, %v14397_v47  ;;  %v6075_v42 = vmax.f32 %v2279_v21, %v14398_v25 }
 0x1bc   : > { %v8135_v23 = vsel %vm8085_vm6, %v7304_v49, %v8134_v59  ;;  %v6521_v61 = vmax.f32 %v6073_v26, %v6081_v50  ;;  %v2330_v24 = vrot.slane %v2316_v35, %v16831_v40  ;;  %v2331_v10 = vcombine.high %v2323_v51, %v2323_v51 }
 0x1bd   : > { %8344 = vst [vmem:[#allocation2 + $0x81] sm:$0xff] %v8135_v23  ;;  %v6076_v36 = vmax.f32 %v2281_v63, %v14399_v43  ;;  %v6522_v53 = vmax.f32 %v6074_v62, %v6082_v15  ;;  %v6523_v37 = vmax.f32 %v6075_v42, %v6083_v39  ;;  %v14408_v54 = vrot.slane %v2323_v51, 9  ;;  %v8373_v39 = vld [vmem:[#allocation2 + $0x40] sm:$0xff] }
 0x1be   : > { %v7308_v0 = vrot.slane %v6521_v61, %v16841_v56  ;;  %v2332_v4 = vcombine.high %v2330_v24, %v2330_v24  ;;  %v14409_v32 = vrot.slane %v2331_v10, 9  ;;  %v14410_v12 = vrot.slane %v2330_v24, 9 }
 0x1bf   : > { %v6524_v14 = vmax.f32 %v6076_v36, %v6084_v28  ;;  %v7312_v21 = vrot.slane %v6522_v53, %v16841_v56  ;;  %v7316_v57 = vrot.slane %v6523_v37, %v16841_v56  ;;  %v6085_v50 = vmax.f32 %v2323_v51, %v14408_v54 }
 0x1c0   : > { %v14411_v5 = vrot.slane %v2332_v4, 9  ;;  %v17250_v17 = vmax.f32 %v2331_v10, %v14409_v32  ;;  %v17252_v6 = vmax.f32 %v2330_v24, %v14410_v12  ;;  %v1086_v15 = vadd.f32 %v17104_v16, %v16994_v22 }
 0x1c1   : > { %v7320_v63 = vrot.slane %v6524_v14, %v16841_v56  ;;  %v8136_v47 = vsel %vm8073_vm0, %v7312_v21, %v7308_v0  ;;  %v15221_v28 = vpack.c.bf16 %v17098_v13, %v17056_v9  ;;  %v15220_v25 = vpack.c.bf16 %v8374_v46, %v8373_v39  ;;  %v16213_v39 = vld [vmem:[%s20449_s3 + $0x124] ss:$8 sps:$4 sm:$0xff]  }
 0x1c2   : > { %v8137_v26 = vsel %vm8075_vm1, %v7316_v57, %v8136_v47  ;;  %v17261_v49 = vmax.f32 %v2332_v4, %v14411_v5  ;;  %v1498_v29 = vmax.f32 %v1086_v15, 0.0  ;;  %v1107_v35 = vadd.f32 %v17104_v16, %v17012_v52  ;;  %15695 = vmatprep.subr.bf16.mxu1 %v16213_v39  ;;  %10883 = vmatprep.subr.bf16.mxu0 %v16213_v39 }
 0x1c3   : > { %v8138_v51 = vsel %vm8077_vm2, %v7320_v63, %v8137_v26  ;;  %10738 = vmatprep.mubr.bf16.mxu0 %v15221_v28  ;;  %v1099_v22 = vadd.f32 %v17104_v16, %v17015_v58  ;;  %v1110_v59 = vadd.f32 %v17104_v16, %v17019_v3  ;;  %v1102_v9 = vadd.f32 %v17104_v16, %v17021_v11  ;;  %v16215_v26 = vld [vmem:[%s20449_s3 + $0x120] ss:$8 sps:$4 sm:$0xff]  }
 0x1c4   : > { %v2282_v13 = vcombine.high %v1498_v29, %v1498_v29  ;;  %v2289_v43 = vrot.slane %v1498_v29, %v16831_v40  ;;  %10739 = vmatmul.mubr.bf16.gmra.mrb[136].mxu0 %v15220_v25  ;;  %v1503_v62 = vmax.f32 %v1107_v35, 0.0  ;;  %v17275_v52 = vadd.f32 %v17104_v16, %v17028_v38  ;;  %15711 = vmatpush1.bf16.msra.mxu1 %v16215_v26 }
 0x1c5   : > { %v1501_v42 = vmax.f32 %v1099_v22, 0.0  ;;  %v17277_v23 = vmax.f32 %v1110_v59, 0.0  ;;  %v17279_v61 = vmax.f32 %v1102_v9, 0.0  ;;  %v17283_v58 = vadd.f32 %v17104_v16, %v17032_v55  ;;  %10884 = vmatpush1.bf16.msra.mxu0 %v16215_v26 }
 0x1c6   : > { %v2296_v3 = vrot.slane %v2282_v13, %v16831_v40  ;;  %v2297_v11 = vcombine.high %v2289_v43, %v2289_v43  ;;  %v14400_v24 = vrot.slane %v2289_v43, 9  ;;  %v2367_v10 = vcombine.high %v1503_v62, %v1503_v62 }
 0x1c7   : > { %v2374_v36 = vrot.slane %v1503_v62, %v16831_v40  ;;  %v2333_v53 = vcombine.high %v1501_v42, %v1501_v42  ;;  %v2340_v38 = vrot.slane %v1501_v42, %v16831_v40  ;;  %v2384_v37 = vcombine.high %v17277_v23, %v17277_v23  ;;  %v17301_v62 = vpop.f32.mrb[60].mxu0 }
 0x1c8   : > { %v2298_v54 = vcombine.high %v2296_v3, %v2296_v3  ;;  %v14401_v0 = vrot.slane %v2297_v11, 9  ;;  %v14402_v4 = vrot.slane %v2296_v3, 9  ;;  %v6077_v32 = vmax.f32 %v2289_v43, %v14400_v24 }
 0x1c9   : > { %v2381_v55 = vrot.slane %v2367_v10, %v16831_v40  ;;  %v2382_v12 = vcombine.high %v2374_v36, %v2374_v36  ;;  %v14420_v46 = vrot.slane %v2374_v36, 9  ;;  %v2347_v14 = vrot.slane %v2333_v53, %v16831_v40 }
 0x1ca   : > { %v14403_v21 = vrot.slane %v2298_v54, 9  ;;  %v6078_v57 = vmax.f32 %v2297_v11, %v14401_v0  ;;  %v6079_v5 = vmax.f32 %v2296_v3, %v14402_v4  ;;  %v6525_v15 = vmax.f32 %v6077_v32, %v6085_v50 }
 0x1cb   : > { %v2383_v63 = vcombine.high %v2381_v55, %v2381_v55  ;;  %v14421_v47 = vrot.slane %v2382_v12, 9  ;;  %v14422_v28 = vrot.slane %v2381_v55, 9  ;;  %v6097_v25 = vmax.f32 %v2374_v36, %v14420_v46 }
 0x1cc   : > { %v6080_v29 = vmax.f32 %v2298_v54, %v14403_v21  ;;  %v6526_v35 = vmax.f32 %v6078_v57, %v17250_v17  ;;  %v6527_v22 = vmax.f32 %v6079_v5, %v17252_v6  ;;  %v7324_v59 = vrot.slane %v6525_v15, %v16841_v56  ;;  %v16216_v6 = vld [vmem:[%s20449_s3 + $0x134] ss:$8 sps:$4 sm:$0xff]   ;;  %v17310_v54 = vpop.f32.mrb[61].mxu0 }
 0x1cd   : > { %v14423_v50 = vrot.slane %v2383_v63, 9  ;;  %v6098_v9 = vmax.f32 %v2382_v12, %v14421_v47  ;;  %v6099_v13 = vmax.f32 %v2381_v55, %v14422_v28  ;;  %v2348_v43 = vcombine.high %v2340_v38, %v2340_v38  ;;  %15696 = vmatprep.subr.bf16.mxu1 %v16216_v6  ;;  %10885 = vmatprep.subr.bf16.mxu0 %v16216_v6 }
 0x1ce   : > { %v6528_v42 = vmax.f32 %v6080_v29, %v17261_v49  ;;  %v7328_v3 = vrot.slane %v6526_v35, %v16841_v56  ;;  %v7332_v11 = vrot.slane %v6527_v22, %v16841_v56  ;;  %v8139_v17 = vsel %vm8079_vm3, %v7324_v59, %v8138_v51  ;;  %v16218_v49 = vld [vmem:[%s20449_s3 + $0x130] ss:$8 sps:$4 sm:$0xff]  }
 0x1cf   : > { %v6100_v24 = vmax.f32 %v2383_v63, %v14423_v50  ;;  %v2349_v10 = vcombine.high %v2347_v14, %v2347_v14  ;;  %v14412_v36 = vrot.slane %v2340_v38, 9  ;;  %v14413_v53 = vrot.slane %v2348_v43, 9  ;;  %15712 = vmatpush1.bf16.msra.mxu1 %v16218_v49  ;;  %v17324_v63 = vpop.f32.mrb[62].mxu0  ;;  %10886 = vmatpush1.bf16.msra.mxu0 %v16218_v49 }
 0x1d0   : > { %v7336_v0 = vrot.slane %v6528_v42, %v16841_v56  ;;  %v8140_v4 = vsel %vm8081_vm4, %v7328_v3, %v8139_v17  ;;  %v14414_v51 = vrot.slane %v2347_v14, 9  ;;  %v2391_v32 = vrot.slane %v17277_v23, %v16831_v40  ;;  %v16219_v23 = vld [vmem:[%s20449_s3 + $0x144] ss:$8 sps:$4 sm:$0xff]   ;;  %v17330_v29 = vpop.f32.mrb[63].mxu0 }
 0x1d1   : > { %v8141_v55 = vsel %vm8083_vm5, %v7332_v11, %v8140_v4  ;;  %v14415_v12 = vrot.slane %v2349_v10, 9  ;;  %v6089_v46 = vmax.f32 %v2340_v38, %v14412_v36  ;;  %v6090_v21 = vmax.f32 %v2348_v43, %v14413_v53  ;;  %15697 = vmatprep.subr.bf16.mxu1 %v16219_v23  ;;  %10887 = vmatprep.subr.bf16.mxu0 %v16219_v23 }
 0x1d2   : > { %v17321_v57 = vsel %vm8085_vm6, %v7336_v0, %v8141_v55  ;;  %v6091_v5 = vmax.f32 %v2347_v14, %v14414_v51  ;;  %v2398_v15 = vrot.slane %v2384_v37, %v16831_v40  ;;  %v2399_v39 = vcombine.high %v2391_v32, %v2391_v32  ;;  %v16221_v37 = vld [vmem:[%s20449_s3 + $0x140] ss:$8 sps:$4 sm:$0xff]   ;;  %v17350_v51 = vpop.f32.mrb[64].mxu0 }
 0x1d3   : > { %8345 = vst [vmem:[#allocation2 + $0xb1] sm:$0xff] %v17321_v57  ;;  %v6092_v47 = vmax.f32 %v2349_v10, %v14415_v12  ;;  %v6529_v38 = vmax.f32 %v6089_v46, %v6097_v25  ;;  %v6530_v28 = vmax.f32 %v6090_v21, %v6098_v9  ;;  %v14424_v26 = vrot.slane %v2391_v32, 9  ;;  %15713 = vmatpush1.bf16.msra.mxu1 %v16221_v37  ;;  %v17354_v21 = vpop.f32.mrb[65].mxu0 }
 0x1d4   : > { %v6531_v14 = vmax.f32 %v6091_v5, %v6099_v13  ;;  %v2400_v35 = vcombine.high %v2398_v15, %v2398_v15  ;;  %v14425_v22 = vrot.slane %v2399_v39, 9  ;;  %v14426_v59 = vrot.slane %v2398_v15, 9  ;;  %v16222_v13 = vld [vmem:[%s20449_s3 + $0x154] ss:$8 sps:$4 sm:$0xff]   ;;  %10888 = vmatpush1.bf16.msra.mxu0 %v16221_v37 }
 0x1d5   : > { %v6532_v50 = vmax.f32 %v6092_v47, %v6100_v24  ;;  %v7340_v43 = vrot.slane %v6529_v38, %v16841_v56  ;;  %v7344_v42 = vrot.slane %v6530_v28, %v16841_v56  ;;  %v6101_v25 = vmax.f32 %v2391_v32, %v14424_v26  ;;  %15698 = vmatprep.subr.bf16.mxu1 %v16222_v13 }
 0x1d6   : > { %v7348_v9 = vrot.slane %v6531_v14, %v16841_v56  ;;  %v14427_v3 = vrot.slane %v2400_v35, 9  ;;  %v6102_v11 = vmax.f32 %v2399_v39, %v14425_v22  ;;  %v6103_v17 = vmax.f32 %v2398_v15, %v14426_v59  ;;  %10889 = vmatprep.subr.bf16.mxu0 %v16222_v13 }
 0x1d7   : > { %v7352_v6 = vrot.slane %v6532_v50, %v16841_v56  ;;  %v8143_v24 = vsel %vm8073_vm0, %v7344_v42, %v7340_v43  ;;  %v2350_v10 = vcombine.high %v17279_v61, %v17279_v61  ;;  %v2357_v36 = vrot.slane %v17279_v61, %v16831_v40  ;;  %v16224_v61 = vld [vmem:[%s20449_s3 + $0x150] ss:$8 sps:$4 sm:$0xff]  }
 0x1d8   : > { %v8144_v53 = vsel %vm8075_vm1, %v7348_v9, %v8143_v24  ;;  %v6104_v49 = vmax.f32 %v2400_v35, %v14427_v3  ;;  %v1507_v0 = vmax.f32 %v17275_v52, 0.0  ;;  %v1505_v4 = vmax.f32 %v17283_v58, 0.0  ;;  %15714 = vmatpush1.bf16.msra.mxu1 %v16224_v61  ;;  %10890 = vmatpush1.bf16.msra.mxu0 %v16224_v61  ;;  %v17363_v35 = vpop.f32.mrb[66].mxu0 }
 0x1d9   : > { %v2364_v32 = vrot.slane %v2350_v10, %v16831_v40  ;;  %v2365_v55 = vcombine.high %v2357_v36, %v2357_v36  ;;  %v14416_v12 = vrot.slane %v2357_v36, 9  ;;  %v8145_v46 = vsel %vm8077_vm2, %v7352_v6, %v8144_v53  ;;  %v17366_v61 = vpop.f32.mrb[67].mxu0 }
 0x1da   : > { %v2435_v5 = vcombine.high %v1507_v0, %v1507_v0  ;;  %v2442_v52 = vrot.slane %v1507_v0, %v16831_v40  ;;  %v2401_v58 = vcombine.high %v1505_v4, %v1505_v4  ;;  %v2408_v15 = vrot.slane %v1505_v4, %v16831_v40 }
 0x1db   : > { %v2366_v39 = vcombine.high %v2364_v32, %v2364_v32  ;;  %v14417_v23 = vrot.slane %v2365_v55, 9  ;;  %v14418_v47 = vrot.slane %v2364_v32, 9  ;;  %v6093_v38 = vmax.f32 %v2357_v36, %v14416_v12 }
 0x1dc   : > { %v2449_v28 = vrot.slane %v2435_v5, %v16831_v40  ;;  %v2450_v26 = vcombine.high %v2442_v52, %v2442_v52  ;;  %v14436_v37 = vrot.slane %v2442_v52, 9  ;;  %v2415_v14 = vrot.slane %v2401_v58, %v16831_v40 }
 0x1dd   : > { %v14419_v22 = vrot.slane %v2366_v39, 9  ;;  %v6094_v59 = vmax.f32 %v2365_v55, %v14417_v23  ;;  %v6095_v50 = vmax.f32 %v2364_v32, %v14418_v47  ;;  %v6533_v43 = vmax.f32 %v6093_v38, %v6101_v25 }
 0x1de   : > { %v2451_v42 = vcombine.high %v2449_v28, %v2449_v28  ;;  %v14437_v9 = vrot.slane %v2450_v26, 9  ;;  %v14438_v3 = vrot.slane %v2449_v28, 9  ;;  %v6113_v13 = vmax.f32 %v2442_v52, %v14436_v37 }
 0x1df   : > { %v6096_v6 = vmax.f32 %v2366_v39, %v14419_v22  ;;  %v6534_v24 = vmax.f32 %v6094_v59, %v6102_v11  ;;  %v6535_v10 = vmax.f32 %v6095_v50, %v6103_v17  ;;  %v7356_v36 = vrot.slane %v6533_v43, %v16841_v56  ;;  %v8376_v43 = vld [vmem:[#allocation2 + $0x70] sm:$0xff] }
 0x1e0   : > { %v14439_v53 = vrot.slane %v2451_v42, 9  ;;  %v6114_v0 = vmax.f32 %v2450_v26, %v14437_v9  ;;  %v6115_v4 = vmax.f32 %v2449_v28, %v14438_v3  ;;  %v2416_v12 = vcombine.high %v2408_v15, %v2408_v15 }
 0x1e1   : > { %v6536_v5 = vmax.f32 %v6096_v6, %v6104_v49  ;;  %v7360_v55 = vrot.slane %v6534_v24, %v16841_v56  ;;  %v7364_v25 = vrot.slane %v6535_v10, %v16841_v56  ;;  %v8146_v32 = vsel %vm8079_vm3, %v7356_v36, %v8145_v46  ;;  %v8375_v36 = vld [vmem:[#allocation2 + $0x60] sm:$0xff] }
 0x1e2   : > { %v6116_v58 = vmax.f32 %v2451_v42, %v14439_v53  ;;  %v2417_v52 = vcombine.high %v2415_v14, %v2415_v14  ;;  %v14428_v39 = vrot.slane %v2408_v15, 9  ;;  %v14429_v11 = vrot.slane %v2416_v12, 9 }
 0x1e3   : > { %v7368_v17 = vrot.slane %v6536_v5, %v16841_v56  ;;  %v8147_v23 = vsel %vm8081_vm4, %v7360_v55, %v8146_v32  ;;  %v14430_v47 = vrot.slane %v2415_v14, 9  ;;  %v1126_v38 = vadd.f32 %v17104_v16, %v17036_v19 }
 0x1e4   : > { %v8148_v49 = vsel %vm8083_vm5, %v7364_v25, %v8147_v23  ;;  %v14431_v28 = vrot.slane %v2417_v52, 9  ;;  %v6105_v26 = vmax.f32 %v2408_v15, %v14428_v39  ;;  %v6106_v37 = vmax.f32 %v2416_v12, %v14429_v11 }
 0x1e5   : > { %v17377_v22 = vsel %vm8085_vm6, %v7368_v17, %v8148_v49  ;;  %v6107_v46 = vmax.f32 %v2415_v14, %v14430_v47  ;;  %v1508_v59 = vmax.f32 %v1126_v38, 0.0  ;;  %v1118_v50 = vadd.f32 %v17104_v16, %v17053_v1 }
 0x1e6   : > { %8346 = vst [vmem:[#allocation2 + $0xc1] sm:$0xff] %v17377_v22  ;;  %v6108_v42 = vmax.f32 %v2417_v52, %v14431_v28  ;;  %v6537_v9 = vmax.f32 %v6105_v26, %v6113_v13  ;;  %v6538_v3 = vmax.f32 %v6106_v37, %v6114_v0  ;;  %v15230_v19 = vpack.c.bf16 %v17182_v7, %v17147_v8 }
 0x1e7   : > { %v6539_v6 = vmax.f32 %v6107_v46, %v6115_v4  ;;  %v2452_v15 = vcombine.high %v1508_v59, %v1508_v59  ;;  %v2459_v24 = vrot.slane %v1508_v59, %v16831_v40  ;;  %v1506_v10 = vmax.f32 %v1118_v50, 0.0 }
 0x1e8   : > { %v6540_v14 = vmax.f32 %v6108_v42, %v6116_v58  ;;  %v7372_v53 = vrot.slane %v6537_v9, %v16841_v56  ;;  %v7376_v1 = vrot.slane %v6538_v3, %v16841_v56  ;;  %10748 = vmatprep.mubr.bf16.mxu0 %v15230_v19  ;;  %v15229_v16 = vpack.c.bf16 %v8376_v43, %v8375_v36  ;;  %v17398_v43 = vld [vmem:[%s20448_s2] ss:$0 sm:$0xff] }
 0x1e9   : > { %v7380_v12 = vrot.slane %v6539_v6, %v16841_v56  ;;  %v2466_v13 = vrot.slane %v2452_v15, %v16831_v40  ;;  %v2467_v0 = vcombine.high %v2459_v24, %v2459_v24  ;;  %v14440_v5 = vrot.slane %v2459_v24, 9 }
 0x1ea   : > { %v7384_v8 = vrot.slane %v6540_v14, %v16841_v56  ;;  %v8150_v7 = vsel %vm8073_vm0, %v7376_v1, %v7372_v53  ;;  %v2418_v4 = vcombine.high %v1506_v10, %v1506_v10  ;;  %v2425_v55 = vrot.slane %v1506_v10, %v16831_v40  ;;  %10749 = vmatmul.mubr.bf16.gmra.mrb[140].mxu0 %v15229_v16 }
 0x1eb   : > { %v8151_v25 = vsel %vm8075_vm1, %v7380_v12, %v8150_v7  ;;  %v2468_v32 = vcombine.high %v2466_v13, %v2466_v13  ;;  %v14441_v58 = vrot.slane %v2467_v0, 9  ;;  %v14442_v52 = vrot.slane %v2466_v13, 9 }
 0x1ec   : > { %v6117_v39 = vmax.f32 %v2459_v24, %v14440_v5  ;;  %v2432_v11 = vrot.slane %v2418_v4, %v16831_v40  ;;  %v2433_v17 = vcombine.high %v2425_v55, %v2425_v55  ;;  %v14432_v23 = vrot.slane %v2425_v55, 9 }
 0x1ed   : > { %v14443_v47 = vrot.slane %v2468_v32, 9  ;;  %v6118_v38 = vmax.f32 %v2467_v0, %v14441_v58  ;;  %v6119_v49 = vmax.f32 %v2466_v13, %v14442_v52  ;;  %v8152_v28 = vsel %vm8077_vm2, %v7384_v8, %v8151_v25  ;;  %v16227_v52 = vld [vmem:[%s20449_s3 + $0x160] ss:$8 sps:$4 sm:$0xff]  }
 0x1ee   : > { %v2434_v26 = vcombine.high %v2432_v11, %v2432_v11  ;;  %v14433_v37 = vrot.slane %v2433_v17, 9  ;;  %v14434_v46 = vrot.slane %v2432_v11, 9  ;;  %v6109_v59 = vmax.f32 %v2425_v55, %v14432_v23 }
 0x1ef   : > { %v6120_v50 = vmax.f32 %v2468_v32, %v14443_v47  ;;  %v1139_v42 = vadd.f32 %v17398_v43, %v17082_v30  ;;  %v1131_v9 = vadd.f32 %v17398_v43, %v17084_v20  ;;  %v1142_v3 = vadd.f32 %v17398_v43, %v17089_v18 }
 0x1f0   : > { %v14435_v19 = vrot.slane %v2434_v26, 9  ;;  %v6110_v6 = vmax.f32 %v2433_v17, %v14433_v37  ;;  %v6111_v15 = vmax.f32 %v2432_v11, %v14434_v46  ;;  %v6541_v24 = vmax.f32 %v6109_v59, %v6117_v39 }
 0x1f1   : > { %v1511_v10 = vmax.f32 %v1139_v42, 0.0  ;;  %v1509_v36 = vmax.f32 %v1131_v9, 0.0  ;;  %v1512_v14 = vmax.f32 %v1142_v3, 0.0  ;;  %v1134_v53 = vadd.f32 %v17398_v43, %v17092_v48  ;;  %v16225_v48 = vld [vmem:[%s20449_s3 + $0x164] ss:$8 sps:$4 sm:$0xff]  }
 0x1f2   : > { %v6112_v1 = vmax.f32 %v2434_v26, %v14435_v19  ;;  %v6542_v16 = vmax.f32 %v6110_v6, %v6118_v38  ;;  %v6543_v12 = vmax.f32 %v6111_v15, %v6119_v49  ;;  %v7388_v30 = vrot.slane %v6541_v24, %v16841_v56  ;;  %15699 = vmatprep.subr.bf16.mxu1 %v16225_v48  ;;  %v17425_v26 = vpop.f32.mrb[68].mxu0  ;;  %v16228_v42 = vld [vmem:[%s20449_s3 + $0x174] ss:$8 sps:$4 sm:$0xff]   ;;  %v16230_v24 = vld [vmem:[%s20449_s3 + $0x170] ss:$8 sps:$4 sm:$0xff]  }
 0x1f3   : > { %v2503_v13 = vcombine.high %v1511_v10, %v1511_v10  ;;  %v2510_v20 = vrot.slane %v1511_v10, %v16831_v40  ;;  %v2469_v0 = vcombine.high %v1509_v36, %v1509_v36  ;;  %v2476_v18 = vrot.slane %v1509_v36, %v16831_v40  ;;  %10891 = vmatprep.subr.bf16.mxu0 %v16225_v48  ;;  %v17434_v15 = vpop.f32.mrb[69].mxu0 }
 0x1f4   : > { %v6544_v5 = vmax.f32 %v6112_v1, %v6120_v50  ;;  %v7392_v8 = vrot.slane %v6542_v16, %v16841_v56  ;;  %v7396_v7 = vrot.slane %v6543_v12, %v16841_v56  ;;  %v8153_v4 = vsel %vm8079_vm3, %v7388_v30, %v8152_v28  ;;  %15715 = vmatpush1.bf16.msra.mxu1 %v16227_v52 }
 0x1f5   : > { %v2517_v55 = vrot.slane %v2503_v13, %v16831_v40  ;;  %v2518_v25 = vcombine.high %v2510_v20, %v2510_v20  ;;  %v14452_v32 = vrot.slane %v2510_v20, 9  ;;  %v2483_v58 = vrot.slane %v2469_v0, %v16831_v40  ;;  %10892 = vmatpush1.bf16.msra.mxu0 %v16227_v52  ;;  %15700 = vmatprep.subr.bf16.mxu1 %v16228_v42 }
 0x1f6   : > { %v7400_v39 = vrot.slane %v6544_v5, %v16841_v56  ;;  %v8154_v11 = vsel %vm8081_vm4, %v7392_v8, %v8153_v4  ;;  %v2484_v17 = vcombine.high %v2476_v18, %v2476_v18  ;;  %v14444_v23 = vrot.slane %v2476_v18, 9  ;;  %10893 = vmatprep.subr.bf16.mxu0 %v16228_v42  ;;  %v17441_v4 = vpop.f32.mrb[70].mxu0 }
 0x1f7   : > { %v8155_v47 = vsel %vm8083_vm5, %v7396_v7, %v8154_v11  ;;  %v2519_v38 = vcombine.high %v2517_v55, %v2517_v55  ;;  %v14453_v49 = vrot.slane %v2518_v25, 9  ;;  %v14454_v28 = vrot.slane %v2517_v55, 9 }
 0x1f8   : > { %v17428_v37 = vsel %vm8085_vm6, %v7400_v39, %v8155_v47  ;;  %v6129_v46 = vmax.f32 %v2510_v20, %v14452_v32  ;;  %v2485_v59 = vcombine.high %v2483_v58, %v2483_v58  ;;  %v14445_v50 = vrot.slane %v2484_v17, 9  ;;  %15716 = vmatpush1.bf16.msra.mxu1 %v16230_v24 }
 0x1f9   : > { %8347 = vst [vmem:[#allocation2 + $0xd1] sm:$0xff] %v17428_v37  ;;  %v14455_v9 = vrot.slane %v2519_v38, 9  ;;  %v6130_v3 = vmax.f32 %v2518_v25, %v14453_v49  ;;  %v6131_v19 = vmax.f32 %v2517_v55, %v14454_v28  ;;  %v14446_v6 = vrot.slane %v2483_v58, 9  ;;  %10894 = vmatpush1.bf16.msra.mxu0 %v16230_v24 }
 0x1fa   : > { %v14447_v10 = vrot.slane %v2485_v59, 9  ;;  %v6121_v36 = vmax.f32 %v2476_v18, %v14444_v23  ;;  %v6122_v1 = vmax.f32 %v2484_v17, %v14445_v50  ;;  %v2520_v16 = vcombine.high %v1512_v14, %v1512_v14  ;;  %v16231_v18 = vld [vmem:[%s20449_s3 + $0x184] ss:$8 sps:$4 sm:$0xff]   ;;  %v16234_v50 = vld [vmem:[%s20449_s3 + $0x194] ss:$8 sps:$4 sm:$0xff]  }
 0x1fb   : > { %v6132_v12 = vmax.f32 %v2519_v38, %v14455_v9  ;;  %v6123_v30 = vmax.f32 %v2483_v58, %v14446_v6  ;;  %v2527_v13 = vrot.slane %v1512_v14, %v16831_v40  ;;  %v1510_v20 = vmax.f32 %v1134_v53, 0.0  ;;  %v17446_v58 = vpop.f32.mrb[71].mxu0  ;;  %v16233_v14 = vld [vmem:[%s20449_s3 + $0x180] ss:$8 sps:$4 sm:$0xff]   ;;  %15701 = vmatprep.subr.bf16.mxu1 %v16231_v18  ;;  %10895 = vmatprep.subr.bf16.mxu0 %v16231_v18 }
 0x1fc   : > { %v6124_v0 = vmax.f32 %v2485_v59, %v14447_v10  ;;  %v6545_v5 = vmax.f32 %v6121_v36, %v6129_v46  ;;  %v6546_v8 = vmax.f32 %v6122_v1, %v6130_v3  ;;  %v2534_v7 = vrot.slane %v2520_v16, %v16831_v40  ;;  %15717 = vmatpush1.bf16.msra.mxu1 %v16233_v14  ;;  %v17463_v1 = vpop.f32.mrb[72].mxu0 }
 0x1fd   : > { %v6547_v48 = vmax.f32 %v6123_v30, %v6131_v19  ;;  %v2535_v55 = vcombine.high %v2527_v13, %v2527_v13  ;;  %v14456_v25 = vrot.slane %v2527_v13, 9  ;;  %v2486_v32 = vcombine.high %v1510_v20, %v1510_v20  ;;  %10896 = vmatpush1.bf16.msra.mxu0 %v16233_v14  ;;  %15702 = vmatprep.subr.bf16.mxu1 %v16234_v50 }
 0x1fe   : > { %v6548_v53 = vmax.f32 %v6124_v0, %v6132_v12  ;;  %v7404_v52 = vrot.slane %v6545_v5, %v16841_v56  ;;  %v7408_v39 = vrot.slane %v6546_v8, %v16841_v56  ;;  %v2536_v11 = vcombine.high %v2534_v7, %v2534_v7  ;;  %10897 = vmatprep.subr.bf16.mxu0 %v16234_v50  ;;  %v16236_v0 = vld [vmem:[%s20449_s3 + $0x190] ss:$8 sps:$4 sm:$0xff]  }
 0x1ff   : > { %v7412_v17 = vrot.slane %v6547_v48, %v16841_v56  ;;  %v14457_v23 = vrot.slane %v2535_v55, 9  ;;  %v14458_v47 = vrot.slane %v2534_v7, 9  ;;  %v6133_v38 = vmax.f32 %v2527_v13, %v14456_v25 }
 0x200   : > { %v7416_v49 = vrot.slane %v6548_v53, %v16841_v56  ;;  %v8157_v28 = vsel %vm8073_vm0, %v7408_v39, %v7404_v52  ;;  %v14459_v46 = vrot.slane %v2536_v11, 9  ;;  %v2493_v59 = vrot.slane %v1510_v20, %v16831_v40  ;;  %v17469_v20 = vpop.f32.mrb[73].mxu0  ;;  %15718 = vmatpush1.bf16.msra.mxu1 %v16236_v0 }
 0x201   : > { %v8158_v42 = vsel %vm8075_vm1, %v7412_v17, %v8157_v28  ;;  %v6134_v9 = vmax.f32 %v2535_v55, %v14457_v23  ;;  %v6135_v3 = vmax.f32 %v2534_v7, %v14458_v47  ;;  %v2500_v19 = vrot.slane %v2486_v32, %v16831_v40  ;;  %10898 = vmatpush1.bf16.msra.mxu0 %v16236_v0  ;;  %v17480_v52 = vpop.f32.mrb[74].mxu0 }
 0x202   : > { %v6136_v6 = vmax.f32 %v2536_v11, %v14459_v46  ;;  %v2501_v24 = vcombine.high %v2493_v59, %v2493_v59  ;;  %v14448_v10 = vrot.slane %v2493_v59, 9  ;;  %v8159_v36 = vsel %vm8077_vm2, %v7416_v49, %v8158_v42 }
 0x203   : > { %v2502_v16 = vcombine.high %v2500_v19, %v2500_v19  ;;  %v14450_v12 = vrot.slane %v2500_v19, 9  ;;  %v1155_v30 = vadd.f32 %v17398_v43, %v17114_v27  ;;  %v1147_v13 = vadd.f32 %v17398_v43, %v17122_v60 }
 0x204   : > { %v14449_v5 = vrot.slane %v2501_v24, 9  ;;  %v6125_v8 = vmax.f32 %v2493_v59, %v14448_v10  ;;  %v1158_v7 = vadd.f32 %v17398_v43, %v17130_v45  ;;  %v1150_v18 = vadd.f32 %v17398_v43, %v17138_v2 }
 0x205   : > { %v14451_v48 = vrot.slane %v2502_v16, 9  ;;  %v6127_v55 = vmax.f32 %v2500_v19, %v14450_v12  ;;  %v1515_v27 = vmax.f32 %v1155_v30, 0.0  ;;  %v1513_v25 = vmax.f32 %v1147_v13, 0.0 }
 0x206   : > { %v6126_v60 = vmax.f32 %v2501_v24, %v14449_v5  ;;  %v6549_v32 = vmax.f32 %v6125_v8, %v6133_v38  ;;  %v1516_v14 = vmax.f32 %v1158_v7, 0.0  ;;  %v17478_v53 = vmax.f32 %v1150_v18, 0.0  ;;  %v17490_v24 = vpop.f32.mrb[75].mxu0 }
 0x207   : > { %v6128_v39 = vmax.f32 %v2502_v16, %v14451_v48  ;;  %v6551_v11 = vmax.f32 %v6127_v55, %v6135_v3  ;;  %v2571_v17 = vcombine.high %v1515_v27, %v1515_v27  ;;  %v2578_v45 = vrot.slane %v1515_v27, %v16831_v40 }
 0x208   : > { %v6550_v23 = vmax.f32 %v6126_v60, %v6134_v9  ;;  %v7420_v2 = vrot.slane %v6549_v32, %v16841_v56  ;;  %v2537_v47 = vcombine.high %v1513_v25, %v1513_v25  ;;  %v2544_v49 = vrot.slane %v1513_v25, %v16831_v40 }
 0x209   : > { %v6552_v28 = vmax.f32 %v6128_v39, %v6136_v6  ;;  %v7428_v46 = vrot.slane %v6551_v11, %v16841_v56  ;;  %v2585_v38 = vrot.slane %v2571_v17, %v16831_v40  ;;  %v2586_v59 = vcombine.high %v2578_v45, %v2578_v45 }
 0x20a   : > { %v7424_v50 = vrot.slane %v6550_v23, %v16841_v56  ;;  %v8160_v42 = vsel %vm8079_vm3, %v7420_v2, %v8159_v36  ;;  %v14468_v3 = vrot.slane %v2578_v45, 9  ;;  %v2551_v19 = vrot.slane %v2537_v47, %v16831_v40 }
 0x20b   : > { %v7432_v9 = vrot.slane %v6552_v28, %v16841_v56  ;;  %v2587_v10 = vcombine.high %v2585_v38, %v2585_v38  ;;  %v14469_v16 = vrot.slane %v2586_v59, 9  ;;  %v14470_v12 = vrot.slane %v2585_v38, 9 }
 0x20c   : > { %v8161_v6 = vsel %vm8081_vm4, %v7424_v50, %v8160_v42  ;;  %v6145_v30 = vmax.f32 %v2578_v45, %v14468_v3  ;;  %v2552_v13 = vcombine.high %v2544_v49, %v2544_v49  ;;  %v2553_v0 = vcombine.high %v2551_v19, %v2551_v19 }
 0x20d   : > { %v8162_v5 = vsel %vm8083_vm5, %v7428_v46, %v8161_v6  ;;  %v14471_v8 = vrot.slane %v2587_v10, 9  ;;  %v6146_v7 = vmax.f32 %v2586_v59, %v14469_v16  ;;  %v6147_v36 = vmax.f32 %v2585_v38, %v14470_v12  ;;  %v8441_v6 = vld [vmem:[#allocation2 + $0xa1] sm:$0xff] }
 0x20e   : > { %v17496_v18 = vsel %vm8085_vm6, %v7432_v9, %v8162_v5  ;;  %v14460_v48 = vrot.slane %v2544_v49, 9  ;;  %v14461_v55 = vrot.slane %v2552_v13, 9  ;;  %v14462_v27 = vrot.slane %v2551_v19, 9 }
 0x20f   : > { %8348 = vst [vmem:[#allocation2 + $0xe1] sm:$0xff] %v17496_v18  ;;  %v6148_v25 = vmax.f32 %v2587_v10, %v14471_v8  ;;  %v14463_v60 = vrot.slane %v2553_v0, 9  ;;  %v2588_v32 = vcombine.high %v1516_v14, %v1516_v14  ;;  %v2595_v39 = vrot.slane %v1516_v14, %v16831_v40 }
 0x210   : > { %v6137_v11 = vmax.f32 %v2544_v49, %v14460_v48  ;;  %v6138_v17 = vmax.f32 %v2552_v13, %v14461_v55  ;;  %v6139_v45 = vmax.f32 %v2551_v19, %v14462_v27  ;;  %v2554_v23 = vcombine.high %v17478_v53, %v17478_v53  ;;  %v8378_v13 = vld [vmem:[#allocation2 + $0xb0] sm:$0xff] }
 0x211   : > { %v6140_v2 = vmax.f32 %v2553_v0, %v14463_v60  ;;  %v2602_v47 = vrot.slane %v2588_v32, %v16831_v40  ;;  %v2603_v28 = vcombine.high %v2595_v39, %v2595_v39  ;;  %v14472_v46 = vrot.slane %v2595_v39, 9  ;;  %v16382_v60 = vld [vmem:[#allocation2] sm:$0xff] }
 0x212   : > { %v6553_v38 = vmax.f32 %v6137_v11, %v6145_v30  ;;  %v6554_v59 = vmax.f32 %v6138_v17, %v6146_v7  ;;  %v6555_v50 = vmax.f32 %v6139_v45, %v6147_v36  ;;  %v2561_v42 = vrot.slane %v17478_v53, %v16831_v40 }
 0x213   : > { %v6556_v3 = vmax.f32 %v6140_v2, %v6148_v25  ;;  %v2604_v9 = vcombine.high %v2602_v47, %v2602_v47  ;;  %v14473_v14 = vrot.slane %v2603_v28, 9  ;;  %v14474_v49 = vrot.slane %v2602_v47, 9 }
 0x214   : > { %v7436_v19 = vrot.slane %v6553_v38, %v16841_v56  ;;  %v7440_v10 = vrot.slane %v6554_v59, %v16841_v56  ;;  %v7444_v16 = vrot.slane %v6555_v50, %v16841_v56  ;;  %v6149_v12 = vmax.f32 %v2595_v39, %v14472_v46 }
 0x215   : > { %v7448_v30 = vrot.slane %v6556_v3, %v16841_v56  ;;  %v14475_v0 = vrot.slane %v2604_v9, 9  ;;  %v6150_v5 = vmax.f32 %v2603_v28, %v14473_v14  ;;  %v6151_v8 = vmax.f32 %v2602_v47, %v14474_v49 }
 0x216   : > { %v8164_v53 = vsel %vm8073_vm0, %v7440_v10, %v7436_v19  ;;  %v2568_v7 = vrot.slane %v2554_v23, %v16831_v40  ;;  %v2569_v36 = vcombine.high %v2561_v42, %v2561_v42  ;;  %v14464_v48 = vrot.slane %v2561_v42, 9 }
 0x217   : > { %v8165_v55 = vsel %vm8075_vm1, %v7444_v16, %v8164_v53  ;;  %v6152_v27 = vmax.f32 %v2604_v9, %v14475_v0  ;;  %v15239_v25 = vpack.c.bf16 %v17321_v57, %v8441_v6  ;;  %v15238_v32 = vpack.c.bf16 %v8378_v13, %v16382_v60 }
 0x218   : > { %v2570_v39 = vcombine.high %v2568_v7, %v2568_v7  ;;  %v14465_v11 = vrot.slane %v2569_v36, 9  ;;  %v14466_v17 = vrot.slane %v2568_v7, 9  ;;  %v6141_v45 = vmax.f32 %v2561_v42, %v14464_v48 }
 0x219   : > { %v8166_v2 = vsel %vm8077_vm2, %v7448_v30, %v8165_v55  ;;  %10758 = vmatprep.mubr.bf16.mxu0 %v15239_v25  ;;  %v1171_v47 = vadd.f32 %v17398_v43, %v17178_v34  ;;  %v1163_v23 = vadd.f32 %v17398_v43, %v17184_v33  ;;  %v1174_v28 = vadd.f32 %v17398_v43, %v17193_v41 }
 0x21a   : > { %v14467_v46 = vrot.slane %v2570_v39, 9  ;;  %v6142_v57 = vmax.f32 %v2569_v36, %v14465_v11  ;;  %v6143_v38 = vmax.f32 %v2568_v7, %v14466_v17  ;;  %v6557_v59 = vmax.f32 %v6141_v45, %v6149_v12  ;;  %10759 = vmatmul.mubr.bf16.gmra.mrb[144].mxu0 %v15238_v32  ;;  %v16239_v7 = vld [vmem:[%s20449_s3 + $0x1a0] ss:$8 sps:$4 sm:$0xff]   ;;  %v17539_v11 = vpop.f32.mrb[76].mxu0 }
 0x21b   : > { %v1519_v50 = vmax.f32 %v1171_v47, 0.0  ;;  %v1517_v3 = vmax.f32 %v1163_v23, 0.0  ;;  %v1520_v42 = vmax.f32 %v1174_v28, 0.0  ;;  %v1166_v9 = vadd.f32 %v17398_v43, %v17198_v44  ;;  %v16237_v44 = vld [vmem:[%s20449_s3 + $0x1a4] ss:$8 sps:$4 sm:$0xff]  }
 0x21c   : > { %v6144_v14 = vmax.f32 %v2570_v39, %v14467_v46  ;;  %v6558_v49 = vmax.f32 %v6142_v57, %v6150_v5  ;;  %v6559_v34 = vmax.f32 %v6143_v38, %v6151_v8  ;;  %v7452_v19 = vrot.slane %v6557_v59, %v16841_v56  ;;  %15703 = vmatprep.subr.bf16.mxu1 %v16237_v44  ;;  %v16240_v23 = vld [vmem:[%s20449_s3 + $0x1b4] ss:$8 sps:$4 sm:$0xff]   ;;  %v17548_v59 = vpop.f32.mrb[77].mxu0 }
 0x21d   : > { %v2639_v33 = vcombine.high %v1519_v50, %v1519_v50  ;;  %v2646_v10 = vrot.slane %v1519_v50, %v16831_v40  ;;  %v2605_v41 = vcombine.high %v1517_v3, %v1517_v3  ;;  %v2612_v16 = vrot.slane %v1517_v3, %v16831_v40  ;;  %10899 = vmatprep.subr.bf16.mxu0 %v16237_v44  ;;  %v16242_v50 = vld [vmem:[%s20449_s3 + $0x1b0] ss:$8 sps:$4 sm:$0xff]   ;;  %v17555_v44 = vpop.f32.mrb[78].mxu0 }
 0x21e   : > { %v6560_v6 = vmax.f32 %v6144_v14, %v6152_v27  ;;  %v7456_v12 = vrot.slane %v6558_v49, %v16841_v56  ;;  %v7460_v13 = vrot.slane %v6559_v34, %v16841_v56  ;;  %v8167_v30 = vsel %vm8079_vm3, %v7452_v19, %v8166_v2  ;;  %15719 = vmatpush1.bf16.msra.mxu1 %v16239_v7 }
 0x21f   : > { %v2653_v0 = vrot.slane %v2639_v33, %v16831_v40  ;;  %v2654_v5 = vcombine.high %v2646_v10, %v2646_v10  ;;  %v14484_v8 = vrot.slane %v2646_v10, 9  ;;  %v2619_v53 = vrot.slane %v2605_v41, %v16831_v40  ;;  %10900 = vmatpush1.bf16.msra.mxu0 %v16239_v7  ;;  %15704 = vmatprep.subr.bf16.mxu1 %v16240_v23  ;;  %v17560_v7 = vpop.f32.mrb[79].mxu0 }
 0x220   : > { %v7464_v36 = vrot.slane %v6560_v6, %v16841_v56  ;;  %v8168_v48 = vsel %vm8081_vm4, %v7456_v12, %v8167_v30  ;;  %v2620_v55 = vcombine.high %v2612_v16, %v2612_v16  ;;  %v14476_v27 = vrot.slane %v2612_v16, 9  ;;  %10901 = vmatprep.subr.bf16.mxu0 %v16240_v23  ;;  %v16246_v23 = vld [vmem:[%s20449_s3 + $0x1d4] ss:$8 sps:$4 sm:$0xff]  }
 0x221   : > { %v8169_v25 = vsel %vm8083_vm5, %v7460_v13, %v8168_v48  ;;  %v2655_v60 = vcombine.high %v2653_v0, %v2653_v0  ;;  %v14485_v32 = vrot.slane %v2654_v5, 9  ;;  %v14486_v39 = vrot.slane %v2653_v0, 9 }
 0x222   : > { %v17542_v17 = vsel %vm8085_vm6, %v7464_v36, %v8169_v25  ;;  %v6161_v45 = vmax.f32 %v2646_v10, %v14484_v8  ;;  %v2621_v2 = vcombine.high %v2619_v53, %v2619_v53  ;;  %v14477_v47 = vrot.slane %v2620_v55, 9  ;;  %15720 = vmatpush1.bf16.msra.mxu1 %v16242_v50 }
 0x223   : > { %8349 = vst [vmem:[#allocation2 + $0xf1] sm:$0xff] %v17542_v17  ;;  %v14487_v28 = vrot.slane %v2655_v60, 9  ;;  %v6162_v46 = vmax.f32 %v2654_v5, %v14485_v32  ;;  %v6163_v57 = vmax.f32 %v2653_v0, %v14486_v39  ;;  %v14478_v38 = vrot.slane %v2619_v53, 9  ;;  %10902 = vmatpush1.bf16.msra.mxu0 %v16242_v50 }
 0x224   : > { %v14479_v3 = vrot.slane %v2621_v2, 9  ;;  %v6153_v14 = vmax.f32 %v2612_v16, %v14476_v27  ;;  %v6154_v49 = vmax.f32 %v2620_v55, %v14477_v47  ;;  %v2656_v34 = vcombine.high %v1520_v42, %v1520_v42  ;;  %v16243_v16 = vld [vmem:[%s20449_s3 + $0x1c4] ss:$8 sps:$4 sm:$0xff]  }
 0x225   : > { %v6164_v19 = vmax.f32 %v2655_v60, %v14487_v28  ;;  %v6155_v33 = vmax.f32 %v2619_v53, %v14478_v38  ;;  %v2663_v10 = vrot.slane %v1520_v42, %v16831_v40  ;;  %v1518_v41 = vmax.f32 %v1166_v9, 0.0  ;;  %v16245_v42 = vld [vmem:[%s20449_s3 + $0x1c0] ss:$8 sps:$4 sm:$0xff]   ;;  %15705 = vmatprep.subr.bf16.mxu1 %v16243_v16  ;;  %10903 = vmatprep.subr.bf16.mxu0 %v16243_v16 }
 0x226   : > { %v6156_v6 = vmax.f32 %v2621_v2, %v14479_v3  ;;  %v6561_v12 = vmax.f32 %v6153_v14, %v6161_v45  ;;  %v6562_v13 = vmax.f32 %v6154_v49, %v6162_v46  ;;  %v2670_v30 = vrot.slane %v2656_v34, %v16831_v40  ;;  %15721 = vmatpush1.bf16.msra.mxu1 %v16245_v42  ;;  %v17577_v34 = vpop.f32.mrb[80].mxu0 }
 0x227   : > { %v6563_v0 = vmax.f32 %v6155_v33, %v6163_v57  ;;  %v2671_v5 = vcombine.high %v2663_v10, %v2663_v10  ;;  %v14488_v8 = vrot.slane %v2663_v10, 9  ;;  %v2622_v53 = vcombine.high %v1518_v41, %v1518_v41  ;;  %10904 = vmatpush1.bf16.msra.mxu0 %v16245_v42  ;;  %15706 = vmatprep.subr.bf16.mxu1 %v16246_v23 }
 0x228   : > { %v6564_v9 = vmax.f32 %v6156_v6, %v6164_v19  ;;  %v7468_v36 = vrot.slane %v6561_v12, %v16841_v56  ;;  %v7472_v48 = vrot.slane %v6562_v13, %v16841_v56  ;;  %v2672_v55 = vcombine.high %v2670_v30, %v2670_v30  ;;  %10905 = vmatprep.subr.bf16.mxu0 %v16246_v23  ;;  %v20472_v6 = vld [vmem:[#allocation9_spill] sm:$0xff]  ;;  %v17583_v13 = vpop.f32.mrb[81].mxu0 }
 0x229   : > { %v7476_v27 = vrot.slane %v6563_v0, %v16841_v56  ;;  %v14489_v25 = vrot.slane %v2671_v5, 9  ;;  %v14490_v60 = vrot.slane %v2670_v30, 9  ;;  %v6165_v32 = vmax.f32 %v2663_v10, %v14488_v8  ;;  %v20471_v10 = vld [vmem:[#allocation8_spill] sm:$0xff] }
 0x22a   : > { %v7480_v39 = vrot.slane %v6564_v9, %v16841_v56  ;;  %v8171_v45 = vsel %vm8073_vm0, %v7472_v48, %v7468_v36  ;;  %v14491_v2 = vrot.slane %v2672_v55, 9  ;;  %v2629_v47 = vrot.slane %v1518_v41, %v16831_v40 }
 0x22b   : > { %v8172_v28 = vsel %vm8075_vm1, %v7476_v27, %v8171_v45  ;;  %v6166_v46 = vmax.f32 %v2671_v5, %v14489_v25  ;;  %v6167_v57 = vmax.f32 %v2670_v30, %v14490_v60  ;;  %v2636_v38 = vrot.slane %v2622_v53, %v16831_v40  ;;  %v16248_v30 = vld [vmem:[%s20449_s3 + $0x1d0] ss:$8 sps:$4 sm:$0xff]   ;;  %v20473_v5 = vld [vmem:[#allocation10_spill] sm:$0xff] }
 0x22c   : > { %v6168_v50 = vmax.f32 %v2672_v55, %v14491_v2  ;;  %v2637_v3 = vcombine.high %v2629_v47, %v2629_v47  ;;  %v14480_v14 = vrot.slane %v2629_v47, 9  ;;  %v8173_v49 = vsel %vm8077_vm2, %v7480_v39, %v8172_v28  ;;  %15722 = vmatpush1.bf16.msra.mxu1 %v16248_v30  ;;  %10906 = vmatpush1.bf16.msra.mxu0 %v16248_v30  ;;  %v17594_v39 = vpop.f32.mrb[82].mxu0 }
 0x22d   : > { %v2638_v19 = vcombine.high %v2636_v38, %v2636_v38  ;;  %v14482_v33 = vrot.slane %v2636_v38, 9  ;;  %v1187_v41 = vadd.f32 %v17398_v43, %v20471_v10  ;;  %v1179_v12 = vadd.f32 %v17398_v43, %v20472_v6 }
 0x22e   : > { %v14481_v16 = vrot.slane %v2637_v3, 9  ;;  %v6157_v0 = vmax.f32 %v2629_v47, %v14480_v14  ;;  %v1190_v8 = vadd.f32 %v17398_v43, %v20473_v5  ;;  %v1182_v53 = vadd.f32 %v17398_v43, %v17235_v31 }
 0x22f   : > { %v14483_v42 = vrot.slane %v2638_v19, 9  ;;  %v6159_v9 = vmax.f32 %v2636_v38, %v14482_v33  ;;  %v1523_v36 = vmax.f32 %v1187_v41, 0.0  ;;  %v1521_v48 = vmax.f32 %v1179_v12, 0.0  ;;  %v17604_v12 = vpop.f32.mrb[83].mxu0 }
 0x230   : > { %v6158_v55 = vmax.f32 %v2637_v3, %v14481_v16  ;;  %v6565_v27 = vmax.f32 %v6157_v0, %v6165_v32  ;;  %v1524_v25 = vmax.f32 %v1190_v8, 0.0  ;;  %v17592_v60 = vmax.f32 %v1182_v53, 0.0 }
 0x231   : > { %v6160_v45 = vmax.f32 %v2638_v19, %v14483_v42  ;;  %v6567_v2 = vmax.f32 %v6159_v9, %v6167_v57  ;;  %v2707_v47 = vcombine.high %v1523_v36, %v1523_v36  ;;  %v2714_v23 = vrot.slane %v1523_v36, %v16831_v40 }
 0x232   : > { %v6566_v28 = vmax.f32 %v6158_v55, %v6166_v46  ;;  %v7484_v31 = vrot.slane %v6565_v27, %v16841_v56  ;;  %v2673_v38 = vcombine.high %v1521_v48, %v1521_v48  ;;  %v2680_v14 = vrot.slane %v1521_v48, %v16831_v40 }
 0x233   : > { %v6568_v33 = vmax.f32 %v6160_v45, %v6168_v50  ;;  %v7492_v3 = vrot.slane %v6567_v2, %v16841_v56  ;;  %v2721_v32 = vrot.slane %v2707_v47, %v16831_v40  ;;  %v2722_v10 = vcombine.high %v2714_v23, %v2714_v23 }
 0x234   : > { %v7488_v41 = vrot.slane %v6566_v28, %v16841_v56  ;;  %v8174_v19 = vsel %vm8079_vm3, %v7484_v31, %v8173_v49  ;;  %v14500_v57 = vrot.slane %v2714_v23, 9  ;;  %v2687_v6 = vrot.slane %v2673_v38, %v16831_v40 }
 0x235   : > { %v7496_v46 = vrot.slane %v6568_v33, %v16841_v56  ;;  %v2723_v30 = vcombine.high %v2721_v32, %v2721_v32  ;;  %v14501_v16 = vrot.slane %v2722_v10, 9  ;;  %v14502_v0 = vrot.slane %v2721_v32, 9 }
 0x236   : > { %v8175_v50 = vsel %vm8081_vm4, %v7488_v41, %v8174_v19  ;;  %v6177_v5 = vmax.f32 %v2714_v23, %v14500_v57  ;;  %v2688_v8 = vcombine.high %v2680_v14, %v2680_v14  ;;  %v2689_v53 = vcombine.high %v2687_v6, %v2687_v6 }
 0x237   : > { %v8176_v42 = vsel %vm8083_vm5, %v7492_v3, %v8175_v50  ;;  %v14503_v9 = vrot.slane %v2723_v30, 9  ;;  %v6178_v36 = vmax.f32 %v2722_v10, %v14501_v16  ;;  %v6179_v49 = vmax.f32 %v2721_v32, %v14502_v0 }
 0x238   : > { %v8177_v48 = vsel %vm8085_vm6, %v7496_v46, %v8176_v42  ;;  %v14492_v55 = vrot.slane %v2680_v14, 9  ;;  %v14493_v27 = vrot.slane %v2688_v8, 9  ;;  %v14494_v45 = vrot.slane %v2687_v6, 9 }
 0x239   : > { %8350 = vst [vmem:[#allocation2 + $0x101] sm:$0xff] %v8177_v48  ;;  %v6180_v2 = vmax.f32 %v2723_v30, %v14503_v9  ;;  %v14495_v47 = vrot.slane %v2689_v53, 9  ;;  %v2724_v28 = vcombine.high %v1524_v25, %v1524_v25  ;;  %v2731_v31 = vrot.slane %v1524_v25, %v16831_v40  ;;  %v8380_v9 = vld [vmem:[#allocation2 + $0xd0] sm:$0xff] }
 0x23a   : > { %v6169_v38 = vmax.f32 %v2680_v14, %v14492_v55  ;;  %v6170_v23 = vmax.f32 %v2688_v8, %v14493_v27  ;;  %v6171_v33 = vmax.f32 %v2687_v6, %v14494_v45  ;;  %v2690_v3 = vcombine.high %v17592_v60, %v17592_v60 }
 0x23b   : > { %v6172_v41 = vmax.f32 %v2689_v53, %v14495_v47  ;;  %v2738_v32 = vrot.slane %v2724_v28, %v16831_v40  ;;  %v2739_v10 = vcombine.high %v2731_v31, %v2731_v31  ;;  %v14504_v19 = vrot.slane %v2731_v31, 9 }
 0x23c   : > { %v6569_v57 = vmax.f32 %v6169_v38, %v6177_v5  ;;  %v6570_v46 = vmax.f32 %v6170_v23, %v6178_v36  ;;  %v6571_v16 = vmax.f32 %v6171_v33, %v6179_v49  ;;  %v2697_v30 = vrot.slane %v17592_v60, %v16831_v40 }
 0x23d   : > { %v6572_v0 = vmax.f32 %v6172_v41, %v6180_v2  ;;  %v2740_v50 = vcombine.high %v2738_v32, %v2738_v32  ;;  %v14505_v25 = vrot.slane %v2739_v10, 9  ;;  %v14506_v14 = vrot.slane %v2738_v32, 9  ;;  %v8379_v2 = vld [vmem:[#allocation2 + $0xc0] sm:$0xff] }
 0x23e   : > { %v7500_v6 = vrot.slane %v6569_v57, %v16841_v56  ;;  %v7504_v8 = vrot.slane %v6570_v46, %v16841_v56  ;;  %v7508_v53 = vrot.slane %v6571_v16, %v16841_v56  ;;  %v6181_v42 = vmax.f32 %v2731_v31, %v14504_v19 }
 0x23f   : > { %v7512_v48 = vrot.slane %v6572_v0, %v16841_v56  ;;  %v14507_v5 = vrot.slane %v2740_v50, 9  ;;  %v6182_v36 = vmax.f32 %v2739_v10, %v14505_v25  ;;  %v6183_v49 = vmax.f32 %v2738_v32, %v14506_v14 }
 0x240   : > { %v8178_v55 = vsel %vm8073_vm0, %v7504_v8, %v7500_v6  ;;  %v2704_v60 = vrot.slane %v2690_v3, %v16831_v40  ;;  %v2705_v27 = vcombine.high %v2697_v30, %v2697_v30  ;;  %v14496_v45 = vrot.slane %v2697_v30, 9 }
 0x241   : > { %v8179_v47 = vsel %vm8075_vm1, %v7508_v53, %v8178_v55  ;;  %v6184_v28 = vmax.f32 %v2740_v50, %v14507_v5  ;;  %v15248_v38 = vpack.c.bf16 %v17428_v37, %v17377_v22  ;;  %v15247_v31 = vpack.c.bf16 %v8380_v9, %v8379_v2 }
 0x242   : > { %v2706_v23 = vcombine.high %v2704_v60, %v2704_v60  ;;  %v14497_v33 = vrot.slane %v2705_v27, 9  ;;  %v14498_v41 = vrot.slane %v2704_v60, 9  ;;  %v6173_v19 = vmax.f32 %v2697_v30, %v14496_v45  ;;  %v16251_v45 = vld [vmem:[%s20449_s3 + $0x1e0] ss:$8 sps:$4 sm:$0xff]  }
 0x243   : > { %v8180_v32 = vsel %vm8077_vm2, %v7512_v48, %v8179_v47  ;;  %10768 = vmatprep.mubr.bf16.mxu0 %v15248_v38  ;;  %v1203_v3 = vadd.f32 %v17398_v43, %v17301_v62  ;;  %v1195_v10 = vadd.f32 %v17398_v43, %v17310_v54  ;;  %v1206_v57 = vadd.f32 %v17398_v43, %v17324_v63 }
 0x244   : > { %v14499_v46 = vrot.slane %v2706_v23, 9  ;;  %v6174_v16 = vmax.f32 %v2705_v27, %v14497_v33  ;;  %v6175_v22 = vmax.f32 %v2704_v60, %v14498_v41  ;;  %v6573_v37 = vmax.f32 %v6173_v19, %v6181_v42  ;;  %10769 = vmatmul.mubr.bf16.gmra.mrb[148].mxu0 %v15247_v31  ;;  %v17651_v19 = vpop.f32.mrb[84].mxu0 }
 0x245   : > { %v1527_v0 = vmax.f32 %v1203_v3, 0.0  ;;  %v1525_v50 = vmax.f32 %v1195_v10, 0.0  ;;  %v1528_v30 = vmax.f32 %v1206_v57, 0.0  ;;  %v1198_v25 = vadd.f32 %v17398_v43, %v17330_v29  ;;  %v16249_v29 = vld [vmem:[%s20449_s3 + $0x1e4] ss:$8 sps:$4 sm:$0xff]  }
 0x246   : > { %v6176_v14 = vmax.f32 %v2706_v23, %v14499_v46  ;;  %v6574_v6 = vmax.f32 %v6174_v16, %v6182_v36  ;;  %v6575_v62 = vmax.f32 %v6175_v22, %v6183_v49  ;;  %v7516_v8 = vrot.slane %v6573_v37, %v16841_v56  ;;  %15707 = vmatprep.subr.bf16.mxu1 %v16249_v29  ;;  %v16252_v46 = vld [vmem:[%s20449_s3 + $0x1f4] ss:$8 sps:$4 sm:$0xff]  }
 0x247   : > { %v2775_v54 = vcombine.high %v1527_v0, %v1527_v0  ;;  %v2782_v53 = vrot.slane %v1527_v0, %v16831_v40  ;;  %v2741_v63 = vcombine.high %v1525_v50, %v1525_v50  ;;  %v2748_v9 = vrot.slane %v1525_v50, %v16831_v40  ;;  %10907 = vmatprep.subr.bf16.mxu0 %v16249_v29  ;;  %v17660_v50 = vpop.f32.mrb[85].mxu0 }
 0x248   : > { %v6576_v48 = vmax.f32 %v6176_v14, %v6184_v28  ;;  %v7520_v42 = vrot.slane %v6574_v6, %v16841_v56  ;;  %v7524_v5 = vrot.slane %v6575_v62, %v16841_v56  ;;  %v8181_v55 = vsel %vm8079_vm3, %v7516_v8, %v8180_v32  ;;  %15723 = vmatpush1.bf16.msra.mxu1 %v16251_v45  ;;  %v16254_v14 = vld [vmem:[%s20449_s3 + $0x1f0] ss:$8 sps:$4 sm:$0xff]  }
 0x249   : > { %v2789_v36 = vrot.slane %v2775_v54, %v16831_v40  ;;  %v2790_v49 = vcombine.high %v2782_v53, %v2782_v53  ;;  %v14516_v60 = vrot.slane %v2782_v53, 9  ;;  %v2755_v27 = vrot.slane %v2741_v63, %v16831_v40  ;;  %10908 = vmatpush1.bf16.msra.mxu0 %v16251_v45  ;;  %15708 = vmatprep.subr.bf16.mxu1 %v16252_v46 }
 0x24a   : > { %v7528_v2 = vrot.slane %v6576_v48, %v16841_v56  ;;  %v8182_v47 = vsel %vm8081_vm4, %v7520_v42, %v8181_v55  ;;  %v2756_v28 = vcombine.high %v2748_v9, %v2748_v9  ;;  %v14508_v38 = vrot.slane %v2748_v9, 9  ;;  %10909 = vmatprep.subr.bf16.mxu0 %v16252_v46 }
 0x24b   : > { %v8183_v31 = vsel %vm8083_vm5, %v7524_v5, %v8182_v47  ;;  %v2791_v23 = vcombine.high %v2789_v36, %v2789_v36  ;;  %v14517_v33 = vrot.slane %v2790_v49, 9  ;;  %v14518_v41 = vrot.slane %v2789_v36, 9 }
 0x24c   : > { %v17654_v32 = vsel %vm8085_vm6, %v7528_v2, %v8183_v31  ;;  %v6193_v3 = vmax.f32 %v2782_v53, %v14516_v60  ;;  %v2757_v10 = vcombine.high %v2755_v27, %v2755_v27  ;;  %v14509_v57 = vrot.slane %v2756_v28, 9  ;;  %15724 = vmatpush1.bf16.msra.mxu1 %v16254_v14 }
 0x24d   : > { %8351 = vst [vmem:[#allocation2 + $0x111] sm:$0xff] %v17654_v32  ;;  %v14519_v16 = vrot.slane %v2791_v23, 9  ;;  %v6194_v22 = vmax.f32 %v2790_v49, %v14517_v33  ;;  %v6195_v37 = vmax.f32 %v2789_v36, %v14518_v41  ;;  %v14510_v0 = vrot.slane %v2755_v27, 9  ;;  %10910 = vmatpush1.bf16.msra.mxu0 %v16254_v14  ;;  %v17667_v49 = vpop.f32.mrb[86].mxu0 }
 0x24e   : > { %v14511_v6 = vrot.slane %v2757_v10, 9  ;;  %v6185_v62 = vmax.f32 %v2748_v9, %v14508_v38  ;;  %v6186_v8 = vmax.f32 %v2756_v28, %v14509_v57  ;;  %v2792_v54 = vcombine.high %v1528_v30, %v1528_v30  ;;  %v17669_v47 = vpop.f32.mrb[87].mxu0 }
 0x24f   : > { %v6196_v53 = vmax.f32 %v2791_v23, %v14519_v16  ;;  %v6187_v63 = vmax.f32 %v2755_v27, %v14510_v0  ;;  %v2799_v48 = vrot.slane %v1528_v30, %v16831_v40  ;;  %v1526_v42 = vmax.f32 %v1198_v25, 0.0 }
 0x250   : > { %v6188_v5 = vmax.f32 %v2757_v10, %v14511_v6  ;;  %v6577_v55 = vmax.f32 %v6185_v62, %v6193_v3  ;;  %v6578_v29 = vmax.f32 %v6186_v8, %v6194_v22  ;;  %v2806_v36 = vrot.slane %v2792_v54, %v16831_v40 }
 0x251   : > { %v6579_v60 = vmax.f32 %v6187_v63, %v6195_v37  ;;  %v2807_v9 = vcombine.high %v2799_v48, %v2799_v48  ;;  %v14520_v45 = vrot.slane %v2799_v48, 9  ;;  %v2758_v2 = vcombine.high %v1526_v42, %v1526_v42 }
 0x252   : > { %v6580_v28 = vmax.f32 %v6188_v5, %v6196_v53  ;;  %v7532_v27 = vrot.slane %v6577_v55, %v16841_v56  ;;  %v7536_v30 = vrot.slane %v6578_v29, %v16841_v56  ;;  %v2808_v25 = vcombine.high %v2806_v36, %v2806_v36  ;;  %v17687_v5 = vld [vmem:[%s20448_s2] ss:$0 sm:$0xff] }
 0x253   : > { %v7540_v38 = vrot.slane %v6579_v60, %v16841_v56  ;;  %v14521_v31 = vrot.slane %v2807_v9, 9  ;;  %v14522_v23 = vrot.slane %v2806_v36, 9  ;;  %v6197_v33 = vmax.f32 %v2799_v48, %v14520_v45 }
 0x254   : > { %v7544_v41 = vrot.slane %v6580_v28, %v16841_v56  ;;  %v8185_v3 = vsel %vm8073_vm0, %v7536_v30, %v7532_v27  ;;  %v14523_v10 = vrot.slane %v2808_v25, 9  ;;  %v2765_v57 = vrot.slane %v1526_v42, %v16831_v40 }
 0x255   : > { %v8186_v46 = vsel %vm8075_vm1, %v7540_v38, %v8185_v3  ;;  %v6198_v16 = vmax.f32 %v2807_v9, %v14521_v31  ;;  %v6199_v22 = vmax.f32 %v2806_v36, %v14522_v23  ;;  %v2772_v37 = vrot.slane %v2758_v2, %v16831_v40 }
 0x256   : > { %v6200_v0 = vmax.f32 %v2808_v25, %v14523_v10  ;;  %v2773_v14 = vcombine.high %v2765_v57, %v2765_v57  ;;  %v14512_v6 = vrot.slane %v2765_v57, 9  ;;  %v8187_v62 = vsel %vm8077_vm2, %v7544_v41, %v8186_v46 }
 0x257   : > { %v2774_v8 = vcombine.high %v2772_v37, %v2772_v37  ;;  %v14514_v54 = vrot.slane %v2772_v37, 9  ;;  %v1219_v53 = vadd.f32 %v17398_v43, %v17350_v51  ;;  %v1211_v63 = vadd.f32 %v17398_v43, %v17354_v21 }
 0x258   : > { %v14513_v48 = vrot.slane %v2773_v14, 9  ;;  %v6189_v42 = vmax.f32 %v2765_v57, %v14512_v6  ;;  %v1222_v55 = vadd.f32 %v17687_v5, %v17363_v35  ;;  %v1214_v29 = vadd.f32 %v17687_v5, %v17366_v61 }
 0x259   : > { %v14515_v36 = vrot.slane %v2774_v8, 9  ;;  %v6191_v60 = vmax.f32 %v2772_v37, %v14514_v54  ;;  %v1531_v9 = vmax.f32 %v1219_v53, 0.0  ;;  %v1529_v51 = vmax.f32 %v1211_v63, 0.0 }
 0x25a   : > { %v6190_v45 = vmax.f32 %v2773_v14, %v14513_v48  ;;  %v6581_v2 = vmax.f32 %v6189_v42, %v6197_v33  ;;  %v1532_v21 = vmax.f32 %v1222_v55, 0.0  ;;  %v17693_v43 = vmax.f32 %v1214_v29, 0.0  ;;  %v17706_v29 = vpop.f32.mrb[88].mxu0 }
 0x25b   : > { %v6192_v28 = vmax.f32 %v2774_v8, %v14515_v36  ;;  %v6583_v27 = vmax.f32 %v6191_v60, %v6199_v22  ;;  %v2843_v30 = vcombine.high %v1531_v9, %v1531_v9  ;;  %v2850_v25 = vrot.slane %v1531_v9, %v16831_v40 }
 0x25c   : > { %v6582_v38 = vmax.f32 %v6190_v45, %v6198_v16  ;;  %v7548_v35 = vrot.slane %v6581_v2, %v16841_v56  ;;  %v2809_v31 = vcombine.high %v1529_v51, %v1529_v51  ;;  %v2816_v61 = vrot.slane %v1529_v51, %v16831_v40  ;;  %v17709_v51 = vpop.f32.mrb[89].mxu0 }
 0x25d   : > { %v6584_v23 = vmax.f32 %v6192_v28, %v6200_v0  ;;  %v7556_v41 = vrot.slane %v6583_v27, %v16841_v56  ;;  %v2857_v3 = vrot.slane %v2843_v30, %v16831_v40  ;;  %v2858_v33 = vcombine.high %v2850_v25, %v2850_v25 }
 0x25e   : > { %v7552_v10 = vrot.slane %v6582_v38, %v16841_v56  ;;  %v8188_v57 = vsel %vm8079_vm3, %v7548_v35, %v8187_v62  ;;  %v14532_v46 = vrot.slane %v2850_v25, 9  ;;  %v2823_v22 = vrot.slane %v2809_v31, %v16831_v40 }
 0x25f   : > { %v7560_v16 = vrot.slane %v6584_v23, %v16841_v56  ;;  %v2859_v37 = vcombine.high %v2857_v3, %v2857_v3  ;;  %v14533_v14 = vrot.slane %v2858_v33, 9  ;;  %v14534_v6 = vrot.slane %v2857_v3, 9 }
 0x260   : > { %v8189_v8 = vsel %vm8081_vm4, %v7552_v10, %v8188_v57  ;;  %v6209_v0 = vmax.f32 %v2850_v25, %v14532_v46  ;;  %v2824_v54 = vcombine.high %v2816_v61, %v2816_v61  ;;  %v2825_v53 = vcombine.high %v2823_v22, %v2823_v22 }
 0x261   : > { %v8190_v63 = vsel %vm8083_vm5, %v7556_v41, %v8189_v8  ;;  %v14535_v48 = vrot.slane %v2859_v37, 9  ;;  %v6210_v42 = vmax.f32 %v2858_v33, %v14533_v14  ;;  %v6211_v55 = vmax.f32 %v2857_v3, %v14534_v6 }
 0x262   : > { %v8191_v62 = vsel %vm8085_vm6, %v7560_v16, %v8190_v63  ;;  %v14524_v36 = vrot.slane %v2816_v61, 9  ;;  %v14525_v60 = vrot.slane %v2824_v54, 9  ;;  %v14526_v9 = vrot.slane %v2823_v22, 9  ;;  %v17717_v16 = vpop.f32.mrb[90].mxu0 }
 0x263   : > { %8352 = vst [vmem:[#allocation2 + $0x121] sm:$0xff] %v8191_v62  ;;  %v6212_v45 = vmax.f32 %v2859_v37, %v14535_v48  ;;  %v14527_v2 = vrot.slane %v2825_v53, 9  ;;  %v2860_v28 = vcombine.high %v1532_v21, %v1532_v21  ;;  %v2867_v27 = vrot.slane %v1532_v21, %v16831_v40  ;;  %v17719_v14 = vpop.f32.mrb[91].mxu0 }
 0x264   : > { %v6201_v30 = vmax.f32 %v2816_v61, %v14524_v36  ;;  %v6202_v25 = vmax.f32 %v2824_v54, %v14525_v60  ;;  %v6203_v38 = vmax.f32 %v2823_v22, %v14526_v9  ;;  %v2826_v35 = vcombine.high %v17693_v43, %v17693_v43  ;;  %v8381_v9 = vld [vmem:[#allocation2 + $0xe0] sm:$0xff] }
 0x265   : > { %v6204_v31 = vmax.f32 %v2825_v53, %v14527_v2  ;;  %v2874_v23 = vrot.slane %v2860_v28, %v16831_v40  ;;  %v2875_v41 = vcombine.high %v2867_v27, %v2867_v27  ;;  %v14536_v3 = vrot.slane %v2867_v27, 9  ;;  %v8382_v53 = vld [vmem:[#allocation2 + $0xf0] sm:$0xff] }
 0x266   : > { %v6585_v33 = vmax.f32 %v6201_v30, %v6209_v0  ;;  %v6586_v10 = vmax.f32 %v6202_v25, %v6210_v42  ;;  %v6587_v57 = vmax.f32 %v6203_v38, %v6211_v55  ;;  %v2833_v46 = vrot.slane %v17693_v43, %v16831_v40 }
 0x267   : > { %v6588_v21 = vmax.f32 %v6204_v31, %v6212_v45  ;;  %v2876_v61 = vcombine.high %v2874_v23, %v2874_v23  ;;  %v14537_v37 = vrot.slane %v2875_v41, 9  ;;  %v14538_v22 = vrot.slane %v2874_v23, 9 }
 0x268   : > { %v7564_v6 = vrot.slane %v6585_v33, %v16841_v56  ;;  %v7568_v8 = vrot.slane %v6586_v10, %v16841_v56  ;;  %v7572_v54 = vrot.slane %v6587_v57, %v16841_v56  ;;  %v6213_v0 = vmax.f32 %v2867_v27, %v14536_v3 }
 0x269   : > { %v7576_v63 = vrot.slane %v6588_v21, %v16841_v56  ;;  %v14539_v48 = vrot.slane %v2876_v61, 9  ;;  %v6214_v43 = vmax.f32 %v2875_v41, %v14537_v37  ;;  %v6215_v42 = vmax.f32 %v2874_v23, %v14538_v22 }
 0x26a   : > { %v8192_v55 = vsel %vm8073_vm0, %v7568_v8, %v7564_v6  ;;  %v2840_v62 = vrot.slane %v2826_v35, %v16831_v40  ;;  %v2841_v36 = vcombine.high %v2833_v46, %v2833_v46  ;;  %v14528_v60 = vrot.slane %v2833_v46, 9 }
 0x26b   : > { %v8193_v45 = vsel %vm8075_vm1, %v7572_v54, %v8192_v55  ;;  %v6216_v2 = vmax.f32 %v2876_v61, %v14539_v48  ;;  %v15257_v28 = vpack.c.bf16 %v17542_v17, %v17496_v18  ;;  %v15256_v27 = vpack.c.bf16 %v8382_v53, %v8381_v9 }
 0x26c   : > { %v2842_v30 = vcombine.high %v2840_v62, %v2840_v62  ;;  %v14529_v25 = vrot.slane %v2841_v36, 9  ;;  %v14530_v38 = vrot.slane %v2840_v62, 9  ;;  %v6205_v31 = vmax.f32 %v2833_v46, %v14528_v60 }
 0x26d   : > { %v8194_v23 = vsel %vm8077_vm2, %v7576_v63, %v8193_v45  ;;  %10778 = vmatprep.mubr.bf16.mxu0 %v15257_v28  ;;  %v1235_v35 = vadd.f32 %v17687_v5, %v17425_v26  ;;  %v1227_v41 = vadd.f32 %v17687_v5, %v17434_v15  ;;  %v1238_v3 = vadd.f32 %v17687_v5, %v17441_v4 }
 0x26e   : > { %v14531_v33 = vrot.slane %v2842_v30, 9  ;;  %v6206_v10 = vmax.f32 %v2841_v36, %v14529_v25  ;;  %v6207_v18 = vmax.f32 %v2840_v62, %v14530_v38  ;;  %v6589_v17 = vmax.f32 %v6205_v31, %v6213_v0  ;;  %10779 = vmatmul.mubr.bf16.gmra.mrb[152].mxu0 %v15256_v27 }
 0x26f   : > { %v1535_v57 = vmax.f32 %v1235_v35, 0.0  ;;  %v1533_v21 = vmax.f32 %v1227_v41, 0.0  ;;  %v1536_v46 = vmax.f32 %v1238_v3, 0.0  ;;  %v1230_v61 = vadd.f32 %v17687_v5, %v17446_v58 }
 0x270   : > { %v6208_v37 = vmax.f32 %v2842_v30, %v14531_v33  ;;  %v6590_v22 = vmax.f32 %v6206_v10, %v6214_v43  ;;  %v6591_v26 = vmax.f32 %v6207_v18, %v6215_v42  ;;  %v7580_v6 = vrot.slane %v6589_v17, %v16841_v56  ;;  %v17750_v30 = vpop.f32.mrb[92].mxu0 }
 0x271   : > { %v2911_v15 = vcombine.high %v1535_v57, %v1535_v57  ;;  %v2918_v8 = vrot.slane %v1535_v57, %v16831_v40  ;;  %v2877_v4 = vcombine.high %v1533_v21, %v1533_v21  ;;  %v2884_v54 = vrot.slane %v1533_v21, %v16831_v40  ;;  %v17756_v21 = vpop.f32.mrb[93].mxu0 }
 0x272   : > { %v6592_v53 = vmax.f32 %v6208_v37, %v6216_v2  ;;  %v7584_v0 = vrot.slane %v6590_v22, %v16841_v56  ;;  %v7588_v63 = vrot.slane %v6591_v26, %v16841_v56  ;;  %v8195_v48 = vsel %vm8079_vm3, %v7580_v6, %v8194_v23 }
 0x273   : > { %v2925_v58 = vrot.slane %v2911_v15, %v16831_v40  ;;  %v2926_v55 = vcombine.high %v2918_v8, %v2918_v8  ;;  %v14548_v43 = vrot.slane %v2918_v8, 9  ;;  %v2891_v42 = vrot.slane %v2877_v4, %v16831_v40 }
 0x274   : > { %v7592_v62 = vrot.slane %v6592_v53, %v16841_v56  ;;  %v8196_v36 = vsel %vm8081_vm4, %v7584_v0, %v8195_v48  ;;  %v2892_v60 = vcombine.high %v2884_v54, %v2884_v54  ;;  %v14540_v9 = vrot.slane %v2884_v54, 9 }
 0x275   : > { %v8197_v45 = vsel %vm8083_vm5, %v7588_v63, %v8196_v36  ;;  %v2927_v2 = vcombine.high %v2925_v58, %v2925_v58  ;;  %v14549_v28 = vrot.slane %v2926_v55, 9  ;;  %v14550_v27 = vrot.slane %v2925_v58, 9 }
 0x276   : > { %v17753_v25 = vsel %vm8085_vm6, %v7592_v62, %v8197_v45  ;;  %v6225_v38 = vmax.f32 %v2918_v8, %v14548_v43  ;;  %v2893_v31 = vcombine.high %v2891_v42, %v2891_v42  ;;  %v14541_v23 = vrot.slane %v2892_v60, 9 }
 0x277   : > { %8353 = vst [vmem:[#allocation2 + $0x151] sm:$0xff] %v17753_v25  ;;  %v14551_v35 = vrot.slane %v2927_v2, 9  ;;  %v6226_v41 = vmax.f32 %v2926_v55, %v14549_v28  ;;  %v6227_v3 = vmax.f32 %v2925_v58, %v14550_v27  ;;  %v14542_v33 = vrot.slane %v2891_v42, 9  ;;  %v17760_v55 = vpop.f32.mrb[94].mxu0 }
 0x278   : > { %v14543_v10 = vrot.slane %v2893_v31, 9  ;;  %v6217_v18 = vmax.f32 %v2884_v54, %v14540_v9  ;;  %v6218_v17 = vmax.f32 %v2892_v60, %v14541_v23  ;;  %v2928_v57 = vcombine.high %v1536_v46, %v1536_v46  ;;  %v17764_v36 = vpop.f32.mrb[95].mxu0 }
 0x279   : > { %v6228_v37 = vmax.f32 %v2927_v2, %v14551_v35  ;;  %v6219_v22 = vmax.f32 %v2891_v42, %v14542_v33  ;;  %v2935_v26 = vrot.slane %v1536_v46, %v16831_v40  ;;  %v1534_v6 = vmax.f32 %v1230_v61, 0.0 }
 0x27a   : > { %v6220_v15 = vmax.f32 %v2893_v31, %v14543_v10  ;;  %v6593_v8 = vmax.f32 %v6217_v18, %v6225_v38  ;;  %v6594_v4 = vmax.f32 %v6218_v17, %v6226_v41  ;;  %v2942_v53 = vrot.slane %v2928_v57, %v16831_v40 }
 0x27b   : > { %v6595_v0 = vmax.f32 %v6219_v22, %v6227_v3  ;;  %v2943_v63 = vcombine.high %v2935_v26, %v2935_v26  ;;  %v14552_v48 = vrot.slane %v2935_v26, 9  ;;  %v2894_v58 = vcombine.high %v1534_v6, %v1534_v6 }
 0x27c   : > { %v6596_v54 = vmax.f32 %v6220_v15, %v6228_v37  ;;  %v7596_v43 = vrot.slane %v6593_v8, %v16841_v56  ;;  %v7600_v62 = vrot.slane %v6594_v4, %v16841_v56  ;;  %v2944_v42 = vcombine.high %v2942_v53, %v2942_v53 }
 0x27d   : > { %v7604_v46 = vrot.slane %v6595_v0, %v16841_v56  ;;  %v14553_v61 = vrot.slane %v2943_v63, 9  ;;  %v14554_v60 = vrot.slane %v2942_v53, 9  ;;  %v6229_v9 = vmax.f32 %v2935_v26, %v14552_v48 }
 0x27e   : > { %v7608_v45 = vrot.slane %v6596_v54, %v16841_v56  ;;  %v8199_v2 = vsel %vm8073_vm0, %v7600_v62, %v7596_v43  ;;  %v14555_v28 = vrot.slane %v2944_v42, 9  ;;  %v2901_v27 = vrot.slane %v1534_v6, %v16831_v40 }
 0x27f   : > { %v8200_v38 = vsel %vm8075_vm1, %v7604_v46, %v8199_v2  ;;  %v6230_v31 = vmax.f32 %v2943_v63, %v14553_v61  ;;  %v6231_v23 = vmax.f32 %v2942_v53, %v14554_v60  ;;  %v2908_v35 = vrot.slane %v2894_v58, %v16831_v40 }
 0x280   : > { %v6232_v41 = vmax.f32 %v2944_v42, %v14555_v28  ;;  %v2909_v3 = vcombine.high %v2901_v27, %v2901_v27  ;;  %v14544_v33 = vrot.slane %v2901_v27, 9  ;;  %v8201_v10 = vsel %vm8077_vm2, %v7608_v45, %v8200_v38 }
 0x281   : > { %v2910_v18 = vcombine.high %v2908_v35, %v2908_v35  ;;  %v14546_v17 = vrot.slane %v2908_v35, 9  ;;  %v1251_v57 = vadd.f32 %v17687_v5, %v17463_v1  ;;  %v1243_v37 = vadd.f32 %v17687_v5, %v17469_v20 }
 0x282   : > { %v14545_v22 = vrot.slane %v2909_v3, 9  ;;  %v6221_v26 = vmax.f32 %v2901_v27, %v14544_v33  ;;  %v1254_v6 = vadd.f32 %v17687_v5, %v17480_v52  ;;  %v1246_v15 = vadd.f32 %v17687_v5, %v17490_v24 }
 0x283   : > { %v14547_v8 = vrot.slane %v2910_v18, 9  ;;  %v6223_v4 = vmax.f32 %v2908_v35, %v14546_v17  ;;  %v1539_v53 = vmax.f32 %v1251_v57, 0.0  ;;  %v1537_v0 = vmax.f32 %v1243_v37, 0.0 }
 0x284   : > { %v6222_v63 = vmax.f32 %v2909_v3, %v14545_v22  ;;  %v6597_v48 = vmax.f32 %v6221_v26, %v6229_v9  ;;  %v1540_v58 = vmax.f32 %v1254_v6, 0.0  ;;  %v17781_v54 = vmax.f32 %v1246_v15, 0.0 }
 0x285   : > { %v6224_v1 = vmax.f32 %v2910_v18, %v14547_v8  ;;  %v6599_v43 = vmax.f32 %v6223_v4, %v6231_v23  ;;  %v2979_v20 = vcombine.high %v1539_v53, %v1539_v53  ;;  %v2986_v62 = vrot.slane %v1539_v53, %v16831_v40  ;;  %v17795_v4 = vpop.f32.mrb[96].mxu0 }
 0x286   : > { %v6598_v42 = vmax.f32 %v6222_v63, %v6230_v31  ;;  %v7612_v52 = vrot.slane %v6597_v48, %v16841_v56  ;;  %v2945_v46 = vcombine.high %v1537_v0, %v1537_v0  ;;  %v2952_v24 = vrot.slane %v1537_v0, %v16831_v40 }
 0x287   : > { %v6600_v61 = vmax.f32 %v6224_v1, %v6232_v41  ;;  %v7620_v60 = vrot.slane %v6599_v43, %v16841_v56  ;;  %v2993_v45 = vrot.slane %v2979_v20, %v16831_v40  ;;  %v2994_v9 = vcombine.high %v2986_v62, %v2986_v62  ;;  %v17798_v1 = vpop.f32.mrb[97].mxu0 }
 0x288   : > { %v7616_v2 = vrot.slane %v6598_v42, %v16841_v56  ;;  %v8202_v28 = vsel %vm8079_vm3, %v7612_v52, %v8201_v10  ;;  %v14564_v27 = vrot.slane %v2986_v62, 9  ;;  %v2959_v38 = vrot.slane %v2945_v46, %v16831_v40 }
 0x289   : > { %v7624_v31 = vrot.slane %v6600_v61, %v16841_v56  ;;  %v2995_v23 = vcombine.high %v2993_v45, %v2993_v45  ;;  %v14565_v35 = vrot.slane %v2994_v9, 9  ;;  %v14566_v3 = vrot.slane %v2993_v45, 9 }
 0x28a   : > { %v8203_v33 = vsel %vm8081_vm4, %v7616_v2, %v8202_v28  ;;  %v6241_v41 = vmax.f32 %v2986_v62, %v14564_v27  ;;  %v2960_v18 = vcombine.high %v2952_v24, %v2952_v24  ;;  %v2961_v17 = vcombine.high %v2959_v38, %v2959_v38 }
 0x28b   : > { %v8204_v57 = vsel %vm8083_vm5, %v7620_v60, %v8203_v33  ;;  %v14567_v37 = vrot.slane %v2995_v23, 9  ;;  %v6242_v22 = vmax.f32 %v2994_v9, %v14565_v35  ;;  %v6243_v26 = vmax.f32 %v2993_v45, %v14566_v3 }
 0x28c   : > { %v8205_v10 = vsel %vm8085_vm6, %v7624_v31, %v8204_v57  ;;  %v14556_v6 = vrot.slane %v2952_v24, 9  ;;  %v14557_v15 = vrot.slane %v2960_v18, 9  ;;  %v14558_v8 = vrot.slane %v2959_v38, 9 }
 0x28d   : > { %8354 = vst [vmem:[#allocation2 + $0x161] sm:$0xff] %v8205_v10  ;;  %v6244_v53 = vmax.f32 %v2995_v23, %v14567_v37  ;;  %v14559_v0 = vrot.slane %v2961_v17, 9  ;;  %v2996_v63 = vcombine.high %v1540_v58, %v1540_v58  ;;  %v3003_v48 = vrot.slane %v1540_v58, %v16831_v40  ;;  %v17805_v58 = vpop.f32.mrb[98].mxu0 }
 0x28e   : > { %v6233_v43 = vmax.f32 %v2952_v24, %v14556_v6  ;;  %v6234_v20 = vmax.f32 %v2960_v18, %v14557_v15  ;;  %v6235_v62 = vmax.f32 %v2959_v38, %v14558_v8  ;;  %v2962_v42 = vcombine.high %v17781_v54, %v17781_v54  ;;  %v17807_v23 = vpop.f32.mrb[99].mxu0  ;;  %v8447_v18 = vld [vmem:[#allocation2 + $0x101] sm:$0xff] }
 0x28f   : > { %v6236_v52 = vmax.f32 %v2961_v17, %v14559_v0  ;;  %v3010_v46 = vrot.slane %v2996_v63, %v16831_v40  ;;  %v3011_v61 = vcombine.high %v3003_v48, %v3003_v48  ;;  %v14568_v60 = vrot.slane %v3003_v48, 9  ;;  %v8384_v17 = vld [vmem:[#allocation2 + $0x110] sm:$0xff]  ;;  %v8383_v8 = vld [vmem:[#allocation2 + $0x100] sm:$0xff] }
 0x290   : > { %v6601_v45 = vmax.f32 %v6233_v43, %v6241_v41  ;;  %v6602_v9 = vmax.f32 %v6234_v20, %v6242_v22  ;;  %v6603_v2 = vmax.f32 %v6235_v62, %v6243_v26  ;;  %v2969_v28 = vrot.slane %v17781_v54, %v16831_v40 }
 0x291   : > { %v6604_v27 = vmax.f32 %v6236_v52, %v6244_v53  ;;  %v3012_v24 = vcombine.high %v3010_v46, %v3010_v46  ;;  %v14569_v31 = vrot.slane %v3011_v61, 9  ;;  %v14570_v38 = vrot.slane %v3010_v46, 9 }
 0x292   : > { %v7628_v35 = vrot.slane %v6601_v45, %v16841_v56  ;;  %v7632_v3 = vrot.slane %v6602_v9, %v16841_v56  ;;  %v7636_v33 = vrot.slane %v6603_v2, %v16841_v56  ;;  %v6245_v41 = vmax.f32 %v3003_v48, %v14568_v60 }
 0x293   : > { %v7640_v57 = vrot.slane %v6604_v27, %v16841_v56  ;;  %v14571_v54 = vrot.slane %v3012_v24, 9  ;;  %v6246_v37 = vmax.f32 %v3011_v61, %v14569_v31  ;;  %v6247_v22 = vmax.f32 %v3010_v46, %v14570_v38 }
 0x294   : > { %v8206_v26 = vsel %vm8073_vm0, %v7632_v3, %v7628_v35  ;;  %v2976_v10 = vrot.slane %v2962_v42, %v16831_v40  ;;  %v2977_v6 = vcombine.high %v2969_v28, %v2969_v28  ;;  %v14560_v15 = vrot.slane %v2969_v28, 9 }
 0x295   : > { %v8207_v53 = vsel %vm8075_vm1, %v7636_v33, %v8206_v26  ;;  %v6248_v0 = vmax.f32 %v3012_v24, %v14571_v54  ;;  %v15266_v63 = vpack.c.bf16 %v17654_v32, %v8447_v18  ;;  %v15265_v48 = vpack.c.bf16 %v8384_v17, %v8383_v8 }
 0x296   : > { %v2978_v43 = vcombine.high %v2976_v10, %v2976_v10  ;;  %v14561_v20 = vrot.slane %v2977_v6, 9  ;;  %v14562_v62 = vrot.slane %v2976_v10, 9  ;;  %v6237_v52 = vmax.f32 %v2969_v28, %v14560_v15 }
 0x297   : > { %v8208_v61 = vsel %vm8077_vm2, %v7640_v57, %v8207_v53  ;;  %10788 = vmatprep.mubr.bf16.mxu0 %v15266_v63  ;;  %v1267_v46 = vadd.f32 %v17687_v5, %v17539_v11  ;;  %v1259_v42 = vadd.f32 %v17687_v5, %v17548_v59  ;;  %v1270_v60 = vadd.f32 %v17687_v5, %v17555_v44 }
 0x298   : > { %v14563_v45 = vrot.slane %v2978_v43, 9  ;;  %v6238_v9 = vmax.f32 %v2977_v6, %v14561_v20  ;;  %v6239_v32 = vmax.f32 %v2976_v10, %v14562_v62  ;;  %v6605_v2 = vmax.f32 %v6237_v52, %v6245_v41  ;;  %10789 = vmatmul.mubr.bf16.gmra.mrb[156].mxu0 %v15265_v48 }
 0x299   : > { %v1543_v27 = vmax.f32 %v1267_v46, 0.0  ;;  %v1541_v24 = vmax.f32 %v1259_v42, 0.0  ;;  %v1544_v28 = vmax.f32 %v1270_v60, 0.0  ;;  %v1262_v31 = vadd.f32 %v17687_v5, %v17560_v7 }
 0x29a   : > { %v6240_v38 = vmax.f32 %v2978_v43, %v14563_v45  ;;  %v6606_v35 = vmax.f32 %v6238_v9, %v6246_v37  ;;  %v6607_v11 = vmax.f32 %v6239_v32, %v6247_v22  ;;  %v7644_v3 = vrot.slane %v6605_v2, %v16841_v56 }
 0x29b   : > { %v3047_v59 = vcombine.high %v1543_v27, %v1543_v27  ;;  %v3054_v33 = vrot.slane %v1543_v27, %v16831_v40  ;;  %v3013_v44 = vcombine.high %v1541_v24, %v1541_v24  ;;  %v3020_v18 = vrot.slane %v1541_v24, %v16831_v40 }
 0x29c   : > { %v6608_v17 = vmax.f32 %v6240_v38, %v6248_v0  ;;  %v7648_v41 = vrot.slane %v6606_v35, %v16841_v56  ;;  %v7652_v57 = vrot.slane %v6607_v11, %v16841_v56  ;;  %v8209_v54 = vsel %vm8079_vm3, %v7644_v3, %v8208_v61  ;;  %v17840_v61 = vpop.f32.mrb[100].mxu0 }
 0x29d   : > { %v3061_v7 = vrot.slane %v3047_v59, %v16831_v40  ;;  %v3062_v26 = vcombine.high %v3054_v33, %v3054_v33  ;;  %v14580_v37 = vrot.slane %v3054_v33, 9  ;;  %v3027_v22 = vrot.slane %v3013_v44, %v16831_v40  ;;  %v17843_v24 = vpop.f32.mrb[101].mxu0 }
 0x29e   : > { %v7656_v10 = vrot.slane %v6608_v17, %v16841_v56  ;;  %v8210_v6 = vsel %vm8081_vm4, %v7648_v41, %v8209_v54  ;;  %v3028_v15 = vcombine.high %v3020_v18, %v3020_v18  ;;  %v14572_v8 = vrot.slane %v3020_v18, 9 }
 0x29f   : > { %v8211_v53 = vsel %vm8083_vm5, %v7652_v57, %v8210_v6  ;;  %v3063_v0 = vcombine.high %v3061_v7, %v3061_v7  ;;  %v14581_v63 = vrot.slane %v3062_v26, 9  ;;  %v14582_v48 = vrot.slane %v3061_v7, 9 }
 0x2a0   : > { %v17838_v43 = vsel %vm8085_vm6, %v7656_v10, %v8211_v53  ;;  %v6257_v20 = vmax.f32 %v3054_v33, %v14580_v37  ;;  %v3029_v62 = vcombine.high %v3027_v22, %v3027_v22  ;;  %v14573_v52 = vrot.slane %v3028_v15, 9 }
 0x2a1   : > { %8355 = vst [vmem:[#allocation2 + $0x171] sm:$0xff] %v17838_v43  ;;  %v14583_v46 = vrot.slane %v3063_v0, 9  ;;  %v6258_v42 = vmax.f32 %v3062_v26, %v14581_v63  ;;  %v6259_v60 = vmax.f32 %v3061_v7, %v14582_v48  ;;  %v14574_v45 = vrot.slane %v3027_v22, 9  ;;  %v17847_v26 = vpop.f32.mrb[102].mxu0 }
 0x2a2   : > { %v14575_v9 = vrot.slane %v3029_v62, 9  ;;  %v6249_v32 = vmax.f32 %v3020_v18, %v14572_v8  ;;  %v6250_v2 = vmax.f32 %v3028_v15, %v14573_v52  ;;  %v3064_v27 = vcombine.high %v1544_v28, %v1544_v28  ;;  %v17851_v6 = vpop.f32.mrb[103].mxu0 }
 0x2a3   : > { %v6260_v38 = vmax.f32 %v3063_v0, %v14583_v46  ;;  %v6251_v35 = vmax.f32 %v3027_v22, %v14574_v45  ;;  %v3071_v11 = vrot.slane %v1544_v28, %v16831_v40  ;;  %v1542_v3 = vmax.f32 %v1262_v31, 0.0 }
 0x2a4   : > { %v6252_v59 = vmax.f32 %v3029_v62, %v14575_v9  ;;  %v6609_v33 = vmax.f32 %v6249_v32, %v6257_v20  ;;  %v6610_v44 = vmax.f32 %v6250_v2, %v6258_v42  ;;  %v3078_v17 = vrot.slane %v3064_v27, %v16831_v40 }
 0x2a5   : > { %v6611_v41 = vmax.f32 %v6251_v35, %v6259_v60  ;;  %v3079_v57 = vcombine.high %v3071_v11, %v3071_v11  ;;  %v14584_v54 = vrot.slane %v3071_v11, 9  ;;  %v3030_v7 = vcombine.high %v1542_v3, %v1542_v3 }
 0x2a6   : > { %v6612_v18 = vmax.f32 %v6252_v59, %v6260_v38  ;;  %v7660_v37 = vrot.slane %v6609_v33, %v16841_v56  ;;  %v7664_v10 = vrot.slane %v6610_v44, %v16841_v56  ;;  %v3080_v22 = vcombine.high %v3078_v17, %v3078_v17 }
 0x2a7   : > { %v7668_v28 = vrot.slane %v6611_v41, %v16841_v56  ;;  %v14585_v31 = vrot.slane %v3079_v57, 9  ;;  %v14586_v15 = vrot.slane %v3078_v17, 9  ;;  %v6261_v8 = vmax.f32 %v3071_v11, %v14584_v54 }
 0x2a8   : > { %v7672_v53 = vrot.slane %v6612_v18, %v16841_v56  ;;  %v8213_v0 = vsel %vm8073_vm0, %v7664_v10, %v7660_v37  ;;  %v14587_v63 = vrot.slane %v3080_v22, 9  ;;  %v3037_v48 = vrot.slane %v1542_v3, %v16831_v40 }
 0x2a9   : > { %v8214_v20 = vsel %vm8075_vm1, %v7668_v28, %v8213_v0  ;;  %v6262_v62 = vmax.f32 %v3079_v57, %v14585_v31  ;;  %v6263_v52 = vmax.f32 %v3078_v17, %v14586_v15  ;;  %v3044_v46 = vrot.slane %v3030_v7, %v16831_v40 }
 0x2aa   : > { %v6264_v42 = vmax.f32 %v3080_v22, %v14587_v63  ;;  %v3045_v60 = vcombine.high %v3037_v48, %v3037_v48  ;;  %v14576_v45 = vrot.slane %v3037_v48, 9  ;;  %v8215_v9 = vsel %vm8077_vm2, %v7672_v53, %v8214_v20 }
 0x2ab   : > { %v3046_v32 = vcombine.high %v3044_v46, %v3044_v46  ;;  %v14578_v2 = vrot.slane %v3044_v46, 9  ;;  %v1283_v27 = vadd.f32 %v17687_v5, %v17577_v34  ;;  %v1275_v38 = vadd.f32 %v17687_v5, %v17583_v13 }
 0x2ac   : > { %v14577_v35 = vrot.slane %v3045_v60, 9  ;;  %v6253_v11 = vmax.f32 %v3037_v48, %v14576_v45  ;;  %v1286_v3 = vadd.f32 %v17687_v5, %v17594_v39  ;;  %v1278_v59 = vadd.f32 %v17687_v5, %v17604_v12 }
 0x2ad   : > { %v14579_v33 = vrot.slane %v3046_v32, 9  ;;  %v6255_v44 = vmax.f32 %v3044_v46, %v14578_v2  ;;  %v1547_v17 = vmax.f32 %v1283_v27, 0.0  ;;  %v1545_v41 = vmax.f32 %v1275_v38, 0.0 }
 0x2ae   : > { %v6254_v57 = vmax.f32 %v3045_v60, %v14577_v35  ;;  %v6613_v54 = vmax.f32 %v6253_v11, %v6261_v8  ;;  %v1548_v7 = vmax.f32 %v1286_v3, 0.0  ;;  %v17868_v18 = vmax.f32 %v1278_v59, 0.0 }
 0x2af   : > { %v6256_v34 = vmax.f32 %v3046_v32, %v14579_v33  ;;  %v6615_v37 = vmax.f32 %v6255_v44, %v6263_v52  ;;  %v3115_v13 = vcombine.high %v1547_v17, %v1547_v17  ;;  %v3122_v10 = vrot.slane %v1547_v17, %v16831_v40  ;;  %v17884_v44 = vpop.f32.mrb[104].mxu0 }
 0x2b0   : > { %v6614_v22 = vmax.f32 %v6254_v57, %v6262_v62  ;;  %v7676_v39 = vrot.slane %v6613_v54, %v16841_v56  ;;  %v3081_v28 = vcombine.high %v1545_v41, %v1545_v41  ;;  %v3088_v12 = vrot.slane %v1545_v41, %v16831_v40 }
 0x2b1   : > { %v6616_v31 = vmax.f32 %v6256_v34, %v6264_v42  ;;  %v7684_v15 = vrot.slane %v6615_v37, %v16841_v56  ;;  %v3129_v53 = vrot.slane %v3115_v13, %v16831_v40  ;;  %v3130_v8 = vcombine.high %v3122_v10, %v3122_v10  ;;  %v17888_v34 = vpop.f32.mrb[105].mxu0 }
 0x2b2   : > { %v7680_v0 = vrot.slane %v6614_v22, %v16841_v56  ;;  %v8216_v63 = vsel %vm8079_vm3, %v7676_v39, %v8215_v9  ;;  %v14596_v48 = vrot.slane %v3122_v10, 9  ;;  %v3095_v20 = vrot.slane %v3081_v28, %v16831_v40 }
 0x2b3   : > { %v7688_v62 = vrot.slane %v6616_v31, %v16841_v56  ;;  %v3131_v52 = vcombine.high %v3129_v53, %v3129_v53  ;;  %v14597_v46 = vrot.slane %v3130_v8, 9  ;;  %v14598_v60 = vrot.slane %v3129_v53, 9 }
 0x2b4   : > { %v8217_v45 = vsel %vm8081_vm4, %v7680_v0, %v8216_v63  ;;  %v6273_v42 = vmax.f32 %v3122_v10, %v14596_v48  ;;  %v3096_v32 = vcombine.high %v3088_v12, %v3088_v12  ;;  %v3097_v2 = vcombine.high %v3095_v20, %v3095_v20 }
 0x2b5   : > { %v8218_v27 = vsel %vm8083_vm5, %v7684_v15, %v8217_v45  ;;  %v14599_v38 = vrot.slane %v3131_v52, 9  ;;  %v6274_v35 = vmax.f32 %v3130_v8, %v14597_v46  ;;  %v6275_v11 = vmax.f32 %v3129_v53, %v14598_v60 }
 0x2b6   : > { %v17882_v9 = vsel %vm8085_vm6, %v7688_v62, %v8218_v27  ;;  %v14588_v3 = vrot.slane %v3088_v12, 9  ;;  %v14589_v59 = vrot.slane %v3096_v32, 9  ;;  %v14590_v33 = vrot.slane %v3095_v20, 9 }
 0x2b7   : > { %8356 = vst [vmem:[#allocation2 + $0x181] sm:$0xff] %v17882_v9  ;;  %v6276_v17 = vmax.f32 %v3131_v52, %v14599_v38  ;;  %v14591_v41 = vrot.slane %v3097_v2, 9  ;;  %v3132_v57 = vcombine.high %v1548_v7, %v1548_v7  ;;  %v3139_v54 = vrot.slane %v1548_v7, %v16831_v40  ;;  %v17895_v52 = vpop.f32.mrb[106].mxu0 }
 0x2b8   : > { %v6265_v37 = vmax.f32 %v3088_v12, %v14588_v3  ;;  %v6266_v13 = vmax.f32 %v3096_v32, %v14589_v59  ;;  %v6267_v10 = vmax.f32 %v3095_v20, %v14590_v33  ;;  %v3098_v22 = vcombine.high %v17868_v18, %v17868_v18  ;;  %v8449_v32 = vld [vmem:[#allocation2 + $0x141] sm:$0xff] }
 0x2b9   : > { %v6268_v39 = vmax.f32 %v3097_v2, %v14591_v41  ;;  %v3146_v28 = vrot.slane %v3132_v57, %v16831_v40  ;;  %v3147_v31 = vcombine.high %v3139_v54, %v3139_v54  ;;  %v14600_v15 = vrot.slane %v3139_v54, 9  ;;  %v17902_v2 = vpop.f32.mrb[107].mxu0 }
 0x2ba   : > { %v6617_v53 = vmax.f32 %v6265_v37, %v6273_v42  ;;  %v6618_v8 = vmax.f32 %v6266_v13, %v6274_v35  ;;  %v6619_v0 = vmax.f32 %v6267_v10, %v6275_v11  ;;  %v3105_v63 = vrot.slane %v17868_v18, %v16831_v40  ;;  %v17900_v42 = vld [vmem:[#allocation2 + $0x150] sm:$0xff] }
 0x2bb   : > { %v6620_v7 = vmax.f32 %v6268_v39, %v6276_v17  ;;  %v3148_v48 = vcombine.high %v3146_v28, %v3146_v28  ;;  %v14601_v62 = vrot.slane %v3147_v31, 9  ;;  %v14602_v12 = vrot.slane %v3146_v28, 9 }
 0x2bc   : > { %v7692_v20 = vrot.slane %v6617_v53, %v16841_v56  ;;  %v7696_v46 = vrot.slane %v6618_v8, %v16841_v56  ;;  %v7700_v60 = vrot.slane %v6619_v0, %v16841_v56  ;;  %v6277_v45 = vmax.f32 %v3139_v54, %v14600_v15  ;;  %v16384_v54 = vld [vmem:[#allocation2] sm:$0xff] }
 0x2bd   : > { %v7704_v18 = vrot.slane %v6620_v7, %v16841_v56  ;;  %v14603_v27 = vrot.slane %v3148_v48, 9  ;;  %v6278_v38 = vmax.f32 %v3147_v31, %v14601_v62  ;;  %v6279_v35 = vmax.f32 %v3146_v28, %v14602_v12 }
 0x2be   : > { %v8220_v11 = vsel %vm8073_vm0, %v7696_v46, %v7692_v20  ;;  %v3112_v3 = vrot.slane %v3098_v22, %v16831_v40  ;;  %v3113_v59 = vcombine.high %v3105_v63, %v3105_v63  ;;  %v14592_v33 = vrot.slane %v3105_v63, 9 }
 0x2bf   : > { %v8221_v17 = vsel %vm8075_vm1, %v7700_v60, %v8220_v11  ;;  %v6280_v41 = vmax.f32 %v3148_v48, %v14603_v27  ;;  %v15275_v57 = vpack.c.bf16 %v17753_v25, %v8449_v32  ;;  %v15274_v37 = vpack.c.bf16 %v17900_v42, %v16384_v54 }
 0x2c0   : > { %v3114_v13 = vcombine.high %v3112_v3, %v3112_v3  ;;  %v14593_v10 = vrot.slane %v3113_v59, 9  ;;  %v14594_v39 = vrot.slane %v3112_v3, 9  ;;  %v6269_v15 = vmax.f32 %v3105_v63, %v14592_v33 }
 0x2c1   : > { %v8222_v28 = vsel %vm8077_vm2, %v7704_v18, %v8221_v17  ;;  %10798 = vmatprep.mubr.bf16.mxu0 %v15275_v57  ;;  %v1299_v22 = vadd.f32 %v17687_v5, %v17651_v19  ;;  %v1291_v31 = vadd.f32 %v17687_v5, %v17660_v50  ;;  %v1302_v53 = vadd.f32 %v17687_v5, %v17667_v49 }
 0x2c2   : > { %v14595_v25 = vrot.slane %v3114_v13, 9  ;;  %v6270_v8 = vmax.f32 %v3113_v59, %v14593_v10  ;;  %v6271_v0 = vmax.f32 %v3112_v3, %v14594_v39  ;;  %v6621_v7 = vmax.f32 %v6269_v15, %v6277_v45  ;;  %10799 = vmatmul.mubr.bf16.gmra.mrb[160].mxu0 %v15274_v37 }
 0x2c3   : > { %v1551_v48 = vmax.f32 %v1299_v22, 0.0  ;;  %v1549_v62 = vmax.f32 %v1291_v31, 0.0  ;;  %v1552_v63 = vmax.f32 %v1302_v53, 0.0  ;;  %v1294_v12 = vadd.f32 %v17687_v5, %v17669_v47  ;;  %v17933_v22 = vpop.f32.mrb[108].mxu0 }
 0x2c4   : > { %v6272_v20 = vmax.f32 %v3114_v13, %v14595_v25  ;;  %v6622_v46 = vmax.f32 %v6270_v8, %v6278_v38  ;;  %v6623_v19 = vmax.f32 %v6271_v0, %v6279_v35  ;;  %v7708_v60 = vrot.slane %v6621_v7, %v16841_v56 }
 0x2c5   : > { %v3183_v50 = vcombine.high %v1551_v48, %v1551_v48  ;;  %v3190_v32 = vrot.slane %v1551_v48, %v16831_v40  ;;  %v3149_v49 = vcombine.high %v1549_v62, %v1549_v62  ;;  %v3156_v18 = vrot.slane %v1549_v62, %v16831_v40 }
 0x2c6   : > { %v6624_v27 = vmax.f32 %v6272_v20, %v6280_v41  ;;  %v7712_v45 = vrot.slane %v6622_v46, %v16841_v56  ;;  %v7716_v11 = vrot.slane %v6623_v19, %v16841_v56  ;;  %v8223_v3 = vsel %vm8079_vm3, %v7708_v60, %v8222_v28 }
 0x2c7   : > { %v3197_v47 = vrot.slane %v3183_v50, %v16831_v40  ;;  %v3198_v5 = vcombine.high %v3190_v32, %v3190_v32  ;;  %v14612_v38 = vrot.slane %v3190_v32, 9  ;;  %v3163_v35 = vrot.slane %v3149_v49, %v16831_v40  ;;  %v17937_v50 = vpop.f32.mrb[109].mxu0 }
 0x2c8   : > { %v7720_v59 = vrot.slane %v6624_v27, %v16841_v56  ;;  %v8224_v33 = vsel %vm8081_vm4, %v7712_v45, %v8223_v3  ;;  %v3164_v17 = vcombine.high %v3156_v18, %v3156_v18  ;;  %v14604_v57 = vrot.slane %v3156_v18, 9 }
 0x2c9   : > { %v8225_v41 = vsel %vm8083_vm5, %v7716_v11, %v8224_v33  ;;  %v3199_v54 = vcombine.high %v3197_v47, %v3197_v47  ;;  %v14613_v37 = vrot.slane %v3198_v5, 9  ;;  %v14614_v13 = vrot.slane %v3197_v47, 9  ;;  %v17942_v33 = vpop.f32.mrb[110].mxu0 }
 0x2ca   : > { %v17931_v10 = vsel %vm8085_vm6, %v7720_v59, %v8225_v41  ;;  %v6289_v39 = vmax.f32 %v3190_v32, %v14612_v38  ;;  %v3165_v15 = vcombine.high %v3163_v35, %v3163_v35  ;;  %v14605_v28 = vrot.slane %v3164_v17, 9  ;;  %v17945_v41 = vpop.f32.mrb[111].mxu0 }
 0x2cb   : > { %8357 = vst [vmem:[#allocation2 + $0x191] sm:$0xff] %v17931_v10  ;;  %v14615_v31 = vrot.slane %v3199_v54, 9  ;;  %v6290_v53 = vmax.f32 %v3198_v5, %v14613_v37  ;;  %v6291_v25 = vmax.f32 %v3197_v47, %v14614_v13  ;;  %v14606_v8 = vrot.slane %v3163_v35, 9 }
 0x2cc   : > { %v14607_v0 = vrot.slane %v3165_v15, 9  ;;  %v6281_v7 = vmax.f32 %v3156_v18, %v14604_v57  ;;  %v6282_v48 = vmax.f32 %v3164_v17, %v14605_v28  ;;  %v3200_v62 = vcombine.high %v1552_v63, %v1552_v63  ;;  %v8513_v28 = vld [vmem:[#allocation2 + $0x142] sm:$0xff] }
 0x2cd   : > { %v6292_v20 = vmax.f32 %v3199_v54, %v14615_v31  ;;  %v6283_v46 = vmax.f32 %v3163_v35, %v14606_v8  ;;  %v3207_v19 = vrot.slane %v1552_v63, %v16831_v40  ;;  %v1550_v60 = vmax.f32 %v1294_v12, 0.0  ;;  %v8514_v31 = vld [vmem:[#allocation2 + $0x152] sm:$0xff] }
 0x2ce   : > { %v6284_v32 = vmax.f32 %v3165_v15, %v14607_v0  ;;  %v6625_v49 = vmax.f32 %v6281_v7, %v6289_v39  ;;  %v6626_v27 = vmax.f32 %v6282_v48, %v6290_v53  ;;  %v3214_v45 = vrot.slane %v3200_v62, %v16831_v40  ;;  %v17950_v15 = vld [vmem:[#allocation2 + $0x160] sm:$0xff] }
 0x2cf   : > { %v6627_v11 = vmax.f32 %v6283_v46, %v6291_v25  ;;  %v3215_v3 = vcombine.high %v3207_v19, %v3207_v19  ;;  %v14616_v47 = vrot.slane %v3207_v19, 9  ;;  %v3166_v5 = vcombine.high %v1550_v60, %v1550_v60 }
 0x2d0   : > { %v6628_v38 = vmax.f32 %v6284_v32, %v6292_v20  ;;  %v7724_v18 = vrot.slane %v6625_v49, %v16841_v56  ;;  %v7728_v59 = vrot.slane %v6626_v27, %v16841_v56  ;;  %v3216_v35 = vcombine.high %v3214_v45, %v3214_v45 }
 0x2d1   : > { %v7732_v63 = vrot.slane %v6627_v11, %v16841_v56  ;;  %v14617_v12 = vrot.slane %v3215_v3, 9  ;;  %v14618_v17 = vrot.slane %v3214_v45, 9  ;;  %v6293_v57 = vmax.f32 %v3207_v19, %v14616_v47  ;;  %v17960_v11 = vld [vmem:[%s20448_s2] ss:$0 sm:$0xff] }
 0x2d2   : > { %v7736_v54 = vrot.slane %v6628_v38, %v16841_v56  ;;  %v8227_v37 = vsel %vm8073_vm0, %v7728_v59, %v7724_v18  ;;  %v14619_v13 = vrot.slane %v3216_v35, 9  ;;  %v3173_v39 = vrot.slane %v1550_v60, %v16831_v40 }
 0x2d3   : > { %v8228_v53 = vsel %vm8075_vm1, %v7732_v63, %v8227_v37  ;;  %v6294_v25 = vmax.f32 %v3215_v3, %v14617_v12  ;;  %v6295_v8 = vmax.f32 %v3214_v45, %v14618_v17  ;;  %v3180_v0 = vrot.slane %v3166_v5, %v16831_v40 }
 0x2d4   : > { %v6296_v7 = vmax.f32 %v3216_v35, %v14619_v13  ;;  %v3181_v48 = vcombine.high %v3173_v39, %v3173_v39  ;;  %v14608_v62 = vrot.slane %v3173_v39, 9  ;;  %v8229_v20 = vsel %vm8077_vm2, %v7736_v54, %v8228_v53 }
 0x2d5   : > { %v3182_v46 = vcombine.high %v3180_v0, %v3180_v0  ;;  %v14610_v19 = vrot.slane %v3180_v0, 9  ;;  %v15277_v60 = vpack.c.bf16 %v17950_v15, %v17900_v42  ;;  %v15276_v32 = vpack.c.bf16 %v8514_v31, %v8513_v28 }
 0x2d6   : > { %v14609_v49 = vrot.slane %v3181_v48, 9  ;;  %v6285_v27 = vmax.f32 %v3173_v39, %v14608_v62  ;;  %v1315_v45 = vadd.f32 %v17960_v11, %v17706_v29  ;;  %v1307_v3 = vadd.f32 %v17960_v11, %v17709_v51 }
 0x2d7   : > { %v14611_v47 = vrot.slane %v3182_v46, 9  ;;  %v6287_v5 = vmax.f32 %v3180_v0, %v14610_v19  ;;  %10991 = vmatprep.mubr.bf16.mxu1 %v15277_v60  ;;  %v1318_v42 = vadd.f32 %v17960_v11, %v17717_v16  ;;  %v1310_v38 = vadd.f32 %v17960_v11, %v17719_v14 }
 0x2d8   : > { %v6286_v18 = vmax.f32 %v3181_v48, %v14609_v49  ;;  %v6629_v59 = vmax.f32 %v6285_v27, %v6293_v57  ;;  %10992 = vmatmul.mubr.bf16.vlgmr.msra.gmra.mrb[0].mxu1 %v15276_v32  ;;  %v1555_v35 = vmax.f32 %v1315_v45, 0.0  ;;  %v1553_v63 = vmax.f32 %v1307_v3, 0.0 }
 0x2d9   : > { %v6288_v12 = vmax.f32 %v3182_v46, %v14611_v47  ;;  %v6631_v17 = vmax.f32 %v6287_v5, %v6295_v8  ;;  %v1556_v29 = vmax.f32 %v1318_v42, 0.0  ;;  %v1554_v54 = vmax.f32 %v1310_v38, 0.0 }
 0x2da   : > { %v6630_v37 = vmax.f32 %v6286_v18, %v6294_v25  ;;  %v7740_v51 = vrot.slane %v6629_v59, %v16841_v56  ;;  %v3251_v13 = vcombine.high %v1555_v35, %v1555_v35  ;;  %v3258_v39 = vrot.slane %v1555_v35, %v16831_v40 }
 0x2db   : > { %v6632_v28 = vmax.f32 %v6288_v12, %v6296_v7  ;;  %v7748_v16 = vrot.slane %v6631_v17, %v16841_v56  ;;  %v3217_v31 = vcombine.high %v1553_v63, %v1553_v63  ;;  %v3224_v14 = vrot.slane %v1553_v63, %v16831_v40  ;;  %v17985_v63 = vpop.f32.mrb[112].mxu0 }
 0x2dc   : > { %v7744_v57 = vrot.slane %v6630_v37, %v16841_v56  ;;  %v8230_v53 = vsel %vm8079_vm3, %v7740_v51, %v8229_v20  ;;  %v3265_v8 = vrot.slane %v3251_v13, %v16831_v40  ;;  %v3266_v0 = vcombine.high %v3258_v39, %v3258_v39  ;;  %v17988_v13 = vpop.f32.mrb[113].mxu0 }
 0x2dd   : > { %v7752_v25 = vrot.slane %v6632_v28, %v16841_v56  ;;  %v14628_v48 = vrot.slane %v3258_v39, 9  ;;  %v3231_v62 = vrot.slane %v3217_v31, %v16831_v40  ;;  %v3232_v46 = vcombine.high %v3224_v14, %v3224_v14 }
 0x2de   : > { %v8231_v7 = vsel %vm8081_vm4, %v7744_v57, %v8230_v53  ;;  %v3267_v19 = vcombine.high %v3265_v8, %v3265_v8  ;;  %v14629_v60 = vrot.slane %v3266_v0, 9  ;;  %v14630_v32 = vrot.slane %v3265_v8, 9 }
 0x2df   : > { %v8232_v49 = vsel %vm8083_vm5, %v7748_v16, %v8231_v7  ;;  %v6305_v27 = vmax.f32 %v3258_v39, %v14628_v48  ;;  %v3233_v45 = vcombine.high %v3231_v62, %v3231_v62  ;;  %v14620_v3 = vrot.slane %v3224_v14, 9 }
 0x2e0   : > { %v17982_v20 = vsel %vm8085_vm6, %v7752_v25, %v8232_v49  ;;  %v14631_v47 = vrot.slane %v3267_v19, 9  ;;  %v6306_v5 = vmax.f32 %v3266_v0, %v14629_v60  ;;  %v6307_v42 = vmax.f32 %v3265_v8, %v14630_v32 }
 0x2e1   : > { %8358 = vst [vmem:[#allocation2 + $0x1a1] sm:$0xff] %v17982_v20  ;;  %v14621_v38 = vrot.slane %v3232_v46, 9  ;;  %v14622_v18 = vrot.slane %v3231_v62, 9  ;;  %v14623_v59 = vrot.slane %v3233_v45, 9  ;;  %v6297_v35 = vmax.f32 %v3224_v14, %v14620_v3  ;;  %v8451_v3 = vld [vmem:[#allocation2 + $0x161] sm:$0xff] }
 0x2e2   : > { %v6308_v12 = vmax.f32 %v3267_v19, %v14631_v47  ;;  %v3268_v17 = vcombine.high %v1556_v29, %v1556_v29  ;;  %v3275_v37 = vrot.slane %v1556_v29, %v16831_v40  ;;  %v3234_v51 = vcombine.high %v1554_v54, %v1554_v54  ;;  %v17993_v19 = vpop.f32.mrb[114].mxu0 }
 0x2e3   : > { %v6298_v39 = vmax.f32 %v3232_v46, %v14621_v38  ;;  %v6299_v28 = vmax.f32 %v3231_v62, %v14622_v18  ;;  %v6300_v16 = vmax.f32 %v3233_v45, %v14623_v59  ;;  %v6633_v31 = vmax.f32 %v6297_v35, %v6305_v27  ;;  %v17995_v62 = vpop.f32.mrb[115].mxu0 }
 0x2e4   : > { %v3282_v57 = vrot.slane %v3268_v17, %v16831_v40  ;;  %v3283_v53 = vcombine.high %v3275_v37, %v3275_v37  ;;  %v14632_v8 = vrot.slane %v3275_v37, 9  ;;  %v3241_v0 = vrot.slane %v1554_v54, %v16831_v40  ;;  %v18002_v17 = vld [vmem:[#allocation2 + $0x170] sm:$0xff] }
 0x2e5   : > { %v6634_v14 = vmax.f32 %v6298_v39, %v6306_v5  ;;  %v6635_v25 = vmax.f32 %v6299_v28, %v6307_v42  ;;  %v6636_v48 = vmax.f32 %v6300_v16, %v6308_v12  ;;  %v7756_v7 = vrot.slane %v6633_v31, %v16841_v56 }
 0x2e6   : > { %v3284_v29 = vcombine.high %v3282_v57, %v3282_v57  ;;  %v14633_v60 = vrot.slane %v3283_v53, 9  ;;  %v14634_v32 = vrot.slane %v3282_v57, 9  ;;  %v6309_v46 = vmax.f32 %v3275_v37, %v14632_v8 }
 0x2e7   : > { %v7760_v49 = vrot.slane %v6634_v14, %v16841_v56  ;;  %v7764_v27 = vrot.slane %v6635_v25, %v16841_v56  ;;  %v7768_v45 = vrot.slane %v6636_v48, %v16841_v56  ;;  %v3248_v54 = vrot.slane %v3234_v51, %v16831_v40 }
 0x2e8   : > { %v14635_v47 = vrot.slane %v3284_v29, 9  ;;  %v6310_v5 = vmax.f32 %v3283_v53, %v14633_v60  ;;  %v6311_v42 = vmax.f32 %v3282_v57, %v14634_v32  ;;  %v3249_v38 = vcombine.high %v3241_v0, %v3241_v0 }
 0x2e9   : > { %v8234_v18 = vsel %vm8073_vm0, %v7760_v49, %v7756_v7  ;;  %v3250_v59 = vcombine.high %v3248_v54, %v3248_v54  ;;  %v14624_v35 = vrot.slane %v3241_v0, 9  ;;  %v14626_v12 = vrot.slane %v3248_v54, 9 }
 0x2ea   : > { %v8235_v37 = vsel %vm8075_vm1, %v7764_v27, %v8234_v18  ;;  %v6312_v39 = vmax.f32 %v3284_v29, %v14635_v47  ;;  %v14625_v28 = vrot.slane %v3249_v38, 9  ;;  %v15284_v16 = vpack.c.bf16 %v17838_v43, %v8451_v3 }
 0x2eb   : > { %v14627_v31 = vrot.slane %v3250_v59, 9  ;;  %v6301_v51 = vmax.f32 %v3241_v0, %v14624_v35  ;;  %v6303_v8 = vmax.f32 %v3248_v54, %v14626_v12  ;;  %v8236_v53 = vsel %vm8077_vm2, %v7768_v45, %v8235_v37  ;;  %v16257_v12 = vld [vmem:[%s20449_s3 + $0x204] ss:$8 sps:$4 sm:$0xff]  }
 0x2ec   : > { %v6302_v57 = vmax.f32 %v3249_v38, %v14625_v28  ;;  %10808 = vmatprep.mubr.bf16.mxu0 %v15284_v16  ;;  %v15283_v14 = vpack.c.bf16 %v18002_v17, %v17950_v15  ;;  %v1331_v25 = vadd.f32 %v17960_v11, %v17750_v30  ;;  %v1323_v48 = vadd.f32 %v17960_v11, %v17756_v21 }
 0x2ed   : > { %v6304_v7 = vmax.f32 %v3250_v59, %v14627_v31  ;;  %v6637_v29 = vmax.f32 %v6301_v51, %v6309_v46  ;;  %v6639_v60 = vmax.f32 %v6303_v8, %v6311_v42  ;;  %v1334_v43 = vadd.f32 %v17960_v11, %v17760_v55  ;;  %v16255_v31 = vld [vmem:[%s20449_s3 + $0x200] ss:$8 sps:$4 sm:$0xff]   ;;  %11072 = vmatprep.subr.bf16.mxu1 %v16257_v12 }
 0x2ee   : > { %v6638_v0 = vmax.f32 %v6302_v57, %v6310_v5  ;;  %10809 = vmatmul.mubr.bf16.gmra.mrb[164].mxu0 %v15283_v14  ;;  %v1559_v32 = vmax.f32 %v1331_v25, 0.0  ;;  %v1557_v49 = vmax.f32 %v1323_v48, 0.0  ;;  %v1326_v27 = vadd.f32 %v17960_v11, %v17764_v36  ;;  %11073 = vmatpush1.bf16.msra.mxu1 %v16255_v31 }
 0x2ef   : > { %v6640_v15 = vmax.f32 %v6304_v7, %v6312_v39  ;;  %v7772_v45 = vrot.slane %v6637_v29, %v16841_v56  ;;  %v7780_v30 = vrot.slane %v6639_v60, %v16841_v56  ;;  %v1560_v54 = vmax.f32 %v1334_v43, 0.0  ;;  %v16258_v29 = vld [vmem:[%s20449_s3 + $0x210] ss:$8 sps:$4 sm:$0xff]   ;;  %v16260_v60 = vld [vmem:[%s20449_s3 + $0x214] ss:$8 sps:$4 sm:$0xff]  }
 0x2f0   : > { %v7776_v21 = vrot.slane %v6638_v0, %v16841_v56  ;;  %v3319_v46 = vcombine.high %v1559_v32, %v1559_v32  ;;  %v3326_v3 = vrot.slane %v1559_v32, %v16831_v40  ;;  %v3285_v47 = vcombine.high %v1557_v49, %v1557_v49  ;;  %11074 = vmatprep.subr.bf16.mxu1 %v16260_v60 }
 0x2f1   : > { %v7784_v55 = vrot.slane %v6640_v15, %v16841_v56  ;;  %v8237_v5 = vsel %vm8079_vm3, %v7772_v45, %v8236_v53  ;;  %v3292_v42 = vrot.slane %v1557_v49, %v16831_v40  ;;  %v3336_v38 = vcombine.high %v1560_v54, %v1560_v54  ;;  %v18044_v15 = vpop.f32.mrb[116].mxu0 }
 0x2f2   : > { %v8238_v36 = vsel %vm8081_vm4, %v7776_v21, %v8237_v5  ;;  %v3333_v18 = vrot.slane %v3319_v46, %v16831_v40  ;;  %v3334_v59 = vcombine.high %v3326_v3, %v3326_v3  ;;  %v14644_v35 = vrot.slane %v3326_v3, 9  ;;  %11075 = vmatpush1.bf16.msra.mxu1 %v16258_v29 }
 0x2f3   : > { %v8239_v37 = vsel %vm8083_vm5, %v7780_v30, %v8238_v36  ;;  %v3299_v39 = vrot.slane %v3285_v47, %v16831_v40  ;;  %v3300_v28 = vcombine.high %v3292_v42, %v3292_v42  ;;  %v14636_v16 = vrot.slane %v3292_v42, 9 }
 0x2f4   : > { %v18035_v51 = vsel %vm8085_vm6, %v7784_v55, %v8239_v37  ;;  %v3335_v8 = vcombine.high %v3333_v18, %v3333_v18  ;;  %v14645_v53 = vrot.slane %v3334_v59, 9  ;;  %v14646_v57 = vrot.slane %v3333_v18, 9 }
 0x2f5   : > { %8359 = vst [vmem:[#allocation2 + $0x1b1] sm:$0xff] %v18035_v51  ;;  %v6321_v14 = vmax.f32 %v3326_v3, %v14644_v35  ;;  %v3301_v25 = vcombine.high %v3299_v39, %v3299_v39  ;;  %v14637_v48 = vrot.slane %v3300_v28, 9  ;;  %v14638_v7 = vrot.slane %v3299_v39, 9  ;;  %v18047_v3 = vpop.f32.mrb[117].mxu0 }
 0x2f6   : > { %v14647_v43 = vrot.slane %v3335_v8, 9  ;;  %v6322_v0 = vmax.f32 %v3334_v59, %v14645_v53  ;;  %v6323_v32 = vmax.f32 %v3333_v18, %v14646_v57  ;;  %v6313_v49 = vmax.f32 %v3292_v42, %v14636_v16  ;;  %v18051_v16 = vpop.f32.mrb[118].mxu0 }
 0x2f7   : > { %v14639_v45 = vrot.slane %v3301_v25, 9  ;;  %v6314_v30 = vmax.f32 %v3300_v28, %v14637_v48  ;;  %v6315_v21 = vmax.f32 %v3299_v39, %v14638_v7  ;;  %v3343_v46 = vrot.slane %v1560_v54, %v16831_v40  ;;  %v8516_v7 = vld [vmem:[#allocation2 + $0x172] sm:$0xff] }
 0x2f8   : > { %v6324_v47 = vmax.f32 %v3335_v8, %v14647_v43  ;;  %v6641_v55 = vmax.f32 %v6313_v49, %v6321_v14  ;;  %v3350_v5 = vrot.slane %v3336_v38, %v16831_v40  ;;  %v1558_v36 = vmax.f32 %v1326_v27, 0.0  ;;  %v18055_v38 = vld [vmem:[#allocation2 + $0x180] sm:$0xff]  ;;  %v18057_v27 = vpop.f32.mrb[119].mxu0 }
 0x2f9   : > { %v6316_v35 = vmax.f32 %v3301_v25, %v14639_v45  ;;  %v6642_v12 = vmax.f32 %v6314_v30, %v6322_v0  ;;  %v6643_v59 = vmax.f32 %v6315_v21, %v6323_v32  ;;  %v3351_v18 = vcombine.high %v3343_v46, %v3343_v46  ;;  %v8515_v21 = vld [vmem:[#allocation2 + $0x162] sm:$0xff] }
 0x2fa   : > { %v7788_v42 = vrot.slane %v6641_v55, %v16841_v56  ;;  %v3352_v37 = vcombine.high %v3350_v5, %v3350_v5  ;;  %v14648_v28 = vrot.slane %v3343_v46, 9  ;;  %v14650_v39 = vrot.slane %v3350_v5, 9 }
 0x2fb   : > { %v6644_v54 = vmax.f32 %v6316_v35, %v6324_v47  ;;  %v7792_v31 = vrot.slane %v6642_v12, %v16841_v56  ;;  %v7796_v8 = vrot.slane %v6643_v59, %v16841_v56  ;;  %v14649_v53 = vrot.slane %v3351_v18, 9 }
 0x2fc   : > { %v14651_v57 = vrot.slane %v3352_v37, 9  ;;  %v6325_v14 = vmax.f32 %v3343_v46, %v14648_v28  ;;  %v6327_v25 = vmax.f32 %v3350_v5, %v14650_v39  ;;  %v3302_v48 = vcombine.high %v1558_v36, %v1558_v36 }
 0x2fd   : > { %v7800_v29 = vrot.slane %v6644_v54, %v16841_v56  ;;  %v8241_v60 = vsel %vm8073_vm0, %v7792_v31, %v7788_v42  ;;  %v6326_v43 = vmax.f32 %v3351_v18, %v14649_v53  ;;  %v3309_v0 = vrot.slane %v1558_v36, %v16831_v40  ;;  %v16263_v18 = vld [vmem:[%s20449_s3 + $0x224] ss:$8 sps:$4 sm:$0xff]  }
 0x2fe   : > { %v8242_v32 = vsel %vm8075_vm1, %v7796_v8, %v8241_v60  ;;  %v6328_v49 = vmax.f32 %v3352_v37, %v14651_v57  ;;  %v3316_v45 = vrot.slane %v3302_v48, %v16831_v40  ;;  %v15286_v30 = vpack.c.bf16 %v18055_v38, %v18002_v17  ;;  %11076 = vmatprep.subr.bf16.mxu1 %v16263_v18 }
 0x2ff   : > { %v3317_v46 = vcombine.high %v3309_v0, %v3309_v0  ;;  %v14640_v47 = vrot.slane %v3309_v0, 9  ;;  %v8243_v55 = vsel %vm8077_vm2, %v7800_v29, %v8242_v32  ;;  %v15285_v5 = vpack.c.bf16 %v8516_v7, %v8515_v21 }
 0x300   : > { %v3318_v35 = vcombine.high %v3316_v45, %v3316_v45  ;;  %v14642_v12 = vrot.slane %v3316_v45, 9  ;;  %11001 = vmatprep.mubr.bf16.mxu1 %v15286_v30  ;;  %v1347_v36 = vadd.f32 %v17960_v11, %v17795_v4  ;;  %v1339_v59 = vadd.f32 %v17960_v11, %v17798_v1  ;;  %v16261_v4 = vld [vmem:[%s20449_s3 + $0x220] ss:$8 sps:$4 sm:$0xff]  }
 0x301   : > { %v14641_v17 = vrot.slane %v3317_v46, 9  ;;  %v6317_v42 = vmax.f32 %v3309_v0, %v14640_v47  ;;  %11002 = vmatmul.mubr.bf16.gmra.mrb[4].mxu1 %v15285_v5  ;;  %v1350_v37 = vadd.f32 %v17960_v11, %v17805_v58  ;;  %v1342_v28 = vadd.f32 %v17960_v11, %v17807_v23 }
 0x302   : > { %v14643_v39 = vrot.slane %v3318_v35, 9  ;;  %v6319_v54 = vmax.f32 %v3316_v45, %v14642_v12  ;;  %v1563_v1 = vmax.f32 %v1347_v36, 0.0  ;;  %v1561_v31 = vmax.f32 %v1339_v59, 0.0  ;;  %11077 = vmatpush1.bf16.msra.mxu1 %v16261_v4 }
 0x303   : > { %v6318_v8 = vmax.f32 %v3317_v46, %v14641_v17  ;;  %v6645_v53 = vmax.f32 %v6317_v42, %v6325_v14  ;;  %v1564_v57 = vmax.f32 %v1350_v37, 0.0  ;;  %v18081_v48 = vmax.f32 %v1342_v28, 0.0 }
 0x304   : > { %v6320_v7 = vmax.f32 %v3318_v35, %v14643_v39  ;;  %v6647_v58 = vmax.f32 %v6319_v54, %v6327_v25  ;;  %v3387_v29 = vcombine.high %v1563_v1, %v1563_v1  ;;  %v3394_v23 = vrot.slane %v1563_v1, %v16831_v40 }
 0x305   : > { %v6646_v60 = vmax.f32 %v6318_v8, %v6326_v43  ;;  %v7804_v0 = vrot.slane %v6645_v53, %v16841_v56  ;;  %v3353_v32 = vcombine.high %v1561_v31, %v1561_v31  ;;  %v3360_v45 = vrot.slane %v1561_v31, %v16831_v40  ;;  %v16264_v8 = vld [vmem:[%s20449_s3 + $0x230] ss:$8 sps:$4 sm:$0xff]   ;;  %v18098_v53 = vpop.f32.mrb[120].mxu0 }
 0x306   : > { %v6648_v30 = vmax.f32 %v6320_v7, %v6328_v49  ;;  %v7812_v21 = vrot.slane %v6647_v58, %v16841_v56  ;;  %v3401_v14 = vrot.slane %v3387_v29, %v16831_v40  ;;  %v3402_v46 = vcombine.high %v3394_v23, %v3394_v23 }
 0x307   : > { %v7808_v47 = vrot.slane %v6646_v60, %v16841_v56  ;;  %v8244_v5 = vsel %vm8079_vm3, %v7804_v0, %v8243_v55  ;;  %v14660_v25 = vrot.slane %v3394_v23, 9  ;;  %v3367_v35 = vrot.slane %v3353_v32, %v16831_v40  ;;  %v16266_v60 = vld [vmem:[%s20449_s3 + $0x234] ss:$8 sps:$4 sm:$0xff]   ;;  %v18104_v0 = vpop.f32.mrb[121].mxu0 }
 0x308   : > { %v7816_v43 = vrot.slane %v6648_v30, %v16841_v56  ;;  %v3403_v12 = vcombine.high %v3401_v14, %v3401_v14  ;;  %v14661_v36 = vrot.slane %v3402_v46, 9  ;;  %v14662_v59 = vrot.slane %v3401_v14, 9  ;;  %11078 = vmatprep.subr.bf16.mxu1 %v16266_v60 }
 0x309   : > { %v8245_v18 = vsel %vm8081_vm4, %v7808_v47, %v8244_v5  ;;  %v6337_v49 = vmax.f32 %v3394_v23, %v14660_v25  ;;  %v3368_v17 = vcombine.high %v3360_v45, %v3360_v45  ;;  %v3369_v42 = vcombine.high %v3367_v35, %v3367_v35  ;;  %11079 = vmatpush1.bf16.msra.mxu1 %v16264_v8 }
 0x30a   : > { %v8246_v37 = vsel %vm8083_vm5, %v7812_v21, %v8245_v18  ;;  %v14663_v28 = vrot.slane %v3403_v12, 9  ;;  %v6338_v4 = vmax.f32 %v3402_v46, %v14661_v36  ;;  %v6339_v39 = vmax.f32 %v3401_v14, %v14662_v59 }
 0x30b   : > { %v8247_v55 = vsel %vm8085_vm6, %v7816_v43, %v8246_v37  ;;  %v14652_v54 = vrot.slane %v3360_v45, 9  ;;  %v14653_v1 = vrot.slane %v3368_v17, 9  ;;  %v14654_v31 = vrot.slane %v3367_v35, 9 }
 0x30c   : > { %8360 = vst [vmem:[#allocation2 + $0x1c1] sm:$0xff] %v8247_v55  ;;  %v6340_v7 = vmax.f32 %v3403_v12, %v14663_v28  ;;  %v14655_v58 = vrot.slane %v3369_v42, 9  ;;  %v3404_v29 = vcombine.high %v1564_v57, %v1564_v57  ;;  %v3411_v23 = vrot.slane %v1564_v57, %v16831_v40 }
 0x30d   : > { %v6329_v32 = vmax.f32 %v3360_v45, %v14652_v54  ;;  %v6330_v30 = vmax.f32 %v3368_v17, %v14653_v1  ;;  %v6331_v21 = vmax.f32 %v3367_v35, %v14654_v31  ;;  %v3370_v14 = vcombine.high %v18081_v48, %v18081_v48  ;;  %v18111_v17 = vpop.f32.mrb[122].mxu0 }
 0x30e   : > { %v6332_v46 = vmax.f32 %v3369_v42, %v14655_v58  ;;  %v3418_v47 = vrot.slane %v3404_v29, %v16831_v40  ;;  %v3419_v5 = vcombine.high %v3411_v23, %v3411_v23  ;;  %v14664_v25 = vrot.slane %v3411_v23, 9 }
 0x30f   : > { %v6649_v43 = vmax.f32 %v6329_v32, %v6337_v49  ;;  %v6650_v57 = vmax.f32 %v6330_v30, %v6338_v4  ;;  %v6651_v12 = vmax.f32 %v6331_v21, %v6339_v39  ;;  %v3377_v36 = vrot.slane %v18081_v48, %v16831_v40  ;;  %v18116_v49 = vld [vmem:[#allocation2 + $0x190] sm:$0xff]  ;;  %v18118_v4 = vpop.f32.mrb[123].mxu0 }
 0x310   : > { %v6652_v59 = vmax.f32 %v6332_v46, %v6340_v7  ;;  %v3420_v45 = vcombine.high %v3418_v47, %v3418_v47  ;;  %v14665_v18 = vrot.slane %v3419_v5, 9  ;;  %v14666_v35 = vrot.slane %v3418_v47, 9 }
 0x311   : > { %v7820_v42 = vrot.slane %v6649_v43, %v16841_v56  ;;  %v7824_v37 = vrot.slane %v6650_v57, %v16841_v56  ;;  %v7828_v28 = vrot.slane %v6651_v12, %v16841_v56  ;;  %v6341_v55 = vmax.f32 %v3411_v23, %v14664_v25 }
 0x312   : > { %v7832_v48 = vrot.slane %v6652_v59, %v16841_v56  ;;  %v14667_v39 = vrot.slane %v3420_v45, 9  ;;  %v6342_v54 = vmax.f32 %v3419_v5, %v14665_v18  ;;  %v6343_v1 = vmax.f32 %v3418_v47, %v14666_v35 }
 0x313   : > { %v8248_v31 = vsel %vm8073_vm0, %v7824_v37, %v7820_v42  ;;  %v3384_v8 = vrot.slane %v3370_v14, %v16831_v40  ;;  %v3385_v7 = vcombine.high %v3377_v36, %v3377_v36  ;;  %v14656_v58 = vrot.slane %v3377_v36, 9 }
 0x314   : > { %v8249_v29 = vsel %vm8075_vm1, %v7828_v28, %v8248_v31  ;;  %v6344_v60 = vmax.f32 %v3420_v45, %v14667_v39  ;;  %v15293_v23 = vpack.c.bf16 %v17931_v10, %v17882_v9  ;;  %v15292_v32 = vpack.c.bf16 %v18116_v49, %v18055_v38 }
 0x315   : > { %v3386_v30 = vcombine.high %v3384_v8, %v3384_v8  ;;  %v14657_v21 = vrot.slane %v3385_v7, 9  ;;  %v14658_v46 = vrot.slane %v3384_v8, 9  ;;  %v6333_v5 = vmax.f32 %v3377_v36, %v14656_v58 }
 0x316   : > { %v8250_v47 = vsel %vm8077_vm2, %v7832_v48, %v8249_v29  ;;  %10818 = vmatprep.mubr.bf16.mxu0 %v15293_v23  ;;  %v1363_v14 = vadd.f32 %v17960_v11, %v17840_v61  ;;  %v1355_v25 = vadd.f32 %v17960_v11, %v17843_v24  ;;  %v1366_v43 = vadd.f32 %v17960_v11, %v17847_v26 }
 0x317   : > { %v14659_v9 = vrot.slane %v3386_v30, 9  ;;  %v6334_v10 = vmax.f32 %v3385_v7, %v14657_v21  ;;  %v6335_v57 = vmax.f32 %v3384_v8, %v14658_v46  ;;  %v6653_v38 = vmax.f32 %v6333_v5, %v6341_v55  ;;  %10819 = vmatmul.mubr.bf16.gmra.mrb[168].mxu0 %v15292_v32  ;;  %v16267_v5 = vld [vmem:[%s20449_s3 + $0x240] ss:$8 sps:$4 sm:$0xff]  }
 0x318   : > { %v1567_v12 = vmax.f32 %v1363_v14, 0.0  ;;  %v1565_v59 = vmax.f32 %v1355_v25, 0.0  ;;  %v1568_v36 = vmax.f32 %v1366_v43, 0.0  ;;  %v1358_v45 = vadd.f32 %v17960_v11, %v17851_v6 }
 0x319   : > { %v6336_v18 = vmax.f32 %v3386_v30, %v14659_v9  ;;  %v6654_v35 = vmax.f32 %v6334_v10, %v6342_v54  ;;  %v6655_v61 = vmax.f32 %v6335_v57, %v6343_v1  ;;  %v7836_v42 = vrot.slane %v6653_v38, %v16841_v56  ;;  %v16272_v9 = vld [vmem:[%s20449_s3 + $0x254] ss:$8 sps:$4 sm:$0xff]   ;;  %v18160_v10 = vpop.f32.mrb[124].mxu0 }
 0x31a   : > { %v3455_v24 = vcombine.high %v1567_v12, %v1567_v12  ;;  %v3462_v37 = vrot.slane %v1567_v12, %v16831_v40  ;;  %v3421_v26 = vcombine.high %v1565_v59, %v1565_v59  ;;  %v3428_v28 = vrot.slane %v1565_v59, %v16831_v40 }
 0x31b   : > { %v6656_v48 = vmax.f32 %v6336_v18, %v6344_v60  ;;  %v7840_v55 = vrot.slane %v6654_v35, %v16841_v56  ;;  %v7844_v39 = vrot.slane %v6655_v61, %v16841_v56  ;;  %v8251_v31 = vsel %vm8079_vm3, %v7836_v42, %v8250_v47  ;;  %v16269_v60 = vld [vmem:[%s20449_s3 + $0x244] ss:$8 sps:$4 sm:$0xff]   ;;  %v16270_v18 = vld [vmem:[%s20449_s3 + $0x250] ss:$8 sps:$4 sm:$0xff]  }
 0x31c   : > { %v3469_v6 = vrot.slane %v3455_v24, %v16831_v40  ;;  %v3470_v8 = vcombine.high %v3462_v37, %v3462_v37  ;;  %v14676_v54 = vrot.slane %v3462_v37, 9  ;;  %v3435_v1 = vrot.slane %v3421_v26, %v16831_v40  ;;  %11080 = vmatprep.subr.bf16.mxu1 %v16269_v60 }
 0x31d   : > { %v7848_v7 = vrot.slane %v6656_v48, %v16841_v56  ;;  %v8252_v58 = vsel %vm8081_vm4, %v7840_v55, %v8251_v31  ;;  %v3436_v29 = vcombine.high %v3428_v28, %v3428_v28  ;;  %v14668_v23 = vrot.slane %v3428_v28, 9  ;;  %11081 = vmatpush1.bf16.msra.mxu1 %v16267_v5 }
 0x31e   : > { %v8253_v32 = vsel %vm8083_vm5, %v7844_v39, %v8252_v58  ;;  %v3471_v30 = vcombine.high %v3469_v6, %v3469_v6  ;;  %v14677_v21 = vrot.slane %v3470_v8, 9  ;;  %v14678_v46 = vrot.slane %v3469_v6, 9  ;;  %11082 = vmatprep.subr.bf16.mxu1 %v16272_v9  ;;  %v18167_v39 = vpop.f32.mrb[125].mxu0 }
 0x31f   : > { %v18155_v47 = vsel %vm8085_vm6, %v7848_v7, %v8253_v32  ;;  %v6353_v14 = vmax.f32 %v3462_v37, %v14676_v54  ;;  %v3437_v25 = vcombine.high %v3435_v1, %v3435_v1  ;;  %v14669_v43 = vrot.slane %v3436_v29, 9 }
 0x320   : > { %8361 = vst [vmem:[#allocation2 + $0x1f1] sm:$0xff] %v18155_v47  ;;  %v14679_v57 = vrot.slane %v3471_v30, 9  ;;  %v6354_v38 = vmax.f32 %v3470_v8, %v14677_v21  ;;  %v6355_v12 = vmax.f32 %v3469_v6, %v14678_v46  ;;  %v14670_v59 = vrot.slane %v3435_v1, 9 }
 0x321   : > { %v14671_v35 = vrot.slane %v3437_v25, 9  ;;  %v6345_v61 = vmax.f32 %v3428_v28, %v14668_v23  ;;  %v6346_v42 = vmax.f32 %v3436_v29, %v14669_v43  ;;  %v3472_v24 = vcombine.high %v1568_v36, %v1568_v36  ;;  %11083 = vmatpush1.bf16.msra.mxu1 %v16270_v18 }
 0x322   : > { %v6356_v37 = vmax.f32 %v3471_v30, %v14679_v57  ;;  %v6347_v26 = vmax.f32 %v3435_v1, %v14670_v59  ;;  %v3479_v48 = vrot.slane %v1568_v36, %v16831_v40  ;;  %v1566_v55 = vmax.f32 %v1358_v45, 0.0  ;;  %v18172_v36 = vpop.f32.mrb[126].mxu0  ;;  %v18180_v57 = vld [vmem:[#allocation2 + $0x1a0] sm:$0xff] }
 0x323   : > { %v6348_v31 = vmax.f32 %v3437_v25, %v14671_v35  ;;  %v6657_v6 = vmax.f32 %v6345_v61, %v6353_v14  ;;  %v6658_v8 = vmax.f32 %v6346_v42, %v6354_v38  ;;  %v3486_v54 = vrot.slane %v3472_v24, %v16831_v40  ;;  %v18175_v5 = vpop.f32.mrb[127].mxu0  ;;  %v8518_v38 = vld [vmem:[#allocation2 + $0x192] sm:$0xff] }
 0x324   : > { %v6659_v7 = vmax.f32 %v6347_v26, %v6355_v12  ;;  %v3487_v58 = vcombine.high %v3479_v48, %v3479_v48  ;;  %v14680_v60 = vrot.slane %v3479_v48, 9  ;;  %v3438_v32 = vcombine.high %v1566_v55, %v1566_v55  ;;  %v8517_v26 = vld [vmem:[#allocation2 + $0x182] sm:$0xff] }
 0x325   : > { %v6660_v28 = vmax.f32 %v6348_v31, %v6356_v37  ;;  %v7852_v29 = vrot.slane %v6657_v6, %v16841_v56  ;;  %v7856_v1 = vrot.slane %v6658_v8, %v16841_v56  ;;  %v3488_v23 = vcombine.high %v3486_v54, %v3486_v54 }
 0x326   : > { %v7860_v45 = vrot.slane %v6659_v7, %v16841_v56  ;;  %v14681_v30 = vrot.slane %v3487_v58, 9  ;;  %v14682_v21 = vrot.slane %v3486_v54, 9  ;;  %v6357_v46 = vmax.f32 %v3479_v48, %v14680_v60  ;;  %v16275_v48 = vld [vmem:[%s20449_s3 + $0x264] ss:$8 sps:$4 sm:$0xff]  }
 0x327   : > { %v7864_v14 = vrot.slane %v6660_v28, %v16841_v56  ;;  %v8255_v25 = vsel %vm8073_vm0, %v7856_v1, %v7852_v29  ;;  %v14683_v43 = vrot.slane %v3488_v23, 9  ;;  %v3445_v9 = vrot.slane %v1566_v55, %v16831_v40  ;;  %11084 = vmatprep.subr.bf16.mxu1 %v16275_v48 }
 0x328   : > { %v8256_v12 = vsel %vm8075_vm1, %v7860_v45, %v8255_v25  ;;  %v6358_v59 = vmax.f32 %v3487_v58, %v14681_v30  ;;  %v6359_v18 = vmax.f32 %v3486_v54, %v14682_v21  ;;  %v3452_v35 = vrot.slane %v3438_v32, %v16831_v40  ;;  %v16273_v54 = vld [vmem:[%s20449_s3 + $0x260] ss:$8 sps:$4 sm:$0xff]  }
 0x329   : > { %v6360_v61 = vmax.f32 %v3488_v23, %v14683_v43  ;;  %v3453_v42 = vcombine.high %v3445_v9, %v3445_v9  ;;  %v14672_v24 = vrot.slane %v3445_v9, 9  ;;  %v8257_v37 = vsel %vm8077_vm2, %v7864_v14, %v8256_v12  ;;  %11085 = vmatpush1.bf16.msra.mxu1 %v16273_v54 }
 0x32a   : > { %v3454_v55 = vcombine.high %v3452_v35, %v3452_v35  ;;  %v14674_v31 = vrot.slane %v3452_v35, 9  ;;  %v15295_v6 = vpack.c.bf16 %v18180_v57, %v18116_v49  ;;  %v15294_v8 = vpack.c.bf16 %v8518_v38, %v8517_v26 }
 0x32b   : > { %v14673_v7 = vrot.slane %v3453_v42, 9  ;;  %v6349_v58 = vmax.f32 %v3445_v9, %v14672_v24  ;;  %v1379_v60 = vadd.f32 %v17960_v11, %v17884_v44  ;;  %v1371_v32 = vadd.f32 %v17960_v11, %v17888_v34 }
 0x32c   : > { %v14675_v28 = vrot.slane %v3454_v55, 9  ;;  %v6351_v29 = vmax.f32 %v3452_v35, %v14674_v31  ;;  %11011 = vmatprep.mubr.bf16.mxu1 %v15295_v6  ;;  %v1382_v49 = vadd.f32 %v17960_v11, %v17895_v52  ;;  %v1374_v1 = vadd.f32 %v17960_v11, %v17902_v2 }
 0x32d   : > { %v6350_v23 = vmax.f32 %v3453_v42, %v14673_v7  ;;  %v6661_v45 = vmax.f32 %v6349_v58, %v6357_v46  ;;  %11012 = vmatmul.mubr.bf16.gmra.mrb[8].mxu1 %v15294_v8  ;;  %v1571_v30 = vmax.f32 %v1379_v60, 0.0  ;;  %v1569_v21 = vmax.f32 %v1371_v32, 0.0 }
 0x32e   : > { %v6352_v44 = vmax.f32 %v3454_v55, %v14675_v28  ;;  %v6663_v14 = vmax.f32 %v6351_v29, %v6359_v18  ;;  %v1572_v25 = vmax.f32 %v1382_v49, 0.0  ;;  %v18201_v34 = vmax.f32 %v1374_v1, 0.0 }
 0x32f   : > { %v6662_v43 = vmax.f32 %v6350_v23, %v6358_v59  ;;  %v7868_v9 = vrot.slane %v6661_v45, %v16841_v56  ;;  %v3523_v38 = vcombine.high %v1571_v30, %v1571_v30  ;;  %v3530_v52 = vrot.slane %v1571_v30, %v16831_v40 }
 0x330   : > { %v6664_v12 = vmax.f32 %v6352_v44, %v6360_v61  ;;  %v7876_v2 = vrot.slane %v6663_v14, %v16841_v56  ;;  %v3489_v35 = vcombine.high %v1569_v21, %v1569_v21  ;;  %v3496_v46 = vrot.slane %v1569_v21, %v16831_v40  ;;  %v16276_v21 = vld [vmem:[%s20449_s3 + $0x270] ss:$8 sps:$4 sm:$0xff]  }
 0x331   : > { %v7872_v42 = vrot.slane %v6662_v43, %v16841_v56  ;;  %v8258_v24 = vsel %vm8079_vm3, %v7868_v9, %v8257_v37  ;;  %v3537_v18 = vrot.slane %v3523_v38, %v16831_v40  ;;  %v3538_v26 = vcombine.high %v3530_v52, %v3530_v52  ;;  %v16278_v38 = vld [vmem:[%s20449_s3 + $0x274] ss:$8 sps:$4 sm:$0xff]  }
 0x332   : > { %v7880_v59 = vrot.slane %v6664_v12, %v16841_v56  ;;  %v14692_v48 = vrot.slane %v3530_v52, 9  ;;  %v3503_v55 = vrot.slane %v3489_v35, %v16831_v40  ;;  %v3504_v31 = vcombine.high %v3496_v46, %v3496_v46  ;;  %11086 = vmatprep.subr.bf16.mxu1 %v16278_v38 }
 0x333   : > { %v8259_v61 = vsel %vm8081_vm4, %v7872_v42, %v8258_v24  ;;  %v3539_v6 = vcombine.high %v3537_v18, %v3537_v18  ;;  %v14693_v8 = vrot.slane %v3538_v26, 9  ;;  %v14694_v54 = vrot.slane %v3537_v18, 9  ;;  %11087 = vmatpush1.bf16.msra.mxu1 %v16276_v21  ;;  %v18242_v21 = vld [vmem:[#allocation2 + $0x1b0] sm:$0xff] }
 0x334   : > { %v8260_v7 = vsel %vm8083_vm5, %v7876_v2, %v8259_v61  ;;  %v6369_v58 = vmax.f32 %v3530_v52, %v14692_v48  ;;  %v3505_v60 = vcombine.high %v3503_v55, %v3503_v55  ;;  %v14684_v32 = vrot.slane %v3496_v46, 9  ;;  %v16281_v52 = vld [vmem:[%s20449_s3 + $0x284] ss:$8 sps:$4 sm:$0xff]  }
 0x335   : > { %v8261_v37 = vsel %vm8085_vm6, %v7880_v59, %v8260_v7  ;;  %v14695_v28 = vrot.slane %v3539_v6, 9  ;;  %v6370_v29 = vmax.f32 %v3538_v26, %v14693_v8  ;;  %v6371_v49 = vmax.f32 %v3537_v18, %v14694_v54  ;;  %11088 = vmatprep.subr.bf16.mxu1 %v16281_v52  ;;  %v16287_v52 = vld [vmem:[%s20449_s3 + $0x2a4] ss:$8 sps:$4 sm:$0xff]  }
 0x336   : > { %8362 = vst [vmem:[#allocation2 + $0x201] sm:$0xff] %v8261_v37  ;;  %v14685_v1 = vrot.slane %v3504_v31, 9  ;;  %v14686_v23 = vrot.slane %v3503_v55, 9  ;;  %v14687_v45 = vrot.slane %v3505_v60, 9  ;;  %v6361_v30 = vmax.f32 %v3496_v46, %v14684_v32 }
 0x337   : > { %v6372_v44 = vmax.f32 %v3539_v6, %v14695_v28  ;;  %v3540_v14 = vcombine.high %v1572_v25, %v1572_v25  ;;  %v3547_v43 = vrot.slane %v1572_v25, %v16831_v40  ;;  %v3506_v9 = vcombine.high %v18201_v34, %v18201_v34 }
 0x338   : > { %v6362_v12 = vmax.f32 %v3504_v31, %v14685_v1  ;;  %v6363_v2 = vmax.f32 %v3503_v55, %v14686_v23  ;;  %v6364_v35 = vmax.f32 %v3505_v60, %v14687_v45  ;;  %v6665_v46 = vmax.f32 %v6361_v30, %v6369_v58  ;;  %v16279_v55 = vld [vmem:[%s20449_s3 + $0x280] ss:$8 sps:$4 sm:$0xff]  }
 0x339   : > { %v3554_v42 = vrot.slane %v3540_v14, %v16831_v40  ;;  %v3555_v24 = vcombine.high %v3547_v43, %v3547_v43  ;;  %v14696_v18 = vrot.slane %v3547_v43, 9  ;;  %v3513_v25 = vrot.slane %v18201_v34, %v16831_v40  ;;  %v16284_v34 = vld [vmem:[%s20449_s3 + $0x294] ss:$8 sps:$4 sm:$0xff]   ;;  %11089 = vmatpush1.bf16.msra.mxu1 %v16279_v55 }
 0x33a   : > { %v6666_v26 = vmax.f32 %v6362_v12, %v6370_v29  ;;  %v6667_v59 = vmax.f32 %v6363_v2, %v6371_v49  ;;  %v6668_v48 = vmax.f32 %v6364_v35, %v6372_v44  ;;  %v7884_v61 = vrot.slane %v6665_v46, %v16841_v56  ;;  %v16282_v44 = vld [vmem:[%s20449_s3 + $0x290] ss:$8 sps:$4 sm:$0xff]   ;;  %11090 = vmatprep.subr.bf16.mxu1 %v16284_v34  ;;  %v16290_v55 = vld [vmem:[%s20449_s3 + $0x2b4] ss:$8 sps:$4 sm:$0xff]  }
 0x33b   : > { %v3556_v31 = vcombine.high %v3554_v42, %v3554_v42  ;;  %v14697_v6 = vrot.slane %v3555_v24, 9  ;;  %v14698_v8 = vrot.slane %v3554_v42, 9  ;;  %v6373_v54 = vmax.f32 %v3547_v43, %v14696_v18 }
 0x33c   : > { %v7888_v7 = vrot.slane %v6666_v26, %v16841_v56  ;;  %v7892_v58 = vrot.slane %v6667_v59, %v16841_v56  ;;  %v7896_v60 = vrot.slane %v6668_v48, %v16841_v56  ;;  %v3520_v32 = vrot.slane %v3506_v9, %v16831_v40 }
 0x33d   : > { %v14699_v37 = vrot.slane %v3556_v31, 9  ;;  %v6374_v28 = vmax.f32 %v3555_v24, %v14697_v6  ;;  %v6375_v29 = vmax.f32 %v3554_v42, %v14698_v8  ;;  %v3521_v49 = vcombine.high %v3513_v25, %v3513_v25  ;;  %11091 = vmatpush1.bf16.msra.mxu1 %v16282_v44 }
 0x33e   : > { %v8262_v1 = vsel %vm8073_vm0, %v7888_v7, %v7884_v61  ;;  %v3522_v23 = vcombine.high %v3520_v32, %v3520_v32  ;;  %v14688_v45 = vrot.slane %v3513_v25, 9  ;;  %v14690_v30 = vrot.slane %v3520_v32, 9  ;;  %11092 = vmatprep.subr.bf16.mxu1 %v16287_v52 }
 0x33f   : > { %v8263_v14 = vsel %vm8075_vm1, %v7892_v58, %v8262_v1  ;;  %v6376_v43 = vmax.f32 %v3556_v31, %v14699_v37  ;;  %v14689_v9 = vrot.slane %v3521_v49, 9  ;;  %v15302_v38 = vpack.c.bf16 %v18035_v51, %v17982_v20 }
 0x340   : > { %v14691_v12 = vrot.slane %v3522_v23, 9  ;;  %v6365_v2 = vmax.f32 %v3513_v25, %v14688_v45  ;;  %v6367_v35 = vmax.f32 %v3520_v32, %v14690_v30  ;;  %v8264_v46 = vsel %vm8077_vm2, %v7896_v60, %v8263_v14  ;;  %v18263_v25 = vld [vmem:[%s20448_s2] ss:$0 sm:$0xff]  ;;  %v16293_v45 = vld [vmem:[%s20449_s3 + $0x2c4] ss:$8 sps:$4 sm:$0xff]  }
 0x341   : > { %v6366_v42 = vmax.f32 %v3521_v49, %v14689_v9  ;;  %10828 = vmatprep.mubr.bf16.mxu0 %v15302_v38  ;;  %v15301_v24 = vpack.c.bf16 %v18242_v21, %v18180_v57  ;;  %v1395_v18 = vadd.f32 %v17960_v11, %v17933_v22  ;;  %v1387_v20 = vadd.f32 %v17960_v11, %v17937_v50  ;;  %v16285_v57 = vld [vmem:[%s20449_s3 + $0x2a0] ss:$8 sps:$4 sm:$0xff]  }
 0x342   : > { %v6368_v51 = vmax.f32 %v3522_v23, %v14691_v12  ;;  %v6669_v26 = vmax.f32 %v6365_v2, %v6373_v54  ;;  %v6671_v59 = vmax.f32 %v6367_v35, %v6375_v29  ;;  %v1398_v48 = vadd.f32 %v18263_v25, %v17942_v33  ;;  %11093 = vmatpush1.bf16.msra.mxu1 %v16285_v57 }
 0x343   : > { %v6670_v22 = vmax.f32 %v6366_v42, %v6374_v28  ;;  %10829 = vmatmul.mubr.bf16.gmra.mrb[172].mxu0 %v15301_v24  ;;  %v1575_v61 = vmax.f32 %v1395_v18, 0.0  ;;  %v1573_v50 = vmax.f32 %v1387_v20, 0.0  ;;  %v1390_v11 = vadd.f32 %v18263_v25, %v17945_v41  ;;  %v16288_v28 = vld [vmem:[%s20449_s3 + $0x2b0] ss:$8 sps:$4 sm:$0xff]   ;;  %11094 = vmatprep.subr.bf16.mxu1 %v16290_v55  ;;  %v16291_v24 = vld [vmem:[%s20449_s3 + $0x2c0] ss:$8 sps:$4 sm:$0xff]  }
 0x344   : > { %v6672_v31 = vmax.f32 %v6368_v51, %v6376_v43  ;;  %v7900_v33 = vrot.slane %v6669_v26, %v16841_v56  ;;  %v7908_v6 = vrot.slane %v6671_v59, %v16841_v56  ;;  %v1576_v8 = vmax.f32 %v1398_v48, 0.0  ;;  %v16296_v59 = vld [vmem:[%s20449_s3 + $0x2d4] ss:$8 sps:$4 sm:$0xff]  }
 0x345   : > { %v7904_v54 = vrot.slane %v6670_v22, %v16841_v56  ;;  %v3591_v34 = vcombine.high %v1575_v61, %v1575_v61  ;;  %v3598_v7 = vrot.slane %v1575_v61, %v16831_v40  ;;  %v3557_v58 = vcombine.high %v1573_v50, %v1573_v50 }
 0x346   : > { %v7912_v60 = vrot.slane %v6672_v31, %v16841_v56  ;;  %v8265_v41 = vsel %vm8079_vm3, %v7900_v33, %v8264_v46  ;;  %v3564_v32 = vrot.slane %v1573_v50, %v16831_v40  ;;  %v3608_v37 = vcombine.high %v1576_v8, %v1576_v8  ;;  %11095 = vmatpush1.bf16.msra.mxu1 %v16288_v28 }
 0x347   : > { %v8266_v29 = vsel %vm8081_vm4, %v7904_v54, %v8265_v41  ;;  %v3605_v49 = vrot.slane %v3591_v34, %v16831_v40  ;;  %v3606_v1 = vcombine.high %v3598_v7, %v3598_v7  ;;  %v14708_v23 = vrot.slane %v3598_v7, 9  ;;  %11096 = vmatprep.subr.bf16.mxu1 %v16293_v45 }
 0x348   : > { %v8267_v30 = vsel %vm8083_vm5, %v7908_v6, %v8266_v29  ;;  %v3571_v44 = vrot.slane %v3557_v58, %v16831_v40  ;;  %v3572_v14 = vcombine.high %v3564_v32, %v3564_v32  ;;  %v14700_v43 = vrot.slane %v3564_v32, 9  ;;  %v16294_v58 = vld [vmem:[%s20449_s3 + $0x2d0] ss:$8 sps:$4 sm:$0xff]  }
 0x349   : > { %v18293_v9 = vsel %vm8085_vm6, %v7912_v60, %v8267_v30  ;;  %v3607_v38 = vcombine.high %v3605_v49, %v3605_v49  ;;  %v14709_v52 = vrot.slane %v3606_v1, 9  ;;  %v14710_v12 = vrot.slane %v3605_v49, 9 }
 0x34a   : > { %8363 = vst [vmem:[#allocation2 + $0x211] sm:$0xff] %v18293_v9  ;;  %v6385_v2 = vmax.f32 %v3598_v7, %v14708_v23  ;;  %v3573_v35 = vcombine.high %v3571_v44, %v3571_v44  ;;  %v14701_v46 = vrot.slane %v3572_v14, 9  ;;  %v14702_v42 = vrot.slane %v3571_v44, 9  ;;  %11097 = vmatpush1.bf16.msra.mxu1 %v16291_v24  ;;  %v8519_v24 = vld [vmem:[#allocation2 + $0x1a2] sm:$0xff] }
 0x34b   : > { %v14711_v18 = vrot.slane %v3607_v38, 9  ;;  %v6386_v20 = vmax.f32 %v3606_v1, %v14709_v52  ;;  %v6387_v51 = vmax.f32 %v3605_v49, %v14710_v12  ;;  %v6377_v26 = vmax.f32 %v3564_v32, %v14700_v43  ;;  %11098 = vmatprep.subr.bf16.mxu1 %v16296_v59  ;;  %v8584_v1 = vld [vmem:[#allocation2 + $0x1c0] sm:$0xff] }
 0x34c   : > { %v14703_v48 = vrot.slane %v3573_v35, 9  ;;  %v6378_v57 = vmax.f32 %v3572_v14, %v14701_v46  ;;  %v6379_v22 = vmax.f32 %v3571_v44, %v14702_v42  ;;  %v3615_v61 = vrot.slane %v1576_v8, %v16831_v40  ;;  %v16299_v8 = vld [vmem:[%s20449_s3 + $0x2e4] ss:$8 sps:$4 sm:$0xff]   ;;  %v8520_v14 = vld [vmem:[#allocation2 + $0x1b2] sm:$0xff] }
 0x34d   : > { %v6388_v50 = vmax.f32 %v3607_v38, %v14711_v18  ;;  %v6673_v55 = vmax.f32 %v6377_v26, %v6385_v2  ;;  %v3622_v31 = vrot.slane %v3608_v37, %v16831_v40  ;;  %v1574_v33 = vmax.f32 %v1390_v11, 0.0  ;;  %v16297_v18 = vld [vmem:[%s20449_s3 + $0x2e0] ss:$8 sps:$4 sm:$0xff]  }
 0x34e   : > { %v6380_v6 = vmax.f32 %v3573_v35, %v14703_v48  ;;  %v6674_v54 = vmax.f32 %v6378_v57, %v6386_v20  ;;  %v6675_v34 = vmax.f32 %v6379_v22, %v6387_v51  ;;  %v3623_v7 = vcombine.high %v3615_v61, %v3615_v61  ;;  %11099 = vmatpush1.bf16.msra.mxu1 %v16294_v58  ;;  %v16302_v48 = vld [vmem:[%s20449_s3 + $0x2f4] ss:$8 sps:$4 sm:$0xff]  }
 0x34f   : > { %v7916_v60 = vrot.slane %v6673_v55, %v16841_v56  ;;  %v3624_v41 = vcombine.high %v3622_v31, %v3622_v31  ;;  %v14712_v32 = vrot.slane %v3615_v61, 9  ;;  %v14714_v28 = vrot.slane %v3622_v31, 9  ;;  %11100 = vmatprep.subr.bf16.mxu1 %v16299_v8 }
 0x350   : > { %v6676_v11 = vmax.f32 %v6380_v6, %v6388_v50  ;;  %v7920_v37 = vrot.slane %v6674_v54, %v16841_v56  ;;  %v7924_v29 = vrot.slane %v6675_v34, %v16841_v56  ;;  %v14713_v49 = vrot.slane %v3623_v7, 9 }
 0x351   : > { %v14715_v23 = vrot.slane %v3624_v41, 9  ;;  %v6389_v45 = vmax.f32 %v3615_v61, %v14712_v32  ;;  %v6391_v30 = vmax.f32 %v3622_v31, %v14714_v28  ;;  %v3574_v44 = vcombine.high %v1574_v33, %v1574_v33 }
 0x352   : > { %v7928_v43 = vrot.slane %v6676_v11, %v16841_v56  ;;  %v8269_v38 = vsel %vm8073_vm0, %v7920_v37, %v7916_v60  ;;  %v6390_v52 = vmax.f32 %v3623_v7, %v14713_v49  ;;  %v3581_v12 = vrot.slane %v1574_v33, %v16831_v40  ;;  %11101 = vmatpush1.bf16.msra.mxu1 %v16297_v18 }
 0x353   : > { %v8270_v2 = vsel %vm8075_vm1, %v7924_v29, %v8269_v38  ;;  %v6392_v35 = vmax.f32 %v3624_v41, %v14715_v23  ;;  %v3588_v46 = vrot.slane %v3574_v44, %v16831_v40  ;;  %v15304_v42 = vpack.c.bf16 %v8584_v1, %v18242_v21  ;;  %11102 = vmatprep.subr.bf16.mxu1 %v16302_v48 }
 0x354   : > { %v3589_v20 = vcombine.high %v3581_v12, %v3581_v12  ;;  %v14704_v51 = vrot.slane %v3581_v12, 9  ;;  %v8271_v26 = vsel %vm8077_vm2, %v7928_v43, %v8270_v2  ;;  %v15303_v59 = vpack.c.bf16 %v8520_v14, %v8519_v24 }
 0x355   : > { %v3590_v57 = vcombine.high %v3588_v46, %v3588_v46  ;;  %v14706_v22 = vrot.slane %v3588_v46, 9  ;;  %11021 = vmatprep.mubr.bf16.mxu1 %v15304_v42  ;;  %v1411_v21 = vadd.f32 %v18263_v25, %v17985_v63  ;;  %v1403_v61 = vadd.f32 %v18263_v25, %v17988_v13  ;;  %v16300_v63 = vld [vmem:[%s20449_s3 + $0x2f0] ss:$8 sps:$4 sm:$0xff]  }
 0x356   : > { %v14705_v50 = vrot.slane %v3589_v20, 9  ;;  %v6381_v55 = vmax.f32 %v3581_v12, %v14704_v51  ;;  %11022 = vmatmul.mubr.bf16.gmra.mrb[12].mxu1 %v15303_v59  ;;  %v1414_v31 = vadd.f32 %v18263_v25, %v17993_v19  ;;  %v1406_v33 = vadd.f32 %v18263_v25, %v17995_v62  ;;  %v16305_v19 = vld [vmem:[%s20449_s3 + $0x304] ss:$8 sps:$4 sm:$0xff]  }
 0x357   : > { %v14707_v6 = vrot.slane %v3590_v57, 9  ;;  %v6383_v54 = vmax.f32 %v3588_v46, %v14706_v22  ;;  %v1579_v34 = vmax.f32 %v1411_v21, 0.0  ;;  %v1577_v7 = vmax.f32 %v1403_v61, 0.0  ;;  %11103 = vmatpush1.bf16.msra.mxu1 %v16300_v63 }
 0x358   : > { %v6382_v58 = vmax.f32 %v3589_v20, %v14705_v50  ;;  %v6677_v13 = vmax.f32 %v6381_v55, %v6389_v45  ;;  %v1580_v60 = vmax.f32 %v1414_v31, 0.0  ;;  %v18337_v41 = vmax.f32 %v1406_v33, 0.0  ;;  %11265 = vmatprep.subr.bf16.mxu1 %v16305_v19 }
 0x359   : > { %v6384_v62 = vmax.f32 %v3590_v57, %v14707_v6  ;;  %v6679_v32 = vmax.f32 %v6383_v54, %v6391_v30  ;;  %v3659_v28 = vcombine.high %v1579_v34, %v1579_v34  ;;  %v3666_v8 = vrot.slane %v1579_v34, %v16831_v40 }
 0x35a   : > { %v6678_v11 = vmax.f32 %v6382_v58, %v6390_v52  ;;  %v7932_v37 = vrot.slane %v6677_v13, %v16841_v56  ;;  %v3625_v29 = vcombine.high %v1577_v7, %v1577_v7  ;;  %v3632_v49 = vrot.slane %v1577_v7, %v16831_v40 }
 0x35b   : > { %v6680_v1 = vmax.f32 %v6384_v62, %v6392_v35  ;;  %v7940_v23 = vrot.slane %v6679_v32, %v16841_v56  ;;  %v3673_v45 = vrot.slane %v3659_v28, %v16831_v40  ;;  %v3674_v44 = vcombine.high %v3666_v8, %v3666_v8 }
 0x35c   : > { %v7936_v14 = vrot.slane %v6678_v11, %v16841_v56  ;;  %v8272_v30 = vsel %vm8079_vm3, %v7932_v37, %v8271_v26  ;;  %v14724_v43 = vrot.slane %v3666_v8, 9  ;;  %v3639_v38 = vrot.slane %v3625_v29, %v16831_v40 }
 0x35d   : > { %v7944_v52 = vrot.slane %v6680_v1, %v16841_v56  ;;  %v3675_v12 = vcombine.high %v3673_v45, %v3673_v45  ;;  %v14725_v2 = vrot.slane %v3674_v44, 9  ;;  %v14726_v46 = vrot.slane %v3673_v45, 9 }
 0x35e   : > { %v8273_v35 = vsel %vm8081_vm4, %v7936_v14, %v8272_v30  ;;  %v6401_v42 = vmax.f32 %v3666_v8, %v14724_v43  ;;  %v3640_v24 = vcombine.high %v3632_v49, %v3632_v49  ;;  %v3641_v18 = vcombine.high %v3639_v38, %v3639_v38 }
 0x35f   : > { %v8274_v20 = vsel %vm8083_vm5, %v7940_v23, %v8273_v35  ;;  %v14727_v51 = vrot.slane %v3675_v12, 9  ;;  %v6402_v59 = vmax.f32 %v3674_v44, %v14725_v2  ;;  %v6403_v48 = vmax.f32 %v3673_v45, %v14726_v46  ;;  %v8457_v45 = vld [vmem:[#allocation2 + $0x1e1] sm:$0xff]  ;;  %v18366_v44 = vld [vmem:[#allocation2 + $0x1f0] sm:$0xff] }
 0x360   : > { %v18354_v26 = vsel %vm8085_vm6, %v7944_v52, %v8274_v20  ;;  %v14716_v57 = vrot.slane %v3632_v49, 9  ;;  %v14717_v22 = vrot.slane %v3640_v24, 9  ;;  %v14718_v21 = vrot.slane %v3639_v38, 9 }
 0x361   : > { %8364 = vst [vmem:[#allocation2 + $0x221] sm:$0xff] %v18354_v26  ;;  %v6404_v61 = vmax.f32 %v3675_v12, %v14727_v51  ;;  %v14719_v50 = vrot.slane %v3641_v18, 9  ;;  %v3676_v55 = vcombine.high %v1580_v60, %v1580_v60  ;;  %v3683_v31 = vrot.slane %v1580_v60, %v16831_v40 }
 0x362   : > { %v6393_v33 = vmax.f32 %v3632_v49, %v14716_v57  ;;  %v6394_v6 = vmax.f32 %v3640_v24, %v14717_v22  ;;  %v6395_v54 = vmax.f32 %v3639_v38, %v14718_v21  ;;  %v3642_v34 = vcombine.high %v18337_v41, %v18337_v41  ;;  %v16387_v24 = vld [vmem:[#allocation2] sm:$0xff] }
 0x363   : > { %v6396_v7 = vmax.f32 %v3641_v18, %v14719_v50  ;;  %v3690_v63 = vrot.slane %v3676_v55, %v16831_v40  ;;  %v3691_v58 = vcombine.high %v3683_v31, %v3683_v31  ;;  %v14728_v13 = vrot.slane %v3683_v31, 9 }
 0x364   : > { %v6681_v19 = vmax.f32 %v6393_v33, %v6401_v42  ;;  %v6682_v62 = vmax.f32 %v6394_v6, %v6402_v59  ;;  %v6683_v32 = vmax.f32 %v6395_v54, %v6403_v48  ;;  %v3649_v28 = vrot.slane %v18337_v41, %v16831_v40 }
 0x365   : > { %v6684_v8 = vmax.f32 %v6396_v7, %v6404_v61  ;;  %v3692_v11 = vcombine.high %v3690_v63, %v3690_v63  ;;  %v14729_v60 = vrot.slane %v3691_v58, 9  ;;  %v14730_v37 = vrot.slane %v3690_v63, 9 }
 0x366   : > { %v7948_v29 = vrot.slane %v6681_v19, %v16841_v56  ;;  %v7952_v49 = vrot.slane %v6682_v62, %v16841_v56  ;;  %v7956_v1 = vrot.slane %v6683_v32, %v16841_v56  ;;  %v6405_v23 = vmax.f32 %v3683_v31, %v14728_v13 }
 0x367   : > { %v7960_v14 = vrot.slane %v6684_v8, %v16841_v56  ;;  %v14731_v30 = vrot.slane %v3692_v11, 9  ;;  %v6406_v43 = vmax.f32 %v3691_v58, %v14729_v60  ;;  %v6407_v38 = vmax.f32 %v3690_v63, %v14730_v37 }
 0x368   : > { %v8276_v41 = vsel %vm8073_vm0, %v7952_v49, %v7948_v29  ;;  %v3656_v52 = vrot.slane %v3642_v34, %v16831_v40  ;;  %v3657_v12 = vcombine.high %v3649_v28, %v3649_v28  ;;  %v14720_v2 = vrot.slane %v3649_v28, 9 }
 0x369   : > { %v8277_v46 = vsel %vm8075_vm1, %v7956_v1, %v8276_v41  ;;  %v6408_v35 = vmax.f32 %v3692_v11, %v14731_v30  ;;  %v15311_v42 = vpack.c.bf16 %v18155_v47, %v8457_v45  ;;  %v15310_v18 = vpack.c.bf16 %v18366_v44, %v16387_v24 }
 0x36a   : > { %v3658_v20 = vcombine.high %v3656_v52, %v3656_v52  ;;  %v14721_v51 = vrot.slane %v3657_v12, 9  ;;  %v14722_v59 = vrot.slane %v3656_v52, 9  ;;  %v6397_v48 = vmax.f32 %v3649_v28, %v14720_v2 }
 0x36b   : > { %v8278_v57 = vsel %vm8077_vm2, %v7960_v14, %v8277_v46  ;;  %10838 = vmatprep.mubr.bf16.mxu0 %v15311_v42  ;;  %v1427_v22 = vadd.f32 %v18263_v25, %v18044_v15  ;;  %v1419_v21 = vadd.f32 %v18263_v25, %v18047_v3  ;;  %v1430_v61 = vadd.f32 %v18263_v25, %v18051_v16 }
 0x36c   : > { %v14723_v47 = vrot.slane %v3658_v20, 9  ;;  %v6398_v50 = vmax.f32 %v3657_v12, %v14721_v51  ;;  %v6399_v55 = vmax.f32 %v3656_v52, %v14722_v59  ;;  %v6685_v31 = vmax.f32 %v6397_v48, %v6405_v23  ;;  %10839 = vmatmul.mubr.bf16.gmra.mrb[176].mxu0 %v15310_v18 }
 0x36d   : > { %v1583_v33 = vmax.f32 %v1427_v22, 0.0  ;;  %v1581_v6 = vmax.f32 %v1419_v21, 0.0  ;;  %v1584_v54 = vmax.f32 %v1430_v61, 0.0  ;;  %v1422_v34 = vadd.f32 %v18263_v25, %v18057_v27 }
 0x36e   : > { %v6400_v7 = vmax.f32 %v3658_v20, %v14723_v47  ;;  %v6686_v63 = vmax.f32 %v6398_v50, %v6406_v43  ;;  %v6687_v15 = vmax.f32 %v6399_v55, %v6407_v38  ;;  %v7964_v58 = vrot.slane %v6685_v31, %v16841_v56 }
 0x36f   : > { %v3727_v3 = vcombine.high %v1583_v33, %v1583_v33  ;;  %v3734_v13 = vrot.slane %v1583_v33, %v16831_v40  ;;  %v3693_v16 = vcombine.high %v1581_v6, %v1581_v6  ;;  %v3700_v19 = vrot.slane %v1581_v6, %v16831_v40 }
 0x370   : > { %v6688_v62 = vmax.f32 %v6400_v7, %v6408_v35  ;;  %v7968_v32 = vrot.slane %v6686_v63, %v16841_v56  ;;  %v7972_v28 = vrot.slane %v6687_v15, %v16841_v56  ;;  %v8279_v8 = vsel %vm8079_vm3, %v7964_v58, %v8278_v57 }
 0x371   : > { %v3741_v27 = vrot.slane %v3727_v3, %v16831_v40  ;;  %v3742_v11 = vcombine.high %v3734_v13, %v3734_v13  ;;  %v14740_v60 = vrot.slane %v3734_v13, 9  ;;  %v3707_v37 = vrot.slane %v3693_v16, %v16831_v40 }
 0x372   : > { %v7976_v29 = vrot.slane %v6688_v62, %v16841_v56  ;;  %v8280_v49 = vsel %vm8081_vm4, %v7968_v32, %v8279_v8  ;;  %v3708_v1 = vcombine.high %v3700_v19, %v3700_v19  ;;  %v14732_v23 = vrot.slane %v3700_v19, 9  ;;  %v8521_v8 = vld [vmem:[#allocation2 + $0x1e2] sm:$0xff] }
 0x373   : > { %v8281_v45 = vsel %vm8083_vm5, %v7972_v28, %v8280_v49  ;;  %v3743_v14 = vcombine.high %v3741_v27, %v3741_v27  ;;  %v14741_v30 = vrot.slane %v3742_v11, 9  ;;  %v14742_v43 = vrot.slane %v3741_v27, 9  ;;  %v18406_v28 = vld [vmem:[#allocation2 + $0x200] sm:$0xff] }
 0x374   : > { %v18395_v38 = vsel %vm8085_vm6, %v7976_v29, %v8281_v45  ;;  %v6417_v41 = vmax.f32 %v3734_v13, %v14740_v60  ;;  %v3709_v52 = vcombine.high %v3707_v37, %v3707_v37  ;;  %v14733_v12 = vrot.slane %v3708_v1, 9 }
 0x375   : > { %8365 = vst [vmem:[#allocation2 + $0x231] sm:$0xff] %v18395_v38  ;;  %v14743_v2 = vrot.slane %v3743_v14, 9  ;;  %v6418_v46 = vmax.f32 %v3742_v11, %v14741_v30  ;;  %v6419_v35 = vmax.f32 %v3741_v27, %v14742_v43  ;;  %v14734_v42 = vrot.slane %v3707_v37, 9  ;;  %v8522_v27 = vld [vmem:[#allocation2 + $0x1f2] sm:$0xff] }
 0x376   : > { %v14735_v24 = vrot.slane %v3709_v52, 9  ;;  %v6409_v18 = vmax.f32 %v3700_v19, %v14732_v23  ;;  %v6410_v20 = vmax.f32 %v3708_v1, %v14733_v12  ;;  %v3744_v51 = vcombine.high %v1584_v54, %v1584_v54 }
 0x377   : > { %v6420_v59 = vmax.f32 %v3743_v14, %v14743_v2  ;;  %v6411_v48 = vmax.f32 %v3707_v37, %v14734_v42  ;;  %v3751_v57 = vrot.slane %v1584_v54, %v16831_v40  ;;  %v1582_v22 = vmax.f32 %v1422_v34, 0.0 }
 0x378   : > { %v6412_v21 = vmax.f32 %v3709_v52, %v14735_v24  ;;  %v6689_v61 = vmax.f32 %v6409_v18, %v6417_v41  ;;  %v6690_v47 = vmax.f32 %v6410_v20, %v6418_v46  ;;  %v3758_v50 = vrot.slane %v3744_v51, %v16831_v40 }
 0x379   : > { %v6691_v55 = vmax.f32 %v6411_v48, %v6419_v35  ;;  %v3759_v31 = vcombine.high %v3751_v57, %v3751_v57  ;;  %v14744_v33 = vrot.slane %v3751_v57, 9  ;;  %v3710_v6 = vcombine.high %v1582_v22, %v1582_v22 }
 0x37a   : > { %v6692_v7 = vmax.f32 %v6412_v21, %v6420_v59  ;;  %v7980_v63 = vrot.slane %v6689_v61, %v16841_v56  ;;  %v7984_v15 = vrot.slane %v6690_v47, %v16841_v56  ;;  %v3760_v58 = vcombine.high %v3758_v50, %v3758_v50 }
 0x37b   : > { %v7988_v3 = vrot.slane %v6691_v55, %v16841_v56  ;;  %v14745_v13 = vrot.slane %v3759_v31, 9  ;;  %v14746_v54 = vrot.slane %v3758_v50, 9  ;;  %v6421_v34 = vmax.f32 %v3751_v57, %v14744_v33 }
 0x37c   : > { %v7992_v16 = vrot.slane %v6692_v7, %v16841_v56  ;;  %v8283_v19 = vsel %vm8073_vm0, %v7984_v15, %v7980_v63  ;;  %v14747_v62 = vrot.slane %v3760_v58, 9  ;;  %v3717_v32 = vrot.slane %v1582_v22, %v16831_v40 }
 0x37d   : > { %v8284_v11 = vsel %vm8075_vm1, %v7988_v3, %v8283_v19  ;;  %v6422_v60 = vmax.f32 %v3759_v31, %v14745_v13  ;;  %v6423_v37 = vmax.f32 %v3758_v50, %v14746_v54  ;;  %v3724_v29 = vrot.slane %v3710_v6, %v16831_v40 }
 0x37e   : > { %v6424_v49 = vmax.f32 %v3760_v58, %v14747_v62  ;;  %v3725_v1 = vcombine.high %v3717_v32, %v3717_v32  ;;  %v14736_v23 = vrot.slane %v3717_v32, 9  ;;  %v8285_v45 = vsel %vm8077_vm2, %v7992_v16, %v8284_v11 }
 0x37f   : > { %v3726_v14 = vcombine.high %v3724_v29, %v3724_v29  ;;  %v14738_v30 = vrot.slane %v3724_v29, 9  ;;  %v15313_v43 = vpack.c.bf16 %v18406_v28, %v18366_v44  ;;  %v15312_v41 = vpack.c.bf16 %v8522_v27, %v8521_v8 }
 0x380   : > { %v14737_v52 = vrot.slane %v3725_v1, 9  ;;  %v6413_v12 = vmax.f32 %v3717_v32, %v14736_v23  ;;  %v1443_v2 = vadd.f32 %v18263_v25, %v18098_v53  ;;  %v1435_v46 = vadd.f32 %v18263_v25, %v18104_v0 }
 0x381   : > { %v14739_v35 = vrot.slane %v3726_v14, 9  ;;  %v6415_v42 = vmax.f32 %v3724_v29, %v14738_v30  ;;  %11031 = vmatprep.mubr.bf16.mxu1 %v15313_v43  ;;  %v1446_v24 = vadd.f32 %v18263_v25, %v18111_v17  ;;  %v1438_v18 = vadd.f32 %v18263_v25, %v18118_v4 }
 0x382   : > { %v6414_v20 = vmax.f32 %v3725_v1, %v14737_v52  ;;  %v6693_v44 = vmax.f32 %v6413_v12, %v6421_v34  ;;  %11032 = vmatmul.mubr.bf16.gmra.mrb[16].mxu1 %v15312_v41  ;;  %v1587_v51 = vmax.f32 %v1443_v2, 0.0  ;;  %v1585_v59 = vmax.f32 %v1435_v46, 0.0 }
 0x383   : > { %v6416_v48 = vmax.f32 %v3726_v14, %v14739_v35  ;;  %v6695_v57 = vmax.f32 %v6415_v42, %v6423_v37  ;;  %v1588_v53 = vmax.f32 %v1446_v24, 0.0  ;;  %v1586_v22 = vmax.f32 %v1438_v18, 0.0 }
 0x384   : > { %v6694_v21 = vmax.f32 %v6414_v20, %v6422_v60  ;;  %v7996_v0 = vrot.slane %v6693_v44, %v16841_v56  ;;  %v3795_v61 = vcombine.high %v1587_v51, %v1587_v51  ;;  %v3802_v47 = vrot.slane %v1587_v51, %v16831_v40 }
 0x385   : > { %v6696_v50 = vmax.f32 %v6416_v48, %v6424_v49  ;;  %v8004_v17 = vrot.slane %v6695_v57, %v16841_v56  ;;  %v3761_v55 = vcombine.high %v1585_v59, %v1585_v59  ;;  %v3768_v4 = vrot.slane %v1585_v59, %v16831_v40 }
 0x386   : > { %v8000_v31 = vrot.slane %v6694_v21, %v16841_v56  ;;  %v8286_v33 = vsel %vm8079_vm3, %v7996_v0, %v8285_v45  ;;  %v3809_v6 = vrot.slane %v3795_v61, %v16831_v40  ;;  %v3810_v7 = vcombine.high %v3802_v47, %v3802_v47 }
 0x387   : > { %v8008_v63 = vrot.slane %v6696_v50, %v16841_v56  ;;  %v14756_v15 = vrot.slane %v3802_v47, 9  ;;  %v3775_v58 = vrot.slane %v3761_v55, %v16831_v40  ;;  %v3776_v3 = vcombine.high %v3768_v4, %v3768_v4  ;;  %v18444_v50 = vld [vmem:[#allocation2 + $0x201] sm:$0xff] }
 0x388   : > { %v8287_v13 = vsel %vm8081_vm4, %v8000_v31, %v8286_v33  ;;  %v3811_v54 = vcombine.high %v3809_v6, %v3809_v6  ;;  %v14757_v34 = vrot.slane %v3810_v7, 9  ;;  %v14758_v16 = vrot.slane %v3809_v6, 9 }
 0x389   : > { %v8288_v19 = vsel %vm8083_vm5, %v8004_v17, %v8287_v13  ;;  %v6433_v62 = vmax.f32 %v3802_v47, %v14756_v15  ;;  %v3777_v32 = vcombine.high %v3775_v58, %v3775_v58  ;;  %v14748_v8 = vrot.slane %v3768_v4, 9 }
 0x38a   : > { %v18433_v27 = vsel %vm8085_vm6, %v8008_v63, %v8288_v19  ;;  %v14759_v11 = vrot.slane %v3811_v54, 9  ;;  %v6434_v60 = vmax.f32 %v3810_v7, %v14757_v34  ;;  %v6435_v37 = vmax.f32 %v3809_v6, %v14758_v16  ;;  %v18447_v63 = vld [vmem:[#allocation2 + $0x210] sm:$0xff] }
 0x38b   : > { %8366 = vst [vmem:[#allocation2 + $0x241] sm:$0xff] %v18433_v27  ;;  %v14749_v29 = vrot.slane %v3776_v3, 9  ;;  %v14750_v49 = vrot.slane %v3775_v58, 9  ;;  %v14751_v1 = vrot.slane %v3777_v32, 9  ;;  %v6425_v23 = vmax.f32 %v3768_v4, %v14748_v8 }
 0x38c   : > { %v6436_v45 = vmax.f32 %v3811_v54, %v14759_v11  ;;  %v3812_v14 = vcombine.high %v1588_v53, %v1588_v53  ;;  %v3819_v30 = vrot.slane %v1588_v53, %v16831_v40  ;;  %v3778_v43 = vcombine.high %v1586_v22, %v1586_v22 }
 0x38d   : > { %v6426_v41 = vmax.f32 %v3776_v3, %v14749_v29  ;;  %v6427_v52 = vmax.f32 %v3775_v58, %v14750_v49  ;;  %v6428_v12 = vmax.f32 %v3777_v32, %v14751_v1  ;;  %v6697_v2 = vmax.f32 %v6425_v23, %v6433_v62 }
 0x38e   : > { %v3826_v46 = vrot.slane %v3812_v14, %v16831_v40  ;;  %v3827_v35 = vcombine.high %v3819_v30, %v3819_v30  ;;  %v14760_v42 = vrot.slane %v3819_v30, 9  ;;  %v3785_v24 = vrot.slane %v1586_v22, %v16831_v40 }
 0x38f   : > { %v6698_v18 = vmax.f32 %v6426_v41, %v6434_v60  ;;  %v6699_v20 = vmax.f32 %v6427_v52, %v6435_v37  ;;  %v6700_v44 = vmax.f32 %v6428_v12, %v6436_v45  ;;  %v8012_v51 = vrot.slane %v6697_v2, %v16841_v56 }
 0x390   : > { %v3828_v59 = vcombine.high %v3826_v46, %v3826_v46  ;;  %v14761_v48 = vrot.slane %v3827_v35, 9  ;;  %v14762_v57 = vrot.slane %v3826_v46, 9  ;;  %v6437_v53 = vmax.f32 %v3819_v30, %v14760_v42 }
 0x391   : > { %v8016_v21 = vrot.slane %v6698_v18, %v16841_v56  ;;  %v8020_v0 = vrot.slane %v6699_v20, %v16841_v56  ;;  %v8024_v61 = vrot.slane %v6700_v44, %v16841_v56  ;;  %v3792_v47 = vrot.slane %v3778_v43, %v16831_v40 }
 0x392   : > { %v14763_v22 = vrot.slane %v3828_v59, 9  ;;  %v6438_v17 = vmax.f32 %v3827_v35, %v14761_v48  ;;  %v6439_v55 = vmax.f32 %v3826_v46, %v14762_v57  ;;  %v3793_v4 = vcombine.high %v3785_v24, %v3785_v24 }
 0x393   : > { %v8290_v31 = vsel %vm8073_vm0, %v8016_v21, %v8012_v51  ;;  %v3794_v33 = vcombine.high %v3792_v47, %v3792_v47  ;;  %v14752_v6 = vrot.slane %v3785_v24, 9  ;;  %v14754_v7 = vrot.slane %v3792_v47, 9 }
 0x394   : > { %v8291_v15 = vsel %vm8075_vm1, %v8020_v0, %v8290_v31  ;;  %v6440_v58 = vmax.f32 %v3828_v59, %v14763_v22  ;;  %v14753_v3 = vrot.slane %v3793_v4, 9  ;;  %v15320_v13 = vpack.c.bf16 %v18293_v9, %v18444_v50 }
 0x395   : > { %v14755_v54 = vrot.slane %v3794_v33, 9  ;;  %v6429_v34 = vmax.f32 %v3785_v24, %v14752_v6  ;;  %v6431_v16 = vmax.f32 %v3792_v47, %v14754_v7  ;;  %v8292_v19 = vsel %vm8077_vm2, %v8024_v61, %v8291_v15 }
 0x396   : > { %v6430_v62 = vmax.f32 %v3793_v4, %v14753_v3  ;;  %10848 = vmatprep.mubr.bf16.mxu0 %v15320_v13  ;;  %v15319_v32 = vpack.c.bf16 %v18447_v63, %v18406_v28  ;;  %v1459_v8 = vadd.f32 %v18263_v25, %v18160_v10  ;;  %v1451_v11 = vadd.f32 %v18263_v25, %v18167_v39 }
 0x397   : > { %v6432_v60 = vmax.f32 %v3794_v33, %v14755_v54  ;;  %v6701_v37 = vmax.f32 %v6429_v34, %v6437_v53  ;;  %v6703_v29 = vmax.f32 %v6431_v16, %v6439_v55  ;;  %v1462_v9 = vadd.f32 %v18263_v25, %v18172_v36  ;;  %v18467_v36 = vpop.f32.mrb[160].mxu0 }
 0x398   : > { %v6702_v49 = vmax.f32 %v6430_v62, %v6438_v17  ;;  %10849 = vmatmul.mubr.bf16.gmra.mrb[180].mxu0 %v15319_v32  ;;  %v1591_v1 = vmax.f32 %v1459_v8, 0.0  ;;  %v1589_v23 = vmax.f32 %v1451_v11, 0.0  ;;  %v1454_v45 = vadd.f32 %v18263_v25, %v18175_v5  ;;  %20474 = vst [vmem:[#allocation8_spill] sm:$0xff] %v18467_v36  ;;  %v18472_v46 = vpop.f32.mrb[161].mxu0 }
 0x399   : > { %v6704_v28 = vmax.f32 %v6432_v60, %v6440_v58  ;;  %v8028_v14 = vrot.slane %v6701_v37, %v16841_v56  ;;  %v8036_v10 = vrot.slane %v6703_v29, %v16841_v56  ;;  %v1592_v30 = vmax.f32 %v1462_v9, 0.0  ;;  %20475 = vst [vmem:[#allocation9_spill] sm:$0xff] %v18472_v46  ;;  %v18476_v20 = vpop.f32.mrb[162].mxu0 }
 0x39a   : > { %v8032_v39 = vrot.slane %v6702_v49, %v16841_v56  ;;  %v3863_v43 = vcombine.high %v1591_v1, %v1591_v1  ;;  %v3870_v41 = vrot.slane %v1591_v1, %v16831_v40  ;;  %v3829_v52 = vcombine.high %v1589_v23, %v1589_v23  ;;  %20476 = vst [vmem:[#allocation10_spill] sm:$0xff] %v18476_v20  ;;  %v18480_v57 = vpop.f32.mrb[163].mxu0  ;;  %v8641_v20 = vld [vmem:[#allocation2 + $0x151] sm:$0xff] }
 0x39b   : > { %v8040_v12 = vrot.slane %v6704_v28, %v16841_v56  ;;  %v8293_v2 = vsel %vm8079_vm3, %v8028_v14, %v8292_v19  ;;  %v3836_v5 = vrot.slane %v1589_v23, %v16831_v40  ;;  %v3880_v25 = vcombine.high %v1592_v30, %v1592_v30  ;;  %20477 = vst [vmem:[#allocation11_spill] sm:$0xff] %v18480_v57  ;;  %v8588_v23 = vld [vmem:[#allocation2 + $0x220] sm:$0xff] }
 0x39c   : > { %v8294_v35 = vsel %vm8081_vm4, %v8032_v39, %v8293_v2  ;;  %v3877_v42 = vrot.slane %v3863_v43, %v16831_v40  ;;  %v3878_v24 = vcombine.high %v3870_v41, %v3870_v41  ;;  %v14772_v18 = vrot.slane %v3870_v41, 9 }
 0x39d   : > { %v8295_v44 = vsel %vm8083_vm5, %v8036_v10, %v8294_v35  ;;  %v3843_v51 = vrot.slane %v3829_v52, %v16831_v40  ;;  %v3844_v59 = vcombine.high %v3836_v5, %v3836_v5  ;;  %v14764_v48 = vrot.slane %v3836_v5, 9  ;;  %v8398_v52 = vld [vmem:[#allocation2 + $0x230] sm:$0xff]  ;;  %v18499_v35 = vld [vmem:[#allocation2 + $0x202] sm:$0xff] }
 0x39e   : > { %v18483_v53 = vsel %vm8085_vm6, %v8040_v12, %v8295_v44  ;;  %v3879_v21 = vcombine.high %v3877_v42, %v3877_v42  ;;  %v14773_v0 = vrot.slane %v3878_v24, 9  ;;  %v14774_v61 = vrot.slane %v3877_v42, 9 }
 0x39f   : > { %8367 = vst [vmem:[#allocation2 + $0x251] sm:$0xff] %v18483_v53  ;;  %v6449_v47 = vmax.f32 %v3870_v41, %v14772_v18  ;;  %v3845_v22 = vcombine.high %v3843_v51, %v3843_v51  ;;  %v14765_v17 = vrot.slane %v3844_v59, 9  ;;  %v14766_v55 = vrot.slane %v3843_v51, 9 }
 0x3a0   : > { %v14775_v4 = vrot.slane %v3879_v21, 9  ;;  %v6450_v31 = vmax.f32 %v3878_v24, %v14773_v0  ;;  %v6451_v33 = vmax.f32 %v3877_v42, %v14774_v61  ;;  %v6441_v6 = vmax.f32 %v3836_v5, %v14764_v48  ;;  %v8590_v42 = vld [vmem:[#allocation2 + $0x240] sm:$0xff] }
 0x3a1   : > { %v14767_v7 = vrot.slane %v3845_v22, 9  ;;  %v6442_v15 = vmax.f32 %v3844_v59, %v14765_v17  ;;  %v6443_v58 = vmax.f32 %v3843_v51, %v14766_v55  ;;  %v3887_v3 = vrot.slane %v1592_v30, %v16831_v40  ;;  %v18491_v30 = vld [vmem:[#allocation2 + $0x212] sm:$0xff] }
 0x3a2   : > { %v6452_v13 = vmax.f32 %v3879_v21, %v14775_v4  ;;  %v6705_v54 = vmax.f32 %v6441_v6, %v6449_v47  ;;  %v3894_v34 = vrot.slane %v3880_v25, %v16831_v40  ;;  %v1590_v16 = vmax.f32 %v1454_v45, 0.0 }
 0x3a3   : > { %v6444_v19 = vmax.f32 %v3845_v22, %v14767_v7  ;;  %v6706_v62 = vmax.f32 %v6442_v15, %v6450_v31  ;;  %v6707_v32 = vmax.f32 %v6443_v58, %v6451_v33  ;;  %v3895_v8 = vcombine.high %v3887_v3, %v3887_v3 }
 0x3a4   : > { %v3896_v11 = vcombine.high %v3894_v34, %v3894_v34  ;;  %v14776_v60 = vrot.slane %v3887_v3, 9  ;;  %v14778_v37 = vrot.slane %v3894_v34, 9  ;;  %v8044_v9 = vrot.slane %v6705_v54, %v16841_v56  ;;  %v18511_v54 = vld [vmem:[#allocation2 + $0x222] sm:$0xff] }
 0x3a5   : > { %v6708_v29 = vmax.f32 %v6444_v19, %v6452_v13  ;;  %v8048_v49 = vrot.slane %v6706_v62, %v16841_v56  ;;  %v8052_v1 = vrot.slane %v6707_v32, %v16841_v56  ;;  %v14777_v28 = vrot.slane %v3895_v8, 9  ;;  %v18517_v19 = vld [vmem:[#allocation2 + $0x20] sm:$0xff] }
 0x3a6   : > { %v14779_v14 = vrot.slane %v3896_v11, 9  ;;  %v3846_v10 = vcombine.high %v1590_v16, %v1590_v16  ;;  %v6453_v43 = vmax.f32 %v3887_v3, %v14776_v60  ;;  %v3853_v41 = vrot.slane %v1590_v16, %v16831_v40 }
 0x3a7   : > { %v8056_v45 = vrot.slane %v6708_v29, %v16841_v56  ;;  %v8297_v39 = vsel %vm8073_vm0, %v8048_v49, %v8044_v9  ;;  %v6455_v2 = vmax.f32 %v3894_v34, %v14778_v37  ;;  %v15322_v25 = vpack.c.bf16 %v8588_v23, %v18447_v63  ;;  %v8497_v9 = vld [vmem:[#allocation2 + $0x2] sm:$0xff]  ;;  %v8498_v49 = vld [vmem:[#allocation2 + $0x12] sm:$0xff] }
 0x3a8   : > { %v8298_v12 = vsel %vm8075_vm1, %v8052_v1, %v8297_v39  ;;  %v3860_v5 = vrot.slane %v3846_v10, %v16831_v40  ;;  %v3861_v24 = vcombine.high %v3853_v41, %v3853_v41  ;;  %v14768_v18 = vrot.slane %v3853_v41, 9  ;;  %v18528_v1 = vld [vmem:[#allocation2 + $0x40] sm:$0xff]  ;;  %v16324_v40 = vld [vmem:[%s20449_s3 + $0x370] ss:$8 sps:$4 sm:$0xff]  }
 0x3a9   : > { %v8299_v44 = vsel %vm8077_vm2, %v8056_v45, %v8298_v12  ;;  %v15321_v51 = vpack.c.bf16 %v18491_v30, %v18499_v35  ;;  %11041 = vmatprep.mubr.bf16.mxu1 %v15322_v25  ;;  %v15329_v21 = vpack.c.bf16 %v18395_v38, %v18354_v26  ;;  %v15328_v0 = vpack.c.bf16 %v8398_v52, %v8588_v23  ;;  %v18508_v26 = vld [vmem:[#allocation2 + $0x232] sm:$0xff]  ;;  %v18530_v23 = vld [vmem:[#allocation2 + $0x242] sm:$0xff] }
 0x3aa   : > { %v3862_v59 = vcombine.high %v3860_v5, %v3860_v5  ;;  %v14770_v48 = vrot.slane %v3860_v5, 9  ;;  %v6454_v61 = vmax.f32 %v3895_v8, %v14777_v28  ;;  %v14769_v47 = vrot.slane %v3861_v24, 9  ;;  %v8400_v38 = vld [vmem:[#allocation2 + $0x250] sm:$0xff]  ;;  %v8690_v39 = vld [vmem:[#allocation2 + $0x22] sm:$0xff] }
 0x3ab   : > { %v6445_v63 = vmax.f32 %v3853_v41, %v14768_v18  ;;  %11042 = vmatmul.mubr.bf16.gmra.mrb[20].mxu1 %v15321_v51  ;;  %v15331_v22 = vpack.c.bf16 %v8590_v42, %v8398_v52  ;;  %v6456_v17 = vmax.f32 %v3896_v11, %v14779_v14  ;;  %10858 = vmatprep.mubr.bf16.mxu0 %v15329_v21  ;;  %v8561_v11 = vld [vmem:[#allocation2 + $0x10] sm:$0xff]  ;;  %v18550_v25 = vld [vmem:[#allocation2 + $0x61] sm:$0xff] }
 0x3ac   : > { %v14771_v55 = vrot.slane %v3862_v59, 9  ;;  %v6447_v4 = vmax.f32 %v3860_v5, %v14770_v48  ;;  %v15338_v31 = vpack.c.bf16 %v18483_v53, %v18433_v27  ;;  %v6446_v33 = vmax.f32 %v3861_v24, %v14769_v47  ;;  %10859 = vmatmul.mubr.bf16.gmra.mrb[184].mxu0 %v15328_v0  ;;  %v18532_v28 = vld [vmem:[#allocation2 + $0x30] sm:$0xff]  ;;  %v18566_v47 = vld [vmem:[#allocation2 + $0xc0] sm:$0xff] }
 0x3ad   : > { %v6709_v6 = vmax.f32 %v6445_v63, %v6453_v43  ;;  %11051 = vmatprep.mubr.bf16.mxu1 %v15331_v22  ;;  %v15330_v53 = vpack.c.bf16 %v18508_v26, %v18511_v54  ;;  %v15337_v16 = vpack.c.bf16 %v8400_v38, %v8590_v42  ;;  %v15205_v37 = vpack.c.bf16 %v18517_v19, %v8561_v11  ;;  %v18534_v14 = vld [vmem:[#allocation2 + $0x31] sm:$0xff]  ;;  %v18538_v43 = vld [vmem:[#allocation2 + $0x21] sm:$0xff] }
 0x3ae   : > { %v6448_v7 = vmax.f32 %v3862_v59, %v14771_v55  ;;  %v6711_v15 = vmax.f32 %v6447_v4, %v6455_v2  ;;  %10868 = vmatprep.mubr.bf16.mxu0 %v15338_v31  ;;  %v6710_v58 = vmax.f32 %v6446_v33, %v6454_v61  ;;  %v15204_v10 = vpack.c.bf16 %v8498_v49, %v8497_v9  ;;  %v18536_v45 = vld [vmem:[#allocation2 + $0x252] sm:$0xff]  ;;  %v18546_v2 = vld [vmem:[#allocation2 + $0x41] sm:$0xff] }
 0x3af   : > { %v8060_v3 = vrot.slane %v6709_v6, %v16841_v56  ;;  %v18540_v41 = vld [vmem:[#allocation2 + $0x50] sm:$0xff]  ;;  %v15214_v12 = vpack.c.bf16 %v18528_v1, %v18532_v28  ;;  %v15339_v0 = vpack.c.bf16 %v18536_v45, %v18530_v23  ;;  %v18576_v4 = vld [vmem:[#allocation2 + $0xe0] sm:$0xff] }
 0x3b0   : > { %v6712_v13 = vmax.f32 %v6448_v7, %v6456_v17  ;;  %v8064_v34 = vrot.slane %v6710_v58, %v16841_v56  ;;  %v8068_v62 = vrot.slane %v6711_v15, %v16841_v56  ;;  %v18542_v52 = vld [vmem:[#allocation2 + $0x51] sm:$0xff]  ;;  %v18578_v31 = vld [vmem:[#allocation2 + $0xc1] sm:$0xff]  ;;  %v15207_v58 = vpack.c.bf16 %v8690_v39, %v8498_v49 }
 0x3b1   : > { %v8300_v27 = vsel %vm8079_vm3, %v8060_v3, %v8299_v44  ;;  %v18548_v5 = vld [vmem:[#allocation2 + $0x70] sm:$0xff]  ;;  %v18556_v44 = vld [vmem:[#allocation2 + $0x60] sm:$0xff] }
 0x3b2   : > { %v8072_v32 = vrot.slane %v6712_v13, %v16841_v56  ;;  %v8301_v8 = vsel %vm8081_vm4, %v8064_v34, %v8300_v27  ;;  %v18552_v42 = vld [vmem:[#allocation2 + $0x71] sm:$0xff]  ;;  %v18590_v3 = vld [vmem:[#allocation2 + $0xe1] sm:$0xff] }
 0x3b3   : > { %11052 = vmatmul.mubr.bf16.gmra.mrb[24].mxu1 %v15330_v53  ;;  %v8302_v60 = vsel %vm8083_vm5, %v8068_v62, %v8301_v8  ;;  %v18558_v51 = vld [vmem:[#allocation2 + $0xd0] sm:$0xff]  ;;  %v18592_v13 = vld [vmem:[#allocation2 + $0x101] sm:$0xff] }
 0x3b4   : > { %v18525_v29 = vsel %vm8085_vm6, %v8072_v32, %v8302_v60  ;;  %10869 = vmatmul.mubr.bf16.gmra.mrb[188].mxu0 %v15337_v16  ;;  %v18560_v59 = vld [vmem:[#allocation2 + $0xd1] sm:$0xff]  ;;  %v18600_v16 = vld [vmem:[#allocation2 + $0x100] sm:$0xff] }
 0x3b5   : > { %8368 = vst [vmem:[#allocation2 + $0x261] sm:$0xff] %v18525_v29  ;;  %10911 = vmatprep.mubr.bf16.mxu0 %v15205_v37  ;;  %v8500_v61 = vld [vmem:[#allocation2 + $0x32] sm:$0xff]  ;;  %v18612_v37 = vld [vmem:[#allocation2 + $0x161] sm:$0xff] }
 0x3b6   : > { %v18568_v63 = vld [vmem:[#allocation2 + $0xf0] sm:$0xff]  ;;  %v18626_v60 = vld [vmem:[#allocation2 + $0x162] sm:$0xff] }
 0x3b7   : > { %v18570_v22 = vld [vmem:[#allocation2 + $0xf1] sm:$0xff]  ;;  %v8692_v11 = vld [vmem:[#allocation2 + $0x42] sm:$0xff] }
 0x3b8   : > { %v18572_v17 = vld [vmem:[#allocation2 + $0x111] sm:$0xff]  ;;  %v15216_v53 = vpack.c.bf16 %v8692_v11, %v8500_v61  ;;  %v18668_v6 = vld [vmem:[#allocation2 + $0x182] sm:$0xff] }
 0x3b9   : > { %v18580_v33 = vld [vmem:[#allocation2 + $0x110] sm:$0xff] }
 0x3ba   : > { %v18594_v34 = vld [vmem:[#allocation2 + $0x171] sm:$0xff] }
 0x3bb   : > { %v18614_v9 = vld [vmem:[#allocation2 + $0x172] sm:$0xff] }
 0x3bc   : > { %v8592_v18 = vld [vmem:[#allocation2 + $0x260] sm:$0xff]  ;;  %10912 = vmatmul.mubr.bf16.vlgmr.msra.gmra.mrb[128].mxu0 %v15204_v10  ;;  %v8625_v10 = vld [vmem:[#allocation2 + $0x11] sm:$0xff] }
 0x3bd   : > { %v15340_v21 = vpack.c.bf16 %v8592_v18, %v8400_v38  ;;  %10921 = vmatprep.mubr.bf16.mxu0 %v15214_v12  ;;  %v15213_v12 = vpack.c.bf16 %v8500_v61, %v8690_v39  ;;  %v16303_v39 = vld [vmem:[%s20449_s3 + $0x300] ss:$8 sps:$4 sm:$0xff]   ;;  %v16308_v32 = vld [vmem:[%s20449_s3 + $0x314] ss:$8 sps:$4 sm:$0xff]   ;;  %v16306_v8 = vld [vmem:[%s20449_s3 + $0x310] ss:$8 sps:$4 sm:$0xff]  }
 0x3be   : > { %v8502_v27 = vld [vmem:[#allocation2 + $0x52] sm:$0xff] }
 0x3bf   : > { %11061 = vmatprep.mubr.bf16.mxu1 %v15340_v21  ;;  %v15206_v21 = vpack.c.bf16 %v18538_v43, %v8625_v10  ;;  %v15222_v38 = vpack.c.bf16 %v8502_v27, %v8692_v11  ;;  %v16311_v10 = vld [vmem:[%s20449_s3 + $0x324] ss:$8 sps:$4 sm:$0xff]   ;;  %v18649_v61 = vld [vmem:[#allocation2 + $0x191] sm:$0xff] }
 0x3c0   : > { %11062 = vmatmul.mubr.bf16.gmra.mrb[28].mxu1 %v15339_v0  ;;  %v15223_v0 = vpack.c.bf16 %v18556_v44, %v18540_v41  ;;  %v16314_v11 = vld [vmem:[%s20449_s3 + $0x334] ss:$8 sps:$4 sm:$0xff]   ;;  %v16312_v7 = vld [vmem:[%s20449_s3 + $0x330] ss:$8 sps:$4 sm:$0xff]  }
 0x3c1   : > { %v18602_v62 = vpop.f32.mrb[164].mxu0  ;;  %11104 = vmatprep.mubr.bf16.mxu1 %v15207_v58  ;;  %v8569_v55 = vld [vmem:[#allocation2 + $0xb0] sm:$0xff] }
 0x3c2   : > { %20478 = vst [vmem:[#allocation12_spill] sm:$0xff] %v18602_v62  ;;  %v18616_v49 = vpop.f32.mrb[165].mxu0  ;;  %v8506_v24 = vld [vmem:[#allocation2 + $0xb2] sm:$0xff] }
 0x3c3   : > { %20479 = vst [vmem:[#allocation13_spill] sm:$0xff] %v18616_v49  ;;  %v18620_v18 = vpop.f32.mrb[166].mxu0  ;;  %v8510_v49 = vld [vmem:[#allocation2 + $0xf2] sm:$0xff] }
 0x3c4   : > { %20480 = vst [vmem:[#allocation14_spill] sm:$0xff] %v18620_v18  ;;  %v18628_v58 = vpop.f32.mrb[167].mxu0  ;;  %10922 = vmatmul.mubr.bf16.gmra.mrb[132].mxu0 %v15213_v12  ;;  %v18639_v12 = vld [vmem:[#allocation2 + $0x80] sm:$0xff]  ;;  %v16332_v18 = vld [vmem:[%s20449_s3 + $0x394] ss:$8 sps:$4 sm:$0xff]  }
 0x3c5   : > { %20481 = vst [vmem:[#allocation15_spill] sm:$0xff] %v18628_v58  ;;  %10931 = vmatprep.mubr.bf16.mxu0 %v15223_v0  ;;  %v15232_v0 = vpack.c.bf16 %v18639_v12, %v18548_v5 }
 0x3c8   : > { %11105 = vmatmul.mubr.bf16.vlgmr.msra.gmra.mrb[32].mxu1 %v15206_v21  ;;  %v8694_v21 = vld [vmem:[#allocation2 + $0x62] sm:$0xff] }
 0x3c9   : > { %11266 = vmatpush1.bf16.msra.mxu1 %v16303_v39  ;;  %11114 = vmatprep.mubr.bf16.mxu1 %v15216_v53  ;;  %v16309_v53 = vld [vmem:[%s20449_s3 + $0x320] ss:$8 sps:$4 sm:$0xff]   ;;  %v15225_v15 = vpack.c.bf16 %v8694_v21, %v8502_v27 }
 0x3ca   : > { %11267 = vmatprep.subr.bf16.mxu1 %v16308_v32  ;;  %v18654_v39 = vld [vmem:[#allocation2 + $0x181] sm:$0xff]  ;;  %v15215_v32 = vpack.c.bf16 %v18546_v2, %v18534_v14 }
 0x3cb   : > { %v8505_v27 = vld [vmem:[#allocation2 + $0xa2] sm:$0xff] }
 0x3cc   : > { %10932 = vmatmul.mubr.bf16.gmra.mrb[136].mxu0 %v15222_v38  ;;  %v16317_v38 = vld [vmem:[%s20449_s3 + $0x344] ss:$8 sps:$4 sm:$0xff]  }
 0x3cd   : > { %11268 = vmatpush1.bf16.msra.mxu1 %v16306_v8  ;;  %10941 = vmatprep.mubr.bf16.mxu0 %v15232_v0  ;;  %v8504_v8 = vld [vmem:[#allocation2 + $0x72] sm:$0xff] }
 0x3ce   : > { %11269 = vmatprep.subr.bf16.mxu1 %v16311_v10  ;;  %v18663_v0 = vld [vmem:[#allocation2 + $0x192] sm:$0xff]  ;;  %v15231_v10 = vpack.c.bf16 %v8504_v8, %v8694_v21  ;;  %v15224_v21 = vpack.c.bf16 %v18550_v25, %v18542_v52 }
 0x3d0   : > { %11115 = vmatmul.mubr.bf16.gmra.mrb[36].mxu1 %v15215_v32  ;;  %v15241_v32 = vpack.c.bf16 %v18566_v47, %v8569_v55  ;;  %v16318_v55 = vld [vmem:[%s20449_s3 + $0x350] ss:$8 sps:$4 sm:$0xff]  }
 0x3d1   : > { %11124 = vmatprep.mubr.bf16.mxu1 %v15225_v15  ;;  %11270 = vmatpush1.bf16.msra.mxu1 %v16309_v53  ;;  %v8696_v15 = vld [vmem:[#allocation2 + $0x82] sm:$0xff] }
 0x3d2   : > { %11271 = vmatprep.subr.bf16.mxu1 %v16314_v11  ;;  %v16315_v53 = vld [vmem:[%s20449_s3 + $0x340] ss:$8 sps:$4 sm:$0xff]   ;;  %v16320_v11 = vld [vmem:[%s20449_s3 + $0x354] ss:$8 sps:$4 sm:$0xff]   ;;  %v15234_v48 = vpack.c.bf16 %v8696_v15, %v8504_v8  ;;  %v15250_v8 = vpack.c.bf16 %v18576_v4, %v18558_v51 }
 0x3d3   : > { %v18699_v15 = vld [vmem:[#allocation2 + $0x1a1] sm:$0xff] }
 0x3d4   : > { %10942 = vmatmul.mubr.bf16.gmra.mrb[140].mxu0 %v15231_v10  ;;  %v18690_v10 = vld [vmem:[#allocation2 + $0x81] sm:$0xff] }
 0x3d5   : > { %10951 = vmatprep.mubr.bf16.mxu0 %v15241_v32  ;;  %11272 = vmatpush1.bf16.msra.mxu1 %v16312_v7  ;;  %v15240_v7 = vpack.c.bf16 %v8506_v24, %v8505_v27  ;;  %v18694_v32 = vld [vmem:[#allocation2 + $0x1b1] sm:$0xff]  ;;  %v16321_v27 = vld [vmem:[%s20449_s3 + $0x360] ss:$8 sps:$4 sm:$0xff]  }
 0x3d6   : > { %11273 = vmatprep.subr.bf16.mxu1 %v16317_v38  ;;  %v16323_v38 = vld [vmem:[%s20449_s3 + $0x364] ss:$8 sps:$4 sm:$0xff]  }
 0x3d8   : > { %11125 = vmatmul.mubr.bf16.gmra.mrb[40].mxu1 %v15224_v21  ;;  %v16326_v21 = vld [vmem:[%s20449_s3 + $0x374] ss:$8 sps:$4 sm:$0xff]  }
 0x3d9   : > { %11134 = vmatprep.mubr.bf16.mxu1 %v15234_v48  ;;  %11274 = vmatpush1.bf16.msra.mxu1 %v16315_v53  ;;  %v8698_v48 = vld [vmem:[#allocation2 + $0xc2] sm:$0xff]  ;;  %v15233_v53 = vpack.c.bf16 %v18690_v10, %v18552_v42 }
 0x3da   : > { %11275 = vmatprep.subr.bf16.mxu1 %v16320_v11 }
 0x3dc   : > { %10952 = vmatmul.mubr.bf16.gmra.mrb[144].mxu0 %v15240_v7  ;;  %v15243_v7 = vpack.c.bf16 %v8698_v48, %v8506_v24  ;;  %v16329_v24 = vld [vmem:[%s20449_s3 + $0x384] ss:$8 sps:$4 sm:$0xff]  }
 0x3dd   : > { %10961 = vmatprep.mubr.bf16.mxu0 %v15250_v8  ;;  %11276 = vmatpush1.bf16.msra.mxu1 %v16318_v55  ;;  %v18708_v8 = vld [vmem:[#allocation2 + $0xd2] sm:$0xff] }
 0x3de   : > { %11277 = vmatprep.subr.bf16.mxu1 %v16323_v38  ;;  %v18710_v55 = vld [vmem:[#allocation2 + $0x1b2] sm:$0xff]  ;;  %v18715_v38 = vld [vmem:[#allocation2 + $0x1a2] sm:$0xff]  ;;  %v15249_v58 = vpack.c.bf16 %v18708_v8, %v8698_v48 }
 0x3df   : > { %v16327_v48 = vld [vmem:[%s20449_s3 + $0x380] ss:$8 sps:$4 sm:$0xff]  }
 0x3e0   : > { %11135 = vmatmul.mubr.bf16.gmra.mrb[44].mxu1 %v15233_v53  ;;  %v15259_v53 = vpack.c.bf16 %v18600_v16, %v18568_v63 }
 0x3e1   : > { %11144 = vmatprep.mubr.bf16.mxu1 %v15243_v7  ;;  %11278 = vmatpush1.bf16.msra.mxu1 %v16321_v27  ;;  %v8700_v27 = vld [vmem:[#allocation2 + $0xe2] sm:$0xff]  ;;  %v8633_v7 = vld [vmem:[#allocation2 + $0xb1] sm:$0xff] }
 0x3e2   : > { %11279 = vmatprep.subr.bf16.mxu1 %v16326_v21  ;;  %v15242_v21 = vpack.c.bf16 %v18578_v31, %v8633_v7  ;;  %v15252_v11 = vpack.c.bf16 %v8700_v27, %v18708_v8  ;;  %v18740_v7 = vpack.c.bf16 %v8510_v49, %v8700_v27  ;;  %v15251_v27 = vpack.c.bf16 %v18590_v3, %v18560_v59 }
 0x3e4   : > { %10962 = vmatmul.mubr.bf16.gmra.mrb[148].mxu0 %v15249_v58  ;;  %v18733_v58 = vld [vmem:[#allocation2 + $0x120] sm:$0xff] }
 0x3e5   : > { %10971 = vmatprep.mubr.bf16.mxu0 %v15259_v53  ;;  %11280 = vmatpush1.bf16.msra.mxu1 %v16324_v40  ;;  %v16330_v40 = vld [vmem:[%s20449_s3 + $0x390] ss:$8 sps:$4 sm:$0xff]  }
 0x3e6   : > { %11281 = vmatprep.subr.bf16.mxu1 %v16329_v24  ;;  %v16335_v24 = vld [vmem:[%s20449_s3 + $0x3a4] ss:$8 sps:$4 sm:$0xff]  }
 0x3e8   : > { %11145 = vmatmul.mubr.bf16.gmra.mrb[48].mxu1 %v15242_v21  ;;  %v15268_v21 = vpack.c.bf16 %v18733_v58, %v18580_v33 }
 0x3e9   : > { %11154 = vmatprep.mubr.bf16.mxu1 %v15252_v11  ;;  %11282 = vmatpush1.bf16.msra.mxu1 %v16327_v48  ;;  %v8702_v48 = vld [vmem:[#allocation2 + $0x102] sm:$0xff] }
 0x3ea   : > { %v18738_v53 = vpop.f32.mrb[168].mxu0  ;;  %11283 = vmatprep.subr.bf16.mxu1 %v16332_v18  ;;  %v16333_v18 = vld [vmem:[%s20449_s3 + $0x3a0] ss:$8 sps:$4 sm:$0xff]  }
 0x3eb   : > { %20482 = vst [vmem:[#allocation16_spill] sm:$0xff] %v18738_v53  ;;  %v18745_v62 = vpop.f32.mrb[169].mxu0  ;;  %v8512_v53 = vld [vmem:[#allocation2 + $0x112] sm:$0xff] }
 0x3ec   : > { %20483 = vst [vmem:[#allocation17_spill] sm:$0xff] %v18745_v62  ;;  %v18749_v11 = vpop.f32.mrb[170].mxu0  ;;  %10972 = vmatmul.mubr.bf16.gmra.mrb[152].mxu0 %v18740_v7  ;;  %v16338_v62 = vld [vmem:[%s20449_s3 + $0x3b4] ss:$8 sps:$4 sm:$0xff]  }
 0x3ed   : > { %20484 = vst [vmem:[#allocation18_spill] sm:$0xff] %v18749_v11  ;;  %v18752_v57 = vpop.f32.mrb[171].mxu0  ;;  %10981 = vmatprep.mubr.bf16.mxu0 %v15268_v21  ;;  %11284 = vmatpush1.bf16.msra.mxu1 %v16330_v40  ;;  %v15261_v11 = vpack.c.bf16 %v8702_v48, %v8510_v49  ;;  %v16336_v40 = vld [vmem:[%s20449_s3 + $0x3b0] ss:$8 sps:$4 sm:$0xff]   ;;  %v18765_v21 = vpack.c.bf16 %v8512_v53, %v8702_v48  ;;  %v16339_v49 = vld [vmem:[%s20449_s3 + $0x3c0] ss:$8 sps:$4 sm:$0xff]  }
 0x3ee   : > { %20485 = vst [vmem:[#allocation19_spill] sm:$0xff] %v18752_v57  ;;  %11285 = vmatprep.subr.bf16.mxu1 %v16335_v24  ;;  %v16341_v24 = vld [vmem:[%s20449_s3 + $0x3c4] ss:$8 sps:$4 sm:$0xff]  }
 0x3ef   : > { %v18771_v57 = vld [vmem:[#allocation2 + $0x122] sm:$0xff] }
 0x3f0   : > { %11155 = vmatmul.mubr.bf16.gmra.mrb[52].mxu1 %v15251_v27  ;;  %v15270_v48 = vpack.c.bf16 %v18771_v57, %v8512_v53  ;;  %v16347_v27 = vld [vmem:[%s20449_s3 + $0x3e4] ss:$8 sps:$4 sm:$0xff]  }
 0x3f1   : > { %11164 = vmatprep.mubr.bf16.mxu1 %v15261_v11  ;;  %11286 = vmatpush1.bf16.msra.mxu1 %v16333_v18  ;;  %v15260_v11 = vpack.c.bf16 %v18592_v13, %v18570_v22  ;;  %v16342_v18 = vld [vmem:[%s20449_s3 + $0x3d0] ss:$8 sps:$4 sm:$0xff]  }
 0x3f2   : > { %11287 = vmatprep.subr.bf16.mxu1 %v16338_v62  ;;  %v16344_v62 = vld [vmem:[%s20449_s3 + $0x3d4] ss:$8 sps:$4 sm:$0xff]  }
 0x3f4   : > { %10982 = vmatmul.mubr.bf16.gmra.mrb[156].mxu0 %v18765_v21 }
 0x3f5   : > { %11288 = vmatpush1.bf16.msra.mxu1 %v16336_v40  ;;  %v18788_v40 = vld [vmem:[#allocation2 + $0x121] sm:$0xff] }
 0x3f6   : > { %11289 = vmatprep.subr.bf16.mxu1 %v16341_v24  ;;  %v16345_v24 = vld [vmem:[%s20449_s3 + $0x3e0] ss:$8 sps:$4 sm:$0xff]   ;;  %v15269_v53 = vpack.c.bf16 %v18788_v40, %v18572_v17 }
 0x3f8   : > { %11165 = vmatmul.mubr.bf16.gmra.mrb[56].mxu1 %v15260_v11  ;;  %v16350_v11 = vld [vmem:[%s20449_s3 + $0x3f4] ss:$8 sps:$4 sm:$0xff]  }
 0x3f9   : > { %11174 = vmatprep.mubr.bf16.mxu1 %v15270_v48  ;;  %11290 = vmatpush1.bf16.msra.mxu1 %v16339_v49  ;;  %v8705_v49 = vld [vmem:[#allocation2 + $0x152] sm:$0xff] }
 0x3fa   : > { %11291 = vmatprep.subr.bf16.mxu1 %v16344_v62  ;;  %v15279_v62 = vpack.c.bf16 %v18626_v60, %v8705_v49  ;;  %v16348_v48 = vld [vmem:[%s20449_s3 + $0x3f0] ss:$8 sps:$4 sm:$0xff]   ;;  %v15288_v49 = vpack.c.bf16 %v18668_v6, %v18614_v9 }
 0x3fd   : > { %11292 = vmatpush1.bf16.msra.mxu1 %v16342_v18  ;;  %v16353_v18 = vld [vmem:[%s20449_s3 + $0x404] ss:$8 sps:$4 sm:$0xff]  }
 0x3fe   : > { %11293 = vmatprep.subr.bf16.mxu1 %v16347_v27  ;;  %v15278_v27 = vpack.c.bf16 %v18612_v37, %v8641_v20  ;;  %v15296_v20 = vpack.c.bf16 %v18699_v15, %v18649_v61 }
 0x400   : > { %11175 = vmatmul.mubr.bf16.gmra.mrb[60].mxu1 %v15269_v53  ;;  %v15297_v53 = vpack.c.bf16 %v18715_v38, %v18663_v0 }
 0x401   : > { %11184 = vmatprep.mubr.bf16.mxu1 %v15279_v62  ;;  %11294 = vmatpush1.bf16.msra.mxu1 %v16345_v24  ;;  %v15287_v24 = vpack.c.bf16 %v18654_v39, %v18594_v34 }
 0x402   : > { %11295 = vmatprep.subr.bf16.mxu1 %v16350_v11  ;;  %v18812_v11 = vld [vmem:[#allocation2 + $0x1c2] sm:$0xff] }
 0x405   : > { %11296 = vmatpush1.bf16.msra.mxu1 %v16348_v48 }
 0x406   : > { %11458 = vmatprep.subr.bf16.mxu1 %v16353_v18  ;;  %v15306_v18 = vpack.c.bf16 %v18812_v11, %v18710_v55 }
 0x408   : > { %11185 = vmatmul.mubr.bf16.gmra.mrb[0].mxu1 %v15278_v27 }
 0x409   : > { %11194 = vmatprep.mubr.bf16.mxu1 %v15288_v49 }
 0x410   : > { %11195 = vmatmul.mubr.bf16.gmra.mrb[4].mxu1 %v15287_v24  ;;  %v18826_v24 = vld [vmem:[#allocation2 + $0x1c1] sm:$0xff] }
 0x411   : > { %11204 = vmatprep.mubr.bf16.mxu1 %v15297_v53  ;;  %v15305_v53 = vpack.c.bf16 %v18826_v24, %v18694_v32 }
 0x416   : > { %v18814_v62 = vpop.f32.mrb[172].mxu0 }
 0x417   : > { %20486 = vst [vmem:[#allocation20_spill] sm:$0xff] %v18814_v62  ;;  %v18818_v48 = vpop.f32.mrb[173].mxu0  ;;  %v8713_v62 = vld [vmem:[#allocation2 + $0x1f2] sm:$0xff] }
 0x418   : > { %20487 = vst [vmem:[#allocation21_spill] sm:$0xff] %v18818_v48  ;;  %v18822_v27 = vpop.f32.mrb[174].mxu0  ;;  %11205 = vmatmul.mubr.bf16.gmra.mrb[8].mxu1 %v15296_v20  ;;  %v15315_v46 = vpack.c.bf16 %v18499_v35, %v8713_v62  ;;  %v8649_v48 = vld [vmem:[#allocation2 + $0x1f1] sm:$0xff]  ;;  %v20490_v20 = vpack.c.bf16 %v18511_v54, %v18491_v30  ;;  %v20491_v35 = vpack.c.bf16 %v18530_v23, %v18508_v26 }
 0x419   : > { %20488 = vst [vmem:[#allocation22_spill] sm:$0xff] %v18822_v27  ;;  %v18824_v49 = vpop.f32.mrb[175].mxu0  ;;  %11214 = vmatprep.mubr.bf16.mxu1 %v15306_v18  ;;  %v15314_v36 = vpack.c.bf16 %v18444_v50, %v8649_v48  ;;  %v18837_v18 = vld [vmem:[#allocation2 + $0x211] sm:$0xff]  ;;  %v18846_v50 = vld [vmem:[#allocation2 + $0x262] sm:$0xff] }
 0x41a   : > { %20489 = vst [vmem:[#allocation23_spill] sm:$0xff] %v18824_v49  ;;  %v18835_v49 = vld [vmem:[#allocation2 + $0x221] sm:$0xff]  ;;  %v15342_v54 = vpack.c.bf16 %v18846_v50, %v18536_v45  ;;  %v18854_v62 = vld [vmem:[#allocation2 + $0x251] sm:$0xff] }
 0x41b   : > { %v15323_v27 = vpack.c.bf16 %v18835_v49, %v18837_v18  ;;  %v15341_v26 = vpack.c.bf16 %v18525_v29, %v18854_v62  ;;  %v16351_v45 = vld [vmem:[%s20449_s3 + $0x400] ss:$8 sps:$4 sm:$0xff]   ;;  %v16356_v29 = vld [vmem:[%s20449_s3 + $0x414] ss:$8 sps:$4 sm:$0xff]  }
 0x420   : > { %11215 = vmatmul.mubr.bf16.gmra.mrb[12].mxu1 %v15305_v53  ;;  %v20492_v53 = vpack.c.bf16 %v18534_v14, %v18538_v43  ;;  %v16354_v14 = vld [vmem:[%s20449_s3 + $0x410] ss:$8 sps:$4 sm:$0xff]   ;;  %v16359_v43 = vld [vmem:[%s20449_s3 + $0x424] ss:$8 sps:$4 sm:$0xff]  }
 0x421   : > { %11224 = vmatprep.mubr.bf16.mxu1 %v15315_v46  ;;  %v18844_v46 = vld [vmem:[#allocation2 + $0x241] sm:$0xff] }
 0x428   : > { %11225 = vmatmul.mubr.bf16.gmra.mrb[16].mxu1 %v15314_v36  ;;  %v18848_v36 = vld [vmem:[#allocation2 + $0x231] sm:$0xff] }
 0x429   : > { %11234 = vmatprep.mubr.bf16.mxu1 %v20490_v20  ;;  %v15332_v30 = vpack.c.bf16 %v18844_v46, %v18848_v36 }
 0x430   : > { %11235 = vmatmul.mubr.bf16.gmra.mrb[20].mxu1 %v15323_v27 }
 0x431   : > { %11244 = vmatprep.mubr.bf16.mxu1 %v20491_v35  ;;  %v20493_v35 = vpack.c.bf16 %v18532_v28, %v18517_v19  ;;  %v16357_v19 = vld [vmem:[%s20449_s3 + $0x420] ss:$8 sps:$4 sm:$0xff]   ;;  %v16362_v28 = vld [vmem:[%s20449_s3 + $0x434] ss:$8 sps:$4 sm:$0xff]  }
 0x438   : > { %11245 = vmatmul.mubr.bf16.gmra.mrb[24].mxu1 %v15332_v30  ;;  %v20494_v30 = vpack.c.bf16 %v18542_v52, %v18546_v2  ;;  %v20495_v52 = vpack.c.bf16 %v18540_v41, %v18528_v1  ;;  %v20496_v2 = vpack.c.bf16 %v18552_v42, %v18550_v25  ;;  %v16363_v1 = vld [vmem:[%s20449_s3 + $0x440] ss:$8 sps:$4 sm:$0xff]   ;;  %v16368_v41 = vld [vmem:[%s20449_s3 + $0x454] ss:$8 sps:$4 sm:$0xff]   ;;  %v20497_v42 = vpack.c.bf16 %v18548_v5, %v18556_v44 }
 0x439   : > { %11254 = vmatprep.mubr.bf16.mxu1 %v15342_v54  ;;  %v16360_v54 = vld [vmem:[%s20449_s3 + $0x430] ss:$8 sps:$4 sm:$0xff]   ;;  %v16374_v44 = vld [vmem:[%s20449_s3 + $0x474] ss:$8 sps:$4 sm:$0xff]  }
 0x43f   : > { %v18858_v23 = vpop.f32.mrb[176].mxu0 }
 0x440   : > { %v18860_v48 = vpop.f32.mrb[177].mxu0  ;;  %11255 = vmatmul.mubr.bf16.gmra.mrb[28].mxu1 %v15341_v26  ;;  %v16365_v26 = vld [vmem:[%s20449_s3 + $0x444] ss:$8 sps:$4 sm:$0xff]  }
 0x441   : > { %v18862_v27 = vpop.f32.mrb[178].mxu0  ;;  %11297 = vmatprep.mubr.bf16.mxu1 %v20492_v53  ;;  %v8825_v53 = vld [vmem:[#allocation2 + $0x91] sm:$0xff] }
 0x442   : > { %v18867_v20 = vpop.f32.mrb[179].mxu0  ;;  %v15236_v25 = vpack.c.bf16 %v8825_v53, %v18690_v10  ;;  %v16369_v10 = vld [vmem:[%s20449_s3 + $0x460] ss:$8 sps:$4 sm:$0xff]   ;;  %v20505_v53 = vpack.c.bf16 %v18649_v61, %v18654_v39  ;;  %v8775_v39 = vld [vmem:[#allocation2 + $0x1b0] sm:$0xff] }
 0x448   : > { %11298 = vmatmul.mubr.bf16.vlgmr.msra.gmra.mrb[32].mxu1 %v20493_v35  ;;  %v18924_v35 = vld [vmem:[#allocation2] sm:$0xff] }
 0x449   : > { %11459 = vmatpush1.bf16.msra.mxu1 %v16351_v45  ;;  %11307 = vmatprep.mubr.bf16.mxu1 %v20494_v30  ;;  %v16366_v45 = vld [vmem:[%s20449_s3 + $0x450] ss:$8 sps:$4 sm:$0xff]   ;;  %v15235_v5 = vpack.c.bf16 %v18924_v35, %v18639_v12  ;;  %v20498_v30 = vpack.c.bf16 %v18560_v59, %v18578_v31  ;;  %v20499_v12 = vpack.c.bf16 %v18558_v51, %v18566_v47 }
 0x44a   : > { %11460 = vmatprep.subr.bf16.mxu1 %v16356_v29  ;;  %v16371_v29 = vld [vmem:[%s20449_s3 + $0x464] ss:$8 sps:$4 sm:$0xff]   ;;  %v20502_v51 = vpack.c.bf16 %v18572_v17, %v18592_v13  ;;  %v8833_v47 = vld [vmem:[#allocation2 + $0x131] sm:$0xff]  ;;  %v20504_v17 = vpack.c.bf16 %v18594_v34, %v18612_v37 }
 0x44b   : > { %v8771_v13 = vld [vmem:[#allocation2 + $0x170] sm:$0xff]  ;;  %v8772_v37 = vld [vmem:[#allocation2 + $0x180] sm:$0xff] }
 0x44c   : > { %v8773_v34 = vld [vmem:[#allocation2 + $0x190] sm:$0xff] }
 0x44d   : > { %11461 = vmatpush1.bf16.msra.mxu1 %v16354_v14  ;;  %v16372_v14 = vld [vmem:[%s20449_s3 + $0x470] ss:$8 sps:$4 sm:$0xff]  }
 0x44e   : > { %11462 = vmatprep.subr.bf16.mxu1 %v16359_v43  ;;  %v20500_v43 = vpack.c.bf16 %v18570_v22, %v18590_v3  ;;  %v15272_v22 = vpack.c.bf16 %v8833_v47, %v18788_v40  ;;  %v20503_v3 = vpack.c.bf16 %v18580_v33, %v18600_v16  ;;  %v8770_v33 = vld [vmem:[#allocation2 + $0x160] sm:$0xff] }
 0x44f   : > { %v15280_v16 = vpack.c.bf16 %v8771_v13, %v8770_v33  ;;  %v8842_v47 = vld [vmem:[#allocation2 + $0x201] sm:$0xff]  ;;  %v8779_v13 = vld [vmem:[#allocation2 + $0x210] sm:$0xff] }
 0x450   : > { %11308 = vmatmul.mubr.bf16.gmra.mrb[36].mxu1 %v20495_v52  ;;  %v20501_v52 = vpack.c.bf16 %v18568_v63, %v18576_v4  ;;  %v8778_v33 = vld [vmem:[#allocation2 + $0x200] sm:$0xff] }
 0x451   : > { %11317 = vmatprep.mubr.bf16.mxu1 %v20496_v2  ;;  %11463 = vmatpush1.bf16.msra.mxu1 %v16357_v19  ;;  %v15271_v2 = vpack.c.bf16 %v18924_v35, %v18733_v58 }
 0x452   : > { %11464 = vmatprep.subr.bf16.mxu1 %v16362_v28 }
 0x455   : > { %11465 = vmatpush1.bf16.msra.mxu1 %v16360_v54 }
 0x456   : > { %11466 = vmatprep.subr.bf16.mxu1 %v16365_v26 }
 0x458   : > { %11318 = vmatmul.mubr.bf16.gmra.mrb[40].mxu1 %v20497_v42 }
 0x459   : > { %11327 = vmatprep.mubr.bf16.mxu1 %v15236_v25  ;;  %11467 = vmatpush1.bf16.msra.mxu1 %v16363_v1  ;;  %v15289_v25 = vpack.c.bf16 %v8773_v34, %v8772_v37 }
 0x45a   : > { %11468 = vmatprep.subr.bf16.mxu1 %v16368_v41 }
 0x45d   : > { %11469 = vmatpush1.bf16.msra.mxu1 %v16366_v45 }
 0x45e   : > { %11470 = vmatprep.subr.bf16.mxu1 %v16371_v29  ;;  %v20506_v29 = vpack.c.bf16 %v18694_v32, %v18699_v15  ;;  %v8776_v15 = vld [vmem:[#allocation2 + $0x1c0] sm:$0xff] }
 0x460   : > { %11328 = vmatmul.mubr.bf16.gmra.mrb[44].mxu1 %v15235_v5  ;;  %v8841_v5 = vld [vmem:[#allocation2 + $0x1d1] sm:$0xff] }
 0x461   : > { %11337 = vmatprep.mubr.bf16.mxu1 %v20498_v30  ;;  %11471 = vmatpush1.bf16.msra.mxu1 %v16369_v10 }
 0x462   : > { %11472 = vmatprep.subr.bf16.mxu1 %v16374_v44  ;;  %v8774_v44 = vld [vmem:[#allocation2 + $0x1a0] sm:$0xff] }
 0x463   : > { %v15298_v30 = vpack.c.bf16 %v8775_v39, %v8774_v44  ;;  %v8780_v39 = vld [vmem:[#allocation2 + $0x220] sm:$0xff]  ;;  %v15335_v44 = vpack.c.bf16 %v18854_v62, %v18844_v46 }
 0x465   : > { %11473 = vmatpush1.bf16.msra.mxu1 %v16372_v14  ;;  %v15308_v14 = vpack.c.bf16 %v8841_v5, %v18826_v24 }
 0x468   : > { %11338 = vmatmul.mubr.bf16.gmra.mrb[48].mxu1 %v20499_v12 }
 0x469   : > { %11347 = vmatprep.mubr.bf16.mxu1 %v20500_v43 }
 0x46b   : > { %v18943_v19 = vpop.f32.mrb[180].mxu0 }
 0x46c   : > { %v18945_v28 = vpop.f32.mrb[181].mxu0 }
 0x46d   : > { %v18947_v59 = vpop.f32.mrb[182].mxu0 }
 0x46e   : > { %v18949_v31 = vpop.f32.mrb[183].mxu0 }
 0x470   : > { %11348 = vmatmul.mubr.bf16.gmra.mrb[52].mxu1 %v20501_v52 }
 0x471   : > { %11357 = vmatprep.mubr.bf16.mxu1 %v20502_v51  ;;  %v15307_v51 = vpack.c.bf16 %v18924_v35, %v8776_v15  ;;  %v8783_v15 = vld [vmem:[#allocation2 + $0x250] sm:$0xff] }
 0x478   : > { %11358 = vmatmul.mubr.bf16.gmra.mrb[56].mxu1 %v20503_v3 }
 0x479   : > { %11367 = vmatprep.mubr.bf16.mxu1 %v15272_v22  ;;  %v15317_v22 = vpack.c.bf16 %v18837_v18, %v8842_v47  ;;  %v8849_v47 = vld [vmem:[#allocation2 + $0x271] sm:$0xff] }
 0x47f   : > { %v18963_v54 = vpop.f32.mrb[184].mxu0 }
 0x480   : > { %v18965_v26 = vpop.f32.mrb[185].mxu0  ;;  %11368 = vmatmul.mubr.bf16.gmra.mrb[60].mxu1 %v15271_v2 }
 0x481   : > { %v18967_v63 = vpop.f32.mrb[186].mxu0  ;;  %11377 = vmatprep.mubr.bf16.mxu1 %v20504_v17 }
 0x482   : > { %v18972_v4 = vpop.f32.mrb[187].mxu0 }
 0x487   : > { %v18974_v40 = vpop.f32.mrb[188].mxu0 }
 0x488   : > { %11378 = vmatmul.mubr.bf16.gmra.mrb[0].mxu1 %v15280_v16  ;;  %v18976_v58 = vpop.f32.mrb[189].mxu0  ;;  %v15316_v16 = vpack.c.bf16 %v8779_v13, %v8778_v33 }
 0x489   : > { %11387 = vmatprep.mubr.bf16.mxu1 %v20505_v53  ;;  %v18981_v1 = vpop.f32.mrb[190].mxu0  ;;  %v15326_v53 = vpack.c.bf16 %v18848_v36, %v18835_v49 }
 0x48a   : > { %v18983_v41 = vpop.f32.mrb[191].mxu0 }
 0x48f   : > { %v18985_v42 = vpop.f32.mrb[128].mxu0 }
 0x490   : > { %11388 = vmatmul.mubr.bf16.gmra.mrb[4].mxu1 %v15289_v25  ;;  %v18987_v45 = vpop.f32.mrb[129].mxu0 }
 0x491   : > { %11397 = vmatprep.mubr.bf16.mxu1 %v20506_v29  ;;  %v18992_v10 = vpop.f32.mrb[130].mxu0  ;;  %v8781_v29 = vld [vmem:[#allocation2 + $0x230] sm:$0xff] }
 0x492   : > { %v18994_v61 = vpop.f32.mrb[131].mxu0  ;;  %v15325_v5 = vpack.c.bf16 %v8781_v29, %v8780_v39  ;;  %v8784_v29 = vld [vmem:[#allocation2 + $0x260] sm:$0xff] }
 0x493   : > { %v15343_v39 = vpack.c.bf16 %v18924_v35, %v8784_v29 }
 0x497   : > { %v18997_v12 = vpop.f32.mrb[132].mxu0 }
 0x498   : > { %11398 = vmatmul.mubr.bf16.gmra.mrb[8].mxu1 %v15298_v30  ;;  %v18999_v43 = vpop.f32.mrb[133].mxu0 }
 0x499   : > { %11407 = vmatprep.mubr.bf16.mxu1 %v15308_v14  ;;  %v19001_v52 = vpop.f32.mrb[134].mxu0 }
 0x49a   : > { %v19003_v32 = vpop.f32.mrb[135].mxu0 }
 0x49f   : > { %v19007_v3 = vpop.f32.mrb[136].mxu0 }
 0x4a0   : > { %11408 = vmatmul.mubr.bf16.gmra.mrb[12].mxu1 %v15307_v51  ;;  %v19009_v24 = vpop.f32.mrb[137].mxu0  ;;  %v8848_v51 = vld [vmem:[#allocation2 + $0x261] sm:$0xff] }
 0x4a1   : > { %11417 = vmatprep.mubr.bf16.mxu1 %v15317_v22  ;;  %v19011_v2 = vpop.f32.mrb[138].mxu0  ;;  %v8782_v22 = vld [vmem:[#allocation2 + $0x240] sm:$0xff]  ;;  %v15344_v33 = vpack.c.bf16 %v8849_v47, %v8848_v51  ;;  %v16455_v51 = vmov 0  }
 0x4a2   : > { %v19013_v17 = vpop.f32.mrb[139].mxu0  ;;  %v15334_v13 = vpack.c.bf16 %v8783_v15, %v8782_v22  ;;  %v8883_v22 = vld [vmem:[#allocation2 + $0x32] sm:$0xff] }
 0x4a7   : > { %v19017_v34 = vpop.f32.mrb[140].mxu0 }
 0x4a8   : > { %11418 = vmatmul.mubr.bf16.gmra.mrb[16].mxu1 %v15316_v16  ;;  %v19019_v18 = vpop.f32.mrb[141].mxu0 }
 0x4a9   : > { %11427 = vmatprep.mubr.bf16.mxu1 %v15326_v53  ;;  %v19021_v37 = vpop.f32.mrb[142].mxu0 }
 0x4aa   : > { %v19023_v25 = vpop.f32.mrb[143].mxu0 }
 0x4af   : > { %v19027_v30 = vpop.f32.mrb[144].mxu0 }
 0x4b0   : > { %11428 = vmatmul.mubr.bf16.gmra.mrb[20].mxu1 %v15325_v5  ;;  %v19029_v49 = vpop.f32.mrb[145].mxu0 }
 0x4b1   : > { %11437 = vmatprep.mubr.bf16.mxu1 %v15335_v44  ;;  %v19031_v36 = vpop.f32.mrb[146].mxu0 }
 0x4b2   : > { %v19033_v14 = vpop.f32.mrb[147].mxu0 }
 0x4b7   : > { %v19035_v16 = vpop.f32.mrb[148].mxu0 }
 0x4b8   : > { %11438 = vmatmul.mubr.bf16.gmra.mrb[24].mxu1 %v15334_v13  ;;  %v19037_v46 = vpop.f32.mrb[149].mxu0  ;;  %v8882_v13 = vld [vmem:[#allocation2 + $0x22] sm:$0xff] }
 0x4b9   : > { %20507 = vst [vmem:[#allocation24_spill] sm:$0xff] %v19037_v46  ;;  %11447 = vmatprep.mubr.bf16.mxu1 %v15344_v33  ;;  %v19039_v62 = vpop.f32.mrb[150].mxu0  ;;  %v15210_v33 = vpack.c.bf16 %v8883_v22, %v8882_v13  ;;  %v8888_v22 = vld [vmem:[#allocation2 + $0x82] sm:$0xff]  ;;  %v8889_v13 = vld [vmem:[#allocation2 + $0x92] sm:$0xff] }
 0x4ba   : > { %20508 = vst [vmem:[#allocation25_spill] sm:$0xff] %v19039_v62  ;;  %v19041_v53 = vpop.f32.mrb[151].mxu0 }
 0x4bb   : > { %20509 = vst [vmem:[#allocation26_spill] sm:$0xff] %v19041_v53 }
 0x4bf   : > { %v19044_v5 = vpop.f32.mrb[152].mxu0 }
 0x4c0   : > { %20510 = vst [vmem:[#allocation27_spill] sm:$0xff] %v19044_v5  ;;  %11448 = vmatmul.mubr.bf16.gmra.mrb[28].mxu1 %v15343_v39  ;;  %v19046_v44 = vpop.f32.mrb[153].mxu0  ;;  %v8885_v39 = vld [vmem:[#allocation2 + $0x52] sm:$0xff] }
 0x4c1   : > { %20511 = vst [vmem:[#allocation28_spill] sm:$0xff] %v19046_v44  ;;  %v19048_v15 = vpop.f32.mrb[154].mxu0  ;;  %11490 = vmatprep.mubr.bf16.mxu1 %v16455_v51  ;;  %v8884_v44 = vld [vmem:[#allocation2 + $0x42] sm:$0xff]  ;;  %v8887_v5 = vld [vmem:[#allocation2 + $0x72] sm:$0xff] }
 0x4c2   : > { %20512 = vst [vmem:[#allocation29_spill] sm:$0xff] %v19048_v15  ;;  %v19050_v47 = vpop.f32.mrb[155].mxu0  ;;  %v15219_v15 = vpack.c.bf16 %v8885_v39, %v8884_v44  ;;  %v8897_v44 = vld [vmem:[#allocation2 + $0x132] sm:$0xff]  ;;  %v9666_v39 = vld [vmem:[%s20450_s4] sm:$0x3] }
 0x4c3   : > { %20513 = vst [vmem:[#allocation30_spill] sm:$0xff] %v19050_v47  ;;  %v8886_v47 = vld [vmem:[#allocation2 + $0x62] sm:$0xff] }
 0x4c4   : > { %v15228_v46 = vpack.c.bf16 %v8887_v5, %v8886_v47  ;;  %v20516_v5 = vpack.c.bf16 %v18614_v9, %v18626_v60  ;;  %v8909_v9 = vld [vmem:[#allocation2 + $0x232] sm:$0xff]  ;;  %v8908_v47 = vld [vmem:[#allocation2 + $0x222] sm:$0xff] }
 0x4c7   : > { %v19052_v62 = vpop.f32.mrb[156].mxu0 }
 0x4c8   : > { %11491 = vmatmul.mubr.bf16.vlgmr.msra.gmra.mrb[32].mxu1 %v15210_v33  ;;  %v19054_v53 = vpop.f32.mrb[157].mxu0  ;;  %v15237_v33 = vpack.c.bf16 %v8889_v13, %v8888_v22  ;;  %v20519_v22 = vld [vmem:[#allocation6_spill] sm:$0xff] }
 0x4c9   : > { %20514 = vst [vmem:[#allocation31_spill] sm:$0xff] %v19054_v53  ;;  %v19056_v35 = vpop.f32.mrb[158].mxu0  ;;  %11500 = vmatprep.mubr.bf16.mxu1 %v16455_v51  ;;  %v8890_v53 = vld [vmem:[#allocation2 + $0xc2] sm:$0xff]  ;;  %v20460_v13 = vsub.s32 1, %v20519_v22 }
 0x4ca   : > { %20515 = vst [vmem:[#allocation32_spill] sm:$0xff] %v19056_v35  ;;  %v19058_v29 = vpop.f32.mrb[159].mxu0  ;;  %v15246_v35 = vpack.c.bf16 %v18708_v8, %v8890_v53  ;;  %v20517_v8 = vpack.c.bf16 %v18663_v0, %v18668_v6  ;;  %v8907_v53 = vld [vmem:[#allocation2 + $0x212] sm:$0xff]  ;;  %v15327_v6 = vpack.c.bf16 %v8909_v9, %v8908_v47  ;;  %v20532_v47 = vld [vmem:[#allocation14_spill] sm:$0xff] }
 0x4cb   : > { %v8911_v0 = vld [vmem:[#allocation2 + $0x252] sm:$0xff] }
 0x4d0   : > { %11501 = vmatmul.mubr.bf16.gmra.mrb[36].mxu1 %v15219_v15  ;;  %v8906_v15 = vld [vmem:[#allocation2 + $0x202] sm:$0xff] }
 0x4d1   : > { %11510 = vmatprep.mubr.bf16.mxu1 %v16455_v51  ;;  %v15318_v60 = vpack.c.bf16 %v8907_v53, %v8906_v15  ;;  %v20528_v53 = vld [vmem:[#allocation12_spill] sm:$0xff] }
 0x4d8   : > { %11511 = vmatmul.mubr.bf16.gmra.mrb[40].mxu1 %v15228_v46  ;;  %v15273_v46 = vpack.c.bf16 %v8897_v44, %v18771_v57  ;;  %v19084_v44 = vrot.slane %v9666_v39, %v20460_v13  ;;  %v20550_v13 = vld [vmem:[#allocation23_spill] sm:$0xff] }
 0x4d9   : > { %11520 = vmatprep.mubr.bf16.mxu1 %v16455_v51 }
 0x4e0   : > { %11521 = vmatmul.mubr.bf16.gmra.mrb[44].mxu1 %v15237_v33  ;;  %v19080_v33 = vrot.slane %v9666_v39, %v16841_v56 }
 0x4e1   : > { %11530 = vmatprep.mubr.bf16.mxu1 %v16455_v51 }
 0x4e2   : > { %v19104_v15 = vadd.f32 %v20528_v53, %v19080_v33  ;;  %v20544_v53 = vld [vmem:[#allocation20_spill] sm:$0xff] }
 0x4e4   : > { %20529 = vst [vmem:[#allocation12_spill] sm:$0xff] %v19104_v15 }
 0x4e8   : > { %11531 = vmatmul.mubr.bf16.gmra.mrb[48].mxu1 %v15246_v35  ;;  %v8910_v35 = vld [vmem:[#allocation2 + $0x242] sm:$0xff] }
 0x4e9   : > { %11540 = vmatprep.mubr.bf16.mxu1 %v16455_v51 }
 0x4f0   : > { %11541 = vmatmul.mubr.bf16.gmra.mrb[52].mxu1 %v18740_v7  ;;  %v20518_v7 = vpack.c.bf16 %v18710_v55, %v18715_v38  ;;  %v15336_v55 = vpack.c.bf16 %v8911_v0, %v8910_v35  ;;  %v8913_v38 = vld [vmem:[#allocation2 + $0x272] sm:$0xff] }
 0x4f1   : > { %11550 = vmatprep.mubr.bf16.mxu1 %v16455_v51  ;;  %v20534_v0 = vld [vmem:[#allocation15_spill] sm:$0xff] }
 0x4f2   : > { %v19116_v35 = vadd.f32 %v20534_v0, %v19084_v44 }
 0x4f4   : > { %20535 = vst [vmem:[#allocation15_spill] sm:$0xff] %v19116_v35 }
 0x4f8   : > { %11551 = vmatmul.mubr.bf16.gmra.mrb[56].mxu1 %v18765_v21  ;;  %v8905_v21 = vld [vmem:[#allocation2 + $0x1d2] sm:$0xff] }
 0x4f9   : > { %11560 = vmatprep.mubr.bf16.mxu1 %v16455_v51  ;;  %v15309_v57 = vpack.c.bf16 %v8905_v21, %v18812_v11  ;;  %v15345_v11 = vpack.c.bf16 %v8913_v38, %v18846_v50  ;;  %v20522_v50 = vld [vmem:[#allocation9_spill] sm:$0xff]  ;;  %v20526_v21 = vld [vmem:[#allocation11_spill] sm:$0xff] }
 0x500   : > { %11561 = vmatmul.mubr.bf16.gmra.mrb[60].mxu1 %v15273_v46  ;;  %v20520_v46 = vld [vmem:[#allocation8_spill] sm:$0xff] }
 0x501   : > { %11570 = vmatprep.mubr.bf16.mxu1 %v16455_v51 }
 0x508   : > { %11571 = vmatmul.mubr.bf16.gmra.mrb[0].mxu1 %v20516_v5  ;;  %v19092_v5 = vadd.f32 %v20522_v50, %v19084_v44 }
 0x509   : > { %11580 = vmatprep.mubr.bf16.mxu1 %v16455_v51 }
 0x50a   : > { %20523 = vst [vmem:[#allocation9_spill] sm:$0xff] %v19092_v5 }
 0x510   : > { %11581 = vmatmul.mubr.bf16.gmra.mrb[4].mxu1 %v20517_v8  ;;  %v20524_v8 = vld [vmem:[#allocation10_spill] sm:$0xff] }
 0x511   : > { %11590 = vmatprep.mubr.bf16.mxu1 %v16455_v51 }
 0x518   : > { %11591 = vmatmul.mubr.bf16.gmra.mrb[8].mxu1 %v20518_v7  ;;  %v19096_v7 = vadd.f32 %v20524_v8, %v19080_v33  ;;  %v20542_v8 = vld [vmem:[#allocation19_spill] sm:$0xff] }
 0x519   : > { %11600 = vmatprep.mubr.bf16.mxu1 %v16455_v51 }
 0x51a   : > { %20525 = vst [vmem:[#allocation10_spill] sm:$0xff] %v19096_v7 }
 0x520   : > { %11601 = vmatmul.mubr.bf16.gmra.mrb[12].mxu1 %v15309_v57  ;;  %v19100_v57 = vadd.f32 %v20526_v21, %v19084_v44  ;;  %v19132_v21 = vadd.f32 %v20542_v8, %v19084_v44  ;;  %v19152_v8 = vadd.f32 %v18858_v23, %v19080_v33  ;;  %v19172_v23 = vadd.f32 %v18945_v28, %v19084_v44 }
 0x521   : > { %11610 = vmatprep.mubr.bf16.mxu1 %v16455_v51  ;;  %v19192_v28 = vadd.f32 %v18967_v63, %v19080_v33  ;;  %v19212_v63 = vadd.f32 %v18983_v41, %v19084_v44  ;;  %v19228_v41 = vadd.f32 %v19001_v52, %v19080_v33 }
 0x522   : > { %20527 = vst [vmem:[#allocation11_spill] sm:$0xff] %v19100_v57  ;;  %20543 = vst [vmem:[#allocation19_spill] sm:$0xff] %v19132_v21 }
 0x523   : > { %20552 = vst [vmem:[#allocation33_spill] sm:$0xff] %v19152_v8  ;;  %20557 = vst [vmem:[#allocation38_spill] sm:$0xff] %v19172_v23  ;;  %v20575_v23 = vld [vmem:[#allocation30_spill] sm:$0xff] }
 0x524   : > { %20562 = vst [vmem:[#allocation43_spill] sm:$0xff] %v19192_v28  ;;  %20567 = vst [vmem:[#allocation48_spill] sm:$0xff] %v19212_v63  ;;  %v19252_v63 = vadd.f32 %v19017_v34, %v19080_v33 }
 0x528   : > { %11611 = vmatmul.mubr.bf16.gmra.mrb[16].mxu1 %v15318_v60  ;;  %v20530_v60 = vld [vmem:[#allocation13_spill] sm:$0xff] }
 0x529   : > { %11620 = vmatprep.mubr.bf16.mxu1 %v16455_v51  ;;  %v19108_v9 = vadd.f32 %v20530_v60, %v19084_v44  ;;  %v19136_v60 = vadd.f32 %v20544_v53, %v19080_v33  ;;  %v19156_v53 = vadd.f32 %v18860_v48, %v19084_v44  ;;  %v19176_v48 = vadd.f32 %v18947_v59, %v19080_v33 }
 0x52a   : > { %v19196_v59 = vadd.f32 %v18972_v4, %v19084_v44  ;;  %v15725_v4 = vadd.f32 %v18985_v42, %v19080_v33  ;;  %v19232_v42 = vadd.f32 %v19003_v32, %v19084_v44 }
 0x52b   : > { %20531 = vst [vmem:[#allocation13_spill] sm:$0xff] %v19108_v9  ;;  %20545 = vst [vmem:[#allocation20_spill] sm:$0xff] %v19136_v60 }
 0x52c   : > { %20553 = vst [vmem:[#allocation34_spill] sm:$0xff] %v19156_v53  ;;  %20558 = vst [vmem:[#allocation39_spill] sm:$0xff] %v19176_v48 }
 0x52d   : > { %20563 = vst [vmem:[#allocation44_spill] sm:$0xff] %v19196_v59  ;;  %v15727_v59 = vadd.f32 %v18987_v45, %v19084_v44  ;;  %v19236_v45 = vadd.f32 %v19007_v3, %v19080_v33  ;;  %v19256_v3 = vadd.f32 %v19019_v18, %v19084_v44  ;;  %v19272_v18 = vadd.f32 %v19029_v49, %v19084_v44 }
 0x530   : > { %11621 = vmatmul.mubr.bf16.gmra.mrb[20].mxu1 %v15327_v6  ;;  %v19112_v6 = vadd.f32 %v20532_v47, %v19080_v33  ;;  %v20546_v47 = vld [vmem:[#allocation21_spill] sm:$0xff] }
 0x531   : > { %11630 = vmatprep.mubr.bf16.mxu1 %v16455_v51  ;;  %v19140_v0 = vadd.f32 %v20546_v47, %v19084_v44  ;;  %v19160_v47 = vadd.f32 %v18862_v27, %v19080_v33  ;;  %v19180_v27 = vadd.f32 %v18949_v31, %v19084_v44  ;;  %v19200_v31 = vadd.f32 %v18974_v40, %v19080_v33 }
 0x532   : > { %20533 = vst [vmem:[#allocation14_spill] sm:$0xff] %v19112_v6  ;;  %v15729_v40 = vadd.f32 %v18992_v10, %v19080_v33 }
 0x533   : > { %20547 = vst [vmem:[#allocation21_spill] sm:$0xff] %v19140_v0  ;;  %20554 = vst [vmem:[#allocation35_spill] sm:$0xff] %v19160_v47 }
 0x534   : > { %20559 = vst [vmem:[#allocation40_spill] sm:$0xff] %v19180_v27  ;;  %20564 = vst [vmem:[#allocation45_spill] sm:$0xff] %v19200_v31 }
 0x538   : > { %11631 = vmatmul.mubr.bf16.gmra.mrb[24].mxu1 %v15336_v55  ;;  %v20536_v55 = vld [vmem:[#allocation16_spill] sm:$0xff] }
 0x539   : > { %11640 = vmatprep.mubr.bf16.mxu1 %v16455_v51  ;;  %v19088_v51 = vadd.f32 %v20520_v46, %v19080_v33  ;;  %v19120_v38 = vadd.f32 %v20536_v55, %v19080_v33  ;;  %v20540_v46 = vld [vmem:[#allocation18_spill] sm:$0xff] }
 0x53a   : > { %v19128_v50 = vadd.f32 %v20540_v46, %v19080_v33  ;;  %v20548_v55 = vld [vmem:[#allocation22_spill] sm:$0xff]  ;;  %v19148_v46 = vadd.f32 %v20550_v13, %v19084_v44  ;;  %v19168_v13 = vadd.f32 %v18943_v19, %v19080_v33  ;;  %v19188_v19 = vadd.f32 %v18965_v26, %v19084_v44 }
 0x53b   : > { %20521 = vst [vmem:[#allocation8_spill] sm:$0xff] %v19088_v51  ;;  %20537 = vst [vmem:[#allocation16_spill] sm:$0xff] %v19120_v38  ;;  %v19208_v26 = vadd.f32 %v18981_v1, %v19080_v33  ;;  %v15733_v1 = vadd.f32 %v18997_v12, %v19080_v33  ;;  %v19244_v12 = vadd.f32 %v19011_v2, %v19080_v33 }
 0x53c   : > { %20541 = vst [vmem:[#allocation18_spill] sm:$0xff] %v19128_v50  ;;  %20551 = vst [vmem:[#allocation23_spill] sm:$0xff] %v19148_v46  ;;  %v19327_v46 = vsub.s32 2, %v20519_v22 }
 0x53d   : > { %20556 = vst [vmem:[#allocation37_spill] sm:$0xff] %v19168_v13  ;;  %20561 = vst [vmem:[#allocation42_spill] sm:$0xff] %v19188_v19  ;;  %v20571_v19 = vld [vmem:[#allocation27_spill] sm:$0xff]  ;;  %v19314_v13 = vadd.f32 %v20575_v23, %v19084_v44 }
 0x53e   : > { %20566 = vst [vmem:[#allocation47_spill] sm:$0xff] %v19208_v26  ;;  %v15735_v26 = vadd.f32 %v18999_v43, %v19084_v44  ;;  %v19248_v43 = vadd.f32 %v19013_v17, %v19084_v44  ;;  %v19264_v17 = vadd.f32 %v19023_v25, %v19084_v44  ;;  %v19280_v25 = vadd.f32 %v19033_v14, %v19084_v44 }
 0x540   : > { %11641 = vmatmul.mubr.bf16.gmra.mrb[28].mxu1 %v15345_v11  ;;  %v20538_v11 = vld [vmem:[#allocation17_spill] sm:$0xff] }
 0x541   : > { %v19124_v39 = vadd.f32 %v20538_v11, %v19084_v44  ;;  %v19144_v11 = vadd.f32 %v20548_v55, %v19080_v33  ;;  %v19164_v55 = vadd.f32 %v18867_v20, %v19084_v44  ;;  %v19184_v20 = vadd.f32 %v18963_v54, %v19080_v33 }
 0x542   : > { %v19204_v54 = vadd.f32 %v18976_v58, %v19084_v44  ;;  %v15731_v58 = vadd.f32 %v18994_v61, %v19084_v44  ;;  %v19240_v61 = vadd.f32 %v19009_v24, %v19084_v44  ;;  %v19260_v24 = vadd.f32 %v19021_v37, %v19080_v33 }
 0x543   : > { %20539 = vst [vmem:[#allocation17_spill] sm:$0xff] %v19124_v39  ;;  %20549 = vst [vmem:[#allocation22_spill] sm:$0xff] %v19144_v11  ;;  %v19276_v37 = vadd.f32 %v19031_v36, %v19080_v33 }
 0x544   : > { %20555 = vst [vmem:[#allocation36_spill] sm:$0xff] %v19164_v55  ;;  %20560 = vst [vmem:[#allocation41_spill] sm:$0xff] %v19184_v20  ;;  %v20572_v20 = vld [vmem:[#allocation28_spill] sm:$0xff] }
 0x545   : > { %20565 = vst [vmem:[#allocation46_spill] sm:$0xff] %v19204_v54 }
 0x59b   : > { %v11492_v10 = vpop.f32.mrb[32].mxu1 }
 0x59c   : > { %v15726_v52 = vadd.f32 %v15725_v4, %v11492_v10  ;;  %v11494_v32 = vpop.f32.mrb[33].mxu1  ;;  %v19268_v4 = vadd.f32 %v19027_v30, %v19080_v33  ;;  %v19284_v30 = vadd.f32 %v19035_v16, %v19080_v33  ;;  %v19300_v16 = vadd.f32 %v20571_v19, %v19080_v33 }
 0x59d   : > { %v15728_v2 = vadd.f32 %v15727_v59, %v11494_v32  ;;  %v11496_v54 = vpop.f32.mrb[34].mxu1  ;;  %v19318_v19 = vadd.f32 %v19052_v62, %v19080_v33 }
 0x59e   : > { %v11651_v34 = vmax.f32 %v15726_v52, 0.0  ;;  %v15730_v10 = vadd.f32 %v15729_v40, %v11496_v54  ;;  %v11498_v31 = vpop.f32.mrb[35].mxu1  ;;  %v20568_v54 = vld [vmem:[#allocation24_spill] sm:$0xff]  ;;  %v20569_v52 = vld [vmem:[#allocation25_spill] sm:$0xff] }
 0x59f   : > { %v11652_v59 = vmax.f32 %v15728_v2, 0.0  ;;  %v15732_v32 = vadd.f32 %v15731_v58, %v11498_v31  ;;  %v19288_v40 = vadd.f32 %v20568_v54, %v19084_v44  ;;  %v19292_v28 = vadd.f32 %v20569_v52, %v19080_v33  ;;  %v20570_v58 = vld [vmem:[#allocation26_spill] sm:$0xff]  ;;  %v20574_v52 = vld [vmem:[#allocation7_spill] sm:$0xff] }
 0x5a0   : > { %v11653_v49 = vmax.f32 %v15730_v10, 0.0  ;;  %v19296_v14 = vadd.f32 %v20570_v58, %v19084_v44  ;;  %v19304_v54 = vadd.f32 %v20572_v20, %v19084_v44  ;;  %v20573_v10 = vld [vmem:[#allocation29_spill] sm:$0xff]  ;;  %v20576_v20 = vld [vmem:[#allocation31_spill] sm:$0xff] }
 0x5a1   : > { %v11779_v36 = vcombine.low %v11651_v34, %v11652_v59  ;;  %v11780_v2 = vcombine.high %v11651_v34, %v11652_v59  ;;  %v11654_v31 = vmax.f32 %v15732_v32, 0.0  ;;  %v19308_v27 = vadd.f32 %v20573_v10, %v19080_v33 }
 0x5a2   : > { %v19322_v55 = vadd.f32 %v20576_v20, %v19084_v44 }
 0x5a3   : > { %v11787_v48 = vrot.slane %v11779_v36, %v20574_v52  ;;  %v11794_v34 = vrot.slane %v11780_v2, %v20574_v52  ;;  %v11797_v59 = vcombine.low %v11653_v49, %v11654_v31  ;;  %v11798_v32 = vcombine.high %v11653_v49, %v11654_v31  ;;  %v11502_v58 = vpop.f32.mrb[36].mxu1 }
 0x5a4   : > { %20577 = vst [vmem:[#allocation24_spill] sm:$0xff] %v19322_v55  ;;  %v15734_v10 = vadd.f32 %v15733_v1, %v11502_v58  ;;  %v11504_v47 = vpop.f32.mrb[37].mxu1 }
 0x5a5   : > { %v11795_v36 = vcombine.high %v11787_v48, %v11787_v48  ;;  %v11796_v53 = vcombine.high %v11794_v34, %v11794_v34  ;;  %v15068_v2 = vrot.slane %v11787_v48, 9  ;;  %v15070_v8 = vrot.slane %v11794_v34, 9  ;;  %v11506_v49 = vpop.f32.mrb[38].mxu1 }
 0x5a6   : > { %v11805_v31 = vrot.slane %v11797_v59, %v20574_v52  ;;  %v11812_v23 = vrot.slane %v11798_v32, %v20574_v52  ;;  %v15736_v62 = vadd.f32 %v15735_v26, %v11504_v47  ;;  %v11508_v11 = vpop.f32.mrb[39].mxu1  ;;  %v11655_v21 = vmax.f32 %v15734_v10, 0.0 }
 0x5a7   : > { %v15069_v0 = vrot.slane %v11795_v36, 9  ;;  %v15071_v60 = vrot.slane %v11796_v53, 9  ;;  %v12867_v20 = vmax.f32 %v11787_v48, %v15068_v2  ;;  %v12869_v35 = vmax.f32 %v11794_v34, %v15070_v8 }
 0x5a8   : > { %v11813_v1 = vcombine.high %v11805_v31, %v11805_v31  ;;  %v11814_v58 = vcombine.high %v11812_v23, %v11812_v23  ;;  %v15072_v50 = vrot.slane %v11805_v31, 9  ;;  %v15074_v39 = vrot.slane %v11812_v23, 9 }
 0x5a9   : > { %v12868_v38 = vmax.f32 %v11795_v36, %v15069_v0  ;;  %v11656_v6 = vmax.f32 %v15736_v62, 0.0  ;;  %v15738_v59 = vadd.f32 %v19228_v41, %v11506_v49  ;;  %v12870_v57 = vmax.f32 %v11796_v53, %v15071_v60 }
 0x5aa   : > { %v15073_v9 = vrot.slane %v11813_v1, 9  ;;  %v15075_v32 = vrot.slane %v11814_v58, 9  ;;  %v12871_v15 = vmax.f32 %v11805_v31, %v15072_v50  ;;  %v12873_v22 = vmax.f32 %v11812_v23, %v15074_v39 }
 0x5ab   : > { %v11815_v47 = vcombine.low %v11655_v21, %v11656_v6  ;;  %v11816_v26 = vcombine.high %v11655_v21, %v11656_v6  ;;  %v15740_v7 = vadd.f32 %v19232_v42, %v11508_v11  ;;  %v11512_v48 = vpop.f32.mrb[40].mxu1  ;;  %v11657_v41 = vmax.f32 %v15738_v59, 0.0 }
 0x5ac   : > { %v12872_v10 = vmax.f32 %v11813_v1, %v15073_v9  ;;  %v12874_v2 = vmax.f32 %v11814_v58, %v15075_v32  ;;  %v12995_v5 = vmax.f32 %v12867_v20, %v12871_v15  ;;  %v12997_v51 = vmax.f32 %v12869_v35, %v12873_v22  ;;  %v11514_v55 = vpop.f32.mrb[41].mxu1 }
 0x5ad   : > { %v11823_v0 = vrot.slane %v11815_v47, %v20574_v52  ;;  %v11830_v8 = vrot.slane %v11816_v26, %v20574_v52  ;;  %v15742_v34 = vadd.f32 %v19236_v45, %v11512_v48  ;;  %v11516_v50 = vpop.f32.mrb[42].mxu1  ;;  %v11658_v21 = vmax.f32 %v15740_v7, 0.0 }
 0x5ae   : > { %v12996_v39 = vmax.f32 %v12868_v38, %v12872_v10  ;;  %v12998_v60 = vmax.f32 %v12870_v57, %v12874_v2  ;;  %v13126_v6 = vrot.slane %v12995_v5, %v16841_v56  ;;  %v11518_v11 = vpop.f32.mrb[43].mxu1  ;;  %v13130_v9 = vrot.slane %v12995_v5, %v19327_v46 }
 0x5af   : > { %v13142_v15 = vrot.slane %v12997_v51, %v16841_v56  ;;  %v11831_v22 = vcombine.high %v11823_v0, %v11823_v0  ;;  %v11832_v35 = vcombine.high %v11830_v8, %v11830_v8  ;;  %v13146_v36 = vrot.slane %v12997_v51, %v19327_v46 }
 0x5b0   : > { %v13134_v53 = vrot.slane %v12996_v39, %v16841_v56  ;;  %v13138_v42 = vrot.slane %v12996_v39, %v19327_v46  ;;  %v13150_v45 = vrot.slane %v12998_v60, %v16841_v56  ;;  %v13154_v57 = vrot.slane %v12998_v60, %v19327_v46 }
 0x5b1   : > { %v15076_v38 = vrot.slane %v11823_v0, 9  ;;  %v15077_v49 = vrot.slane %v11831_v22, 9  ;;  %v15078_v7 = vrot.slane %v11830_v8, 9  ;;  %v11833_v23 = vcombine.low %v11657_v41, %v11658_v21 }
 0x5b2   : > { %v13635_v31 = vsel %vm8073_vm0, %v13134_v53, %v13126_v6  ;;  %v13642_v5 = vsel %vm8073_vm0, %v13138_v42, %v13130_v9  ;;  %v11834_v62 = vcombine.high %v11657_v41, %v11658_v21  ;;  %v15079_v58 = vrot.slane %v11832_v35, 9 }
 0x5b3   : > { %v13636_v20 = vsel %vm8075_vm1, %v13142_v15, %v13635_v31  ;;  %v13643_v1 = vsel %vm8075_vm1, %v13146_v36, %v13642_v5  ;;  %v12875_v59 = vmax.f32 %v11823_v0, %v15076_v38  ;;  %v11522_v51 = vpop.f32.mrb[44].mxu1  ;;  %v12876_v26 = vmax.f32 %v11831_v22, %v15077_v49 }
 0x5b4   : > { %v13637_v32 = vsel %vm8077_vm2, %v13150_v45, %v13636_v20  ;;  %v13644_v47 = vsel %vm8077_vm2, %v13154_v57, %v13643_v1  ;;  %v12877_v48 = vmax.f32 %v11830_v8, %v15078_v7  ;;  %v11524_v10 = vpop.f32.mrb[45].mxu1  ;;  %v11841_v2 = vrot.slane %v11833_v23, %v20574_v52 }
 0x5b5   : > { %v11848_v39 = vrot.slane %v11834_v62, %v20574_v52  ;;  %v11659_v60 = vmax.f32 %v15742_v34, 0.0  ;;  %v15744_v41 = vadd.f32 %v19240_v61, %v11514_v55  ;;  %v19351_v6 = vpop.f32.mrb[46].mxu1  ;;  %v15746_v21 = vadd.f32 %v19244_v12, %v11516_v50 }
 0x5b6   : > { %v15748_v0 = vadd.f32 %v19248_v43, %v11518_v11  ;;  %v19356_v9 = vadd.f32 %v19252_v63, %v11522_v51  ;;  %v19359_v15 = vadd.f32 %v19256_v3, %v11524_v10  ;;  %v19361_v8 = vpop.f32.mrb[47].mxu1  ;;  %v11849_v22 = vcombine.high %v11841_v2, %v11841_v2 }
 0x5b7   : > { %v11850_v53 = vcombine.high %v11848_v39, %v11848_v39  ;;  %v15080_v42 = vrot.slane %v11841_v2, 9  ;;  %v15082_v34 = vrot.slane %v11848_v39, 9  ;;  %v12878_v36 = vmax.f32 %v11832_v35, %v15079_v58 }
 0x5b8   : > { %v11660_v55 = vmax.f32 %v15744_v41, 0.0  ;;  %v11661_v61 = vmax.f32 %v15746_v21, 0.0  ;;  %v11662_v45 = vmax.f32 %v15748_v0, 0.0  ;;  %v15081_v57 = vrot.slane %v11849_v22, 9 }
 0x5b9   : > { %v15083_v12 = vrot.slane %v11850_v53, 9  ;;  %v12879_v50 = vmax.f32 %v11841_v2, %v15080_v42  ;;  %v12881_v43 = vmax.f32 %v11848_v39, %v15082_v34  ;;  %v11663_v1 = vmax.f32 %v19356_v9, 0.0 }
 0x5ba   : > { %v11851_v11 = vcombine.low %v11659_v60, %v11660_v55  ;;  %v11852_v63 = vcombine.high %v11659_v60, %v11660_v55  ;;  %v11869_v38 = vcombine.low %v11661_v61, %v11662_v45  ;;  %v11870_v49 = vcombine.high %v11661_v61, %v11662_v45 }
 0x5bb   : > { %v12880_v3 = vmax.f32 %v11849_v22, %v15081_v57  ;;  %v12882_v7 = vmax.f32 %v11850_v53, %v15083_v12  ;;  %v12999_v31 = vmax.f32 %v12875_v59, %v12879_v50  ;;  %v13001_v5 = vmax.f32 %v12877_v48, %v12881_v43  ;;  %v11532_v23 = vpop.f32.mrb[48].mxu1 }
 0x5bc   : > { %v11859_v62 = vrot.slane %v11851_v11, %v20574_v52  ;;  %v11866_v35 = vrot.slane %v11852_v63, %v20574_v52  ;;  %v11877_v20 = vrot.slane %v11869_v38, %v20574_v52  ;;  %v19367_v58 = vpop.f32.mrb[49].mxu1  ;;  %v11884_v21 = vrot.slane %v11870_v49, %v20574_v52 }
 0x5bd   : > { %v13000_v51 = vmax.f32 %v12876_v26, %v12880_v3  ;;  %v19369_v10 = vmax.f32 %v12878_v36, %v12882_v7  ;;  %v13158_v2 = vrot.slane %v12999_v31, %v16841_v56  ;;  %v13162_v39 = vrot.slane %v12999_v31, %v19327_v46  ;;  %v19373_v59 = vpop.f32.mrb[50].mxu1 }
 0x5be   : > { %v13174_v48 = vrot.slane %v13001_v5, %v16841_v56  ;;  %v11867_v60 = vcombine.high %v11859_v62, %v11859_v62  ;;  %v11868_v41 = vcombine.high %v11866_v35, %v11866_v35  ;;  %v19377_v0 = vpop.f32.mrb[51].mxu1  ;;  %v13178_v22 = vrot.slane %v13001_v5, %v19327_v46 }
 0x5bf   : > { %v13166_v9 = vrot.slane %v13000_v51, %v16841_v56  ;;  %v13170_v26 = vrot.slane %v13000_v51, %v19327_v46  ;;  %v13182_v53 = vrot.slane %v19369_v10, %v16841_v56  ;;  %v13638_v42 = vsel %vm8079_vm3, %v13158_v2, %v13637_v32 }
 0x5c0   : > { %v13645_v34 = vsel %vm8079_vm3, %v13162_v39, %v13644_v47  ;;  %v15084_v36 = vrot.slane %v11859_v62, 9  ;;  %v15085_v55 = vrot.slane %v11867_v60, 9  ;;  %v15086_v57 = vrot.slane %v11866_v35, 9 }
 0x5c1   : > { %v13639_v61 = vsel %vm8081_vm4, %v13166_v9, %v13638_v42  ;;  %v13646_v45 = vsel %vm8081_vm4, %v13170_v26, %v13645_v34  ;;  %v15087_v12 = vrot.slane %v11868_v41, 9  ;;  %v11885_v49 = vcombine.high %v11877_v20, %v11877_v20 }
 0x5c2   : > { %v13640_v50 = vsel %vm8083_vm5, %v13174_v48, %v13639_v61  ;;  %v19390_v43 = vsel %vm8083_vm5, %v13178_v22, %v13646_v45  ;;  %v12883_v11 = vmax.f32 %v11859_v62, %v15084_v36  ;;  %v12884_v63 = vmax.f32 %v11867_v60, %v15085_v55 }
 0x5c3   : > { %v19393_v38 = vsel %vm8085_vm6, %v13182_v53, %v13640_v50  ;;  %v12885_v32 = vmax.f32 %v11866_v35, %v15086_v57  ;;  %v12886_v47 = vmax.f32 %v11868_v41, %v15087_v12  ;;  %v19395_v3 = vpop.f32.mrb[52].mxu1  ;;  %v11886_v7 = vcombine.high %v11884_v21, %v11884_v21 }
 0x5c4   : > { %v15088_v31 = vrot.slane %v11877_v20, 9  ;;  %v15090_v5 = vrot.slane %v11884_v21, 9  ;;  %v11664_v51 = vmax.f32 %v19359_v15, 0.0  ;;  %v19398_v2 = vpop.f32.mrb[53].mxu1  ;;  %v15089_v39 = vrot.slane %v11885_v49, 9 }
 0x5c5   : > { %v15754_v62 = vadd.f32 %v19260_v24, %v19351_v6  ;;  %v15756_v48 = vadd.f32 %v19264_v17, %v19361_v8  ;;  %v19405_v35 = vadd.f32 %v19268_v4, %v11532_v23  ;;  %v19407_v60 = vpop.f32.mrb[54].mxu1  ;;  %v15091_v41 = vrot.slane %v11886_v7, 9 }
 0x5c6   : > { %v12887_v9 = vmax.f32 %v11877_v20, %v15088_v31  ;;  %v12889_v26 = vmax.f32 %v11884_v21, %v15090_v5  ;;  %v11887_v22 = vcombine.low %v11663_v1, %v11664_v51  ;;  %v19409_v53 = vpop.f32.mrb[55].mxu1  ;;  %v12888_v15 = vmax.f32 %v11885_v49, %v15089_v39 }
 0x5c7   : > { %v11888_v42 = vcombine.high %v11663_v1, %v11664_v51  ;;  %v11665_v34 = vmax.f32 %v15754_v62, 0.0  ;;  %v11666_v36 = vmax.f32 %v15756_v48, 0.0  ;;  %v12890_v55 = vmax.f32 %v11886_v7, %v15091_v41  ;;  %v20578_v41 = vld [vmem:[#allocation32_spill] sm:$0xff] }
 0x5c8   : > { %v13003_v24 = vmax.f32 %v12883_v11, %v12887_v9  ;;  %v13005_v6 = vmax.f32 %v12885_v32, %v12889_v26  ;;  %v11895_v17 = vrot.slane %v11887_v22, %v20574_v52  ;;  %v13004_v8 = vmax.f32 %v12884_v63, %v12888_v15 }
 0x5c9   : > { %v11902_v4 = vrot.slane %v11888_v42, %v20574_v52  ;;  %v11905_v23 = vcombine.low %v11665_v34, %v11666_v36  ;;  %v11906_v61 = vcombine.high %v11665_v34, %v11666_v36  ;;  %v13006_v45 = vmax.f32 %v12886_v47, %v12890_v55 }
 0x5ca   : > { %v13190_v20 = vrot.slane %v13003_v24, %v16841_v56  ;;  %v13194_v21 = vrot.slane %v13003_v24, %v19327_v46  ;;  %v13206_v57 = vrot.slane %v13005_v6, %v16841_v56  ;;  %v13198_v1 = vrot.slane %v13004_v8, %v16841_v56 }
 0x5cb   : > { %v13202_v12 = vrot.slane %v13004_v8, %v19327_v46  ;;  %v13210_v50 = vrot.slane %v13005_v6, %v19327_v46  ;;  %v11903_v11 = vcombine.high %v11895_v17, %v11895_v17  ;;  %v19419_v32 = vpop.f32.mrb[56].mxu1  ;;  %v13214_v63 = vrot.slane %v13006_v45, %v16841_v56 }
 0x5cc   : > { %v13218_v49 = vrot.slane %v13006_v45, %v19327_v46  ;;  %v11904_v47 = vcombine.high %v11902_v4, %v11902_v4  ;;  %v15092_v7 = vrot.slane %v11895_v17, 9  ;;  %v19423_v31 = vpop.f32.mrb[57].mxu1  ;;  %v13649_v5 = vsel %vm8073_vm0, %v13198_v1, %v13190_v20 }
 0x5cd   : > { %v13656_v51 = vsel %vm8073_vm0, %v13202_v12, %v13194_v21  ;;  %v15093_v39 = vrot.slane %v11903_v11, 9  ;;  %v15094_v62 = vrot.slane %v11902_v4, 9  ;;  %v19427_v48 = vpop.f32.mrb[58].mxu1  ;;  %v19431_v9 = vadd.f32 %v20578_v41, %v19080_v33 }
 0x5ce   : > { %v13650_v26 = vsel %vm8075_vm1, %v13206_v57, %v13649_v5  ;;  %v13657_v22 = vsel %vm8075_vm1, %v13210_v50, %v13656_v51  ;;  %v15095_v15 = vrot.slane %v11904_v47, 9  ;;  %v19435_v42 = vpop.f32.mrb[59].mxu1  ;;  %v12891_v55 = vmax.f32 %v11895_v17, %v15092_v7 }
 0x5cf   : > { %v13651_v34 = vsel %vm8077_vm2, %v13214_v63, %v13650_v26  ;;  %v13658_v36 = vsel %vm8077_vm2, %v13218_v49, %v13657_v22  ;;  %v12892_v24 = vmax.f32 %v11903_v11, %v15093_v39  ;;  %v12893_v6 = vmax.f32 %v11902_v4, %v15094_v62 }
 0x5d0   : > { %v11913_v8 = vrot.slane %v11905_v23, %v20574_v52  ;;  %v11920_v45 = vrot.slane %v11906_v61, %v20574_v52  ;;  %v11667_v33 = vmax.f32 %v19405_v35, 0.0  ;;  %v15760_v20 = vadd.f32 %v19272_v18, %v19367_v58 }
 0x5d1   : > { %v15762_v21 = vadd.f32 %v19276_v37, %v19373_v59  ;;  %v15764_v57 = vadd.f32 %v19280_v25, %v19377_v0  ;;  %v19450_v17 = vadd.f32 %v19284_v30, %v19395_v3  ;;  %v12894_v61 = vmax.f32 %v11904_v47, %v15095_v15 }
 0x5d2   : > { %v11921_v4 = vcombine.high %v11913_v8, %v11913_v8  ;;  %v11922_v1 = vcombine.high %v11920_v45, %v11920_v45  ;;  %v15096_v23 = vrot.slane %v11913_v8, 9  ;;  %v15098_v12 = vrot.slane %v11920_v45, 9 }
 0x5d3   : > { %v11668_v50 = vmax.f32 %v15760_v20, 0.0  ;;  %v11669_v35 = vmax.f32 %v15762_v21, 0.0  ;;  %v11670_v11 = vmax.f32 %v15764_v57, 0.0  ;;  %v19452_v63 = vpop.f32.mrb[60].mxu1  ;;  %v11671_v15 = vmax.f32 %v19450_v17, 0.0 }
 0x5d4   : > { %v15097_v18 = vrot.slane %v11921_v4, 9  ;;  %v15099_v58 = vrot.slane %v11922_v1, 9  ;;  %v12895_v37 = vmax.f32 %v11913_v8, %v15096_v23  ;;  %v12897_v59 = vmax.f32 %v11920_v45, %v15098_v12  ;;  %v19454_v49 = vpop.f32.mrb[61].mxu1 }
 0x5d5   : > { %v11923_v25 = vcombine.low %v11667_v33, %v11668_v50  ;;  %v11924_v0 = vcombine.high %v11667_v33, %v11668_v50  ;;  %v11941_v30 = vcombine.low %v11669_v35, %v11670_v11  ;;  %v11942_v3 = vcombine.high %v11669_v35, %v11670_v11  ;;  %v19456_v7 = vpop.f32.mrb[62].mxu1 }
 0x5d6   : > { %v12896_v5 = vmax.f32 %v11921_v4, %v15097_v18  ;;  %v12898_v51 = vmax.f32 %v11922_v1, %v15099_v58  ;;  %v13007_v47 = vmax.f32 %v12891_v55, %v12895_v37  ;;  %v13009_v39 = vmax.f32 %v12893_v6, %v12897_v59  ;;  %v19458_v62 = vpop.f32.mrb[63].mxu1 }
 0x5d7   : > { %v11931_v41 = vrot.slane %v11923_v25, %v20574_v52  ;;  %v11938_v26 = vrot.slane %v11924_v0, %v20574_v52  ;;  %v11949_v22 = vrot.slane %v11941_v30, %v20574_v52  ;;  %v11956_v57 = vrot.slane %v11942_v3, %v20574_v52 }
 0x5d8   : > { %v13008_v8 = vmax.f32 %v12892_v24, %v12896_v5  ;;  %v19464_v45 = vmax.f32 %v12894_v61, %v12898_v51  ;;  %v13222_v33 = vrot.slane %v13007_v47, %v16841_v56  ;;  %v13226_v20 = vrot.slane %v13007_v47, %v19327_v46 }
 0x5d9   : > { %v13238_v55 = vrot.slane %v13009_v39, %v16841_v56  ;;  %v11939_v6 = vcombine.high %v11931_v41, %v11931_v41  ;;  %v11940_v21 = vcombine.high %v11938_v26, %v11938_v26  ;;  %v13242_v23 = vrot.slane %v13009_v39, %v19327_v46 }
 0x5da   : > { %v13230_v4 = vrot.slane %v13008_v8, %v16841_v56  ;;  %v13234_v1 = vrot.slane %v13008_v8, %v19327_v46  ;;  %v13246_v24 = vrot.slane %v19464_v45, %v16841_v56  ;;  %v13652_v17 = vsel %vm8079_vm3, %v13222_v33, %v13651_v34 }
 0x5db   : > { %v13659_v12 = vsel %vm8079_vm3, %v13226_v20, %v13658_v36  ;;  %v15100_v61 = vrot.slane %v11931_v41, 9  ;;  %v15101_v50 = vrot.slane %v11939_v6, 9  ;;  %v19477_v35 = vpop.f32.mrb[0].mxu1  ;;  %v15102_v58 = vrot.slane %v11938_v26, 9 }
 0x5dc   : > { %v13653_v11 = vsel %vm8081_vm4, %v13230_v4, %v13652_v17  ;;  %v13660_v18 = vsel %vm8081_vm4, %v13234_v1, %v13659_v12  ;;  %v15103_v37 = vrot.slane %v11940_v21, 9  ;;  %v19481_v59 = vpop.f32.mrb[1].mxu1  ;;  %v11957_v47 = vcombine.high %v11949_v22, %v11949_v22 }
 0x5dd   : > { %v13654_v25 = vsel %vm8083_vm5, %v13238_v55, %v13653_v11  ;;  %v19485_v0 = vsel %vm8083_vm5, %v13242_v23, %v13660_v18  ;;  %v12899_v34 = vmax.f32 %v11931_v41, %v15100_v61  ;;  %v12900_v30 = vmax.f32 %v11939_v6, %v15101_v50  ;;  %v19487_v36 = vpop.f32.mrb[2].mxu1 }
 0x5de   : > { %20579 = vst [vmem:[#allocation25_spill] sm:$0xff] %v19485_v0  ;;  %v13655_v3 = vsel %vm8085_vm6, %v13246_v24, %v13654_v25  ;;  %v12901_v5 = vmax.f32 %v11938_v26, %v15102_v58  ;;  %v12902_v51 = vmax.f32 %v11940_v21, %v15103_v37  ;;  %v19490_v39 = vpop.f32.mrb[3].mxu1  ;;  %v11958_v33 = vcombine.high %v11956_v57, %v11956_v57 }
 0x5df   : > { %v19493_v8 = vadd.f32 %v13655_v3, %v19393_v38  ;;  %v15104_v20 = vrot.slane %v11949_v22, 9  ;;  %v15106_v55 = vrot.slane %v11956_v57, 9  ;;  %v15105_v4 = vrot.slane %v11957_v47, 9 }
 0x5e0   : > { %v15768_v41 = vadd.f32 %v19288_v40, %v19398_v2  ;;  %v15770_v6 = vadd.f32 %v19292_v28, %v19407_v60  ;;  %v15772_v26 = vadd.f32 %v19296_v14, %v19409_v53  ;;  %v15107_v21 = vrot.slane %v11958_v33, 9 }
 0x5e1   : > { %20580 = vst [vmem:[#allocation26_spill] sm:$0xff] %v19493_v8  ;;  %v12903_v1 = vmax.f32 %v11949_v22, %v15104_v20  ;;  %v12905_v23 = vmax.f32 %v11956_v57, %v15106_v55  ;;  %v19503_v38 = vadd.f32 %v19300_v16, %v19419_v32  ;;  %v12904_v24 = vmax.f32 %v11957_v47, %v15105_v4 }
 0x5e2   : > { %v11672_v17 = vmax.f32 %v15768_v41, 0.0  ;;  %v11673_v12 = vmax.f32 %v15770_v6, 0.0  ;;  %v11674_v61 = vmax.f32 %v15772_v26, 0.0  ;;  %v12906_v50 = vmax.f32 %v11958_v33, %v15107_v21 }
 0x5e3   : > { %v13011_v11 = vmax.f32 %v12899_v34, %v12903_v1  ;;  %v13013_v40 = vmax.f32 %v12901_v5, %v12905_v23  ;;  %v11675_v2 = vmax.f32 %v19503_v38, 0.0  ;;  %v19506_v28 = vpop.f32.mrb[4].mxu1  ;;  %v13012_v60 = vmax.f32 %v12900_v30, %v12904_v24 }
 0x5e4   : > { %v11959_v14 = vcombine.low %v11671_v15, %v11672_v17  ;;  %v11960_v53 = vcombine.high %v11671_v15, %v11672_v17  ;;  %v11977_v22 = vcombine.low %v11673_v12, %v11674_v61  ;;  %v19508_v57 = vpop.f32.mrb[5].mxu1  ;;  %v13014_v18 = vmax.f32 %v12902_v51, %v12906_v50 }
 0x5e5   : > { %v13254_v16 = vrot.slane %v13011_v11, %v16841_v56  ;;  %v13258_v32 = vrot.slane %v13011_v11, %v19327_v46  ;;  %v13270_v58 = vrot.slane %v13013_v40, %v16841_v56  ;;  %v19513_v37 = vpop.f32.mrb[6].mxu1  ;;  %v13262_v25 = vrot.slane %v13012_v60, %v16841_v56 }
 0x5e6   : > { %v13266_v34 = vrot.slane %v13012_v60, %v19327_v46  ;;  %v13274_v30 = vrot.slane %v13013_v40, %v19327_v46  ;;  %v11967_v15 = vrot.slane %v11959_v14, %v20574_v52  ;;  %v19519_v3 = vpop.f32.mrb[7].mxu1  ;;  %v13278_v5 = vrot.slane %v13014_v18, %v16841_v56 }
 0x5e7   : > { %v13282_v51 = vrot.slane %v13014_v18, %v19327_v46  ;;  %v11974_v47 = vrot.slane %v11960_v53, %v20574_v52  ;;  %v11978_v33 = vcombine.high %v11673_v12, %v11674_v61  ;;  %v13663_v20 = vsel %vm8073_vm0, %v13262_v25, %v13254_v16 }
 0x5e8   : > { %v13670_v55 = vsel %vm8073_vm0, %v13266_v34, %v13258_v32  ;;  %v11975_v4 = vcombine.high %v11967_v15, %v11967_v15  ;;  %v15108_v41 = vrot.slane %v11967_v15, 9  ;;  %v13664_v6 = vsel %vm8075_vm1, %v13270_v58, %v13663_v20 }
 0x5e9   : > { %v13671_v26 = vsel %vm8075_vm1, %v13274_v30, %v13670_v55  ;;  %v11976_v21 = vcombine.high %v11974_v47, %v11974_v47  ;;  %v15110_v1 = vrot.slane %v11974_v47, 9  ;;  %v13665_v23 = vsel %vm8077_vm2, %v13278_v5, %v13664_v6 }
 0x5ea   : > { %v13672_v38 = vsel %vm8077_vm2, %v13282_v51, %v13671_v26  ;;  %v15109_v24 = vrot.slane %v11975_v4, 9  ;;  %v12907_v17 = vmax.f32 %v11967_v15, %v15108_v41  ;;  %v11985_v61 = vrot.slane %v11977_v22, %v20574_v52 }
 0x5eb   : > { %v15111_v50 = vrot.slane %v11976_v21, 9  ;;  %v12909_v12 = vmax.f32 %v11974_v47, %v15110_v1  ;;  %v11992_v11 = vrot.slane %v11978_v33, %v20574_v52  ;;  %v19532_v40 = vpop.f32.mrb[8].mxu1  ;;  %v15776_v14 = vadd.f32 %v19304_v54, %v19423_v31 }
 0x5ec   : > { %v12908_v60 = vmax.f32 %v11975_v4, %v15109_v24  ;;  %v15778_v53 = vadd.f32 %v19308_v27, %v19427_v48  ;;  %v15780_v18 = vadd.f32 %v19314_v13, %v19435_v42  ;;  %v19540_v16 = vpop.f32.mrb[9].mxu1  ;;  %v11993_v58 = vcombine.high %v11985_v61, %v11985_v61 }
 0x5ed   : > { %v12910_v32 = vmax.f32 %v11976_v21, %v15111_v50  ;;  %v11994_v25 = vcombine.high %v11992_v11, %v11992_v11  ;;  %v15112_v22 = vrot.slane %v11985_v61, 9  ;;  %v19542_v34 = vpop.f32.mrb[10].mxu1  ;;  %v15114_v30 = vrot.slane %v11992_v11, 9 }
 0x5ee   : > { %v11676_v15 = vmax.f32 %v15776_v14, 0.0  ;;  %v11677_v5 = vmax.f32 %v15778_v53, 0.0  ;;  %v11678_v51 = vmax.f32 %v15780_v18, 0.0  ;;  %v19544_v47 = vpop.f32.mrb[11].mxu1  ;;  %v15113_v54 = vrot.slane %v11993_v58, 9 }
 0x5ef   : > { %v15115_v31 = vrot.slane %v11994_v25, 9  ;;  %v12911_v27 = vmax.f32 %v11985_v61, %v15112_v22  ;;  %v19548_v13 = vadd.f32 %v19318_v19, %v19452_v63  ;;  %v12913_v48 = vmax.f32 %v11992_v11, %v15114_v30 }
 0x5f0   : > { %v11995_v42 = vcombine.low %v11675_v2, %v11676_v15  ;;  %v11996_v33 = vcombine.high %v11675_v2, %v11676_v15  ;;  %v12013_v20 = vcombine.low %v11677_v5, %v11678_v51  ;;  %v12912_v55 = vmax.f32 %v11993_v58, %v15113_v54 }
 0x5f1   : > { %v12914_v4 = vmax.f32 %v11994_v25, %v15115_v31  ;;  %v13015_v41 = vmax.f32 %v12907_v17, %v12911_v27  ;;  %v12014_v6 = vcombine.high %v11677_v5, %v11678_v51  ;;  %v15787_v26 = vadd.f32 %v19058_v29, %v19084_v44 }
 0x5f2   : > { %v13017_v21 = vmax.f32 %v12909_v12, %v12913_v48  ;;  %v12003_v1 = vrot.slane %v11995_v42, %v20574_v52  ;;  %v12010_v24 = vrot.slane %v11996_v33, %v20574_v52  ;;  %v13016_v50 = vmax.f32 %v12908_v60, %v12912_v55 }
 0x5f3   : > { %v19554_v61 = vmax.f32 %v12910_v32, %v12914_v4  ;;  %v13286_v19 = vrot.slane %v13015_v41, %v16841_v56  ;;  %v13290_v63 = vrot.slane %v13015_v41, %v19327_v46  ;;  %v19558_v2 = vpop.f32.mrb[12].mxu1  ;;  %v12021_v29 = vrot.slane %v12013_v20, %v20574_v52 }
 0x5f4   : > { %v13302_v17 = vrot.slane %v13017_v21, %v16841_v56  ;;  %v12011_v11 = vcombine.high %v12003_v1, %v12003_v1  ;;  %v12012_v14 = vcombine.high %v12010_v24, %v12010_v24  ;;  %v19562_v44 = vpop.f32.mrb[13].mxu1  ;;  %v13294_v12 = vrot.slane %v13016_v50, %v16841_v56 }
 0x5f5   : > { %v13298_v60 = vrot.slane %v13016_v50, %v19327_v46  ;;  %v13306_v53 = vrot.slane %v13017_v21, %v19327_v46  ;;  %v13310_v18 = vrot.slane %v19554_v61, %v16841_v56  ;;  %v19569_v32 = vpop.f32.mrb[14].mxu1  ;;  %v13666_v58 = vsel %vm8079_vm3, %v13286_v19, %v13665_v23  ;;  %v20582_v50 = vld [vmem:[#allocation24_spill] sm:$0xff] }
 0x5f6   : > { %v13673_v25 = vsel %vm8079_vm3, %v13290_v63, %v13672_v38  ;;  %v15116_v22 = vrot.slane %v12003_v1, 9  ;;  %v15117_v30 = vrot.slane %v12011_v11, 9  ;;  %v19573_v15 = vpop.f32.mrb[15].mxu1  ;;  %v13667_v5 = vsel %vm8081_vm4, %v13294_v12, %v13666_v58 }
 0x5f7   : > { %v13674_v51 = vsel %vm8081_vm4, %v13298_v60, %v13673_v25  ;;  %v15118_v54 = vrot.slane %v12010_v24, 9  ;;  %v15119_v31 = vrot.slane %v12012_v14, 9  ;;  %v13668_v27 = vsel %vm8083_vm5, %v13302_v17, %v13667_v5 }
 0x5f8   : > { %v19579_v48 = vsel %vm8083_vm5, %v13306_v53, %v13674_v51  ;;  %v12915_v42 = vmax.f32 %v12003_v1, %v15116_v22  ;;  %v12916_v33 = vmax.f32 %v12011_v11, %v15117_v30  ;;  %v19582_v23 = vsel %vm8085_vm6, %v13310_v18, %v13668_v27 }
 0x5f9   : > { %20581 = vst [vmem:[#allocation27_spill] sm:$0xff] %v19579_v48  ;;  %v12917_v38 = vmax.f32 %v12010_v24, %v15118_v54  ;;  %v12918_v20 = vmax.f32 %v12012_v14, %v15119_v31  ;;  %v12028_v55 = vrot.slane %v12014_v6, %v20574_v52  ;;  %v12029_v4 = vcombine.high %v12021_v29, %v12021_v29  ;;  %v20583_v6 = vld [vmem:[#allocation8_spill] sm:$0xff] }
 0x5fa   : > { %v15120_v41 = vrot.slane %v12021_v29, 9  ;;  %v11679_v21 = vmax.f32 %v19548_v13, 0.0  ;;  %v15784_v19 = vadd.f32 %v20582_v50, %v19454_v49  ;;  %v15786_v1 = vadd.f32 %v19431_v9, %v19456_v7 }
 0x5fb   : > { %v12030_v63 = vcombine.high %v12028_v55, %v12028_v55  ;;  %v15122_v17 = vrot.slane %v12028_v55, 9  ;;  %v15788_v11 = vadd.f32 %v15787_v26, %v19458_v62  ;;  %v19591_v12 = vpop.f32.mrb[16].mxu1  ;;  %v15121_v24 = vrot.slane %v12029_v4, 9 }
 0x5fc   : > { %v12919_v14 = vmax.f32 %v12021_v29, %v15120_v41  ;;  %v11680_v60 = vmax.f32 %v15784_v19, 0.0  ;;  %v19595_v53 = vadd.f32 %v19477_v35, %v20583_v6  ;;  %v19597_v13 = vpop.f32.mrb[17].mxu1  ;;  %v11681_v58 = vmax.f32 %v15786_v1, 0.0 }
 0x5fd   : > { %v15123_v18 = vrot.slane %v12030_v63, 9  ;;  %v12921_v49 = vmax.f32 %v12028_v55, %v15122_v17  ;;  %v11682_v25 = vmax.f32 %v15788_v11, 0.0  ;;  %v19599_v22 = vpop.f32.mrb[18].mxu1  ;;  %v12920_v9 = vmax.f32 %v12029_v4, %v15121_v24 }
 0x5fe   : > { %v13019_v7 = vmax.f32 %v12915_v42, %v12919_v14  ;;  %v12031_v62 = vcombine.low %v11679_v21, %v11680_v60  ;;  %v12032_v26 = vcombine.high %v11679_v21, %v11680_v60  ;;  %v19601_v30 = vpop.f32.mrb[19].mxu1 }
 0x5ff   : > { %v12922_v29 = vmax.f32 %v12030_v63, %v15123_v18  ;;  %v13021_v5 = vmax.f32 %v12917_v38, %v12921_v49  ;;  %v12049_v51 = vcombine.low %v11681_v58, %v11682_v25  ;;  %v12050_v54 = vcombine.high %v11681_v58, %v11682_v25 }
 0x600   : > { %v13020_v35 = vmax.f32 %v12916_v33, %v12920_v9  ;;  %v13318_v31 = vrot.slane %v13019_v7, %v16841_v56  ;;  %v13322_v27 = vrot.slane %v13019_v7, %v19327_v46  ;;  %v12039_v55 = vrot.slane %v12031_v62, %v20574_v52 }
 0x601   : > { %v13022_v41 = vmax.f32 %v12918_v20, %v12922_v29  ;;  %v13334_v50 = vrot.slane %v13021_v5, %v16841_v56  ;;  %v13338_v42 = vrot.slane %v13021_v5, %v19327_v46  ;;  %v12046_v4 = vrot.slane %v12032_v26, %v20574_v52 }
 0x602   : > { %v13326_v21 = vrot.slane %v13020_v35, %v16841_v56  ;;  %v13330_v38 = vrot.slane %v13020_v35, %v19327_v46  ;;  %v12047_v19 = vcombine.high %v12039_v55, %v12039_v55  ;;  %v15124_v63 = vrot.slane %v12039_v55, 9 }
 0x603   : > { %v13342_v33 = vrot.slane %v13022_v41, %v16841_v56  ;;  %v13346_v17 = vrot.slane %v13022_v41, %v19327_v46  ;;  %v12048_v1 = vcombine.high %v12046_v4, %v12046_v4  ;;  %v15126_v11 = vrot.slane %v12046_v4, 9  ;;  %v19613_v24 = vpop.f32.mrb[20].mxu1  ;;  %v20584_v41 = vld [vmem:[#allocation9_spill] sm:$0xff] }
 0x604   : > { %v13677_v20 = vsel %vm8073_vm0, %v13326_v21, %v13318_v31  ;;  %v13684_v14 = vsel %vm8073_vm0, %v13330_v38, %v13322_v27  ;;  %v15125_v60 = vrot.slane %v12047_v19, 9  ;;  %v12923_v6 = vmax.f32 %v12039_v55, %v15124_v63  ;;  %v19617_v18 = vpop.f32.mrb[21].mxu1  ;;  %v20585_v21 = vld [vmem:[#allocation10_spill] sm:$0xff]  ;;  %v20586_v63 = vld [vmem:[#allocation11_spill] sm:$0xff] }
 0x605   : > { %v13678_v49 = vsel %vm8075_vm1, %v13334_v50, %v13677_v20  ;;  %v13685_v58 = vsel %vm8075_vm1, %v13338_v42, %v13684_v14  ;;  %v15127_v25 = vrot.slane %v12048_v1, 9  ;;  %v12925_v9 = vmax.f32 %v12046_v4, %v15126_v11  ;;  %v19621_v7 = vpop.f32.mrb[22].mxu1  ;;  %v20587_v11 = vld [vmem:[#allocation12_spill] sm:$0xff] }
 0x606   : > { %v13679_v62 = vsel %vm8077_vm2, %v13342_v33, %v13678_v49  ;;  %v13686_v26 = vsel %vm8077_vm2, %v13346_v17, %v13685_v58  ;;  %v12924_v29 = vmax.f32 %v12047_v19, %v15125_v60  ;;  %v12057_v5 = vrot.slane %v12049_v51, %v20574_v52  ;;  %v19626_v35 = vpop.f32.mrb[23].mxu1 }
 0x607   : > { %v12926_v31 = vmax.f32 %v12048_v1, %v15127_v25  ;;  %v12064_v27 = vrot.slane %v12050_v54, %v20574_v52  ;;  %v11683_v55 = vmax.f32 %v19595_v53, 0.0  ;;  %v15792_v50 = vadd.f32 %v19481_v59, %v20584_v41 }
 0x608   : > { %v12065_v42 = vcombine.high %v12057_v5, %v12057_v5  ;;  %v15128_v4 = vrot.slane %v12057_v5, 9  ;;  %v15794_v38 = vadd.f32 %v19487_v36, %v20585_v21  ;;  %v15796_v19 = vadd.f32 %v19490_v39, %v20586_v63 }
 0x609   : > { %v12066_v33 = vcombine.high %v12064_v27, %v12064_v27  ;;  %v15130_v51 = vrot.slane %v12064_v27, 9  ;;  %v11684_v17 = vmax.f32 %v15792_v50, 0.0  ;;  %v19638_v1 = vadd.f32 %v19506_v28, %v20587_v11 }
 0x60a   : > { %v15129_v54 = vrot.slane %v12065_v42, 9  ;;  %v12927_v53 = vmax.f32 %v12057_v5, %v15128_v4  ;;  %v11685_v20 = vmax.f32 %v15794_v38, 0.0  ;;  %v11686_v14 = vmax.f32 %v15796_v19, 0.0 }
 0x60b   : > { %v15131_v59 = vrot.slane %v12066_v33, 9  ;;  %v12929_v60 = vmax.f32 %v12064_v27, %v15130_v51  ;;  %v12067_v49 = vcombine.low %v11683_v55, %v11684_v17  ;;  %v12068_v58 = vcombine.high %v11683_v55, %v11684_v17  ;;  %v19640_v25 = vpop.f32.mrb[24].mxu1 }
 0x60c   : > { %v12928_v36 = vmax.f32 %v12065_v42, %v15129_v54  ;;  %v13023_v41 = vmax.f32 %v12923_v6, %v12927_v53  ;;  %v12085_v39 = vcombine.low %v11685_v20, %v11686_v14  ;;  %v12086_v21 = vcombine.high %v11685_v20, %v11686_v14  ;;  %v19642_v63 = vpop.f32.mrb[25].mxu1 }
 0x60d   : > { %v12930_v50 = vmax.f32 %v12066_v33, %v15131_v59  ;;  %v13025_v8 = vmax.f32 %v12925_v9, %v12929_v60  ;;  %v12075_v28 = vrot.slane %v12067_v49, %v20574_v52  ;;  %v12082_v5 = vrot.slane %v12068_v58, %v20574_v52  ;;  %v19646_v4 = vpop.f32.mrb[26].mxu1 }
 0x60e   : > { %v13024_v55 = vmax.f32 %v12924_v29, %v12928_v36  ;;  %v13350_v38 = vrot.slane %v13023_v41, %v16841_v56  ;;  %v13354_v6 = vrot.slane %v13023_v41, %v19327_v46  ;;  %v19652_v42 = vpop.f32.mrb[27].mxu1  ;;  %v12093_v51 = vrot.slane %v12085_v39, %v20574_v52 }
 0x60f   : > { %v19654_v19 = vmax.f32 %v12926_v31, %v12930_v50  ;;  %v13366_v9 = vrot.slane %v13025_v8, %v16841_v56  ;;  %v12083_v33 = vcombine.high %v12075_v28, %v12075_v28  ;;  %v13370_v53 = vrot.slane %v13025_v8, %v19327_v46 }
 0x610   : > { %v13358_v17 = vrot.slane %v13024_v55, %v16841_v56  ;;  %v13362_v11 = vrot.slane %v13024_v55, %v19327_v46  ;;  %v13680_v54 = vsel %vm8079_vm3, %v13350_v38, %v13679_v62  ;;  %v13687_v29 = vsel %vm8079_vm3, %v13354_v6, %v13686_v26 }
 0x611   : > { %v13374_v20 = vrot.slane %v19654_v19, %v16841_v56  ;;  %v12084_v31 = vcombine.high %v12082_v5, %v12082_v5  ;;  %v15132_v14 = vrot.slane %v12075_v28, 9  ;;  %v15133_v49 = vrot.slane %v12083_v33, 9 }
 0x612   : > { %v13681_v59 = vsel %vm8081_vm4, %v13358_v17, %v13680_v54  ;;  %v13688_v60 = vsel %vm8081_vm4, %v13362_v11, %v13687_v29  ;;  %v15134_v58 = vrot.slane %v12082_v5, 9  ;;  %v12100_v38 = vrot.slane %v12086_v21, %v20574_v52 }
 0x613   : > { %v13682_v36 = vsel %vm8083_vm5, %v13366_v9, %v13681_v59  ;;  %v19669_v41 = vsel %vm8083_vm5, %v13370_v53, %v13688_v60  ;;  %v15135_v62 = vrot.slane %v12084_v31, 9  ;;  %v12931_v26 = vmax.f32 %v12075_v28, %v15132_v14  ;;  %v19671_v39 = vpop.f32.mrb[28].mxu1  ;;  %v20590_v59 = vld [vmem:[#allocation13_spill] sm:$0xff]  ;;  %v20591_v60 = vld [vmem:[#allocation14_spill] sm:$0xff] }
 0x614   : > { %20588 = vst [vmem:[#allocation28_spill] sm:$0xff] %v19669_v41  ;;  %v13683_v8 = vsel %vm8085_vm6, %v13374_v20, %v13682_v36  ;;  %v12932_v50 = vmax.f32 %v12083_v33, %v15133_v49  ;;  %v12933_v55 = vmax.f32 %v12082_v5, %v15134_v58  ;;  %v19675_v6 = vpop.f32.mrb[29].mxu1  ;;  %v12101_v9 = vcombine.high %v12093_v51, %v12093_v51  ;;  %v20592_v49 = vld [vmem:[#allocation15_spill] sm:$0xff] }
 0x615   : > { %v19678_v17 = vadd.f32 %v13683_v8, %v19582_v23  ;;  %v12934_v11 = vmax.f32 %v12084_v31, %v15135_v62  ;;  %v15136_v54 = vrot.slane %v12093_v51, 9  ;;  %v19680_v29 = vpop.f32.mrb[30].mxu1  ;;  %v12102_v53 = vcombine.high %v12100_v38, %v12100_v38  ;;  %v20593_v8 = vld [vmem:[#allocation16_spill] sm:$0xff] }
 0x616   : > { %v15138_v28 = vrot.slane %v12100_v38, 9  ;;  %v11687_v14 = vmax.f32 %v19638_v1, 0.0  ;;  %v15800_v33 = vadd.f32 %v19508_v57, %v20590_v59  ;;  %v19685_v5 = vpop.f32.mrb[31].mxu1  ;;  %v15137_v21 = vrot.slane %v12101_v9, 9 }
 0x617   : > { %20589 = vst [vmem:[#allocation29_spill] sm:$0xff] %v19678_v17  ;;  %v12935_v20 = vmax.f32 %v12093_v51, %v15136_v54  ;;  %v15802_v23 = vadd.f32 %v19513_v37, %v20591_v60  ;;  %v15804_v31 = vadd.f32 %v19519_v3, %v20592_v49  ;;  %v15139_v58 = vrot.slane %v12102_v53, 9 }
 0x618   : > { %v12937_v36 = vmax.f32 %v12100_v38, %v15138_v28  ;;  %v11688_v62 = vmax.f32 %v15800_v33, 0.0  ;;  %v15806_v27 = vadd.f32 %v19532_v40, %v20593_v8  ;;  %v12936_v1 = vmax.f32 %v12101_v9, %v15137_v21 }
 0x619   : > { %v13027_v17 = vmax.f32 %v12931_v26, %v12935_v20  ;;  %v11689_v41 = vmax.f32 %v15802_v23, 0.0  ;;  %v11690_v57 = vmax.f32 %v15804_v31, 0.0  ;;  %v12938_v59 = vmax.f32 %v12102_v53, %v15139_v58 }
 0x61a   : > { %v13029_v48 = vmax.f32 %v12933_v55, %v12937_v36  ;;  %v12103_v0 = vcombine.low %v11687_v14, %v11688_v62  ;;  %v12104_v51 = vcombine.high %v11687_v14, %v11688_v62  ;;  %v13028_v54 = vmax.f32 %v12932_v50, %v12936_v1 }
 0x61b   : > { %v13382_v37 = vrot.slane %v13027_v17, %v16841_v56  ;;  %v13386_v60 = vrot.slane %v13027_v17, %v19327_v46  ;;  %v12121_v3 = vcombine.low %v11689_v41, %v11690_v57  ;;  %v13030_v49 = vmax.f32 %v12934_v11, %v12938_v59 }
 0x61c   : > { %v13398_v38 = vrot.slane %v13029_v48, %v16841_v56  ;;  %v13402_v28 = vrot.slane %v13029_v48, %v19327_v46  ;;  %v12111_v40 = vrot.slane %v12103_v0, %v20574_v52  ;;  %v13390_v26 = vrot.slane %v13028_v54, %v16841_v56 }
 0x61d   : > { %v13394_v9 = vrot.slane %v13028_v54, %v19327_v46  ;;  %v12118_v55 = vrot.slane %v12104_v51, %v20574_v52  ;;  %v12122_v53 = vcombine.high %v11689_v41, %v11690_v57  ;;  %v13406_v50 = vrot.slane %v13030_v49, %v16841_v56 }
 0x61e   : > { %v13410_v14 = vrot.slane %v13030_v49, %v19327_v46  ;;  %v12119_v17 = vcombine.high %v12111_v40, %v12111_v40  ;;  %v15140_v33 = vrot.slane %v12111_v40, 9  ;;  %v13691_v11 = vsel %vm8073_vm0, %v13390_v26, %v13382_v37  ;;  %v20594_v37 = vld [vmem:[#allocation17_spill] sm:$0xff]  ;;  %v20595_v49 = vld [vmem:[#allocation18_spill] sm:$0xff] }
 0x61f   : > { %v13698_v21 = vsel %vm8073_vm0, %v13394_v9, %v13386_v60  ;;  %v12120_v48 = vcombine.high %v12118_v55, %v12118_v55  ;;  %v15142_v20 = vrot.slane %v12118_v55, 9  ;;  %v13692_v0 = vsel %vm8075_vm1, %v13398_v38, %v13691_v11 }
 0x620   : > { %v13699_v23 = vsel %vm8075_vm1, %v13402_v28, %v13698_v21  ;;  %v15141_v31 = vrot.slane %v12119_v17, 9  ;;  %v12939_v58 = vmax.f32 %v12111_v40, %v15140_v33  ;;  %v13693_v41 = vsel %vm8077_vm2, %v13406_v50, %v13692_v0  ;;  %v20596_v28 = vld [vmem:[#allocation19_spill] sm:$0xff]  ;;  %v20597_v33 = vld [vmem:[#allocation20_spill] sm:$0xff] }
 0x621   : > { %v13700_v36 = vsel %vm8077_vm2, %v13410_v14, %v13699_v23  ;;  %v15143_v62 = vrot.slane %v12120_v48, 9  ;;  %v12941_v8 = vmax.f32 %v12118_v55, %v15142_v20  ;;  %v12129_v57 = vrot.slane %v12121_v3, %v20574_v52 }
 0x622   : > { %v12940_v1 = vmax.f32 %v12119_v17, %v15141_v31  ;;  %v12136_v59 = vrot.slane %v12122_v53, %v20574_v52  ;;  %v11691_v51 = vmax.f32 %v15806_v27, 0.0  ;;  %v15808_v60 = vadd.f32 %v19540_v16, %v20594_v37 }
 0x623   : > { %v12942_v54 = vmax.f32 %v12120_v48, %v15143_v62  ;;  %v15810_v38 = vadd.f32 %v19542_v34, %v20595_v49  ;;  %v15812_v40 = vadd.f32 %v19544_v47, %v20596_v28  ;;  %v12137_v26 = vcombine.high %v12129_v57, %v12129_v57 }
 0x624   : > { %v12138_v9 = vcombine.high %v12136_v59, %v12136_v59  ;;  %v15144_v50 = vrot.slane %v12129_v57, 9  ;;  %v15146_v55 = vrot.slane %v12136_v59, 9  ;;  %v11692_v14 = vmax.f32 %v15808_v60, 0.0 }
 0x625   : > { %v11693_v17 = vmax.f32 %v15810_v38, 0.0  ;;  %v11694_v3 = vmax.f32 %v15812_v40, 0.0  ;;  %v19719_v27 = vadd.f32 %v19558_v2, %v20597_v33  ;;  %v15145_v53 = vrot.slane %v12137_v26, 9 }
 0x626   : > { %v15147_v11 = vrot.slane %v12138_v9, 9  ;;  %v12943_v16 = vmax.f32 %v12129_v57, %v15144_v50  ;;  %v12945_v21 = vmax.f32 %v12136_v59, %v15146_v55  ;;  %v12139_v48 = vcombine.low %v11691_v51, %v11692_v14 }
 0x627   : > { %v12140_v34 = vcombine.high %v11691_v51, %v11692_v14  ;;  %v12157_v20 = vcombine.low %v11693_v17, %v11694_v3  ;;  %v12158_v0 = vcombine.high %v11693_v17, %v11694_v3  ;;  %v12944_v47 = vmax.f32 %v12137_v26, %v15145_v53 }
 0x628   : > { %v12946_v23 = vmax.f32 %v12138_v9, %v15147_v11  ;;  %v13031_v31 = vmax.f32 %v12939_v58, %v12943_v16  ;;  %v13033_v62 = vmax.f32 %v12941_v8, %v12945_v21  ;;  %v13250_v37 = vrot.slane %v19464_v45, %v19327_v46 }
 0x629   : > { %v12147_v60 = vrot.slane %v12139_v48, %v20574_v52  ;;  %v12154_v2 = vrot.slane %v12140_v34, %v20574_v52  ;;  %v12165_v49 = vrot.slane %v12157_v20, %v20574_v52  ;;  %v13032_v38 = vmax.f32 %v12940_v1, %v12944_v47 }
 0x62a   : > { %v19726_v57 = vmax.f32 %v12942_v54, %v12946_v23  ;;  %v13414_v59 = vrot.slane %v13031_v31, %v16841_v56  ;;  %v13418_v51 = vrot.slane %v13031_v31, %v19327_v46  ;;  %v13430_v28 = vrot.slane %v13033_v62, %v16841_v56 }
 0x62b   : > { %v12155_v58 = vcombine.high %v12147_v60, %v12147_v60  ;;  %v12156_v8 = vcombine.high %v12154_v2, %v12154_v2  ;;  %v12172_v40 = vrot.slane %v12158_v0, %v20574_v52  ;;  %v13422_v26 = vrot.slane %v13032_v38, %v16841_v56 }
 0x62c   : > { %v13426_v9 = vrot.slane %v13032_v38, %v19327_v46  ;;  %v13434_v50 = vrot.slane %v13033_v62, %v19327_v46  ;;  %v13438_v1 = vrot.slane %v19726_v57, %v16841_v56  ;;  %v13694_v54 = vsel %vm8079_vm3, %v13414_v59, %v13693_v41  ;;  %v20598_v59 = vld [vmem:[#allocation21_spill] sm:$0xff] }
 0x62d   : > { %v13701_v55 = vsel %vm8079_vm3, %v13418_v51, %v13700_v36  ;;  %v15148_v14 = vrot.slane %v12147_v60, 9  ;;  %v15149_v17 = vrot.slane %v12155_v58, 9  ;;  %v13695_v3 = vsel %vm8081_vm4, %v13422_v26, %v13694_v54 }
 0x62e   : > { %v13702_v33 = vsel %vm8081_vm4, %v13426_v9, %v13701_v55  ;;  %v15150_v53 = vrot.slane %v12154_v2, 9  ;;  %v15151_v11 = vrot.slane %v12156_v8, 9  ;;  %v13696_v16 = vsel %vm8083_vm5, %v13430_v28, %v13695_v3  ;;  %v20599_v28 = vld [vmem:[#allocation22_spill] sm:$0xff] }
 0x62f   : > { %v19743_v21 = vsel %vm8083_vm5, %v13434_v50, %v13702_v33  ;;  %v12947_v48 = vmax.f32 %v12147_v60, %v15148_v14  ;;  %v12948_v34 = vmax.f32 %v12155_v58, %v15149_v17  ;;  %v19746_v20 = vsel %vm8085_vm6, %v13438_v1, %v13696_v16  ;;  %v20600_v60 = vld [vmem:[#allocation23_spill] sm:$0xff] }
 0x630   : > { %v12949_v41 = vmax.f32 %v12154_v2, %v15150_v53  ;;  %v12950_v36 = vmax.f32 %v12156_v8, %v15151_v11  ;;  %v12173_v0 = vcombine.high %v12165_v49, %v12165_v49  ;;  %v12174_v47 = vcombine.high %v12172_v40, %v12172_v40  ;;  %v20601_v8 = vld [vmem:[#allocation33_spill] sm:$0xff] }
 0x631   : > { %v15152_v23 = vrot.slane %v12165_v49, 9  ;;  %v15154_v31 = vrot.slane %v12172_v40, 9  ;;  %v11695_v62 = vmax.f32 %v19719_v27, 0.0  ;;  %v15816_v51 = vadd.f32 %v19562_v44, %v20598_v59 }
 0x632   : > { %v15153_v38 = vrot.slane %v12173_v0, 9  ;;  %v15818_v26 = vadd.f32 %v19569_v32, %v20599_v28  ;;  %v15820_v58 = vadd.f32 %v19573_v15, %v20600_v60  ;;  %v15155_v9 = vrot.slane %v12174_v47, 9 }
 0x633   : > { %v12951_v50 = vmax.f32 %v12165_v49, %v15152_v23  ;;  %v12953_v2 = vmax.f32 %v12172_v40, %v15154_v31  ;;  %v15822_v1 = vadd.f32 %v19591_v12, %v20601_v8  ;;  %v11696_v55 = vmax.f32 %v15816_v51, 0.0 }
 0x634   : > { %v12952_v54 = vmax.f32 %v12173_v0, %v15153_v38  ;;  %v11697_v14 = vmax.f32 %v15818_v26, 0.0  ;;  %v11698_v27 = vmax.f32 %v15820_v58, 0.0  ;;  %v12954_v17 = vmax.f32 %v12174_v47, %v15155_v9 }
 0x635   : > { %v13035_v3 = vmax.f32 %v12947_v48, %v12951_v50  ;;  %v13037_v33 = vmax.f32 %v12949_v41, %v12953_v2  ;;  %v11699_v44 = vmax.f32 %v15822_v1, 0.0  ;;  %v12175_v11 = vcombine.low %v11695_v62, %v11696_v55 }
 0x636   : > { %v13036_v53 = vmax.f32 %v12948_v34, %v12952_v54  ;;  %v12176_v32 = vcombine.high %v11695_v62, %v11696_v55  ;;  %v12193_v16 = vcombine.low %v11697_v14, %v11698_v27  ;;  %v13038_v59 = vmax.f32 %v12950_v36, %v12954_v17  ;;  %v20602_v17 = vld [vmem:[#allocation34_spill] sm:$0xff] }
 0x637   : > { %v13446_v15 = vrot.slane %v13035_v3, %v16841_v56  ;;  %v13450_v49 = vrot.slane %v13035_v3, %v19327_v46  ;;  %v13462_v40 = vrot.slane %v13037_v33, %v16841_v56  ;;  %v13466_v47 = vrot.slane %v13037_v33, %v19327_v46  ;;  %v20603_v33 = vld [vmem:[#allocation35_spill] sm:$0xff] }
 0x638   : > { %v13454_v12 = vrot.slane %v13036_v53, %v16841_v56  ;;  %v13458_v0 = vrot.slane %v13036_v53, %v19327_v46  ;;  %v12183_v48 = vrot.slane %v12175_v11, %v20574_v52  ;;  %v13470_v34 = vrot.slane %v13038_v59, %v16841_v56  ;;  %v20604_v11 = vld [vmem:[#allocation36_spill] sm:$0xff] }
 0x639   : > { %v13474_v41 = vrot.slane %v13038_v59, %v19327_v46  ;;  %v12190_v36 = vrot.slane %v12176_v32, %v20574_v52  ;;  %v12194_v23 = vcombine.high %v11697_v14, %v11698_v27  ;;  %v12201_v55 = vrot.slane %v12193_v16, %v20574_v52  ;;  %v13829_v59 = vld [vmem:[%s20451_s5 + $0x8] sm:$0xff]  ;;  %v13831_v16 = vld [vmem:[%s20451_s5 + $0x18] sm:$0xff] }
 0x63a   : > { %v13705_v31 = vsel %vm8073_vm0, %v13454_v12, %v13446_v15  ;;  %v13712_v62 = vsel %vm8073_vm0, %v13458_v0, %v13450_v49  ;;  %v12191_v38 = vcombine.high %v12183_v48, %v12183_v48  ;;  %v15156_v51 = vrot.slane %v12183_v48, 9 }
 0x63b   : > { %v13706_v28 = vsel %vm8075_vm1, %v13462_v40, %v13705_v31  ;;  %v13713_v26 = vsel %vm8075_vm1, %v13466_v47, %v13712_v62  ;;  %v12192_v60 = vcombine.high %v12190_v36, %v12190_v36  ;;  %v15158_v58 = vrot.slane %v12190_v36, 9 }
 0x63c   : > { %v13707_v9 = vsel %vm8077_vm2, %v13470_v34, %v13706_v28  ;;  %v13714_v50 = vsel %vm8077_vm2, %v13474_v41, %v13713_v26  ;;  %v15157_v2 = vrot.slane %v12191_v38, 9  ;;  %v12955_v8 = vmax.f32 %v12183_v48, %v15156_v51 }
 0x63d   : > { %v15159_v1 = vrot.slane %v12192_v60, 9  ;;  %v12957_v54 = vmax.f32 %v12190_v36, %v15158_v58  ;;  %v12208_v14 = vrot.slane %v12194_v23, %v20574_v52  ;;  %v15824_v3 = vadd.f32 %v19597_v13, %v20602_v17 }
 0x63e   : > { %v12956_v27 = vmax.f32 %v12191_v38, %v15157_v2  ;;  %v15826_v53 = vadd.f32 %v19599_v22, %v20603_v33  ;;  %v15828_v32 = vadd.f32 %v19601_v30, %v20604_v11  ;;  %v12209_v49 = vcombine.high %v12201_v55, %v12201_v55 }
 0x63f   : > { %v12958_v15 = vmax.f32 %v12192_v60, %v15159_v1  ;;  %v12210_v40 = vcombine.high %v12208_v14, %v12208_v14  ;;  %v15160_v12 = vrot.slane %v12201_v55, 9  ;;  %v15162_v0 = vrot.slane %v12208_v14, 9 }
 0x640   : > { %v11700_v13 = vmax.f32 %v15824_v3, 0.0  ;;  %v11701_v47 = vmax.f32 %v15826_v53, 0.0  ;;  %v11702_v48 = vmax.f32 %v15828_v32, 0.0  ;;  %v15161_v22 = vrot.slane %v12209_v49, 9 }
 0x641   : > { %v15163_v34 = vrot.slane %v12210_v40, 9  ;;  %v12959_v41 = vmax.f32 %v12201_v55, %v15160_v12  ;;  %v15597_v30 = vpack.c.bf16 %v13831_v16, %v13829_v59  ;;  %v12961_v36 = vmax.f32 %v12208_v14, %v15162_v0 }
 0x642   : > { %v12211_v23 = vcombine.low %v11699_v44, %v11700_v13  ;;  %v12212_v31 = vcombine.high %v11699_v44, %v11700_v13  ;;  %v12229_v62 = vcombine.low %v11701_v47, %v11702_v48  ;;  %v12960_v38 = vmax.f32 %v12209_v49, %v15161_v22 }
 0x643   : > { %v12962_v51 = vmax.f32 %v12210_v40, %v15163_v34  ;;  %v13039_v28 = vmax.f32 %v12955_v8, %v12959_v41  ;;  %v12230_v26 = vcombine.high %v11701_v47, %v11702_v48  ;;  %15598 = vmatprep.subr.bf16.mxu0 %v15597_v30  ;;  %v13314_v60 = vrot.slane %v19554_v61, %v19327_v46  ;;  %v13828_v47 = vld [vmem:[%s20451_s5] sm:$0xff]  ;;  %v13830_v48 = vld [vmem:[%s20451_s5 + $0x10] sm:$0xff]  ;;  %v13833_v41 = vld [vmem:[%s20451_s5 + $0x28] sm:$0xff] }
 0x644   : > { %v13041_v58 = vmax.f32 %v12957_v54, %v12961_v36  ;;  %v12219_v2 = vrot.slane %v12211_v23, %v20574_v52  ;;  %v12226_v1 = vrot.slane %v12212_v31, %v20574_v52  ;;  %v13040_v17 = vmax.f32 %v12956_v27, %v12960_v38  ;;  %v13835_v30 = vld [vmem:[%s20451_s5 + $0x38] sm:$0xff]  ;;  %v13832_v38 = vld [vmem:[%s20451_s5 + $0x20] sm:$0xff] }
 0x645   : > { %v19791_v55 = vmax.f32 %v12958_v15, %v12962_v51  ;;  %v13478_v14 = vrot.slane %v13039_v28, %v16841_v56  ;;  %v13482_v44 = vrot.slane %v13039_v28, %v19327_v46  ;;  %v12237_v53 = vrot.slane %v12229_v62, %v20574_v52  ;;  %v13834_v51 = vld [vmem:[%s20451_s5 + $0x30] sm:$0xff] }
 0x646   : > { %v13494_v3 = vrot.slane %v13041_v58, %v16841_v56  ;;  %v12227_v8 = vcombine.high %v12219_v2, %v12219_v2  ;;  %v12228_v33 = vcombine.high %v12226_v1, %v12226_v1  ;;  %v13486_v11 = vrot.slane %v13040_v17, %v16841_v56 }
 0x647   : > { %v13490_v54 = vrot.slane %v13040_v17, %v19327_v46  ;;  %v13498_v32 = vrot.slane %v13041_v58, %v19327_v46  ;;  %v13502_v27 = vrot.slane %v19791_v55, %v16841_v56  ;;  %v13708_v59 = vsel %vm8079_vm3, %v13478_v14, %v13707_v9  ;;  %v20605_v17 = vld [vmem:[#allocation37_spill] sm:$0xff] }
 0x648   : > { %v13715_v16 = vsel %vm8079_vm3, %v13482_v44, %v13714_v50  ;;  %v15164_v15 = vrot.slane %v12219_v2, 9  ;;  %v15165_v49 = vrot.slane %v12227_v8, 9  ;;  %v13709_v40 = vsel %vm8081_vm4, %v13486_v11, %v13708_v59  ;;  %v13839_v11 = vld [vmem:[%s20451_s5 + $0x58] sm:$0xff] }
 0x649   : > { %v13716_v12 = vsel %vm8081_vm4, %v13490_v54, %v13715_v16  ;;  %v15166_v0 = vrot.slane %v12226_v1, 9  ;;  %v15167_v13 = vrot.slane %v12228_v33, 9  ;;  %v13710_v9 = vsel %vm8083_vm5, %v13494_v3, %v13709_v40 }
 0x64a   : > { %v19814_v50 = vsel %vm8083_vm5, %v13498_v32, %v13716_v12  ;;  %v12963_v22 = vmax.f32 %v12219_v2, %v15164_v15  ;;  %v12964_v34 = vmax.f32 %v12227_v8, %v15165_v49  ;;  %v19823_v36 = vsel %vm8085_vm6, %v13502_v27, %v13710_v9  ;;  %v20606_v8 = vld [vmem:[#allocation38_spill] sm:$0xff]  ;;  %v20607_v49 = vld [vmem:[#allocation39_spill] sm:$0xff] }
 0x64b   : > { %v12965_v23 = vmax.f32 %v12226_v1, %v15166_v0  ;;  %v12966_v31 = vmax.f32 %v12228_v33, %v15167_v13  ;;  %v12244_v62 = vrot.slane %v12230_v26, %v20574_v52  ;;  %v12245_v28 = vcombine.high %v12237_v53, %v12237_v53  ;;  %v13837_v33 = vld [vmem:[%s20451_s5 + $0x48] sm:$0xff]  ;;  %v20608_v0 = vld [vmem:[#allocation40_spill] sm:$0xff] }
 0x64c   : > { %v15168_v58 = vrot.slane %v12237_v53, 9  ;;  %v15599_v2 = vpack.c.bf16 %v13830_v48, %v13828_v47  ;;  %v15830_v14 = vadd.f32 %v19613_v24, %v20605_v17  ;;  %v15601_v1 = vpack.c.bf16 %v13835_v30, %v13833_v41 }
 0x64d   : > { %v12246_v44 = vcombine.high %v12244_v62, %v12244_v62  ;;  %v15170_v3 = vrot.slane %v12244_v62, 9  ;;  %v15832_v26 = vadd.f32 %v19617_v18, %v20606_v8  ;;  %v15169_v54 = vrot.slane %v12245_v28, 9 }
 0x64e   : > { %v12967_v32 = vmax.f32 %v12237_v53, %v15168_v58  ;;  %15600 = vmatpush1.bf16.msra.mxu0 %v15599_v2  ;;  %v11703_v27 = vmax.f32 %v15830_v14, 0.0  ;;  %v15603_v59 = vpack.c.bf16 %v13834_v51, %v13832_v38  ;;  %v15834_v18 = vadd.f32 %v19621_v7, %v20607_v49 }
 0x64f   : > { %v15171_v24 = vrot.slane %v12246_v44, 9  ;;  %v12969_v16 = vmax.f32 %v12244_v62, %v15170_v3  ;;  %15602 = vmatprep.subr.bf16.mxu0 %v15601_v1  ;;  %v11704_v15 = vmax.f32 %v15832_v26, 0.0  ;;  %v12968_v40 = vmax.f32 %v12245_v28, %v15169_v54 }
 0x650   : > { %v13043_v12 = vmax.f32 %v12963_v22, %v12967_v32  ;;  %v15836_v13 = vadd.f32 %v19626_v35, %v20608_v0  ;;  %v15605_v47 = vpack.c.bf16 %v13839_v11, %v13837_v33  ;;  %v11705_v51 = vmax.f32 %v15834_v18, 0.0  ;;  %v13836_v33 = vld [vmem:[%s20451_s5 + $0x40] sm:$0xff]  ;;  %v13838_v11 = vld [vmem:[%s20451_s5 + $0x50] sm:$0xff] }
 0x651   : > { %v12970_v48 = vmax.f32 %v12246_v44, %v15171_v24  ;;  %v13045_v9 = vmax.f32 %v12965_v23, %v12969_v16  ;;  %v12247_v41 = vcombine.low %v11703_v27, %v11704_v15  ;;  %v12248_v53 = vcombine.high %v11703_v27, %v11704_v15  ;;  %v13841_v24 = vld [vmem:[%s20451_s5 + $0x68] sm:$0xff]  ;;  %v13843_v16 = vld [vmem:[%s20451_s5 + $0x78] sm:$0xff]  ;;  %v13842_v0 = vld [vmem:[%s20451_s5 + $0x70] sm:$0xff] }
 0x652   : > { %v13044_v30 = vmax.f32 %v12964_v34, %v12968_v40  ;;  %v13510_v38 = vrot.slane %v13043_v12, %v16841_v56  ;;  %v13514_v62 = vrot.slane %v13043_v12, %v19327_v46  ;;  %15604 = vmatpush1.bf16.msra.mxu0 %v15603_v59  ;;  %v11706_v2 = vmax.f32 %v15836_v13, 0.0  ;;  %v13840_v12 = vld [vmem:[%s20451_s5 + $0x60] sm:$0xff] }
 0x653   : > { %v13046_v58 = vmax.f32 %v12966_v31, %v12970_v48  ;;  %v13526_v7 = vrot.slane %v13045_v9, %v16841_v56  ;;  %v13530_v22 = vrot.slane %v13045_v9, %v19327_v46  ;;  %v12255_v28 = vrot.slane %v12247_v41, %v20574_v52  ;;  %15606 = vmatprep.subr.bf16.mxu0 %v15605_v47  ;;  %v13845_v41 = vld [vmem:[%s20451_s5 + $0x88] sm:$0xff] }
 0x654   : > { %v13518_v35 = vrot.slane %v13044_v30, %v16841_v56  ;;  %v13522_v23 = vrot.slane %v13044_v30, %v19327_v46  ;;  %v12262_v34 = vrot.slane %v12248_v53, %v20574_v52  ;;  %v12265_v47 = vcombine.low %v11705_v51, %v11706_v2  ;;  %v13847_v53 = vld [vmem:[%s20451_s5 + $0x98] sm:$0xff] }
 0x655   : > { %v13534_v17 = vrot.slane %v13046_v58, %v16841_v56  ;;  %v13538_v14 = vrot.slane %v13046_v58, %v19327_v46  ;;  %v12263_v44 = vcombine.high %v12255_v28, %v12255_v28  ;;  %v15172_v31 = vrot.slane %v12255_v28, 9 }
 0x656   : > { %v13719_v3 = vsel %vm8073_vm0, %v13518_v35, %v13510_v38  ;;  %v13726_v1 = vsel %vm8073_vm0, %v13522_v23, %v13514_v62  ;;  %v12264_v8 = vcombine.high %v12262_v34, %v12262_v34  ;;  %v15174_v26 = vrot.slane %v12262_v34, 9  ;;  %v20609_v38 = vld [vmem:[#allocation41_spill] sm:$0xff]  ;;  %v20611_v23 = vld [vmem:[#allocation43_spill] sm:$0xff] }
 0x657   : > { %v13720_v54 = vsel %vm8075_vm1, %v13526_v7, %v13719_v3  ;;  %v13727_v32 = vsel %vm8075_vm1, %v13530_v22, %v13726_v1  ;;  %v15173_v27 = vrot.slane %v12263_v44, 9  ;;  %v12971_v59 = vmax.f32 %v12255_v28, %v15172_v31  ;;  %v20610_v7 = vld [vmem:[#allocation42_spill] sm:$0xff] }
 0x658   : > { %v19873_v15 = vsel %vm8077_vm2, %v13534_v17, %v13720_v54  ;;  %v19876_v49 = vsel %vm8077_vm2, %v13538_v14, %v13727_v32  ;;  %v15175_v18 = vrot.slane %v12264_v8, 9  ;;  %v12973_v40 = vmax.f32 %v12262_v34, %v15174_v26  ;;  %v20612_v14 = vld [vmem:[#allocation44_spill] sm:$0xff] }
 0x659   : > { %v12972_v13 = vmax.f32 %v12263_v44, %v15173_v27  ;;  %v12266_v48 = vcombine.high %v11705_v51, %v11706_v2  ;;  %v15607_v9 = vpack.c.bf16 %v13838_v11, %v13836_v33  ;;  %v15838_v62 = vadd.f32 %v19640_v25, %v20609_v38 }
 0x65a   : > { %v12974_v30 = vmax.f32 %v12264_v8, %v15175_v18  ;;  %v15609_v58 = vpack.c.bf16 %v13843_v16, %v13841_v24  ;;  %v15840_v22 = vadd.f32 %v19642_v63, %v20610_v7  ;;  %v12273_v28 = vrot.slane %v12265_v47, %v20574_v52 }
 0x65b   : > { %v12280_v51 = vrot.slane %v12266_v48, %v20574_v52  ;;  %15608 = vmatpush1.bf16.msra.mxu0 %v15607_v9  ;;  %v15611_v35 = vpack.c.bf16 %v13842_v0, %v13840_v12  ;;  %v15842_v34 = vadd.f32 %v19646_v4, %v20611_v23  ;;  %v11707_v2 = vmax.f32 %v15838_v62, 0.0 }
 0x65c   : > { %15610 = vmatprep.subr.bf16.mxu0 %v15609_v58  ;;  %v11708_v17 = vmax.f32 %v15840_v22, 0.0  ;;  %v15844_v44 = vadd.f32 %v19652_v42, %v20612_v14  ;;  %v15613_v25 = vpack.c.bf16 %v13847_v53, %v13845_v41  ;;  %v12281_v31 = vcombine.high %v12273_v28, %v12273_v28 }
 0x65d   : > { %v12282_v3 = vcombine.high %v12280_v51, %v12280_v51  ;;  %v15176_v1 = vrot.slane %v12273_v28, 9  ;;  %v15178_v63 = vrot.slane %v12280_v51, 9  ;;  %v11709_v33 = vmax.f32 %v15842_v34, 0.0  ;;  %v13844_v34 = vld [vmem:[%s20451_s5 + $0x80] sm:$0xff] }
 0x65e   : > { %v12283_v8 = vcombine.low %v11707_v2, %v11708_v17  ;;  %v12284_v26 = vcombine.high %v11707_v2, %v11708_v17  ;;  %v11710_v11 = vmax.f32 %v15844_v44, 0.0  ;;  %v15177_v54 = vrot.slane %v12281_v31, 9  ;;  %v13846_v2 = vld [vmem:[%s20451_s5 + $0x90] sm:$0xff] }
 0x65f   : > { %v15179_v32 = vrot.slane %v12282_v3, 9  ;;  %v12975_v27 = vmax.f32 %v12273_v28, %v15176_v1  ;;  %v12977_v24 = vmax.f32 %v12280_v51, %v15178_v63  ;;  %15612 = vmatpush1.bf16.msra.mxu0 %v15611_v35  ;;  %v20621_v61 = vrot.slane %v19654_v19, %v19327_v46 }
 0x660   : > { %v12291_v4 = vrot.slane %v12283_v8, %v20574_v52  ;;  %v12298_v16 = vrot.slane %v12284_v26, %v20574_v52  ;;  %v12301_v18 = vcombine.low %v11709_v33, %v11710_v11  ;;  %v12302_v42 = vcombine.high %v11709_v33, %v11710_v11  ;;  %15614 = vmatprep.subr.bf16.mxu0 %v15613_v25 }
 0x661   : > { %v12976_v12 = vmax.f32 %v12281_v31, %v15177_v54  ;;  %v12978_v0 = vmax.f32 %v12282_v3, %v15179_v32  ;;  %v13047_v47 = vmax.f32 %v12971_v59, %v12975_v27  ;;  %v19902_v48 = vmax.f32 %v12973_v40, %v12977_v24  ;;  %v13849_v31 = vld [vmem:[%s20451_s5 + $0xa8] sm:$0xff]  ;;  %v13851_v3 = vld [vmem:[%s20451_s5 + $0xb8] sm:$0xff]  ;;  %v20613_v32 = vld [vmem:[#allocation45_spill] sm:$0xff] }
 0x662   : > { %v12299_v9 = vcombine.high %v12291_v4, %v12291_v4  ;;  %v12300_v41 = vcombine.high %v12298_v16, %v12298_v16  ;;  %v15180_v53 = vrot.slane %v12291_v4, 9  ;;  %v15182_v38 = vrot.slane %v12298_v16, 9 }
 0x663   : > { %v19904_v62 = vmax.f32 %v12972_v13, %v12976_v12  ;;  %v19906_v58 = vmax.f32 %v12974_v30, %v12978_v0  ;;  %v13542_v7 = vrot.slane %v13047_v47, %v16841_v56  ;;  %v13546_v22 = vrot.slane %v13047_v47, %v19327_v46  ;;  %v13853_v0 = vld [vmem:[%s20451_s5 + $0xc8] sm:$0xff]  ;;  %v13855_v47 = vld [vmem:[%s20451_s5 + $0xd8] sm:$0xff] }
 0x664   : > { %v15181_v51 = vrot.slane %v12299_v9, 9  ;;  %v13558_v30 = vrot.slane %v19902_v48, %v16841_v56  ;;  %v15183_v23 = vrot.slane %v12300_v41, 9  ;;  %v12979_v25 = vmax.f32 %v12291_v4, %v15180_v53 }
 0x665   : > { %v13550_v13 = vrot.slane %v19904_v62, %v16841_v56  ;;  %v13722_v14 = vsel %vm8079_vm3, %v13542_v7, %v19873_v15  ;;  %v19934_v44 = vsel %vm8079_vm3, %v13546_v22, %v19876_v49  ;;  %v12981_v8 = vmax.f32 %v12298_v16, %v15182_v38  ;;  %v13848_v15 = vld [vmem:[%s20451_s5 + $0xa0] sm:$0xff]  ;;  %v13850_v49 = vld [vmem:[%s20451_s5 + $0xb0] sm:$0xff] }
 0x666   : > { %v12980_v63 = vmax.f32 %v12299_v9, %v15181_v51  ;;  %v12309_v26 = vrot.slane %v12301_v18, %v20574_v52  ;;  %v12316_v11 = vrot.slane %v12302_v42, %v20574_v52  ;;  %v15615_v54 = vpack.c.bf16 %v13846_v2, %v13844_v34  ;;  %v20614_v18 = vld [vmem:[#allocation46_spill] sm:$0xff]  ;;  %v20615_v51 = vld [vmem:[#allocation47_spill] sm:$0xff]  ;;  %v20616_v34 = vld [vmem:[#allocation48_spill] sm:$0xff] }
 0x667   : > { %v13723_v1 = vsel %vm8081_vm4, %v13550_v13, %v13722_v14  ;;  %v15846_v27 = vadd.f32 %v19671_v39, %v20613_v32  ;;  %v15617_v16 = vpack.c.bf16 %v13851_v3, %v13849_v31  ;;  %v15848_v12 = vadd.f32 %v19675_v6, %v20614_v18  ;;  %v13852_v18 = vld [vmem:[%s20451_s5 + $0xc0] sm:$0xff] }
 0x668   : > { %v19951_v33 = vsel %vm8083_vm5, %v13558_v30, %v13723_v1  ;;  %v12317_v24 = vcombine.high %v12309_v26, %v12309_v26  ;;  %v15184_v4 = vrot.slane %v12309_v26, 9  ;;  %v12318_v9 = vcombine.high %v12316_v11, %v12316_v11  ;;  %15616 = vmatpush1.bf16.msra.mxu0 %v15615_v54 }
 0x669   : > { %v15186_v42 = vrot.slane %v12316_v11, 9  ;;  %v11711_v53 = vmax.f32 %v15846_v27, 0.0  ;;  %v15619_v38 = vpack.c.bf16 %v13850_v49, %v13848_v15  ;;  %15618 = vmatprep.subr.bf16.mxu0 %v15617_v16  ;;  %v11712_v22 = vmax.f32 %v15848_v12, 0.0 }
 0x66a   : > { %v15185_v39 = vrot.slane %v12317_v24, 9  ;;  %v12983_v7 = vmax.f32 %v12309_v26, %v15184_v4  ;;  %v15850_v6 = vadd.f32 %v19680_v29, %v20615_v51  ;;  %v15187_v13 = vrot.slane %v12318_v9, 9 }
 0x66b   : > { %v12985_v30 = vmax.f32 %v12316_v11, %v15186_v42  ;;  %v15852_v2 = vadd.f32 %v19685_v5, %v20616_v34  ;;  %v15621_v14 = vpack.c.bf16 %v13855_v47, %v13853_v0  ;;  %v12319_v1 = vcombine.low %v11711_v53, %v11712_v22  ;;  %v13854_v42 = vld [vmem:[%s20451_s5 + $0xd0] sm:$0xff]  ;;  %v20010_v34 = vld [vmem:[%s20451_s5 + $0x118] sm:$0xff] }
 0x66c   : > { %v12984_v31 = vmax.f32 %v12317_v24, %v15185_v39  ;;  %v13051_v3 = vmax.f32 %v12979_v25, %v12983_v7  ;;  %v12320_v32 = vcombine.high %v11711_v53, %v11712_v22  ;;  %v12982_v54 = vmax.f32 %v12300_v41, %v15183_v23  ;;  %15620 = vmatpush1.bf16.msra.mxu0 %v15619_v38  ;;  %v13857_v53 = vld [vmem:[%s20451_s5 + $0xe8] sm:$0xff]  ;;  %v13859_v38 = vld [vmem:[%s20451_s5 + $0xf8] sm:$0xff] }
 0x66d   : > { %v12986_v27 = vmax.f32 %v12318_v9, %v15187_v13  ;;  %v13053_v15 = vmax.f32 %v12981_v8, %v12985_v30  ;;  %v11713_v26 = vmax.f32 %v15850_v6, 0.0  ;;  %v12327_v29 = vrot.slane %v12319_v1, %v20574_v52  ;;  %15622 = vmatprep.subr.bf16.mxu0 %v15621_v14  ;;  %v19995_v6 = vld [vmem:[%s20451_s5 + $0xe0] sm:$0xff]  ;;  %v20000_v13 = vld [vmem:[%s20451_s5 + $0xf0] sm:$0xff]  ;;  %v20005_v30 = vld [vmem:[%s20451_s5 + $0x108] sm:$0xff] }
 0x66e   : > { %v13052_v49 = vmax.f32 %v12980_v63, %v12984_v31  ;;  %v13574_v4 = vrot.slane %v13051_v3, %v16841_v56  ;;  %v11714_v16 = vmax.f32 %v15852_v2, 0.0  ;;  %v13578_v5 = vrot.slane %v13051_v3, %v19327_v46  ;;  %v20015_v2 = vld [vmem:[%s20451_s5 + $0x100] sm:$0xff]  ;;  %v20162_v14 = vld [vmem:[%s20451_s5 + $0x1d8] sm:$0xff] }
 0x66f   : > { %v13054_v11 = vmax.f32 %v12982_v54, %v12986_v27  ;;  %v13590_v24 = vrot.slane %v13053_v15, %v16841_v56  ;;  %v12334_v25 = vrot.slane %v12320_v32, %v20574_v52  ;;  %v13594_v8 = vrot.slane %v13053_v15, %v19327_v46  ;;  %v20024_v32 = vld [vmem:[%s20451_s5 + $0x110] sm:$0xff]  ;;  %v20029_v54 = vld [vmem:[%s20451_s5 + $0x128] sm:$0xff]  ;;  %v20034_v27 = vld [vmem:[%s20451_s5 + $0x138] sm:$0xff] }
 0x670   : > { %v13582_v41 = vrot.slane %v13052_v49, %v16841_v56  ;;  %v13586_v23 = vrot.slane %v13052_v49, %v19327_v46  ;;  %v12335_v63 = vcombine.high %v12327_v29, %v12327_v29  ;;  %v15188_v9 = vrot.slane %v12327_v29, 9 }
 0x671   : > { %v13598_v12 = vrot.slane %v13054_v11, %v16841_v56  ;;  %v13602_v0 = vrot.slane %v13054_v11, %v19327_v46  ;;  %v12336_v47 = vcombine.high %v12334_v25, %v12334_v25  ;;  %v15190_v51 = vrot.slane %v12334_v25, 9 }
 0x672   : > { %v13733_v39 = vsel %vm8073_vm0, %v13582_v41, %v13574_v4  ;;  %v13740_v7 = vsel %vm8073_vm0, %v13586_v23, %v13578_v5  ;;  %v15189_v22 = vrot.slane %v12335_v63, 9  ;;  %v12337_v11 = vcombine.low %v11713_v26, %v11714_v16  ;;  %v20047_v5 = vld [vmem:[%s20451_s5 + $0x120] sm:$0xff]  ;;  %v20057_v41 = vld [vmem:[%s20451_s5 + $0x148] sm:$0xff] }
 0x673   : > { %v13734_v31 = vsel %vm8075_vm1, %v13590_v24, %v13733_v39  ;;  %v13741_v3 = vsel %vm8075_vm1, %v13594_v8, %v13740_v7  ;;  %v15191_v1 = vrot.slane %v12336_v47, 9  ;;  %v20052_v24 = vld [vmem:[%s20451_s5 + $0x130] sm:$0xff]  ;;  %v12987_v23 = vmax.f32 %v12327_v29, %v15188_v9  ;;  %v20062_v39 = vld [vmem:[%s20451_s5 + $0x158] sm:$0xff]  ;;  %v20067_v7 = vld [vmem:[%s20451_s5 + $0x140] sm:$0xff] }
 0x674   : > { %v20039_v49 = vsel %vm8077_vm2, %v13598_v12, %v13734_v31  ;;  %v20042_v4 = vsel %vm8077_vm2, %v13602_v0, %v13741_v3  ;;  %v12338_v8 = vcombine.high %v11713_v26, %v11714_v16  ;;  %v15623_v12 = vpack.c.bf16 %v13854_v42, %v13852_v18  ;;  %v20072_v31 = vld [vmem:[%s20451_s5 + $0x150] sm:$0xff]  ;;  %v20078_v18 = vld [vmem:[%s20451_s5 + $0x168] sm:$0xff]  ;;  %v20083_v9 = vld [vmem:[%s20451_s5 + $0x178] sm:$0xff] }
 0x675   : > { %v15625_v0 = vpack.c.bf16 %v13859_v38, %v13857_v53  ;;  %v12988_v3 = vmax.f32 %v12335_v63, %v15189_v22  ;;  %v12989_v29 = vmax.f32 %v12334_v25, %v15190_v51  ;;  %v12990_v26 = vmax.f32 %v12336_v47, %v15191_v1  ;;  %v20088_v42 = vld [vmem:[%s20451_s5 + $0x160] sm:$0xff]  ;;  %v20100_v38 = vld [vmem:[%s20451_s5 + $0x170] sm:$0xff]  ;;  %v20105_v22 = vld [vmem:[%s20451_s5 + $0x188] sm:$0xff] }
 0x676   : > { %v12345_v16 = vrot.slane %v12337_v11, %v20574_v52  ;;  %v12352_v25 = vrot.slane %v12338_v8, %v20574_v52  ;;  %15624 = vmatpush1.bf16.msra.mxu0 %v15623_v12  ;;  %v15627_v63 = vpack.c.bf16 %v20000_v13, %v19995_v6  ;;  %v15629_v47 = vpack.c.bf16 %v20010_v34, %v20005_v30  ;;  %v20110_v52 = vld [vmem:[%s20451_s5 + $0x198] sm:$0xff]  ;;  %v20119_v34 = vld [vmem:[%s20451_s5 + $0x180] sm:$0xff]  ;;  %v20129_v1 = vld [vmem:[%s20451_s5 + $0x1a8] sm:$0xff] }
 0x677   : > { %v15631_v53 = vpack.c.bf16 %v20024_v32, %v20015_v2  ;;  %15626 = vmatprep.subr.bf16.mxu0 %v15625_v0  ;;  %v15633_v13 = vpack.c.bf16 %v20034_v27, %v20029_v54  ;;  %v15635_v30 = vpack.c.bf16 %v20052_v24, %v20047_v5  ;;  %v20124_v2 = vld [vmem:[%s20451_s5 + $0x190] sm:$0xff]  ;;  %v15637_v27 = vpack.c.bf16 %v20062_v39, %v20057_v41  ;;  %v20138_v5 = vld [vmem:[%s20451_s5 + $0x1b8] sm:$0xff]  ;;  %v20143_v24 = vld [vmem:[%s20451_s5 + $0x1a0] sm:$0xff] }
 0x678   : > { %v12353_v51 = vcombine.high %v12345_v16, %v12345_v16  ;;  %v15192_v6 = vrot.slane %v12345_v16, 9  ;;  %v12354_v32 = vcombine.high %v12352_v25, %v12352_v25  ;;  %v15194_v54 = vrot.slane %v12352_v25, 9  ;;  %v20148_v8 = vld [vmem:[%s20451_s5 + $0x1b0] sm:$0xff]  ;;  %v20157_v11 = vld [vmem:[%s20451_s5 + $0x1c8] sm:$0xff] }
 0x679   : > { %v15649_v17 = vpack.c.bf16 %v20138_v5, %v20129_v1  ;;  %v15651_v40 = vpack.c.bf16 %v20148_v8, %v20143_v24  ;;  %v20624_v19 = vrot.slane %v19904_v62, %v19327_v46  ;;  %v13888_v5 = vld [vmem:[%s20451_s5 + $0x1e0] sm:$0xff] }
 0x67a   : > { %v15193_v12 = vrot.slane %v12353_v51, 9  ;;  %v12991_v41 = vmax.f32 %v12345_v16, %v15192_v6  ;;  %v15195_v15 = vrot.slane %v12354_v32, 9  ;;  %v12993_v35 = vmax.f32 %v12352_v25, %v15194_v54  ;;  %15628 = vmatpush1.bf16.msra.mxu0 %v15627_v63 }
 0x67b   : > { %v15645_v16 = vpack.c.bf16 %v20110_v52, %v20105_v22  ;;  %v15647_v6 = vpack.c.bf16 %v20124_v2, %v20119_v34  ;;  %15630 = vmatprep.subr.bf16.mxu0 %v15629_v47  ;;  %v15653_v25 = vpack.c.bf16 %v20162_v14, %v20157_v11  ;;  %v20617_v63 = vrot.slane %v19369_v10, %v19327_v46  ;;  %v20619_v10 = vld [vmem:[#allocation27_spill] sm:$0xff]  ;;  %v14013_v14 = vld [vmem:[%s20453_s7 + $0x80] sm:$0xff]  ;;  %v14014_v11 = vld [vmem:[%s20453_s7 + $0x88] sm:$0xff] }
 0x67c   : > { %v12992_v39 = vmax.f32 %v12353_v51, %v15193_v12  ;;  %v13055_v0 = vmax.f32 %v12987_v23, %v12991_v41  ;;  %v12994_v59 = vmax.f32 %v12354_v32, %v15195_v15  ;;  %v13057_v28 = vmax.f32 %v12989_v29, %v12993_v35  ;;  %v20618_v12 = vld [vmem:[#allocation25_spill] sm:$0xff] }
 0x67d   : > { %v13648_v54 = vsel %vm8085_vm6, %v20617_v63, %v19390_v43  ;;  %v13662_v35 = vsel %vm8085_vm6, %v13250_v37, %v20618_v12  ;;  %v13676_v43 = vsel %vm8085_vm6, %v13314_v60, %v20619_v10  ;;  %v20629_v10 = vld [vmem:[#allocation29_spill] sm:$0xff] }
 0x67e   : > { %v13056_v51 = vmax.f32 %v12988_v3, %v12992_v39  ;;  %v13606_v23 = vrot.slane %v13055_v0, %v16841_v56  ;;  %v13610_v47 = vrot.slane %v13055_v0, %v19327_v46  ;;  %v13058_v15 = vmax.f32 %v12990_v26, %v12994_v59  ;;  %15632 = vmatpush1.bf16.msra.mxu0 %v15631_v53  ;;  %v20620_v26 = vld [vmem:[#allocation28_spill] sm:$0xff] }
 0x67f   : > { %v13622_v29 = vrot.slane %v13057_v28, %v16841_v56  ;;  %v13626_v32 = vrot.slane %v13057_v28, %v19327_v46  ;;  %15634 = vmatprep.subr.bf16.mxu0 %v15633_v13  ;;  %v13690_v60 = vsel %vm8085_vm6, %v20621_v61, %v20620_v26  ;;  %v20622_v53 = vrot.slane %v19726_v57, %v19327_v46 }
 0x680   : > { %v13614_v3 = vrot.slane %v13056_v51, %v16841_v56  ;;  %v13618_v41 = vrot.slane %v13056_v51, %v19327_v46  ;;  %v13736_v45 = vsel %vm8079_vm3, %v13606_v23, %v20039_v49  ;;  %v13743_v37 = vsel %vm8079_vm3, %v13610_v47, %v20042_v4 }
 0x681   : > { %v13630_v28 = vrot.slane %v13058_v15, %v16841_v56  ;;  %v13634_v59 = vrot.slane %v13058_v15, %v19327_v46  ;;  %v13704_v49 = vsel %vm8085_vm6, %v20622_v53, %v19743_v21  ;;  %v20623_v4 = vrot.slane %v19791_v55, %v19327_v46 }
 0x682   : > { %v13737_v0 = vsel %vm8081_vm4, %v13614_v3, %v13736_v45  ;;  %v13730_v39 = vsel %vm8081_vm4, %v20624_v19, %v19934_v44  ;;  %v13744_v63 = vsel %vm8081_vm4, %v13618_v41, %v13743_v37  ;;  %15636 = vmatpush1.bf16.msra.mxu0 %v15635_v30  ;;  %v20625_v21 = vrot.slane %v19902_v48, %v19327_v46 }
 0x683   : > { %v13718_v13 = vsel %vm8085_vm6, %v20623_v4, %v19814_v50  ;;  %v13738_v57 = vsel %vm8083_vm5, %v13622_v29, %v13737_v0  ;;  %v13745_v55 = vsel %vm8083_vm5, %v13626_v32, %v13744_v63  ;;  %v13770_v23 = vadd.f32 %v13662_v35, %v13648_v54  ;;  %15638 = vmatprep.subr.bf16.mxu0 %v15637_v27  ;;  %v20628_v32 = vld [vmem:[#allocation26_spill] sm:$0xff] }
 0x684   : > { %v13731_v51 = vsel %vm8083_vm5, %v20625_v21, %v13730_v39  ;;  %v20626_v50 = vrot.slane %v19906_v58, %v19327_v46  ;;  %v13746_v44 = vsel %vm8085_vm6, %v13634_v59, %v13745_v55  ;;  %v13784_v47 = vadd.f32 %v13690_v60, %v13676_v43 }
 0x685   : > { %v13798_v12 = vadd.f32 %v13718_v13, %v13704_v49  ;;  %v13771_v15 = vrot.slane %v13770_v23, 4  ;;  %v20627_v48 = vrot.slane %v19906_v58, %v16841_v56  ;;  %v13739_v54 = vsel %vm8085_vm6, %v13630_v28, %v13738_v57 }
 0x686   : > { %v13732_v62 = vsel %vm8085_vm6, %v20626_v50, %v13731_v51  ;;  %v13785_v27 = vrot.slane %v13784_v47, 4  ;;  %v13764_v46 = vrot.slane %v20628_v32, 4  ;;  %v13778_v3 = vrot.slane %v20629_v10, 4 }
 0x687   : > { %v13812_v30 = vadd.f32 %v13746_v44, %v13732_v62  ;;  %v13725_v29 = vsel %vm8085_vm6, %v20627_v48, %v19951_v33  ;;  %v13799_v35 = vrot.slane %v13798_v12, 4  ;;  %v20630_v43 = vpack.c.bf16 %v20072_v31, %v20067_v7 }
 0x688   : > { %v13772_v41 = vadd.f32 %v13771_v15, %v13770_v23  ;;  %v13791_v37 = vadd.f32 %v19823_v36, %v19746_v20  ;;  %v13805_v58 = vadd.f32 %v13739_v54, %v13725_v29  ;;  %v20631_v33 = vpack.c.bf16 %v20083_v9, %v20078_v18 }
 0x689   : > { %15640 = vmatpush1.bf16.msra.mxu0 %v20630_v43  ;;  %v13813_v45 = vrot.slane %v13812_v30, 4  ;;  %v13786_v28 = vadd.f32 %v13785_v27, %v13784_v47  ;;  %v13800_v59 = vadd.f32 %v13799_v35, %v13798_v12  ;;  %v13765_v26 = vadd.f32 %v13764_v46, %v20628_v32  ;;  %v13891_v47 = vld [vmem:[%s20451_s5 + $0x1f8] sm:$0xff] }
 0x68a   : > { %15642 = vmatprep.subr.bf16.mxu0 %v20631_v33  ;;  %v13779_v61 = vadd.f32 %v13778_v3, %v20629_v10  ;;  %v13773_v60 = vrot.slane %v13772_v41, 2  ;;  %v13792_v7 = vrot.slane %v13791_v37, 4  ;;  %v13806_v31 = vrot.slane %v13805_v58, 4 }
 0x68b   : > { %v13814_v53 = vadd.f32 %v13813_v45, %v13812_v30  ;;  %v13787_v49 = vrot.slane %v13786_v28, 2  ;;  %v13801_v0 = vrot.slane %v13800_v59, 2  ;;  %v13766_v4 = vrot.slane %v13765_v26, 2 }
 0x68c   : > { %v13780_v13 = vrot.slane %v13779_v61, 2  ;;  %v20632_v20 = vpack.c.bf16 %v20100_v38, %v20088_v42  ;;  %v13774_v36 = vadd.f32 %v13773_v60, %v13772_v41  ;;  %v13793_v9 = vadd.f32 %v13792_v7, %v13791_v37  ;;  %v13884_v42 = vld [vmem:[%s20451_s5 + $0x1c0] sm:$0xff]  ;;  %v13886_v38 = vld [vmem:[%s20451_s5 + $0x1d0] sm:$0xff] }
 0x68d   : > { %v13815_v18 = vrot.slane %v13814_v53, 2  ;;  %v13807_v19 = vadd.f32 %v13806_v31, %v13805_v58  ;;  %v13788_v39 = vadd.f32 %v13787_v49, %v13786_v28  ;;  %v13802_v63 = vadd.f32 %v13801_v0, %v13800_v59  ;;  %v13890_v37 = vld [vmem:[%s20451_s5 + $0x1f0] sm:$0xff]  ;;  %v13997_v0 = vld [vmem:[%s20453_s7] sm:$0xff] }
 0x68e   : > { %15644 = vmatpush1.bf16.msra.mxu0 %v20632_v20  ;;  %v13767_v57 = vadd.f32 %v13766_v4, %v13765_v26  ;;  %v13781_v21 = vadd.f32 %v13780_v13, %v13779_v61  ;;  %v13775_v51 = vrot.slane %v13774_v36, 1  ;;  %v13794_v23 = vrot.slane %v13793_v9, 2  ;;  %v13998_v4 = vld [vmem:[%s20453_s7 + $0x8] sm:$0xff]  ;;  %v14015_v20 = vld [vmem:[%s20453_s7 + $0x90] sm:$0xff] }
 0x68f   : > { %15646 = vmatprep.subr.bf16.mxu0 %v15645_v16  ;;  %v13816_v55 = vadd.f32 %v13815_v18, %v13814_v53  ;;  %v13808_v50 = vrot.slane %v13807_v19, 2  ;;  %v13789_v62 = vrot.slane %v13788_v39, 1  ;;  %v13803_v44 = vrot.slane %v13802_v63, 1  ;;  %v13889_v16 = vld [vmem:[%s20451_s5 + $0x1e8] sm:$0xff] }
 0x690   : > { %v13768_v22 = vrot.slane %v13767_v57, 1  ;;  %v13782_v52 = vrot.slane %v13781_v21, 1  ;;  %v13776_v12 = vadd.f32 %v13775_v51, %v13774_v36  ;;  %v13795_v30 = vadd.f32 %v13794_v23, %v13793_v9  ;;  %v14016_v36 = vld [vmem:[%s20453_s7 + $0x98] sm:$0xff]  ;;  %v14001_v23 = vld [vmem:[%s20453_s7 + $0x20] sm:$0xff] }
 0x691   : > { %v13817_v15 = vrot.slane %v13816_v55, 1  ;;  %v13809_v48 = vadd.f32 %v13808_v50, %v13807_v19  ;;  %v13790_v29 = vadd.f32 %v13789_v62, %v13788_v39  ;;  %v13804_v54 = vadd.f32 %v13803_v44, %v13802_v63  ;;  %v13999_v39 = vld [vmem:[%s20453_s7 + $0x10] sm:$0xff]  ;;  %v14000_v63 = vld [vmem:[%s20453_s7 + $0x18] sm:$0xff]  ;;  %v14002_v50 = vld [vmem:[%s20453_s7 + $0x28] sm:$0xff] }
 0x692   : > { %15648 = vmatpush1.bf16.msra.mxu0 %v15647_v6  ;;  %v13769_v34 = vadd.f32 %v13768_v22, %v13767_v57  ;;  %v13783_v2 = vadd.f32 %v13782_v52, %v13781_v21  ;;  %v15655_v6 = vpack.c.bf16 %v13886_v38, %v13884_v42  ;;  %v13796_v35 = vrot.slane %v13795_v30, 1  ;;  %v14017_v57 = vld [vmem:[%s20453_s7 + $0xa0] sm:$0xff]  ;;  %v14018_v21 = vld [vmem:[%s20453_s7 + $0xa8] sm:$0xff]  ;;  %v14019_v42 = vld [vmem:[%s20453_s7 + $0xb0] sm:$0xff] }
 0x693   : > { %15650 = vmatprep.subr.bf16.mxu0 %v15649_v17  ;;  %v13818_v27 = vadd.f32 %v13817_v15, %v13816_v55  ;;  %v13810_v32 = vrot.slane %v13809_v48, 1  ;;  %v15657_v46 = vpack.c.bf16 %v13891_v47, %v13889_v16  ;;  %v13823_v10 = vmul.f32 0.0625, %v13790_v29  ;;  %v14020_v38 = vld [vmem:[%s20453_s7 + $0xb8] sm:$0xff]  ;;  %v14003_v22 = vld [vmem:[%s20453_s7 + $0x30] sm:$0xff]  ;;  %v14021_v16 = vld [vmem:[%s20453_s7 + $0xc0] sm:$0xff] }
 0x694   : > { %v13825_v3 = vmul.f32 0.0625, %v13804_v54  ;;  %v13822_v43 = vmul.f32 0.0625, %v13783_v2  ;;  %v13821_v41 = vmul.f32 0.0625, %v13776_v12  ;;  %v13797_v1 = vadd.f32 %v13796_v35, %v13795_v30  ;;  %v14004_v52 = vld [vmem:[%s20453_s7 + $0x38] sm:$0xff]  ;;  %v14022_v47 = vld [vmem:[%s20453_s7 + $0xc8] sm:$0xff]  ;;  %v14005_v30 = vld [vmem:[%s20453_s7 + $0x40] sm:$0xff] }
 0x695   : > { %v13827_v45 = vmul.f32 0.0625, %v13818_v27  ;;  %v13811_v17 = vadd.f32 %v13810_v32, %v13809_v48  ;;  %v13918_v58 = vrot.slane %v13823_v10, 7  ;;  %v13820_v24 = vmul.f32 0.0625, %v13769_v34  ;;  %v14006_v48 = vld [vmem:[%s20453_s7 + $0x48] sm:$0xff]  ;;  %v14023_v29 = vld [vmem:[%s20453_s7 + $0xd0] sm:$0xff]  ;;  %v14024_v54 = vld [vmem:[%s20453_s7 + $0xd8] sm:$0xff] }
 0x696   : > { %15652 = vmatpush1.bf16.msra.mxu0 %v15651_v40  ;;  %v13920_v33 = vrot.slane %v13825_v3, 6  ;;  %v13912_v40 = vrot.slane %v13822_v43, 7  ;;  %v13824_v28 = vmul.f32 0.0625, %v13797_v1  ;;  %v15659_v61 = vpack.c.bf16 %v13890_v37, %v13888_v5  ;;  %v14008_v27 = vld [vmem:[%s20453_s7 + $0x58] sm:$0xff]  ;;  %v14025_v35 = vld [vmem:[%s20453_s7 + $0xe0] sm:$0xff]  ;;  %v14026_v32 = vld [vmem:[%s20453_s7 + $0xe8] sm:$0xff] }
 0x697   : > { %15654 = vmatprep.subr.bf16.mxu0 %v15653_v25  ;;  %v13922_v8 = vrot.slane %v13827_v45, 5  ;;  %v13826_v59 = vmul.f32 0.0625, %v13811_v17  ;;  %v13919_v25 = vsel %vm8073_vm0, %v13918_v58, %v13821_v41  ;;  %v15661_v49 = vpack.c.bf16 %v14014_v11, %v14013_v14  ;;  %v14009_v3 = vld [vmem:[%s20453_s7 + $0x60] sm:$0xff]  ;;  %v14010_v43 = vld [vmem:[%s20453_s7 + $0x68] sm:$0xff]  ;;  %v14027_v45 = vld [vmem:[%s20453_s7 + $0xf0] sm:$0xff] }
 0x698   : > { %v13913_v26 = vsel %vm8073_vm0, %v13912_v40, %v13820_v24  ;;  %v13921_v60 = vsel %vm8075_vm1, %v13920_v33, %v13919_v25  ;;  %v13914_v53 = vrot.slane %v13824_v28, 6  ;;  %v15663_v9 = vpack.c.bf16 %v13998_v4, %v13997_v0  ;;  %v14028_v1 = vld [vmem:[%s20453_s7 + $0xf8] sm:$0xff]  ;;  %v14011_v17 = vld [vmem:[%s20453_s7 + $0x70] sm:$0xff]  ;;  %v13892_v33 = vld [vmem:[%s20452_s6] sm:$0x3] }
 0x699   : > { %v13916_v7 = vrot.slane %v13826_v59, 5  ;;  %v13923_v31 = vsel %vm8077_vm2, %v13922_v8, %v13921_v60  ;;  %v15665_v19 = vpack.c.bf16 %v14016_v36, %v14015_v20  ;;  %v15667_v51 = vpack.c.bf16 %v14000_v63, %v13999_v39  ;;  %v14012_v37 = vld [vmem:[%s20453_s7 + $0x78] sm:$0xff]  ;;  %v20633_v24 = vld [vmem:[#allocation6_spill] sm:$0xff] }
 0x69a   : > { %15656 = vmatpush1.bf16.msra.mxu0 %v15655_v6  ;;  %13990 = vmatprep.mubr.f32.mxu0 %v13923_v31  ;;  %v13915_v13 = vsel %vm8075_vm1, %v13914_v53, %v13913_v26  ;;  %v15669_v55 = vpack.c.bf16 %v14018_v21, %v14017_v57  ;;  %v15671_v62 = vpack.c.bf16 %v14002_v50, %v14001_v23  ;;  %v14007_v6 = vld [vmem:[%s20453_s7 + $0x50] sm:$0xff]  ;;  %v20634_v40 = vsub.s32 1, %v20633_v24 }
 0x69b   : > { %15658 = vmatprep.subr.bf16.mxu0 %v15657_v46  ;;  %v13917_v18 = vsel %vm8077_vm2, %v13916_v7, %v13915_v13  ;;  %v15673_v44 = vpack.c.bf16 %v14020_v38, %v14019_v42  ;;  %v15675_v12 = vpack.c.bf16 %v14004_v52, %v14003_v22  ;;  %v15677_v15 = vpack.c.bf16 %v14022_v47, %v14021_v16 }
 0x69c   : > { %v15679_v34 = vpack.c.bf16 %v14006_v48, %v14005_v30  ;;  %v15681_v2 = vpack.c.bf16 %v14024_v54, %v14023_v29  ;;  %v15683_v46 = vpack.c.bf16 %v14008_v27, %v14007_v6  ;;  %v15685_v10 = vpack.c.bf16 %v14026_v32, %v14025_v35 }
 0x69d   : > { %v15687_v41 = vpack.c.bf16 %v14010_v43, %v14009_v3  ;;  %v15689_v5 = vpack.c.bf16 %v14028_v1, %v14027_v45  ;;  %v15691_v58 = vpack.c.bf16 %v14012_v37, %v14011_v17  ;;  %v13901_v8 = vrot.slane %v13892_v33, %v20634_v40 }
 0x69e   : > { %15660 = vmatpush1.bf16.msra.mxu0 %v15659_v61  ;;  %v13897_v28 = vrot.slane %v13892_v33, %v16841_v56  ;;  %v15196_v61 = vld [vmem:[%s20454_s8] ss:$0 sm:$0xff] }
 0x69f   : > { %15662 = vmatprep.subr.bf16.mxu0 %v15661_v49 }
 0x6a1   : > { %13991 = vmatmul.mubr.f32.vlgmr.msra.gmra.mrb[192].mxu0 %v13917_v18 }
 0x6a2   : > { %15664 = vmatpush3.bf16.msra.mxu0 %v15663_v9 }
 0x6a3   : > { %15666 = vmatprep.subr.bf16.mxu0 %v15665_v19 }
 0x6a6   : > { %15668 = vmatpush3.bf16.msra.mxu0 %v15667_v51 }
 0x6a7   : > { %15670 = vmatprep.subr.bf16.mxu0 %v15669_v55 }
 0x6aa   : > { %15672 = vmatpush3.bf16.msra.mxu0 %v15671_v62 }
 0x6ab   : > { %15674 = vmatprep.subr.bf16.mxu0 %v15673_v44 }
 0x6ae   : > { %15676 = vmatpush3.bf16.msra.mxu0 %v15675_v12 }
 0x6af   : > { %15678 = vmatprep.subr.bf16.mxu0 %v15677_v15 }
 0x6b2   : > { %15680 = vmatpush3.bf16.msra.mxu0 %v15679_v34 }
 0x6b3   : > { %15682 = vmatprep.subr.bf16.mxu0 %v15681_v2 }
 0x6b6   : > { %15684 = vmatpush3.bf16.msra.mxu0 %v15683_v46 }
 0x6b7   : > { %15686 = vmatprep.subr.bf16.mxu0 %v15685_v10 }
 0x6ba   : > { %15688 = vmatpush3.bf16.msra.mxu0 %v15687_v41 }
 0x6bb   : > { %15690 = vmatprep.subr.bf16.mxu0 %v15689_v5 }
 0x6be   : > { %15692 = vmatpush3.bf16.msra.mxu0 %v15691_v58 }
 0x774   : > { %v13992_v59 = vpop.f32.mrb[192].mxu0 }
 0x775   : > { %v13994_v14 = vpop.f32.mrb[193].mxu0  ;;  %v13993_v25 = vadd.f32 %v13992_v59, %v13897_v28 }
 0x776   : > { %v13995_v11 = vadd.f32 %v13994_v14, %v13901_v8 }
 0x778   : > { %14100 = vmatprep.mubr.f32.mxu0 %v13995_v11 }
 0x779   : > { %14101 = vmatmul.mubr.f32.vlgmr.msra.gmra.mrb[194].mxu0 %v13993_v25 }
 0x84c   : > { %v15450_v26 = vpop.f32.mrb[194].mxu0 }
 0x84d   : > { %v15451_v60 = vpop.f32.mrb[195].mxu0 }
 0x84e   : > { %v15452_v53 = vadd.f32 %v15451_v60, %v15450_v26 }
 0x850   : > { %v14103_v7 = vadd.f32 %v15452_v53, %v15196_v61 }
 0x852   : > { %v14106_v31 = vsub.f32 0.0, %v14103_v7 }
 0x854   : > { %v14107_v49 = vmul.f32 1.442695, %v14106_v31 }
 0x856   : > { %16375 = vpow2.f32 %v14107_v49 }
 0x860   : > { %v16376_v56 = vpop.eup %16375 }
 0x861   : > { %v14109_v0 = vadd.f32 1.0, %v16376_v56 }
 0x863   : > { %16377 = vrcp.f32 %v14109_v0 }
 0x86d   : > { %v16378_v4 = vpop.eup %16377 }
 0x86e   : > { %14113 = vst.msk [vmem:[%s328_s21] sm:$0xf] %vm14112_vm7, %v16378_v4 }
 0x86f   : > { %16402 = shalt.err (!%p16399_p3)
}
 0x870   : > { %s16403_s16 = scalar_lea.hbm %s20404_s25, 64  ;;  %s16407_s21 = scalar_lea.hbm %s20455_s9, 128 }
 0x871   : > { %p16404_p4 = scmp.ne.s32.totalorder %s20404_s25, %s16403_s16  ;;  %p16408_p9 = scmp.lt.u32.totalorder %s20404_s25, %s20455_s9 }
 0x872   : > { %p16409_p10 = scmp.lt.u32.totalorder %s16407_s21, %s16403_s16  ;;  %p16411_p12 = scmp.lt.u32.totalorder %s16403_s16, %s20404_s25 }
 0x873   : > { %p16405_p7 = pnand %p16404_p4, %p16545_p5 }
 0x874   : > { %p16410_p11 = por %p16409_p10, %p16408_p9 }
 0x875   : > { %p16406_p8 = pneg %p16405_p7 }
 0x876   : > { %p16412_p13 = por %p16411_p12, %p16410_p11 }
 0x878   : > { %p16413_p0 = pnand %p16412_p13, %p16406_p8 }
 0x87a   : > { %16416 = shalt.err (!%p16413_p0)
}
 0x87b   : > { %16045 = dma.vmem_to_hbm [thread:$0]  (%p16545_p5), %s20406_s22, 64, %s20404_s25, %s14115_s26  }
 0x87c PF: > { %p16051_p1 = scmp.ge.s32.totalorder %s16451_s12, 2  ;;  %s14140_s27 = sand.u32 1, %s16439_s30  }
 0x87d   : > { %s14141_s13 = scalar_lea.sflag [#allocation4], %s14140_s27 }
 0x87e   : > { %p16048_p2 = pnand %p16051_p1, %p16549_p6 }
 0x880   : > { %16434 = dma.done.wait (!%p16048_p2), %s14141_s13, 64  }
 0x881   : > { %16436 = vsyncadd (!%p16048_p2), %s14141_s13, 4294967232  ;;  %p19_p3 = scmp.ge.s32.totalorder %s16532_s15, 4   ;;  %s20635_s30 = smov %s16443_s10 }
 0x882   : > { %s20636_s10 = smov %s16447_s11  ;;  %s20637_s11 = smov %s16543_s18 }
 0x883   : > { %s20638_s12 = smov %s16532_s15  ;;  %21 = sbr.rel (!%p19_p3) target bundleno = 3 (0x3), region = 93 }
 0x88a   :  { %14146 = vsyncpa [#allocation4], 1 }
 0x88b   :  { %14148 = vsyncpa [#allocation4 + $0x1], 1 }

</bundles_post_ra>
